<compile_context>
chip_gen: v7x
topology: tpu7x:2x2x1
jax: 0.10.0
libtpu: 0.0.40
codegen_flags: <defaults>
</compile_context>

<pallas_src>
import jax
import jax.numpy as jnp
from jax.experimental import pallas as pl
from jax.experimental.pallas import tpu as pltpu


def _bottleneck_kernel(x_ref, w1_ref, s1_ref, b1_ref,
                       w2_ref, s2_ref, b2_ref,
                       w3_ref, s3_ref, b3_ref,
                       o_ref, s_ref):
    _, TD, H, W, Cout = o_ref.shape          # per-step output D-tile
    TDp = TD + 2                              # +/- 1 halo plane
    Cin = x_ref.shape[-1]
    P = w1_ref.shape[1]
    Mh = TDp * H * W
    M = TD * H * W

    dt = pl.program_id(1)
    n_dt = pl.num_programs(1)
    # Start plane inside the D-padded input (padded plane p == global plane p-1).
    d0 = pl.multiple_of(dt * TD, TD)

    # ---- conv1 (1x1x1) + bn1 + relu, recomputed on the TD+2 halo planes -----
    x_halo = x_ref[0, pl.ds(d0, TDp)]                       # (TDp,H,W,Cin) bf16
    t1 = jnp.dot(x_halo.reshape(Mh, Cin), w1_ref[...],
                 preferred_element_type=jnp.float32)
    t1 = jnp.maximum(t1 * s1_ref[...] + b1_ref[...], 0.0)   # (Mh, P) f32
    t1f = t1.reshape(TDp, H, W, P)

    # ---- stage into the bf16 scratch with kw folded into lanes --------------
    # s_ref[dd, hp, w, kw*P + c] == t1pad[dd, hp-1, w+kw-1, c] (zero-padded in
    # H, W and at the global D boundaries), so every conv2 tap read below is a
    # full-(W, 3P) slice along the leading (dd, hp) axes only.
    zcol = jnp.zeros((TDp, H, 1, P), jnp.float32)
    left = jnp.concatenate([zcol, t1f[:, :, :W - 1, :]], axis=2)   # value at w-1
    right = jnp.concatenate([t1f[:, :, 1:, :], zcol], axis=2)      # value at w+1
    s_ref[:, 1:H + 1, :, 0:P] = left.astype(jnp.bfloat16)          # kw = 0
    s_ref[:, 1:H + 1, :, P:2 * P] = t1f.astype(jnp.bfloat16)       # kw = 1
    s_ref[:, 1:H + 1, :, 2 * P:3 * P] = right.astype(jnp.bfloat16)  # kw = 2

    # H halo rows are zero every step (cheap; megacore-safe: no cross-step state).
    zrow = jnp.zeros((TDp, 1, W, 3 * P), jnp.bfloat16)
    s_ref[:, 0:1, :, :] = zrow
    s_ref[:, H + 1:H + 2, :, :] = zrow

    # Global D-boundary halo planes must be true zeros (conv1 of the zero pad
    # plane is relu(b1) != 0), so overwrite them after staging.
    zplane = jnp.zeros((1, H + 2, W, 3 * P), jnp.bfloat16)

    @pl.when(dt == 0)
    def _():
        s_ref[0:1, :, :, :] = zplane

    @pl.when(dt == n_dt - 1)
    def _():
        s_ref[TDp - 1:TDp, :, :, :] = zplane

    # ---- conv2 (3x3x3, stride 1, pad 1) + bn2 + relu -------------------------
    # 9 im2col dots of K = 3P (kw already concatenated in lanes, no jnp.concatenate).
    acc = None
    for kd in range(3):
        for kh in range(3):
            slab = s_ref[kd:kd + TD, kh:kh + H, :, :].reshape(M, 3 * P)
            d = jnp.dot(slab, w2_ref[kd, kh],
                        preferred_element_type=jnp.float32)
            acc = d if acc is None else acc + d
    t2 = jnp.maximum(acc * s2_ref[...] + b2_ref[...], 0.0)          # (M, P) f32

    # ---- conv3 (1x1x1) + bn3 + identity residual + relu ----------------------
    t3 = jnp.dot(t2.astype(jnp.bfloat16), w3_ref[...],
                 preferred_element_type=jnp.float32)
    t3 = t3 * s3_ref[...] + b3_ref[...]                              # (M, Cout)
    x_center = x_ref[0, pl.ds(d0 + 1, TD)].reshape(M, Cout).astype(jnp.float32)
    out = jnp.maximum(t3 + x_center, 0.0)                            # f32 residual
    o_ref[0] = out.reshape(TD, H, W, Cout).astype(o_ref.dtype)


def bottleneck_forward(x, params, *, d_tile=None):
    """x: (N, D, H, W, Cin) NDHWC.  Inference-mode (folded) BN.  Returns bf16."""
    N, D, H, W, Cin = x.shape
    w1, s1, b1, w2, s2, b2, w3, s3, b3 = params
    P = w1.shape[1]
    Cout = w3.shape[1]
    assert Cin == Cout, "identity residual requires in_planes == planes*4"
    if d_tile is None:
        d_tile = min(D, 4)
    assert D % d_tile == 0
    n_dt = D // d_tile

    # Host-side prep: bf16 activations & weights; one zero plane of D padding
    # for the halo; w2 flattened per (kd, kh) with rows ordered (kw, cin) to
    # match the kw-in-lanes scratch layout.
    x_pad = jnp.pad(x.astype(jnp.bfloat16),
                    ((0, 0), (1, 1), (0, 0), (0, 0), (0, 0)))
    w1b = w1.astype(jnp.bfloat16)
    w2b = w2.astype(jnp.bfloat16).reshape(3, 3, 3 * P, P)
    w3b = w3.astype(jnp.bfloat16)

    def const_spec(a):
        shp = a.shape
        return pl.BlockSpec(shp, lambda n, t, _r=len(shp): (0,) * _r)

    flops = 2 * N * D * H * W * (Cin * P + 27 * P * P + P * Cout)
    bytes_accessed = ((x_pad.size + N * D * H * W * Cout) * 2
                      + (w1b.size + w2b.size + w3b.size) * 2
                      + (s1.size + b1.size + s2.size + b2.size
                         + s3.size + b3.size) * 4)

    return pl.pallas_call(
        _bottleneck_kernel,
        out_shape=jax.ShapeDtypeStruct((N, D, H, W, Cout), jnp.bfloat16),
        grid_spec=pltpu.PrefetchScalarGridSpec(
            num_scalar_prefetch=0,
            grid=(N, n_dt),
            in_specs=[
                # x block stays resident across the D-tile axis (index map
                # ignores t); weights/BN params resident across the whole grid.
                pl.BlockSpec((1, D + 2, H, W, Cin), lambda n, t: (n, 0, 0, 0, 0)),
                const_spec(w1b), const_spec(s1), const_spec(b1),
                const_spec(w2b), const_spec(s2), const_spec(b2),
                const_spec(w3b), const_spec(s3), const_spec(b3),
            ],
            out_specs=pl.BlockSpec((1, d_tile, H, W, Cout),
                                   lambda n, t: (n, t, 0, 0, 0)),
            # Single bf16 scratch: conv1 output over the halo'd D-tile with the
            # three kw-shifted copies side by side in the lane dimension.
            scratch_shapes=[pltpu.VMEM((d_tile + 2, H + 2, W, 3 * P),
                                       jnp.bfloat16)],
        ),
        compiler_params=pltpu.CompilerParams(
            # Batch axis parallel (megacore); keep D-tiles of one batch element
            # on one core so the resident x block is not re-fetched.
            dimension_semantics=("parallel", "arbitrary"),
            vmem_limit_bytes=32 * 1024 * 1024,   # legal on v5e/v6e/v7x
        ),
        cost_estimate=pl.CostEstimate(
            flops=flops, transcendentals=0, bytes_accessed=bytes_accessed),
    )(x_pad, w1b, s1, b1, w2b, s2, b2, w3b, s3, b3)


def _fold_bn(gamma, beta, mean, var, eps=1e-5):
    scale = gamma / jnp.sqrt(var + eps)
    bias = beta - mean * scale
    return scale[None, :], bias[None, :]            # (1, C) for 2D broadcasting


def make_params(key, in_planes, planes):
    expansion = 4
    ks = jax.random.split(key, 15)
    w1 = jax.random.normal(ks[0], (in_planes, planes), jnp.float32) * 0.04
    w2 = jax.random.normal(ks[1], (3, 3, 3, planes, planes), jnp.float32) * 0.04
    w3 = jax.random.normal(ks[2], (planes, planes * expansion), jnp.float32) * 0.04

    def bn(kg, kb, km, kv, c):
        gamma = 0.8 + 0.4 * jax.random.uniform(kg, (c,), jnp.float32)
        beta = jax.random.normal(kb, (c,), jnp.float32) * 0.1
        mean = jax.random.normal(km, (c,), jnp.float32) * 0.1
        var = 0.8 + 0.4 * jax.random.uniform(kv, (c,), jnp.float32)
        return _fold_bn(gamma, beta, mean, var)

    s1, b1 = bn(ks[3], ks[4], ks[5], ks[6], planes)
    s2, b2 = bn(ks[7], ks[8], ks[9], ks[10], planes)
    s3, b3 = bn(ks[11], ks[12], ks[13], ks[14], planes * expansion)
    return (w1, s1, b1, w2, s2, b2, w3, s3, b3)


def reference_forward(x, params):
    """Pure-JAX f32 reference (module semantics) for correctness checking."""
    w1, s1, b1, w2, s2, b2, w3, s3, b3 = params
    N, D, H, W, _ = x.shape
    t1 = jnp.maximum(jnp.einsum('ndhwc,cp->ndhwp', x, w1) * s1 + b1, 0.0)
    tp = jnp.pad(t1, ((0, 0), (1, 1), (1, 1), (1, 1), (0, 0)))
    acc = jnp.zeros(t1.shape, jnp.float32)
    for kd in range(3):
        for kh in range(3):
            for kw in range(3):
                acc = acc + jnp.einsum(
                    'ndhwc,cp->ndhwp',
                    tp[:, kd:kd + D, kh:kh + H, kw:kw + W, :],
                    w2[kd, kh, kw])
    t2 = jnp.maximum(acc * s2 + b2, 0.0)
    t3 = jnp.einsum('ndhwp,pq->ndhwq', t2, w3) * s3 + b3
    return jnp.maximum(t3 + x, 0.0)


if __name__ == "__main__":
    key = jax.random.PRNGKey(0)
    k_x, k_p = jax.random.split(key)

    # Small but lane-dense shapes: channel counts are multiples of 128 and W is
    # a multiple of 8, so matmuls and scratch accesses are tile aligned.
    N, D, H, W = 2, 8, 8, 8
    planes = 128
    in_planes = planes * 4          # 512 -> identity residual (downsample=None)

    x = jax.random.normal(k_x, (N, D, H, W, in_planes), jnp.float32)
    params = make_params(k_p, in_planes, planes)

    out = jax.block_until_ready(bottleneck_forward(x, params, d_tile=4))
    ref = reference_forward(x, params)

    assert out.shape == (N, D, H, W, in_planes)
    outf = out.astype(jnp.float32)
    err = float(jnp.max(jnp.abs(outf - ref)))
    # bf16 activations/weights/scratch (f32 accumulation) vs f32 reference.
    assert jnp.allclose(outf, ref, atol=2.5e-1, rtol=3e-2), f"max abs err {err}"
    print("KERNEL_OK")
</pallas_src>

<mosaic_0001>
module attributes {stable_mosaic.version = 11 : i64} {
  func.func @_bottleneck_kernel(%arg0: i32, %arg1: i32, %arg2: memref<1x10x8x8x512xbf16, #tpu.memory_space<vmem>>, %arg3: memref<512x128xbf16, #tpu.memory_space<vmem>>, %arg4: memref<1x128xf32, #tpu.memory_space<vmem>>, %arg5: memref<1x128xf32, #tpu.memory_space<vmem>>, %arg6: memref<3x3x384x128xbf16, #tpu.memory_space<vmem>>, %arg7: memref<1x128xf32, #tpu.memory_space<vmem>>, %arg8: memref<1x128xf32, #tpu.memory_space<vmem>>, %arg9: memref<128x512xbf16, #tpu.memory_space<vmem>>, %arg10: memref<1x512xf32, #tpu.memory_space<vmem>>, %arg11: memref<1x512xf32, #tpu.memory_space<vmem>>, %arg12: memref<1x4x8x8x512xbf16, #tpu.memory_space<vmem>>, %arg13: memref<6x10x8x384xbf16, #tpu.memory_space<vmem>>) attributes {dimension_semantics = [#tpu.dimension_semantics<parallel>, #tpu.dimension_semantics<arbitrary>], iteration_bounds = array<i64: 2, 2>, scalar_prefetch = 0 : i64, scratch_operands = 1 : i64, tpu.core_type = #tpu.core_type<tc>, window_params = [{transform_indices = @transform_0, window_bounds = array<i64: 1, 10, 8, 8, 512>}, {pipeline_mode = #tpu.pipeline_mode<synchronous>, transform_indices = @transform_1, window_bounds = array<i64: 512, 128>}, {pipeline_mode = #tpu.pipeline_mode<synchronous>, transform_indices = @transform_2, window_bounds = array<i64: 1, 128>}, {pipeline_mode = #tpu.pipeline_mode<synchronous>, transform_indices = @transform_3, window_bounds = array<i64: 1, 128>}, {pipeline_mode = #tpu.pipeline_mode<synchronous>, transform_indices = @transform_4, window_bounds = array<i64: 3, 3, 384, 128>}, {pipeline_mode = #tpu.pipeline_mode<synchronous>, transform_indices = @transform_5, window_bounds = array<i64: 1, 128>}, {pipeline_mode = #tpu.pipeline_mode<synchronous>, transform_indices = @transform_6, window_bounds = array<i64: 1, 128>}, {pipeline_mode = #tpu.pipeline_mode<synchronous>, transform_indices = @transform_7, window_bounds = array<i64: 128, 512>}, {pipeline_mode = #tpu.pipeline_mode<synchronous>, transform_indices = @transform_8, window_bounds = array<i64: 1, 512>}, {pipeline_mode = #tpu.pipeline_mode<synchronous>, transform_indices = @transform_9, window_bounds = array<i64: 1, 512>}, {transform_indices = @transform_10, window_bounds = array<i64: 1, 4, 8, 8, 512>}]} {
    %c4_i32 = arith.constant 4 : i32
    %0 = arith.muli %arg1, %c4_i32 : i32
    %1 = tpu.assume_multiple %0, 4 : i32
    %c0 = arith.constant 0 : index
    %2 = arith.index_cast %1 : i32 to index
    %c0_0 = arith.constant 0 : index
    %c0_1 = arith.constant 0 : index
    %c0_2 = arith.constant 0 : index
    %3 = vector.load %arg2[%c0, %2, %c0_0, %c0_1, %c0_2] : memref<1x10x8x8x512xbf16, #tpu.memory_space<vmem>>, vector<1x6x8x8x512xbf16>
    %4 = vector.shape_cast %3 : vector<1x6x8x8x512xbf16> to vector<6x8x8x512xbf16>
    %5 = vector.shape_cast %4 : vector<6x8x8x512xbf16> to vector<384x512xbf16>
    %c0_3 = arith.constant 0 : index
    %c0_4 = arith.constant 0 : index
    %6 = vector.load %arg3[%c0_3, %c0_4] : memref<512x128xbf16, #tpu.memory_space<vmem>>, vector<512x128xbf16>
    %cst = arith.constant dense<0.000000e+00> : vector<384x128xf32>
    %7 = tpu.matmul %5, %6, %cst {dimension_numbers = #tpu.dot_dimension_numbers<[1], [0], [0], [1], [0, 0, 1, 1], [], []>} : vector<384x512xbf16>, vector<512x128xbf16>, vector<384x128xf32> -> vector<384x128xf32>
    %c0_5 = arith.constant 0 : index
    %c0_6 = arith.constant 0 : index
    %8 = vector.load %arg4[%c0_5, %c0_6] : memref<1x128xf32, #tpu.memory_space<vmem>>, vector<1x128xf32>
    %9 = vector.broadcast %8 : vector<1x128xf32> to vector<384x128xf32>
    %10 = arith.mulf %7, %9 : vector<384x128xf32>
    %c0_7 = arith.constant 0 : index
    %c0_8 = arith.constant 0 : index
    %11 = vector.load %arg5[%c0_7, %c0_8] : memref<1x128xf32, #tpu.memory_space<vmem>>, vector<1x128xf32>
    %12 = vector.broadcast %11 : vector<1x128xf32> to vector<384x128xf32>
    %13 = arith.addf %10, %12 : vector<384x128xf32>
    %cst_9 = arith.constant 0.000000e+00 : f32
    %14 = vector.broadcast %cst_9 : f32 to vector<384x128xf32>
    %15 = arith.maximumf %13, %14 : vector<384x128xf32>
    %16 = vector.shape_cast %15 : vector<384x128xf32> to vector<6x8x8x128xf32>
    %cst_10 = arith.constant 0.000000e+00 : f32
    %17 = vector.broadcast %cst_10 : f32 to vector<6x8x1x128xf32>
    %18 = vector.extract_strided_slice %16 {offsets = [0, 0, 0, 0], sizes = [6, 8, 7, 128], strides = [1, 1, 1, 1]} : vector<6x8x8x128xf32> to vector<6x8x7x128xf32>
    %19 = tpu.concatenate %17, %18 in 2 : vector<6x8x1x128xf32>, vector<6x8x7x128xf32> -> vector<6x8x8x128xf32>
    %20 = vector.extract_strided_slice %16 {offsets = [0, 0, 1, 0], sizes = [6, 8, 7, 128], strides = [1, 1, 1, 1]} : vector<6x8x8x128xf32> to vector<6x8x7x128xf32>
    %21 = tpu.concatenate %20, %17 in 2 : vector<6x8x7x128xf32>, vector<6x8x1x128xf32> -> vector<6x8x8x128xf32>
    %22 = arith.truncf %19 : vector<6x8x8x128xf32> to vector<6x8x8x128xbf16>
    %c0_11 = arith.constant 0 : index
    %c1 = arith.constant 1 : index
    %c0_12 = arith.constant 0 : index
    %c0_13 = arith.constant 0 : index
    %23 = vector.load %arg13[%c0_11, %c1, %c0_12, %c0_13] : memref<6x10x8x384xbf16, #tpu.memory_space<vmem>>, vector<6x8x8x128xbf16>
    tpu.vector_store %arg13[%c0_11, %c1, %c0_12, %c0_13], %22 {strides = array<i32>} : memref<6x10x8x384xbf16, #tpu.memory_space<vmem>>, vector<6x8x8x128xbf16>,
    %24 = arith.truncf %16 : vector<6x8x8x128xf32> to vector<6x8x8x128xbf16>
    %c0_14 = arith.constant 0 : index
    %c1_15 = arith.constant 1 : index
    %c0_16 = arith.constant 0 : index
    %c128 = arith.constant 128 : index
    %25 = vector.load %arg13[%c0_14, %c1_15, %c0_16, %c128] : memref<6x10x8x384xbf16, #tpu.memory_space<vmem>>, vector<6x8x8x128xbf16>
    tpu.vector_store %arg13[%c0_14, %c1_15, %c0_16, %c128], %24 {strides = array<i32>} : memref<6x10x8x384xbf16, #tpu.memory_space<vmem>>, vector<6x8x8x128xbf16>,
    %26 = arith.truncf %21 : vector<6x8x8x128xf32> to vector<6x8x8x128xbf16>
    %c0_17 = arith.constant 0 : index
    %c1_18 = arith.constant 1 : index
    %c0_19 = arith.constant 0 : index
    %c256 = arith.constant 256 : index
    %27 = vector.load %arg13[%c0_17, %c1_18, %c0_19, %c256] : memref<6x10x8x384xbf16, #tpu.memory_space<vmem>>, vector<6x8x8x128xbf16>
    tpu.vector_store %arg13[%c0_17, %c1_18, %c0_19, %c256], %26 {strides = array<i32>} : memref<6x10x8x384xbf16, #tpu.memory_space<vmem>>, vector<6x8x8x128xbf16>,
    %cst_20 = arith.constant 0.000000e+00 : bf16
    %28 = vector.broadcast %cst_20 : bf16 to vector<6x1x8x384xbf16>
    %c0_21 = arith.constant 0 : index
    %c0_22 = arith.constant 0 : index
    %c0_23 = arith.constant 0 : index
    %c0_24 = arith.constant 0 : index
    %29 = vector.load %arg13[%c0_21, %c0_22, %c0_23, %c0_24] : memref<6x10x8x384xbf16, #tpu.memory_space<vmem>>, vector<6x1x8x384xbf16>
    tpu.vector_store %arg13[%c0_21, %c0_22, %c0_23, %c0_24], %28 {strides = array<i32>} : memref<6x10x8x384xbf16, #tpu.memory_space<vmem>>, vector<6x1x8x384xbf16>,
    %c0_25 = arith.constant 0 : index
    %c9 = arith.constant 9 : index
    %c0_26 = arith.constant 0 : index
    %c0_27 = arith.constant 0 : index
    %30 = vector.load %arg13[%c0_25, %c9, %c0_26, %c0_27] : memref<6x10x8x384xbf16, #tpu.memory_space<vmem>>, vector<6x1x8x384xbf16>
    tpu.vector_store %arg13[%c0_25, %c9, %c0_26, %c0_27], %28 {strides = array<i32>} : memref<6x10x8x384xbf16, #tpu.memory_space<vmem>>, vector<6x1x8x384xbf16>,
    %cst_28 = arith.constant 0.000000e+00 : bf16
    %31 = vector.broadcast %cst_28 : bf16 to vector<1x10x8x384xbf16>
    %c0_i32 = arith.constant 0 : i32
    %32 = arith.cmpi eq, %arg1, %c0_i32 : i32
    %33 = arith.extui %32 : i1 to i32
    %c0_i32_29 = arith.constant 0 : i32
    %34 = arith.cmpi ne, %33, %c0_i32_29 : i32
    scf.if %34 {
      %c0_134 = arith.constant 0 : index
      %c0_135 = arith.constant 0 : index
      %c0_136 = arith.constant 0 : index
      %c0_137 = arith.constant 0 : index
      %122 = vector.load %arg13[%c0_134, %c0_135, %c0_136, %c0_137] : memref<6x10x8x384xbf16, #tpu.memory_space<vmem>>, vector<1x10x8x384xbf16>
      tpu.vector_store %arg13[%c0_134, %c0_135, %c0_136, %c0_137], %31 {strides = array<i32>} : memref<6x10x8x384xbf16, #tpu.memory_space<vmem>>, vector<1x10x8x384xbf16>,
    } else {
    }
    %c1_i32 = arith.constant 1 : i32
    %35 = arith.cmpi eq, %arg1, %c1_i32 : i32
    %36 = arith.extui %35 : i1 to i32
    %c0_i32_30 = arith.constant 0 : i32
    %37 = arith.cmpi ne, %36, %c0_i32_30 : i32
    scf.if %37 {
      %c5 = arith.constant 5 : index
      %c0_134 = arith.constant 0 : index
      %c0_135 = arith.constant 0 : index
      %c0_136 = arith.constant 0 : index
      %122 = vector.load %arg13[%c5, %c0_134, %c0_135, %c0_136] : memref<6x10x8x384xbf16, #tpu.memory_space<vmem>>, vector<1x10x8x384xbf16>
      tpu.vector_store %arg13[%c5, %c0_134, %c0_135, %c0_136], %31 {strides = array<i32>} : memref<6x10x8x384xbf16, #tpu.memory_space<vmem>>, vector<1x10x8x384xbf16>,
    } else {
    }
    %c0_31 = arith.constant 0 : index
    %c0_32 = arith.constant 0 : index
    %c0_33 = arith.constant 0 : index
    %c0_34 = arith.constant 0 : index
    %38 = vector.load %arg13[%c0_31, %c0_32, %c0_33, %c0_34] : memref<6x10x8x384xbf16, #tpu.memory_space<vmem>>, vector<4x8x8x384xbf16>
    %39 = vector.shape_cast %38 : vector<4x8x8x384xbf16> to vector<256x384xbf16>
    %c0_35 = arith.constant 0 : index
    %c0_36 = arith.constant 0 : index
    %c0_37 = arith.constant 0 : index
    %c0_38 = arith.constant 0 : index
    %40 = vector.load %arg6[%c0_35, %c0_36, %c0_37, %c0_38] : memref<3x3x384x128xbf16, #tpu.memory_space<vmem>>, vector<1x1x384x128xbf16>
    %41 = vector.shape_cast %40 : vector<1x1x384x128xbf16> to vector<384x128xbf16>
    %cst_39 = arith.constant dense<0.000000e+00> : vector<256x128xf32>
    %42 = tpu.matmul %39, %41, %cst_39 {dimension_numbers = #tpu.dot_dimension_numbers<[1], [0], [0], [1], [0, 0, 1, 1], [], []>} : vector<256x384xbf16>, vector<384x128xbf16>, vector<256x128xf32> -> vector<256x128xf32>
    %c0_40 = arith.constant 0 : index
    %c1_41 = arith.constant 1 : index
    %c0_42 = arith.constant 0 : index
    %c0_43 = arith.constant 0 : index
    %43 = vector.load %arg13[%c0_40, %c1_41, %c0_42, %c0_43] : memref<6x10x8x384xbf16, #tpu.memory_space<vmem>>, vector<4x8x8x384xbf16>
    %44 = vector.shape_cast %43 : vector<4x8x8x384xbf16> to vector<256x384xbf16>
    %c0_44 = arith.constant 0 : index
    %c1_45 = arith.constant 1 : index
    %c0_46 = arith.constant 0 : index
    %c0_47 = arith.constant 0 : index
    %45 = vector.load %arg6[%c0_44, %c1_45, %c0_46, %c0_47] : memref<3x3x384x128xbf16, #tpu.memory_space<vmem>>, vector<1x1x384x128xbf16>
    %46 = vector.shape_cast %45 : vector<1x1x384x128xbf16> to vector<384x128xbf16>
    %cst_48 = arith.constant dense<0.000000e+00> : vector<256x128xf32>
    %47 = tpu.matmul %44, %46, %cst_48 {dimension_numbers = #tpu.dot_dimension_numbers<[1], [0], [0], [1], [0, 0, 1, 1], [], []>} : vector<256x384xbf16>, vector<384x128xbf16>, vector<256x128xf32> -> vector<256x128xf32>
    %48 = arith.addf %42, %47 : vector<256x128xf32>
    %c0_49 = arith.constant 0 : index
    %c2 = arith.constant 2 : index
    %c0_50 = arith.constant 0 : index
    %c0_51 = arith.constant 0 : index
    %49 = vector.load %arg13[%c0_49, %c2, %c0_50, %c0_51] : memref<6x10x8x384xbf16, #tpu.memory_space<vmem>>, vector<4x8x8x384xbf16>
    %50 = vector.shape_cast %49 : vector<4x8x8x384xbf16> to vector<256x384xbf16>
    %c0_52 = arith.constant 0 : index
    %c2_53 = arith.constant 2 : index
    %c0_54 = arith.constant 0 : index
    %c0_55 = arith.constant 0 : index
    %51 = vector.load %arg6[%c0_52, %c2_53, %c0_54, %c0_55] : memref<3x3x384x128xbf16, #tpu.memory_space<vmem>>, vector<1x1x384x128xbf16>
    %52 = vector.shape_cast %51 : vector<1x1x384x128xbf16> to vector<384x128xbf16>
    %cst_56 = arith.constant dense<0.000000e+00> : vector<256x128xf32>
    %53 = tpu.matmul %50, %52, %cst_56 {dimension_numbers = #tpu.dot_dimension_numbers<[1], [0], [0], [1], [0, 0, 1, 1], [], []>} : vector<256x384xbf16>, vector<384x128xbf16>, vector<256x128xf32> -> vector<256x128xf32>
    %54 = arith.addf %48, %53 : vector<256x128xf32>
    %c1_57 = arith.constant 1 : index
    %c0_58 = arith.constant 0 : index
    %c0_59 = arith.constant 0 : index
    %c0_60 = arith.constant 0 : index
    %55 = vector.load %arg13[%c1_57, %c0_58, %c0_59, %c0_60] : memref<6x10x8x384xbf16, #tpu.memory_space<vmem>>, vector<4x8x8x384xbf16>
    %56 = vector.shape_cast %55 : vector<4x8x8x384xbf16> to vector<256x384xbf16>
    %c1_61 = arith.constant 1 : index
    %c0_62 = arith.constant 0 : index
    %c0_63 = arith.constant 0 : index
    %c0_64 = arith.constant 0 : index
    %57 = vector.load %arg6[%c1_61, %c0_62, %c0_63, %c0_64] : memref<3x3x384x128xbf16, #tpu.memory_space<vmem>>, vector<1x1x384x128xbf16>
    %58 = vector.shape_cast %57 : vector<1x1x384x128xbf16> to vector<384x128xbf16>
    %cst_65 = arith.constant dense<0.000000e+00> : vector<256x128xf32>
    %59 = tpu.matmul %56, %58, %cst_65 {dimension_numbers = #tpu.dot_dimension_numbers<[1], [0], [0], [1], [0, 0, 1, 1], [], []>} : vector<256x384xbf16>, vector<384x128xbf16>, vector<256x128xf32> -> vector<256x128xf32>
    %60 = arith.addf %54, %59 : vector<256x128xf32>
    %c1_66 = arith.constant 1 : index
    %c1_67 = arith.constant 1 : index
    %c0_68 = arith.constant 0 : index
    %c0_69 = arith.constant 0 : index
    %61 = vector.load %arg13[%c1_66, %c1_67, %c0_68, %c0_69] : memref<6x10x8x384xbf16, #tpu.memory_space<vmem>>, vector<4x8x8x384xbf16>
    %62 = vector.shape_cast %61 : vector<4x8x8x384xbf16> to vector<256x384xbf16>
    %c1_70 = arith.constant 1 : index
    %c1_71 = arith.constant 1 : index
    %c0_72 = arith.constant 0 : index
    %c0_73 = arith.constant 0 : index
    %63 = vector.load %arg6[%c1_70, %c1_71, %c0_72, %c0_73] : memref<3x3x384x128xbf16, #tpu.memory_space<vmem>>, vector<1x1x384x128xbf16>
    %64 = vector.shape_cast %63 : vector<1x1x384x128xbf16> to vector<384x128xbf16>
    %cst_74 = arith.constant dense<0.000000e+00> : vector<256x128xf32>
    %65 = tpu.matmul %62, %64, %cst_74 {dimension_numbers = #tpu.dot_dimension_numbers<[1], [0], [0], [1], [0, 0, 1, 1], [], []>} : vector<256x384xbf16>, vector<384x128xbf16>, vector<256x128xf32> -> vector<256x128xf32>
    %66 = arith.addf %60, %65 : vector<256x128xf32>
    %c1_75 = arith.constant 1 : index
    %c2_76 = arith.constant 2 : index
    %c0_77 = arith.constant 0 : index
    %c0_78 = arith.constant 0 : index
    %67 = vector.load %arg13[%c1_75, %c2_76, %c0_77, %c0_78] : memref<6x10x8x384xbf16, #tpu.memory_space<vmem>>, vector<4x8x8x384xbf16>
    %68 = vector.shape_cast %67 : vector<4x8x8x384xbf16> to vector<256x384xbf16>
    %c1_79 = arith.constant 1 : index
    %c2_80 = arith.constant 2 : index
    %c0_81 = arith.constant 0 : index
    %c0_82 = arith.constant 0 : index
    %69 = vector.load %arg6[%c1_79, %c2_80, %c0_81, %c0_82] : memref<3x3x384x128xbf16, #tpu.memory_space<vmem>>, vector<1x1x384x128xbf16>
    %70 = vector.shape_cast %69 : vector<1x1x384x128xbf16> to vector<384x128xbf16>
    %cst_83 = arith.constant dense<0.000000e+00> : vector<256x128xf32>
    %71 = tpu.matmul %68, %70, %cst_83 {dimension_numbers = #tpu.dot_dimension_numbers<[1], [0], [0], [1], [0, 0, 1, 1], [], []>} : vector<256x384xbf16>, vector<384x128xbf16>, vector<256x128xf32> -> vector<256x128xf32>
    %72 = arith.addf %66, %71 : vector<256x128xf32>
    %c2_84 = arith.constant 2 : index
    %c0_85 = arith.constant 0 : index
    %c0_86 = arith.constant 0 : index
    %c0_87 = arith.constant 0 : index
    %73 = vector.load %arg13[%c2_84, %c0_85, %c0_86, %c0_87] : memref<6x10x8x384xbf16, #tpu.memory_space<vmem>>, vector<4x8x8x384xbf16>
    %74 = vector.shape_cast %73 : vector<4x8x8x384xbf16> to vector<256x384xbf16>
    %c2_88 = arith.constant 2 : index
    %c0_89 = arith.constant 0 : index
    %c0_90 = arith.constant 0 : index
    %c0_91 = arith.constant 0 : index
    %75 = vector.load %arg6[%c2_88, %c0_89, %c0_90, %c0_91] : memref<3x3x384x128xbf16, #tpu.memory_space<vmem>>, vector<1x1x384x128xbf16>
    %76 = vector.shape_cast %75 : vector<1x1x384x128xbf16> to vector<384x128xbf16>
    %cst_92 = arith.constant dense<0.000000e+00> : vector<256x128xf32>
    %77 = tpu.matmul %74, %76, %cst_92 {dimension_numbers = #tpu.dot_dimension_numbers<[1], [0], [0], [1], [0, 0, 1, 1], [], []>} : vector<256x384xbf16>, vector<384x128xbf16>, vector<256x128xf32> -> vector<256x128xf32>
    %78 = arith.addf %72, %77 : vector<256x128xf32>
    %c2_93 = arith.constant 2 : index
    %c1_94 = arith.constant 1 : index
    %c0_95 = arith.constant 0 : index
    %c0_96 = arith.constant 0 : index
    %79 = vector.load %arg13[%c2_93, %c1_94, %c0_95, %c0_96] : memref<6x10x8x384xbf16, #tpu.memory_space<vmem>>, vector<4x8x8x384xbf16>
    %80 = vector.shape_cast %79 : vector<4x8x8x384xbf16> to vector<256x384xbf16>
    %c2_97 = arith.constant 2 : index
    %c1_98 = arith.constant 1 : index
    %c0_99 = arith.constant 0 : index
    %c0_100 = arith.constant 0 : index
    %81 = vector.load %arg6[%c2_97, %c1_98, %c0_99, %c0_100] : memref<3x3x384x128xbf16, #tpu.memory_space<vmem>>, vector<1x1x384x128xbf16>
    %82 = vector.shape_cast %81 : vector<1x1x384x128xbf16> to vector<384x128xbf16>
    %cst_101 = arith.constant dense<0.000000e+00> : vector<256x128xf32>
    %83 = tpu.matmul %80, %82, %cst_101 {dimension_numbers = #tpu.dot_dimension_numbers<[1], [0], [0], [1], [0, 0, 1, 1], [], []>} : vector<256x384xbf16>, vector<384x128xbf16>, vector<256x128xf32> -> vector<256x128xf32>
    %84 = arith.addf %78, %83 : vector<256x128xf32>
    %c2_102 = arith.constant 2 : index
    %c2_103 = arith.constant 2 : index
    %c0_104 = arith.constant 0 : index
    %c0_105 = arith.constant 0 : index
    %85 = vector.load %arg13[%c2_102, %c2_103, %c0_104, %c0_105] : memref<6x10x8x384xbf16, #tpu.memory_space<vmem>>, vector<4x8x8x384xbf16>
    %86 = vector.shape_cast %85 : vector<4x8x8x384xbf16> to vector<256x384xbf16>
    %c2_106 = arith.constant 2 : index
    %c2_107 = arith.constant 2 : index
    %c0_108 = arith.constant 0 : index
    %c0_109 = arith.constant 0 : index
    %87 = vector.load %arg6[%c2_106, %c2_107, %c0_108, %c0_109] : memref<3x3x384x128xbf16, #tpu.memory_space<vmem>>, vector<1x1x384x128xbf16>
    %88 = vector.shape_cast %87 : vector<1x1x384x128xbf16> to vector<384x128xbf16>
    %cst_110 = arith.constant dense<0.000000e+00> : vector<256x128xf32>
    %89 = tpu.matmul %86, %88, %cst_110 {dimension_numbers = #tpu.dot_dimension_numbers<[1], [0], [0], [1], [0, 0, 1, 1], [], []>} : vector<256x384xbf16>, vector<384x128xbf16>, vector<256x128xf32> -> vector<256x128xf32>
    %90 = arith.addf %84, %89 : vector<256x128xf32>
    %c0_111 = arith.constant 0 : index
    %c0_112 = arith.constant 0 : index
    %91 = vector.load %arg7[%c0_111, %c0_112] : memref<1x128xf32, #tpu.memory_space<vmem>>, vector<1x128xf32>
    %92 = vector.broadcast %91 : vector<1x128xf32> to vector<256x128xf32>
    %93 = arith.mulf %90, %92 : vector<256x128xf32>
    %c0_113 = arith.constant 0 : index
    %c0_114 = arith.constant 0 : index
    %94 = vector.load %arg8[%c0_113, %c0_114] : memref<1x128xf32, #tpu.memory_space<vmem>>, vector<1x128xf32>
    %95 = vector.broadcast %94 : vector<1x128xf32> to vector<256x128xf32>
    %96 = arith.addf %93, %95 : vector<256x128xf32>
    %cst_115 = arith.constant 0.000000e+00 : f32
    %97 = vector.broadcast %cst_115 : f32 to vector<256x128xf32>
    %98 = arith.maximumf %96, %97 : vector<256x128xf32>
    %99 = arith.truncf %98 : vector<256x128xf32> to vector<256x128xbf16>
    %c0_116 = arith.constant 0 : index
    %c0_117 = arith.constant 0 : index
    %100 = vector.load %arg9[%c0_116, %c0_117] : memref<128x512xbf16, #tpu.memory_space<vmem>>, vector<128x512xbf16>
    %cst_118 = arith.constant dense<0.000000e+00> : vector<256x512xf32>
    %101 = tpu.matmul %99, %100, %cst_118 {dimension_numbers = #tpu.dot_dimension_numbers<[1], [0], [0], [1], [0, 0, 1, 1], [], []>} : vector<256x128xbf16>, vector<128x512xbf16>, vector<256x512xf32> -> vector<256x512xf32>
    %c0_119 = arith.constant 0 : index
    %c0_120 = arith.constant 0 : index
    %102 = vector.load %arg10[%c0_119, %c0_120] : memref<1x512xf32, #tpu.memory_space<vmem>>, vector<1x512xf32>
    %103 = vector.broadcast %102 : vector<1x512xf32> to vector<256x512xf32>
    %104 = arith.mulf %101, %103 : vector<256x512xf32>
    %c0_121 = arith.constant 0 : index
    %c0_122 = arith.constant 0 : index
    %105 = vector.load %arg11[%c0_121, %c0_122] : memref<1x512xf32, #tpu.memory_space<vmem>>, vector<1x512xf32>
    %106 = vector.broadcast %105 : vector<1x512xf32> to vector<256x512xf32>
    %107 = arith.addf %104, %106 : vector<256x512xf32>
    %c1_i32_123 = arith.constant 1 : i32
    %108 = arith.addi %1, %c1_i32_123 : i32
    %c0_124 = arith.constant 0 : index
    %109 = arith.index_cast %108 : i32 to index
    %c0_125 = arith.constant 0 : index
    %c0_126 = arith.constant 0 : index
    %c0_127 = arith.constant 0 : index
    %110 = vector.load %arg2[%c0_124, %109, %c0_125, %c0_126, %c0_127] : memref<1x10x8x8x512xbf16, #tpu.memory_space<vmem>>, vector<1x4x8x8x512xbf16>
    %111 = vector.shape_cast %110 : vector<1x4x8x8x512xbf16> to vector<4x8x8x512xbf16>
    %112 = vector.shape_cast %111 : vector<4x8x8x512xbf16> to vector<256x512xbf16>
    %113 = arith.extf %112 : vector<256x512xbf16> to vector<256x512xf32>
    %114 = arith.addf %107, %113 : vector<256x512xf32>
    %cst_128 = arith.constant 0.000000e+00 : f32
    %115 = vector.broadcast %cst_128 : f32 to vector<256x512xf32>
    %116 = arith.maximumf %114, %115 : vector<256x512xf32>
    %117 = vector.shape_cast %116 : vector<256x512xf32> to vector<4x8x8x512xf32>
    %118 = arith.truncf %117 : vector<4x8x8x512xf32> to vector<4x8x8x512xbf16>
    %c0_129 = arith.constant 0 : index
    %c0_130 = arith.constant 0 : index
    %c0_131 = arith.constant 0 : index
    %c0_132 = arith.constant 0 : index
    %c0_133 = arith.constant 0 : index
    %119 = vector.load %arg12[%c0_129, %c0_130, %c0_131, %c0_132, %c0_133] : memref<1x4x8x8x512xbf16, #tpu.memory_space<vmem>>, vector<1x4x8x8x512xbf16>
    %120 = vector.shape_cast %119 : vector<1x4x8x8x512xbf16> to vector<4x8x8x512xbf16>
    %121 = vector.shape_cast %118 : vector<4x8x8x512xbf16> to vector<1x4x8x8x512xbf16>
    tpu.vector_store %arg12[%c0_129, %c0_130, %c0_131, %c0_132, %c0_133], %121 {strides = array<i32>} : memref<1x4x8x8x512xbf16, #tpu.memory_space<vmem>>, vector<1x4x8x8x512xbf16>,
    return
  }
  func.func @transform_0(%arg0: i32, %arg1: i32) -> (i32, i32, i32, i32, i32) {
    %c0_i32 = arith.constant 0 : i32
    %c0_i32_0 = arith.constant 0 : i32
    %c0_i32_1 = arith.constant 0 : i32
    %c0_i32_2 = arith.constant 0 : i32
    %c0_i32_3 = arith.constant 0 : i32
    return %arg0, %c0_i32, %c0_i32_0, %c0_i32_1, %c0_i32_2 : i32, i32, i32, i32, i32
  }
  func.func @transform_1(%arg0: i32, %arg1: i32) -> (i32, i32) {
    %c0_i32 = arith.constant 0 : i32
    %c0_i32_0 = arith.constant 0 : i32
    %c0_i32_1 = arith.constant 0 : i32
    return %c0_i32, %c0_i32_0 : i32, i32
  }
  func.func @transform_2(%arg0: i32, %arg1: i32) -> (i32, i32) {
    %c0_i32 = arith.constant 0 : i32
    %c0_i32_0 = arith.constant 0 : i32
    %c0_i32_1 = arith.constant 0 : i32
    return %c0_i32, %c0_i32_0 : i32, i32
  }
  func.func @transform_3(%arg0: i32, %arg1: i32) -> (i32, i32) {
    %c0_i32 = arith.constant 0 : i32
    %c0_i32_0 = arith.constant 0 : i32
    %c0_i32_1 = arith.constant 0 : i32
    return %c0_i32, %c0_i32_0 : i32, i32
  }
  func.func @transform_4(%arg0: i32, %arg1: i32) -> (i32, i32, i32, i32) {
    %c0_i32 = arith.constant 0 : i32
    %c0_i32_0 = arith.constant 0 : i32
    %c0_i32_1 = arith.constant 0 : i32
    %c0_i32_2 = arith.constant 0 : i32
    %c0_i32_3 = arith.constant 0 : i32
    return %c0_i32, %c0_i32_0, %c0_i32_1, %c0_i32_2 : i32, i32, i32, i32
  }
  func.func @transform_5(%arg0: i32, %arg1: i32) -> (i32, i32) {
    %c0_i32 = arith.constant 0 : i32
    %c0_i32_0 = arith.constant 0 : i32
    %c0_i32_1 = arith.constant 0 : i32
    return %c0_i32, %c0_i32_0 : i32, i32
  }
  func.func @transform_6(%arg0: i32, %arg1: i32) -> (i32, i32) {
    %c0_i32 = arith.constant 0 : i32
    %c0_i32_0 = arith.constant 0 : i32
    %c0_i32_1 = arith.constant 0 : i32
    return %c0_i32, %c0_i32_0 : i32, i32
  }
  func.func @transform_7(%arg0: i32, %arg1: i32) -> (i32, i32) {
    %c0_i32 = arith.constant 0 : i32
    %c0_i32_0 = arith.constant 0 : i32
    %c0_i32_1 = arith.constant 0 : i32
    return %c0_i32, %c0_i32_0 : i32, i32
  }
  func.func @transform_8(%arg0: i32, %arg1: i32) -> (i32, i32) {
    %c0_i32 = arith.constant 0 : i32
    %c0_i32_0 = arith.constant 0 : i32
    %c0_i32_1 = arith.constant 0 : i32
    return %c0_i32, %c0_i32_0 : i32, i32
  }
  func.func @transform_9(%arg0: i32, %arg1: i32) -> (i32, i32) {
    %c0_i32 = arith.constant 0 : i32
    %c0_i32_0 = arith.constant 0 : i32
    %c0_i32_1 = arith.constant 0 : i32
    return %c0_i32, %c0_i32_0 : i32, i32
  }
  func.func @transform_10(%arg0: i32, %arg1: i32) -> (i32, i32, i32, i32, i32) {
    %c0_i32 = arith.constant 0 : i32
    %c0_i32_0 = arith.constant 0 : i32
    %c0_i32_1 = arith.constant 0 : i32
    %c0_i32_2 = arith.constant 0 : i32
    return %arg0, %arg1, %c0_i32, %c0_i32_0, %c0_i32_1 : i32, i32, i32, i32, i32
  }
}

</mosaic_0001>

<bundles_post_ra>
// kernel: tpu_custom_call.1
= control target key start
LH: loop header
LB: loop body
LE: loop exit
PB: predicated region body
PF: predicated region fallthrough
CT: control target
= control target key end

     0   :  { %s20891_s0 = inlined_call_operand.hbm [shape: bf16[2,10,8,8,512], index: 0, kind: input, shape index: {}]   ;;  %s20892_s1 = inlined_call_operand.hbm [shape: bf16[512,128], index: 1, kind: input, shape index: {}]   ;;  %s20893_s2 = inlined_call_operand.hbm [shape: f32[1,128], index: 2, kind: input, shape index: {}]   ;;  %s20894_s3 = inlined_call_operand.hbm [shape: f32[1,128], index: 3, kind: input, shape index: {}]   ;;  %s20895_s4 = inlined_call_operand.hbm [shape: bf16[3,3,384,128], index: 4, kind: input, shape index: {}]   ;;  %s20896_s5 = inlined_call_operand.hbm [shape: f32[1,128], index: 5, kind: input, shape index: {}]   ;;  %s20897_s6 = inlined_call_operand.hbm [shape: f32[1,128], index: 6, kind: input, shape index: {}]   ;;  %s20898_s7 = inlined_call_operand.hbm [shape: bf16[128,512], index: 7, kind: input, shape index: {}]   ;;  %s20899_s8 = inlined_call_operand.hbm [shape: f32[1,512], index: 8, kind: input, shape index: {}]   ;;  %s20900_s9 = inlined_call_operand.hbm [shape: f32[1,512], index: 9, kind: input, shape index: {}]   ;;  %s20901_s10 = inlined_call_operand.hbm [shape: bf16[2,8,8,8,512], index: 10, kind: output, shape index: {}]  }
   0x1   :  { %20992 = sst [smem:[#allocation124_spill]] %s20891_s0 }
   0x2   :  { %20993 = sst [smem:[#allocation125_spill]] %s20892_s1 }
   0x3   :  { %20994 = sst [smem:[#allocation126_spill]] %s20893_s2 }
   0x4   :  { %20995 = sst [smem:[#allocation127_spill]] %s20894_s3 }
   0x5   :  { %20996 = sst [smem:[#allocation128_spill]] %s20895_s4 }
   0x6   :  { %20997 = sst [smem:[#allocation129_spill]] %s20901_s10 }
   0x7   :  { %15 = vsyncpa [#allocation4], 0 }
   0x8   :  { %17 = vsyncpa [#allocation4 + $0x1], 0 }
   0x9   :  { %18 = vsyncpa [#allocation7], 0 }
   0xa   :  { %19 = vsyncpa [#allocation10], 0 }
   0xb   :  { %20 = vsyncpa [#allocation13], 0 }
   0xc   :  { %21 = vsyncpa [#allocation16], 0 }
   0xd   :  { %22 = vsyncpa [#allocation19], 0 }
   0xe   :  { %23 = vsyncpa [#allocation5], 0 }
   0xf   :  { %25 = vsyncpa [#allocation5 + $0x1], 0  ;;  %s17575_s13 = smov 0   ;;  %s17577_s14 = smov 0  }
  0x10   :  { %s17579_s15 = smov 0   ;;  %s17581_s16 = smov 0  }
  0x11   :  { %s17583_s17 = smov 0   ;;  %s17585_s18 = smov 0  }
  0x12   :  { %s17587_s19 = smov 0   ;;  %s17589_s20 = smov 0  }
  0x13   :  { %s17591_s21 = smov 0   ;;  %s17593_s22 = smov 0  }
  0x14   :  { %s17595_s23 = smov 0  }
  0x15 LB: > { %20998 = sst [smem:[#allocation28_spill]] %s17458_s13  ;;  %s20902_s24 = sadd.s32 4294967295, %s17498_s23   ;;  %s17498_s23 = sphi %s17595_s23, %s31_s23   ;;  %s17494_s22 = sphi %s17593_s22, %s21506_s22   ;;  %s17490_s21 = sphi %s17591_s21, %s21505_s21   ;;  %s17486_s20 = sphi %s17589_s20, %s21504_s20   ;;  %s17482_s19 = sphi %s17587_s19, %s21503_s19   ;;  %s17478_s18 = sphi %s17585_s18, %s21502_s18   ;;  %s17474_s17 = sphi %s17583_s17, %s21501_s17   ;;  %s17470_s16 = sphi %s17581_s16, %s21500_s16   ;;  %s17466_s15 = sphi %s17579_s15, %s21499_s15   ;;  %s17462_s14 = sphi %s17577_s14, %s21497_s14   ;;  %s17458_s13 = sphi %s17575_s13, %s21496_s13  }
  0x16   : > { %20999 = sst [smem:[#allocation29_spill]] %s17462_s14  ;;  %p12633_p0 = scmp.ge.s32.totalorder %s17498_s23, 1 }
  0x17   : > { %21000 = sst [smem:[#allocation30_spill]] %s17466_s15  ;;  %p17634_p1 = scmp.eq.s32.totalorder %s20902_s24, 0 }
  0x18   : > { %21001 = sst [smem:[#allocation31_spill]] %s17482_s19  ;;  %p291_p2 = scmp.lt.s32.totalorder %s17498_s23, 5 }
  0x19   : > { %21002 = sst [smem:[#allocation32_spill]] %s17486_s20  ;;  %s17500_s27 = smov [#allocation6]  }
  0x1a   : > { %s21003_s25 = scalar_select %p17634_p1, 1, 0 }
  0x1b   : > { %p17639_p3 = pnand %p12633_p0, %p291_p2  ;;  %s303_s28 = sshll.u32 %s17500_s27, 4  ;;  %s17643_s28 = int_to_ptr.vmem [resolvable:$true] %s303_s28 }
  0x1c   : > { %21004 = sst [smem:[#allocation33_spill]] %s21003_s25  ;;  %s17501_s30 = smov [#allocation9]  }
  0x1d   : > { %s21005_s26 = scalar_select %p17639_p3, 1, 0 }
  0x1e   : > { %p16033_p4 = pneg %p17639_p3  ;;  %s328_s11 = sshll.u32 %s17501_s30, 4  ;;  %s17653_s11 = int_to_ptr.vmem [resolvable:$true] %s328_s11 }
  0x1f   : > { %21006 = sst [smem:[#allocation34_spill]] %s21005_s26  ;;  %s17502_s12 = smov [#allocation12]  }
  0x20   : > { %p17649_p5 = pnand %p16033_p4, %p17634_p1  ;;  %s17655_s24 = sshll.u32 %s17502_s12, 4  ;;  %s353_s24 = int_to_ptr.vmem [resolvable:$true] %s17655_s24 }
  0x21   : > { %s21008_s1 = sld [smem:[#allocation125_spill]] }
  0x22   : > { %p17665_p7 = pneg %p17649_p5 }
  0x27   : > { %s17074_s27 = scalar_lea.hbm %s21008_s1, 4096 }
  0x28   : > { %p17075_p6 = scmp.ne.s32.totalorder %s21008_s1, %s17074_s27  ;;  %p17081_p10 = scmp.lt.u32.totalorder %s17074_s27, %s21008_s1 }
  0x2a   : > { %p17077_p8 = pnand %p17665_p7, %p17075_p6 }
  0x2c   : > { %p17078_p9 = pneg %p17077_p8 }
  0x2e   : > { %p17083_p11 = pnand %p17081_p10, %p17078_p9 }
  0x30   : > { %17086 = shalt.err (!%p17083_p11)
}
  0x31   : > { %s17087_s10 = scalar_lea.vmem %s17643_s28, 4096  ;;  %p17095_p2 = scmp.lt.s32.totalorder %s17643_s28, %s17643_s28 }
  0x32   : > { %p17088_p12 = scmp.ne.s32.totalorder %s17643_s28, %s17087_s10  ;;  %p17096_p4 = scmp.lt.s32.totalorder %s17087_s10, %s17087_s10 }
  0x34   : > { %p17090_p13 = pnand %p17088_p12, %p17665_p7  ;;  %p17097_p6 = por %p17096_p4, %p17095_p2 }
  0x36   : > { %p17091_p0 = pneg %p17090_p13 }
  0x38   : > { %p17098_p8 = pnand %p17097_p6, %p17091_p0 }
  0x3a   : > { %17101 = shalt.err (!%p17098_p8)
}
  0x3b   : > { %s20915_s19 = smov 64   ;;  %s20916_s20 = smov 4  }
  0x3c   : > { %16036 = dma.hbm_to_vmem [thread:$0]  (!%p17649_p5), %s21008_s1, 4096, %s17643_s28, [#allocation7], %s20915_s19, %s20915_s19, %s20916_s20  }
  0x3d   : > { %s21010_s3 = sld [smem:[#allocation127_spill]] }
  0x43   : > { %s17102_s10 = scalar_lea.hbm %s21010_s3, 16 }
  0x44   : > { %p17103_p9 = scmp.ne.s32.totalorder %s21010_s3, %s17102_s10  ;;  %p17109_p12 = scmp.lt.u32.totalorder %s17102_s10, %s21010_s3 }
  0x46   : > { %p17105_p10 = pnand %p17103_p9, %p17665_p7 }
  0x48   : > { %p17106_p11 = pneg %p17105_p10 }
  0x4a   : > { %p17111_p13 = pnand %p17109_p12, %p17106_p11 }
  0x4c   : > { %17114 = shalt.err (!%p17111_p13)
}
  0x4d   : > { %s17115_s28 = scalar_lea.vmem %s17653_s11, 16  ;;  %s17122_s13 = scalar_lea.vmem %s17653_s11, 32 }
  0x4e   : > { %p17116_p0 = scmp.ne.s32.totalorder %s17653_s11, %s17115_s28  ;;  %p17123_p6 = scmp.lt.s32.totalorder %s17653_s11, %s17653_s11 }
  0x4f   : > { %p17124_p8 = scmp.lt.s32.totalorder %s17122_s13, %s17115_s28 }
  0x50   : > { %p17118_p2 = pnand %p17116_p0, %p17665_p7 }
  0x51   : > { %p17125_p9 = por %p17124_p8, %p17123_p6 }
  0x52   : > { %p17119_p4 = pneg %p17118_p2 }
  0x54   : > { %p17126_p10 = pnand %p17125_p9, %p17119_p4 }
  0x56   : > { %17129 = shalt.err (!%p17126_p10)
}
  0x57   : > { %16042 = dma.hbm_to_vmem [thread:$0]  (!%p17649_p5), %s21010_s3, 16, %s17653_s11, [#allocation10]  }
  0x58   : > { %s17130_s27 = scalar_lea.hbm %s20896_s5, 16 }
  0x59   : > { %p17131_p11 = scmp.ne.s32.totalorder %s20896_s5, %s17130_s27  ;;  %p17137_p0 = scmp.lt.u32.totalorder %s17130_s27, %s20896_s5 }
  0x5b   : > { %p17133_p12 = pnand %p17131_p11, %p17665_p7 }
  0x5d   : > { %p17134_p13 = pneg %p17133_p12 }
  0x5f   : > { %p17139_p2 = pnand %p17137_p0, %p17134_p13 }
  0x61   : > { %17142 = shalt.err (!%p17139_p2)
}
  0x62   : > { %s17143_s13 = scalar_lea.vmem %s353_s24, 16  ;;  %s17150_s11 = scalar_lea.vmem %s353_s24, 32 }
  0x63   : > { %p17144_p4 = scmp.ne.s32.totalorder %s353_s24, %s17143_s13  ;;  %p17151_p9 = scmp.lt.s32.totalorder %s353_s24, %s353_s24 }
  0x64   : > { %p17152_p10 = scmp.lt.s32.totalorder %s17150_s11, %s17143_s13 }
  0x65   : > { %p17146_p6 = pnand %p17144_p4, %p17665_p7 }
  0x66   : > { %p17153_p3 = por %p17152_p10, %p17151_p9 }
  0x67   : > { %p17147_p8 = pneg %p17146_p6 }
  0x69   : > { %p17154_p1 = pnand %p17153_p3, %p17147_p8 }
  0x6b   : > { %17157 = shalt.err (!%p17154_p1)
}
  0x6c   : > { %16048 = dma.hbm_to_vmem [thread:$0]  (!%p17649_p5), %s20896_s5, 16, %s353_s24, [#allocation13]  }
  0x6d   : > { %s17505_s25 = smov [#allocation15]   ;;  %s17158_s12 = scalar_lea.hbm %s20898_s7, 4096 }
  0x6e   : > { %s373_s26 = sshll.u32 %s17505_s25, 4  ;;  %p17159_p11 = scmp.ne.s32.totalorder %s20898_s7, %s17158_s12  ;;  %s374_s26 = int_to_ptr.vmem [resolvable:$true] %s373_s26 }
  0x6f   : > { %p17165_p12 = scmp.lt.u32.totalorder %s17158_s12, %s20898_s7 }
  0x70   : > { %p17161_p1 = pnand %p17159_p11, %p17665_p7 }
  0x72   : > { %p17162_p3 = pneg %p17161_p1 }
  0x74   : > { %p17167_p13 = pnand %p17165_p12, %p17162_p3 }
  0x76   : > { %17170 = shalt.err (!%p17167_p13)
}
  0x77   : > { %s17171_s24 = scalar_lea.vmem %s374_s26, 4096  ;;  %p17179_p6 = scmp.lt.s32.totalorder %s374_s26, %s374_s26 }
  0x78   : > { %p17172_p0 = scmp.ne.s32.totalorder %s374_s26, %s17171_s24  ;;  %p17180_p8 = scmp.lt.s32.totalorder %s17171_s24, %s17171_s24 }
  0x7a   : > { %p17174_p2 = pnand %p17172_p0, %p17665_p7  ;;  %p17181_p9 = por %p17180_p8, %p17179_p6 }
  0x7c   : > { %p17175_p4 = pneg %p17174_p2 }
  0x7e   : > { %p17182_p10 = pnand %p17181_p9, %p17175_p4 }
  0x80   : > { %17185 = shalt.err (!%p17182_p10)
}
  0x81   : > { %s20917_s14 = smov 256   ;;  %s20918_s15 = smov 16  }
  0x82   : > { %16054 = dma.hbm_to_vmem [thread:$0]  (!%p17649_p5), %s20898_s7, 4096, %s374_s26, [#allocation16], %s20917_s14, %s20917_s14, %s20918_s15  }
  0x83   : > { %s17508_s30 = smov [#allocation8]   ;;  %s17509_s10 = smov [#allocation11]  }
  0x84   : > { %s317_s12 = sshll.u32 %s17508_s30, 4  ;;  %s338_s28 = sshll.u32 %s17509_s10, 4  ;;  %s318_s12 = int_to_ptr.vmem [resolvable:$true] %s317_s12  ;;  %s17753_s28 = int_to_ptr.vmem [resolvable:$true] %s338_s28 }
  0x85   : > { %s21011_s2 = sld [smem:[#allocation126_spill]] }
  0x8b   : > { %s17186_s24 = scalar_lea.hbm %s21011_s2, 16 }
  0x8c   : > { %p17187_p11 = scmp.ne.s32.totalorder %s21011_s2, %s17186_s24  ;;  %p17193_p12 = scmp.lt.u32.totalorder %s17186_s24, %s21011_s2 }
  0x8e   : > { %p17189_p1 = pnand %p17187_p11, %p17665_p7 }
  0x90   : > { %p17190_p3 = pneg %p17189_p1 }
  0x92   : > { %p17195_p13 = pnand %p17193_p12, %p17190_p3 }
  0x94   : > { %17198 = shalt.err (!%p17195_p13)
}
  0x95   : > { %s17199_s27 = scalar_lea.vmem %s318_s12, 16  ;;  %s17206_s30 = scalar_lea.vmem %s318_s12, 32 }
  0x96   : > { %p17200_p0 = scmp.ne.s32.totalorder %s318_s12, %s17199_s27  ;;  %p17207_p6 = scmp.lt.s32.totalorder %s318_s12, %s318_s12 }
  0x97   : > { %p17208_p8 = scmp.lt.s32.totalorder %s17206_s30, %s17199_s27 }
  0x98   : > { %p17202_p2 = pnand %p17200_p0, %p17665_p7 }
  0x99   : > { %p17209_p9 = por %p17208_p8, %p17207_p6 }
  0x9a   : > { %p17203_p4 = pneg %p17202_p2 }
  0x9c   : > { %p17210_p10 = pnand %p17209_p9, %p17203_p4 }
  0x9e   : > { %17213 = shalt.err (!%p17210_p10)
}
  0x9f   : > { %16039 = dma.hbm_to_vmem [thread:$0]  (!%p17649_p5), %s21011_s2, 16, %s318_s12, [#allocation7]  }
  0xa0   : > { %s21012_s4 = sld [smem:[#allocation128_spill]] }
  0xa6   : > { %s17214_s11 = scalar_lea.hbm %s21012_s4, 27648 }
  0xa7   : > { %p17215_p11 = scmp.ne.s32.totalorder %s21012_s4, %s17214_s11  ;;  %p17221_p12 = scmp.lt.u32.totalorder %s17214_s11, %s21012_s4 }
  0xa9   : > { %p17217_p1 = pnand %p17215_p11, %p17665_p7 }
  0xab   : > { %p17218_p3 = pneg %p17217_p1 }
  0xad   : > { %p17223_p13 = pnand %p17221_p12, %p17218_p3 }
  0xaf   : > { %17226 = shalt.err (!%p17223_p13)
}
  0xb0   : > { %s17227_s12 = scalar_lea.vmem %s17753_s28, 27648  ;;  %p17235_p6 = scmp.lt.s32.totalorder %s17753_s28, %s17753_s28 }
  0xb1   : > { %p17228_p0 = scmp.ne.s32.totalorder %s17753_s28, %s17227_s12  ;;  %p17236_p8 = scmp.lt.s32.totalorder %s17227_s12, %s17227_s12 }
  0xb3   : > { %p17230_p2 = pnand %p17228_p0, %p17665_p7  ;;  %p17237_p9 = por %p17236_p8, %p17235_p6 }
  0xb5   : > { %p17231_p4 = pneg %p17230_p2 }
  0xb7   : > { %p17238_p10 = pnand %p17237_p9, %p17231_p4 }
  0xb9   : > { %17241 = shalt.err (!%p17238_p10)
}
  0xba   : > { %s21013_s30 = smov 4   ;;  %s21014_s19 = smov 64  }
  0xbb   : > { %16045 = dma.hbm_to_vmem [thread:$0]  (!%p17649_p5), %s21012_s4, 27648, %s17753_s28, [#allocation10], %s21014_s19, %s21014_s19, %s21013_s30  }
  0xbc   : > { %s17510_s13 = smov [#allocation14]   ;;  %s17511_s24 = smov [#allocation17]  }
  0xbd   : > { %s363_s11 = sshll.u32 %s17510_s13, 4  ;;  %s387_s25 = sshll.u32 %s17511_s24, 4  ;;  %s364_s11 = int_to_ptr.vmem [resolvable:$true] %s363_s11  ;;  %s17799_s25 = int_to_ptr.vmem [resolvable:$true] %s387_s25 }
  0xbe   : > { %s17242_s12 = scalar_lea.hbm %s20897_s6, 16 }
  0xbf   : > { %p17243_p11 = scmp.ne.s32.totalorder %s20897_s6, %s17242_s12  ;;  %p17249_p12 = scmp.lt.u32.totalorder %s17242_s12, %s20897_s6 }
  0xc1   : > { %p17245_p1 = pnand %p17243_p11, %p17665_p7 }
  0xc3   : > { %p17246_p3 = pneg %p17245_p1 }
  0xc5   : > { %p17251_p13 = pnand %p17249_p12, %p17246_p3 }
  0xc7   : > { %17254 = shalt.err (!%p17251_p13)
}
  0xc8   : > { %s17255_s30 = scalar_lea.vmem %s364_s11, 16  ;;  %s17262_s19 = scalar_lea.vmem %s364_s11, 32 }
  0xc9   : > { %p17256_p0 = scmp.ne.s32.totalorder %s364_s11, %s17255_s30  ;;  %p17263_p6 = scmp.lt.s32.totalorder %s364_s11, %s364_s11 }
  0xca   : > { %p17264_p8 = scmp.lt.s32.totalorder %s17262_s19, %s17255_s30 }
  0xcb   : > { %p17258_p2 = pnand %p17256_p0, %p17665_p7 }
  0xcc   : > { %p17265_p9 = por %p17264_p8, %p17263_p6 }
  0xcd   : > { %p17259_p4 = pneg %p17258_p2 }
  0xcf   : > { %p17266_p10 = pnand %p17265_p9, %p17259_p4 }
  0xd1   : > { %17269 = shalt.err (!%p17266_p10)
}
  0xd2   : > { %16051 = dma.hbm_to_vmem [thread:$0]  (!%p17649_p5), %s20897_s6, 16, %s364_s11, [#allocation13]  }
  0xd3   : > { %s17270_s24 = scalar_lea.hbm %s20899_s8, 64 }
  0xd4   : > { %p17271_p11 = scmp.ne.s32.totalorder %s20899_s8, %s17270_s24  ;;  %p17277_p12 = scmp.lt.u32.totalorder %s17270_s24, %s20899_s8 }
  0xd6   : > { %p17273_p1 = pnand %p17271_p11, %p17665_p7 }
  0xd8   : > { %p17274_p3 = pneg %p17273_p1 }
  0xda   : > { %p17279_p13 = pnand %p17277_p12, %p17274_p3 }
  0xdc   : > { %17282 = shalt.err (!%p17279_p13)
}
  0xdd   : > { %s17283_s11 = scalar_lea.vmem %s17799_s25, 64  ;;  %p17291_p6 = scmp.lt.s32.totalorder %s17799_s25, %s17799_s25 }
  0xde   : > { %p17284_p0 = scmp.ne.s32.totalorder %s17799_s25, %s17283_s11  ;;  %p17292_p8 = scmp.lt.s32.totalorder %s17283_s11, %s17283_s11 }
  0xe0   : > { %p17286_p2 = pnand %p17284_p0, %p17665_p7  ;;  %p17293_p9 = por %p17292_p8, %p17291_p6 }
  0xe2   : > { %p17287_p4 = pneg %p17286_p2 }
  0xe4   : > { %p17294_p10 = pnand %p17293_p9, %p17287_p4 }
  0xe6   : > { %17297 = shalt.err (!%p17294_p10)
}
  0xe7   : > { %16057 = dma.hbm_to_vmem [thread:$0]  (!%p17649_p5), %s20899_s8, 64, %s17799_s25, [#allocation16]  }
  0xe8   : > { %s17512_s19 = smov [#allocation18]   ;;  %s17298_s13 = scalar_lea.hbm %s20900_s9, 64 }
  0xe9   : > { %s398_s14 = sshll.u32 %s17512_s19, 4  ;;  %p17299_p11 = scmp.ne.s32.totalorder %s20900_s9, %s17298_s13  ;;  %s399_s14 = int_to_ptr.vmem [resolvable:$true] %s398_s14 }
  0xea   : > { %p17305_p12 = scmp.lt.u32.totalorder %s17298_s13, %s20900_s9 }
  0xeb   : > { %p17301_p1 = pnand %p17299_p11, %p17665_p7 }
  0xed   : > { %p17302_p3 = pneg %p17301_p1 }
  0xef   : > { %p17307_p13 = pnand %p17305_p12, %p17302_p3 }
  0xf1   : > { %17310 = shalt.err (!%p17307_p13)
}
  0xf2   : > { %s17311_s25 = scalar_lea.vmem %s399_s14, 64  ;;  %p17319_p6 = scmp.lt.s32.totalorder %s399_s14, %s399_s14 }
  0xf3   : > { %p17312_p0 = scmp.ne.s32.totalorder %s399_s14, %s17311_s25  ;;  %p17320_p8 = scmp.lt.s32.totalorder %s17311_s25, %s17311_s25 }
  0xf5   : > { %p17314_p2 = pnand %p17312_p0, %p17665_p7  ;;  %p17321_p9 = por %p17320_p8, %p17319_p6 }
  0xf7   : > { %p17315_p4 = pneg %p17314_p2 }
  0xf9   : > { %p17322_p10 = pnand %p17321_p9, %p17315_p4 }
  0xfb   : > { %17325 = shalt.err (!%p17322_p10)
}
  0xfc   : > { %s21015_s0 = sld [smem:[#allocation33_spill]]  ;;  %s21016_s28 = sld [smem:[#allocation30_spill]] }
  0xfd   : > { %16060 = dma.hbm_to_vmem [thread:$0]  (!%p17649_p5), %s20900_s9, 64, %s399_s14, [#allocation19]  }
  0xfe   : > { %s12632_s30 = sadd.s32 4294967294, %s17498_s23   ;;  %s21017_s19 = sld [smem:[#allocation29_spill]] }
  0xff   : > { %s40_s29 = sadd.s32 1, %s17490_s21  ;;  %s43_s15 = sadd.s32 1, %s17494_s22 }
 0x100   : > { %p41_p7 = scmp.ge.s32.totalorder %s40_s29, 2  ;;  %s21018_s10 = sld [smem:[#allocation28_spill]] }
 0x101   : > { %s50_s13 = sadd.s32 1, %s17478_s18  ;;  %p57_p11 = scmp.ne.s32.totalorder %s17478_s18, %s17474_s17 }
 0x102   : > { %p58_p1 = scmp.eq.s32.totalorder %s17498_s23, 0  ;;  %s21508_s29 = smov (%p41_p7, %s40_s29), 0 }
 0x103   : > { %s21510_s15 = smov (!%p41_p7, %s43_s15), %s17494_s22  ;;  %p63_p5 = scmp.ne.s32.totalorder %s17474_s17, %s17470_s16 }
 0x104   : > { %p17870_p3 = por %p58_p1, %p57_p11  ;;  %p45_p12 = scmp.ge.s32.totalorder %s21510_s15, 2 }
 0x105   : > { %s263_s24 = ssub.s32 %s17490_s21, %s21508_s29  ;;  %p21020_p13 = scmp.ne.s32.totalorder %s21015_s0, 0 }
 0x106   : > { %s267_s27 = sadd.s32 1, %s21016_s28  ;;  %s21512_s15 = smov (%p45_p12, %s21510_s15), 0 }
 0x107   : > { %p17880_p0 = por %p21020_p13, %p63_p5  ;;  %p277_p2 = scmp.ne.s32.totalorder %s21016_s28, %s21017_s19 }
 0x108   : > { %s21022_s12 = sadd.s32 4294967295, %s17498_s23   ;;  %s47_s25 = ssub.s32 %s17494_s22, %s21512_s15 }
 0x109   : > { %p278_p4 = scmp.eq.s32.totalorder %s21022_s12, 3  ;;  %p283_p6 = scmp.ne.s32.totalorder %s21017_s19, %s21018_s10 }
 0x10a   : > { %p48_p8 = scmp.eq.s32.totalorder %s47_s25, 0  ;;  %s264_s16 = sor.u32 %s263_s24, %s47_s25 }
 0x10b   : > { %p265_p9 = scmp.eq.s32.totalorder %s264_s16, 0  ;;  %p17895_p10 = por %p278_p4, %p277_p2 }
 0x10c   : > { %s17900_s11 = scalar_select %p48_p8, %s17478_s18, %s50_s13  }
 0x10d   : > { %s21023_s20 = scalar_select %p17895_p10, 1, 0 }
 0x10e   : > { %s21514_s28 = smov (!%p265_p9, %s21016_s28), %s267_s27  ;;  %p284_p7 = scmp.eq.s32.totalorder %s12632_s30, 3 }
 0x10f   : > { %p16078_p11 = scmp.lt.s32.totalorder %s17498_s23, 4  ;;  %s409_s0 = sand.u32 1, %s17478_s18  }
 0x110   : > { %s15991_s1 = smul.u32 20480, %s17494_s22  ;;  %p17908_p1 = por %p284_p7, %p283_p6 }
 0x111   : > { %s15990_s19 = smul.u32 1280, %s409_s0  ;;  %p17914_p5 = pnand %p16078_p11, %p17870_p3 }
 0x112   : > { %s21024_s2 = scalar_select %p17908_p1, 1, 0 }
 0x113   : > { %s21026_s13 = sld [smem:[#allocation124_spill]]  ;;  %s413_s30 = scalar_lea.vmem [#allocation3], %s15990_s19 }
 0x114   : > { %s420_s16 = sshll.u32 %s413_s30, 4  ;;  %s17925_s14 = scalar_lea.sflag [#allocation4], %s409_s0  ;;  %s17923_s16 = int_to_ptr.vmem [resolvable:$true] %s420_s16 }
 0x115   : > { %p17328_p12 = pneg %p17914_p5 }
 0x119   : > { %s21027_s25 = smov %s21026_s13  ;;  %s17921_s27 = scalar_lea.hbm %s21026_s13, %s15991_s1 }
 0x11a   : > { %s17326_s3 = scalar_lea.hbm %s17921_s27, 20480  ;;  %s17331_s12 = scalar_lea.hbm %s21027_s25, 40960 }
 0x11b   : > { %p17327_p3 = scmp.ne.s32.totalorder %s17921_s27, %s17326_s3  ;;  %p17332_p4 = scmp.lt.u32.totalorder %s17921_s27, %s21027_s25 }
 0x11c   : > { %p17333_p6 = scmp.lt.u32.totalorder %s17331_s12, %s17326_s3  ;;  %p17335_p9 = scmp.lt.u32.totalorder %s17326_s3, %s17921_s27 }
 0x11d   : > { %p17329_p13 = pnand %p17328_p12, %p17327_p3 }
 0x11e   : > { %p17334_p8 = por %p17333_p6, %p17332_p4 }
 0x11f   : > { %p17330_p2 = pneg %p17329_p13 }
 0x120   : > { %p17336_p7 = por %p17335_p9, %p17334_p8 }
 0x122   : > { %p17337_p11 = pnand %p17336_p7, %p17330_p2 }
 0x124   : > { %17340 = shalt.err (!%p17337_p11)
}
 0x125   : > { %s17341_s0 = scalar_lea.vmem %s17923_s16, 20480  ;;  %s17513_s19 = smov [#allocation3]  }
 0x126   : > { %p17342_p3 = scmp.ne.s32.totalorder %s17923_s16, %s17341_s0  ;;  %s17346_s30 = sshll.u32 %s17513_s19, 4  ;;  %s17347_s30 = int_to_ptr.vmem [resolvable:$false] %s17346_s30 }
 0x127   : > { %s17348_s4 = scalar_lea.vmem %s17347_s30, 40960  ;;  %p17349_p10 = scmp.lt.s32.totalorder %s17923_s16, %s17347_s30 }
 0x128   : > { %p17344_p13 = pnand %p17342_p3, %p17328_p12  ;;  %p17350_p4 = scmp.lt.s32.totalorder %s17348_s4, %s17341_s0 }
 0x12a   : > { %p17345_p1 = pneg %p17344_p13  ;;  %p17351_p6 = por %p17350_p4, %p17349_p10 }
 0x12c   : > { %p17352_p8 = pnand %p17351_p6, %p17345_p1 }
 0x12e   : > { %17355 = shalt.err (!%p17352_p8)
}
 0x12f   : > { %s21028_s3 = smov 16   ;;  %s21029_s1 = smov 256  }
 0x130   : > { %16064 = dma.hbm_to_vmem [thread:$0]  (!%p17914_p5), %s17921_s27, 20480, %s17923_s16, %s17925_s14, %s21029_s1, %s21029_s1, %s21028_s3  }
 0x131   : > { %s21030_s24 = sld [smem:[#allocation34_spill]] }
 0x137   : > { %p21031_p12 = scmp.ne.s32.totalorder %s21030_s24, 0 }
 0x139   : > { %432 = sbr.rel (%p21031_p12) target bundleno = 2723 (0xaa3), region = 60 }
 0x140   : > { %s434_s12 = sand.u32 1, %s17474_s17  }
 0x141   : > { %s17959_s13 = smul.u32 1280, %s434_s12  ;;  %s435_s0 = scalar_lea.sflag [#allocation4], %s434_s12 }
 0x143   : > { %s438_s19 = scalar_lea.vmem [#allocation3], %s17959_s13 }
 0x144   : > { %17429 = dma.done.wait (%p17880_p0), %s435_s0, 20480  }
 0x145   : > { %17431 = vsyncadd (%p17880_p0), %s435_s0, 4294946816  ;;  %s21032_s10 = sld [smem:[#allocation33_spill]] }
 0x14b   : > { %p21033_p10 = scmp.ne.s32.totalorder %s21032_s10, 0 }
 0x14d   : > { %17433 = dma.done.wait (%p21033_p10), [#allocation7], 4112  }
 0x14e   : > { %17435 = vsyncadd (%p21033_p10), [#allocation7], 4294963184 }
 0x14f   : > { %17437 = dma.done.wait (%p21033_p10), [#allocation10], 27664  }
 0x150   : > { %17439 = vsyncadd (%p21033_p10), [#allocation10], 4294939632 }
 0x151   : > { %17441 = dma.done.wait (%p21033_p10), [#allocation13], 32  }
 0x152   : > { %17443 = vsyncadd (%p21033_p10), [#allocation13], 4294967264 }
 0x153   : > { %17445 = dma.done.wait (%p21033_p10), [#allocation16], 4160  }
 0x154   : > { %17447 = vsyncadd (%p21033_p10), [#allocation16], 4294963136 }
 0x155   : > { %17449 = dma.done.wait (%p21033_p10), [#allocation19], 64  }
 0x156   : > { %17451 = vsyncadd (%p21033_p10), [#allocation19], 4294967232  ;;  %s21034_s26 = sld [smem:[#allocation29_spill]]  ;;  %v20920_v0 = vmov 0   ;;  %s21035_s16 = sld [smem:[#allocation31_spill]]  ;;  %v16195_v1 = vld [vmem:[#allocation6] sm:$0xff]  }
 0x157   : > { %2584 = vst [vmem:[#allocation2] sm:$0xff] %v20920_v0  ;;  %2585 = vst [vmem:[#allocation2 + $0x8] sm:$0xf] %v20920_v0  ;;  %1349 = vmatprep.subr.bf16.mxu0 %v20920_v0  ;;  %v16196_v2 = vld [vmem:[#allocation6 + $0x8] sm:$0xff]   ;;  %v16197_v3 = vld [vmem:[#allocation6 + $0x10] sm:$0xff]   ;;  %vm2101_vm0 = vcmask 1040384  }
 0x158   : > { %2586 = vst [vmem:[#allocation2 + $0x78] sm:$0xff] %v20920_v0  ;;  %2587 = vst [vmem:[#allocation2 + $0x80] sm:$0xf] %v20920_v0  ;;  %1350 = vmatpush1.bf16.msra.mxu0 %v16195_v1  ;;  %v16198_v4 = vld [vmem:[#allocation6 + $0x18] sm:$0xff]   ;;  %v16199_v5 = vld [vmem:[#allocation6 + $0x20] sm:$0xff]   ;;  %vm2246_vm1 = vcmask 1046528  }
 0x159   : > { %2588 = vst [vmem:[#allocation2 + $0xf0] sm:$0xff] %v20920_v0  ;;  %2589 = vst [vmem:[#allocation2 + $0xf8] sm:$0xf] %v20920_v0  ;;  %1351 = vmatprep.subr.bf16.mxu0 %v20920_v0  ;;  %v16200_v7 = vld [vmem:[#allocation6 + $0x28] sm:$0xff]   ;;  %v16201_v8 = vld [vmem:[#allocation6 + $0x30] sm:$0xff]  }
 0x15a   : > { %2590 = vst [vmem:[#allocation2 + $0x168] sm:$0xff] %v20920_v0  ;;  %2591 = vst [vmem:[#allocation2 + $0x170] sm:$0xf] %v20920_v0  ;;  %v16202_v9 = vld [vmem:[#allocation6 + $0x38] sm:$0xff]   ;;  %v16203_v10 = vld [vmem:[#allocation6 + $0x40] sm:$0xff]  }
 0x15b   : > { %2592 = vst [vmem:[#allocation2 + $0x1e0] sm:$0xff] %v20920_v0  ;;  %2593 = vst [vmem:[#allocation2 + $0x1e8] sm:$0xf] %v20920_v0  ;;  %v16204_v11 = vld [vmem:[#allocation6 + $0x48] sm:$0xff]   ;;  %v16205_v12 = vld [vmem:[#allocation6 + $0x50] sm:$0xff]  }
 0x15c   : > { %s508_s27 = sand.u32 1, %s21034_s26   ;;  %2594 = vst [vmem:[#allocation2 + $0x258] sm:$0xff] %v20920_v0  ;;  %2595 = vst [vmem:[#allocation2 + $0x260] sm:$0xf] %v20920_v0  ;;  %1352 = vmatpush1.bf16.msra.mxu0 %v16196_v2  ;;  %s13611_s30 = sshll.u32 %s21035_s16, 9  ;;  %v16206_v13 = vld [vmem:[#allocation6 + $0x58] sm:$0xff]  }
 0x15d   : > { %2597 = vst [vmem:[#allocation2 + $0x6c] sm:$0xff] %v20920_v0  ;;  %2598 = vst [vmem:[#allocation2 + $0x74] sm:$0xf] %v20920_v0  ;;  %s18013_s14 = sshll.u32 %s508_s27, 9  ;;  %1353 = vmatprep.subr.bf16.mxu0 %v20920_v0  ;;  %s18022_s4 = scalar_lea.vmem %s438_s19, %s13611_s30 [#allocation3]  ;;  %v16207_v14 = vld [vmem:[#allocation6 + $0x60] sm:$0xff]   ;;  %v16208_v15 = vld [vmem:[#allocation6 + $0x68] sm:$0xff]  }
 0x15e   : > { %2599 = vst [vmem:[#allocation2 + $0xe4] sm:$0xff] %v20920_v0  ;;  %2600 = vst [vmem:[#allocation2 + $0xec] sm:$0xf] %v20920_v0  ;;  %v16213_v6 = vld [vmem:[%s18022_s4 + $0x4] ss:$16 sps:$4 sm:$0xff]   ;;  %v16210_v17 = vld [vmem:[#allocation6 + $0x78] sm:$0xff]  }
 0x15f   : > { %2601 = vst [vmem:[#allocation2 + $0x15c] sm:$0xff] %v20920_v0  ;;  %2602 = vst [vmem:[#allocation2 + $0x164] sm:$0xf] %v20920_v0  ;;  %1381 = vmatprep.mubr.bf16.mxu0 %v16213_v6  ;;  %v16209_v16 = vld [vmem:[#allocation6 + $0x70] sm:$0xff]   ;;  %v16214_v19 = vld [vmem:[#allocation6 + $0x80] sm:$0xff]   ;;  %s18349_s3 = scalar_lea.vmem [#allocation20], %s18013_s14 }
 0x160   : > { %2603 = vst [vmem:[#allocation2 + $0x1d4] sm:$0xff] %v20920_v0  ;;  %2604 = vst [vmem:[#allocation2 + $0x1dc] sm:$0xf] %v20920_v0  ;;  %1354 = vmatpush1.bf16.msra.mxu0 %v16197_v3  ;;  %v16211_v18 = vld [vmem:[%s18022_s4] ss:$16 sps:$4 sm:$0xff]   ;;  %v16218_v21 = vld [vmem:[#allocation6 + $0x88] sm:$0xff]  }
 0x161   : > { %2605 = vst [vmem:[#allocation2 + $0x24c] sm:$0xff] %v20920_v0  ;;  %2606 = vst [vmem:[#allocation2 + $0x254] sm:$0xf] %v20920_v0  ;;  %1355 = vmatprep.subr.bf16.mxu0 %v20920_v0  ;;  %v16215_v20 = vld [vmem:[%s18022_s4 + $0x24] ss:$16 sps:$4 sm:$0xff]   ;;  %v16229_v25 = vld [vmem:[#allocation6 + $0x98] sm:$0xff]  }
 0x162   : > { %2607 = vst [vmem:[#allocation2 + $0x2c4] sm:$0xff] %v20920_v0  ;;  %2608 = vst [vmem:[#allocation2 + $0x2cc] sm:$0xf] %v20920_v0  ;;  %v16217_v22 = vld [vmem:[%s18022_s4 + $0x20] ss:$16 sps:$4 sm:$0xff]   ;;  %v16240_v29 = vld [vmem:[#allocation6 + $0xa8] sm:$0xff]  }
 0x163   : > { %v16219_v23 = vld [vmem:[%s18022_s4 + $0x44] ss:$16 sps:$4 sm:$0xff]   ;;  %v16221_v26 = vld [vmem:[%s18022_s4 + $0x40] ss:$16 sps:$4 sm:$0xff]   ;;  %v16251_v33 = vld [vmem:[#allocation6 + $0xb8] sm:$0xff]   ;;  %p12789_p0 = scmp.ne.s32.totalorder %s21035_s16, 0 }
 0x164   : > { %1356 = vmatpush1.bf16.msra.mxu0 %v16198_v4  ;;  %v16225_v24 = vld [vmem:[#allocation6 + $0x90] sm:$0xff]   ;;  %v16236_v28 = vld [vmem:[#allocation6 + $0xa0] sm:$0xff]   ;;  %v16262_v37 = vld [vmem:[#allocation6 + $0xc8] sm:$0xff]  }
 0x165   : > { %1357 = vmatprep.subr.bf16.mxu0 %v20920_v0  ;;  %v16222_v27 = vld [vmem:[%s18022_s4 + $0x64] ss:$16 sps:$4 sm:$0xff]   ;;  %v16224_v30 = vld [vmem:[%s18022_s4 + $0x60] ss:$16 sps:$4 sm:$0xff]   ;;  %v16273_v41 = vld [vmem:[#allocation6 + $0xd8] sm:$0xff]  }
 0x166   : > { %v16226_v31 = vld [vmem:[%s18022_s4 + $0x84] ss:$16 sps:$4 sm:$0xff]   ;;  %v16228_v34 = vld [vmem:[%s18022_s4 + $0x80] ss:$16 sps:$4 sm:$0xff]   ;;  %v16284_v45 = vld [vmem:[#allocation6 + $0xe8] sm:$0xff]  }
 0x167   : > { %v16247_v32 = vld [vmem:[#allocation6 + $0xb0] sm:$0xff]   ;;  %v16258_v36 = vld [vmem:[#allocation6 + $0xc0] sm:$0xff]   ;;  %v16295_v49 = vld [vmem:[#allocation6 + $0xf8] sm:$0xff]  }
 0x168   : > { %1358 = vmatpush1.bf16.msra.mxu0 %v16199_v5  ;;  %v16230_v35 = vld [vmem:[%s18022_s4 + $0xa4] ss:$16 sps:$4 sm:$0xff]   ;;  %v16232_v38 = vld [vmem:[%s18022_s4 + $0xa0] ss:$16 sps:$4 sm:$0xff]  }
 0x169   : > { %1359 = vmatprep.subr.bf16.mxu0 %v20920_v0  ;;  %v16233_v39 = vld [vmem:[%s18022_s4 + $0xc4] ss:$16 sps:$4 sm:$0xff]   ;;  %v16235_v42 = vld [vmem:[%s18022_s4 + $0xc0] ss:$16 sps:$4 sm:$0xff]  }
 0x16a   : > { %v16269_v40 = vld [vmem:[#allocation6 + $0xd0] sm:$0xff]   ;;  %v16280_v44 = vld [vmem:[#allocation6 + $0xe0] sm:$0xff]  }
 0x16b   : > { %v16237_v43 = vld [vmem:[%s18022_s4 + $0xe4] ss:$16 sps:$4 sm:$0xff]   ;;  %v16239_v46 = vld [vmem:[%s18022_s4 + $0xe0] ss:$16 sps:$4 sm:$0xff]  }
 0x16c   : > { %1360 = vmatpush1.bf16.msra.mxu0 %v16200_v7  ;;  %v16241_v47 = vld [vmem:[%s18022_s4 + $0x104] ss:$16 sps:$4 sm:$0xff]   ;;  %v16243_v50 = vld [vmem:[%s18022_s4 + $0x100] ss:$16 sps:$4 sm:$0xff]  }
 0x16d   : > { %1361 = vmatprep.subr.bf16.mxu0 %v20920_v0  ;;  %v16291_v48 = vld [vmem:[#allocation6 + $0xf0] sm:$0xff]  }
 0x16e   : > { %v16244_v51 = vld [vmem:[%s18022_s4 + $0x124] ss:$16 sps:$4 sm:$0xff]   ;;  %v16246_v52 = vld [vmem:[%s18022_s4 + $0x120] ss:$16 sps:$4 sm:$0xff]  }
 0x16f   : > { %v16248_v53 = vld [vmem:[%s18022_s4 + $0x144] ss:$16 sps:$4 sm:$0xff]   ;;  %v16250_v54 = vld [vmem:[%s18022_s4 + $0x140] ss:$16 sps:$4 sm:$0xff]  }
 0x170   : > { %1362 = vmatpush1.bf16.msra.mxu0 %v16201_v8  ;;  %v16252_v55 = vld [vmem:[%s18022_s4 + $0x164] ss:$16 sps:$4 sm:$0xff]   ;;  %v16254_v56 = vld [vmem:[%s18022_s4 + $0x160] ss:$16 sps:$4 sm:$0xff]  }
 0x171   : > { %1363 = vmatprep.subr.bf16.mxu0 %v20920_v0  ;;  %v16255_v57 = vld [vmem:[%s18022_s4 + $0x184] ss:$16 sps:$4 sm:$0xff]   ;;  %v16257_v58 = vld [vmem:[%s18022_s4 + $0x180] ss:$16 sps:$4 sm:$0xff]  }
 0x172   : > { %v16259_v59 = vld [vmem:[%s18022_s4 + $0x1a4] ss:$16 sps:$4 sm:$0xff]   ;;  %v16261_v60 = vld [vmem:[%s18022_s4 + $0x1a0] ss:$16 sps:$4 sm:$0xff]  }
 0x173   : > { %v16263_v61 = vld [vmem:[%s18022_s4 + $0x1c4] ss:$16 sps:$4 sm:$0xff]   ;;  %v16265_v62 = vld [vmem:[%s18022_s4 + $0x1c0] ss:$16 sps:$4 sm:$0xff]  }
 0x174   : > { %1364 = vmatpush1.bf16.msra.mxu0 %v16202_v9  ;;  %v16266_v63 = vld [vmem:[%s18022_s4 + $0x1e4] ss:$16 sps:$4 sm:$0xff]   ;;  %v16268_v1 = vld [vmem:[%s18022_s4 + $0x1e0] ss:$16 sps:$4 sm:$0xff]  }
 0x175   : > { %1365 = vmatprep.subr.bf16.mxu0 %v20920_v0  ;;  %v16270_v2 = vld [vmem:[%s18022_s4 + $0x204] ss:$16 sps:$4 sm:$0xff]   ;;  %v16272_v3 = vld [vmem:[%s18022_s4 + $0x200] ss:$16 sps:$4 sm:$0xff]  }
 0x176   : > { %v16274_v4 = vld [vmem:[%s18022_s4 + $0x224] ss:$16 sps:$4 sm:$0xff]   ;;  %v16276_v5 = vld [vmem:[%s18022_s4 + $0x220] ss:$16 sps:$4 sm:$0xff]  }
 0x177   : > { %v16277_v6 = vld [vmem:[%s18022_s4 + $0x244] ss:$16 sps:$4 sm:$0xff]   ;;  %v16279_v7 = vld [vmem:[%s18022_s4 + $0x240] ss:$16 sps:$4 sm:$0xff]  }
 0x178   : > { %1366 = vmatpush1.bf16.msra.mxu0 %v16203_v10  ;;  %v16281_v8 = vld [vmem:[%s18022_s4 + $0x264] ss:$16 sps:$4 sm:$0xff]   ;;  %v16283_v9 = vld [vmem:[%s18022_s4 + $0x260] ss:$16 sps:$4 sm:$0xff]  }
 0x179   : > { %1367 = vmatprep.subr.bf16.mxu0 %v20920_v0  ;;  %v16285_v10 = vld [vmem:[%s18022_s4 + $0x284] ss:$16 sps:$4 sm:$0xff]  }
 0x17c   : > { %1368 = vmatpush1.bf16.msra.mxu0 %v16204_v11  ;;  %v16287_v11 = vld [vmem:[%s18022_s4 + $0x280] ss:$16 sps:$4 sm:$0xff]  }
 0x17d   : > { %1369 = vmatprep.subr.bf16.mxu0 %v20920_v0 }
 0x180   : > { %1370 = vmatpush1.bf16.msra.mxu0 %v16205_v12  ;;  %v16288_v12 = vld [vmem:[%s18022_s4 + $0x2a4] ss:$16 sps:$4 sm:$0xff]  }
 0x181   : > { %1371 = vmatprep.subr.bf16.mxu0 %v20920_v0 }
 0x184   : > { %1372 = vmatpush1.bf16.msra.mxu0 %v16206_v13  ;;  %v16290_v13 = vld [vmem:[%s18022_s4 + $0x2a0] ss:$16 sps:$4 sm:$0xff]  }
 0x185   : > { %1373 = vmatprep.subr.bf16.mxu0 %v20920_v0 }
 0x188   : > { %1374 = vmatpush1.bf16.msra.mxu0 %v16207_v14  ;;  %v16292_v14 = vld [vmem:[%s18022_s4 + $0x2c4] ss:$16 sps:$4 sm:$0xff]  }
 0x189   : > { %1375 = vmatprep.subr.bf16.mxu0 %v20920_v0 }
 0x18c   : > { %1376 = vmatpush1.bf16.msra.mxu0 %v16208_v15  ;;  %v16294_v15 = vld [vmem:[%s18022_s4 + $0x2c0] ss:$16 sps:$4 sm:$0xff]  }
 0x18d   : > { %1377 = vmatprep.subr.bf16.mxu0 %v20920_v0 }
 0x190   : > { %1378 = vmatpush1.bf16.msra.mxu0 %v16209_v16  ;;  %v16296_v16 = vld [vmem:[%s18022_s4 + $0x2e4] ss:$16 sps:$4 sm:$0xff]  }
 0x191   : > { %1379 = vmatprep.subr.bf16.mxu0 %v20920_v0 }
 0x194   : > { %1380 = vmatpush1.bf16.msra.mxu0 %v16210_v17  ;;  %v16298_v17 = vld [vmem:[%s18022_s4 + $0x2e0] ss:$16 sps:$4 sm:$0xff]  }
 0x195   : > { %1574 = vmatprep.subr.bf16.mxu0 %v20920_v0 }
 0x197   : > { %1382 = vmatmul.mubr.bf16.vlgmr.msra.gmra.mrb[0].mxu0 %v16211_v18  ;;  %v16301_v18 = vld [vmem:[%s18022_s4 + $0xc] ss:$16 sps:$4 sm:$0xff]  }
 0x198   : > { %1575 = vmatpush1.bf16.msra.mxu0 %v16214_v19  ;;  %1389 = vmatprep.mubr.bf16.mxu0 %v16215_v20  ;;  %v16299_v19 = vld [vmem:[%s18022_s4 + $0x8] ss:$16 sps:$4 sm:$0xff]   ;;  %v16302_v20 = vld [vmem:[%s18022_s4 + $0x2c] ss:$16 sps:$4 sm:$0xff]  }
 0x199   : > { %1576 = vmatprep.subr.bf16.mxu0 %v20920_v0 }
 0x19c   : > { %1577 = vmatpush1.bf16.msra.mxu0 %v16218_v21  ;;  %v16304_v21 = vld [vmem:[%s18022_s4 + $0x28] ss:$16 sps:$4 sm:$0xff]  }
 0x19d   : > { %1578 = vmatprep.subr.bf16.mxu0 %v20920_v0 }
 0x19f   : > { %1390 = vmatmul.mubr.bf16.gmra.mrb[4].mxu0 %v16217_v22  ;;  %v16305_v22 = vld [vmem:[%s18022_s4 + $0x4c] ss:$16 sps:$4 sm:$0xff]  }
 0x1a0   : > { %1397 = vmatprep.mubr.bf16.mxu0 %v16219_v23  ;;  %1579 = vmatpush1.bf16.msra.mxu0 %v16225_v24  ;;  %v16307_v23 = vld [vmem:[%s18022_s4 + $0x48] ss:$16 sps:$4 sm:$0xff]   ;;  %v16308_v24 = vld [vmem:[%s18022_s4 + $0x6c] ss:$16 sps:$4 sm:$0xff]  }
 0x1a1   : > { %1580 = vmatprep.subr.bf16.mxu0 %v20920_v0 }
 0x1a4   : > { %1581 = vmatpush1.bf16.msra.mxu0 %v16229_v25  ;;  %v16310_v25 = vld [vmem:[%s18022_s4 + $0x68] ss:$16 sps:$4 sm:$0xff]  }
 0x1a5   : > { %1582 = vmatprep.subr.bf16.mxu0 %v20920_v0 }
 0x1a7   : > { %1398 = vmatmul.mubr.bf16.gmra.mrb[8].mxu0 %v16221_v26  ;;  %v16311_v26 = vld [vmem:[%s18022_s4 + $0x8c] ss:$16 sps:$4 sm:$0xff]  }
 0x1a8   : > { %1405 = vmatprep.mubr.bf16.mxu0 %v16222_v27  ;;  %1583 = vmatpush1.bf16.msra.mxu0 %v16236_v28  ;;  %v16313_v27 = vld [vmem:[%s18022_s4 + $0x88] ss:$16 sps:$4 sm:$0xff]   ;;  %v16314_v28 = vld [vmem:[%s18022_s4 + $0xac] ss:$16 sps:$4 sm:$0xff]  }
 0x1a9   : > { %1584 = vmatprep.subr.bf16.mxu0 %v20920_v0 }
 0x1ac   : > { %1585 = vmatpush1.bf16.msra.mxu0 %v16240_v29  ;;  %v16316_v29 = vld [vmem:[%s18022_s4 + $0xa8] ss:$16 sps:$4 sm:$0xff]  }
 0x1ad   : > { %1586 = vmatprep.subr.bf16.mxu0 %v20920_v0 }
 0x1af   : > { %1406 = vmatmul.mubr.bf16.gmra.mrb[12].mxu0 %v16224_v30  ;;  %v16317_v30 = vld [vmem:[%s18022_s4 + $0xcc] ss:$16 sps:$4 sm:$0xff]  }
 0x1b0   : > { %1413 = vmatprep.mubr.bf16.mxu0 %v16226_v31  ;;  %1587 = vmatpush1.bf16.msra.mxu0 %v16247_v32  ;;  %v16319_v31 = vld [vmem:[%s18022_s4 + $0xc8] ss:$16 sps:$4 sm:$0xff]   ;;  %v16320_v32 = vld [vmem:[%s18022_s4 + $0xec] ss:$16 sps:$4 sm:$0xff]  }
 0x1b1   : > { %1588 = vmatprep.subr.bf16.mxu0 %v20920_v0 }
 0x1b4   : > { %1589 = vmatpush1.bf16.msra.mxu0 %v16251_v33  ;;  %v16322_v33 = vld [vmem:[%s18022_s4 + $0xe8] ss:$16 sps:$4 sm:$0xff]  }
 0x1b5   : > { %1590 = vmatprep.subr.bf16.mxu0 %v20920_v0 }
 0x1b7   : > { %1414 = vmatmul.mubr.bf16.gmra.mrb[16].mxu0 %v16228_v34  ;;  %v16323_v34 = vld [vmem:[%s18022_s4 + $0x10c] ss:$16 sps:$4 sm:$0xff]  }
 0x1b8   : > { %1421 = vmatprep.mubr.bf16.mxu0 %v16230_v35  ;;  %1591 = vmatpush1.bf16.msra.mxu0 %v16258_v36  ;;  %v16325_v35 = vld [vmem:[%s18022_s4 + $0x108] ss:$16 sps:$4 sm:$0xff]   ;;  %v16326_v36 = vld [vmem:[%s18022_s4 + $0x12c] ss:$16 sps:$4 sm:$0xff]  }
 0x1b9   : > { %1592 = vmatprep.subr.bf16.mxu0 %v20920_v0 }
 0x1bc   : > { %1593 = vmatpush1.bf16.msra.mxu0 %v16262_v37  ;;  %v16328_v37 = vld [vmem:[%s18022_s4 + $0x128] ss:$16 sps:$4 sm:$0xff]  }
 0x1bd   : > { %1594 = vmatprep.subr.bf16.mxu0 %v20920_v0 }
 0x1bf   : > { %1422 = vmatmul.mubr.bf16.gmra.mrb[20].mxu0 %v16232_v38  ;;  %v16329_v38 = vld [vmem:[%s18022_s4 + $0x14c] ss:$16 sps:$4 sm:$0xff]  }
 0x1c0   : > { %1429 = vmatprep.mubr.bf16.mxu0 %v16233_v39  ;;  %1595 = vmatpush1.bf16.msra.mxu0 %v16269_v40  ;;  %v16331_v39 = vld [vmem:[%s18022_s4 + $0x148] ss:$16 sps:$4 sm:$0xff]   ;;  %v16332_v40 = vld [vmem:[%s18022_s4 + $0x16c] ss:$16 sps:$4 sm:$0xff]  }
 0x1c1   : > { %1596 = vmatprep.subr.bf16.mxu0 %v20920_v0 }
 0x1c4   : > { %1597 = vmatpush1.bf16.msra.mxu0 %v16273_v41  ;;  %v16334_v41 = vld [vmem:[%s18022_s4 + $0x168] ss:$16 sps:$4 sm:$0xff]  }
 0x1c5   : > { %1598 = vmatprep.subr.bf16.mxu0 %v20920_v0 }
 0x1c7   : > { %1430 = vmatmul.mubr.bf16.gmra.mrb[24].mxu0 %v16235_v42  ;;  %v16335_v42 = vld [vmem:[%s18022_s4 + $0x18c] ss:$16 sps:$4 sm:$0xff]  }
 0x1c8   : > { %1437 = vmatprep.mubr.bf16.mxu0 %v16237_v43  ;;  %1599 = vmatpush1.bf16.msra.mxu0 %v16280_v44  ;;  %v16337_v43 = vld [vmem:[%s18022_s4 + $0x188] ss:$16 sps:$4 sm:$0xff]   ;;  %v16338_v44 = vld [vmem:[%s18022_s4 + $0x1ac] ss:$16 sps:$4 sm:$0xff]  }
 0x1c9   : > { %1600 = vmatprep.subr.bf16.mxu0 %v20920_v0 }
 0x1cc   : > { %1601 = vmatpush1.bf16.msra.mxu0 %v16284_v45  ;;  %v16340_v45 = vld [vmem:[%s18022_s4 + $0x1a8] ss:$16 sps:$4 sm:$0xff]  }
 0x1cd   : > { %1602 = vmatprep.subr.bf16.mxu0 %v20920_v0 }
 0x1cf   : > { %1438 = vmatmul.mubr.bf16.gmra.mrb[28].mxu0 %v16239_v46  ;;  %v16341_v46 = vld [vmem:[%s18022_s4 + $0x1cc] ss:$16 sps:$4 sm:$0xff]  }
 0x1d0   : > { %1445 = vmatprep.mubr.bf16.mxu0 %v16241_v47  ;;  %1603 = vmatpush1.bf16.msra.mxu0 %v16291_v48  ;;  %v16343_v47 = vld [vmem:[%s18022_s4 + $0x1c8] ss:$16 sps:$4 sm:$0xff]   ;;  %v16344_v48 = vld [vmem:[%s18022_s4 + $0x1ec] ss:$16 sps:$4 sm:$0xff]  }
 0x1d1   : > { %1604 = vmatprep.subr.bf16.mxu0 %v20920_v0 }
 0x1d4   : > { %1605 = vmatpush1.bf16.msra.mxu0 %v16295_v49  ;;  %v16346_v49 = vld [vmem:[%s18022_s4 + $0x1e8] ss:$16 sps:$4 sm:$0xff]  }
 0x1d7   : > { %1446 = vmatmul.mubr.bf16.gmra.mrb[32].mxu0 %v16243_v50  ;;  %v16347_v50 = vld [vmem:[%s18022_s4 + $0x20c] ss:$16 sps:$4 sm:$0xff]  }
 0x1d8   : > { %1453 = vmatprep.mubr.bf16.mxu0 %v16244_v51  ;;  %v16349_v51 = vld [vmem:[%s18022_s4 + $0x208] ss:$16 sps:$4 sm:$0xff]  }
 0x1df   : > { %1454 = vmatmul.mubr.bf16.gmra.mrb[36].mxu0 %v16246_v52  ;;  %v16350_v52 = vld [vmem:[%s18022_s4 + $0x22c] ss:$16 sps:$4 sm:$0xff]  }
 0x1e0   : > { %1461 = vmatprep.mubr.bf16.mxu0 %v16248_v53  ;;  %v16352_v53 = vld [vmem:[%s18022_s4 + $0x228] ss:$16 sps:$4 sm:$0xff]  }
 0x1e7   : > { %1462 = vmatmul.mubr.bf16.gmra.mrb[40].mxu0 %v16250_v54  ;;  %v16353_v54 = vld [vmem:[%s18022_s4 + $0x24c] ss:$16 sps:$4 sm:$0xff]  }
 0x1e8   : > { %1469 = vmatprep.mubr.bf16.mxu0 %v16252_v55  ;;  %v16355_v55 = vld [vmem:[%s18022_s4 + $0x248] ss:$16 sps:$4 sm:$0xff]  }
 0x1ef   : > { %1470 = vmatmul.mubr.bf16.gmra.mrb[44].mxu0 %v16254_v56  ;;  %v16356_v56 = vld [vmem:[%s18022_s4 + $0x26c] ss:$16 sps:$4 sm:$0xff]  }
 0x1f0   : > { %1477 = vmatprep.mubr.bf16.mxu0 %v16255_v57  ;;  %v16358_v57 = vld [vmem:[%s18022_s4 + $0x268] ss:$16 sps:$4 sm:$0xff]  }
 0x1f7   : > { %1478 = vmatmul.mubr.bf16.gmra.mrb[48].mxu0 %v16257_v58  ;;  %v16359_v58 = vld [vmem:[%s18022_s4 + $0x28c] ss:$16 sps:$4 sm:$0xff]  }
 0x1f8   : > { %1485 = vmatprep.mubr.bf16.mxu0 %v16259_v59  ;;  %v16361_v59 = vld [vmem:[%s18022_s4 + $0x288] ss:$16 sps:$4 sm:$0xff]  }
 0x1ff   : > { %1486 = vmatmul.mubr.bf16.gmra.mrb[52].mxu0 %v16261_v60  ;;  %v16362_v60 = vld [vmem:[%s18022_s4 + $0x2ac] ss:$16 sps:$4 sm:$0xff]  }
 0x200   : > { %1493 = vmatprep.mubr.bf16.mxu0 %v16263_v61  ;;  %v16364_v61 = vld [vmem:[%s18022_s4 + $0x2a8] ss:$16 sps:$4 sm:$0xff]  }
 0x207   : > { %1494 = vmatmul.mubr.bf16.gmra.mrb[56].mxu0 %v16265_v62  ;;  %v16365_v62 = vld [vmem:[%s18022_s4 + $0x2cc] ss:$16 sps:$4 sm:$0xff]  }
 0x208   : > { %1501 = vmatprep.mubr.bf16.mxu0 %v16266_v63  ;;  %v16367_v63 = vld [vmem:[%s18022_s4 + $0x2c8] ss:$16 sps:$4 sm:$0xff]  }
 0x20f   : > { %1502 = vmatmul.mubr.bf16.gmra.mrb[60].mxu0 %v16268_v1  ;;  %v16368_v1 = vld [vmem:[%s18022_s4 + $0x2ec] ss:$16 sps:$4 sm:$0xff]  }
 0x210   : > { %1509 = vmatprep.mubr.bf16.mxu0 %v16270_v2  ;;  %v16370_v2 = vld [vmem:[%s18022_s4 + $0x2e8] ss:$16 sps:$4 sm:$0xff]  }
 0x217   : > { %1510 = vmatmul.mubr.bf16.gmra.mrb[64].mxu0 %v16272_v3  ;;  %v18148_v3 = vld [vmem:[#allocation8] ss:$0 sm:$0xff] }
 0x218   : > { %1517 = vmatprep.mubr.bf16.mxu0 %v16274_v4 }
 0x21f   : > { %1518 = vmatmul.mubr.bf16.gmra.mrb[68].mxu0 %v16276_v5  ;;  %v18150_v5 = vld [vmem:[#allocation9] ss:$0 sm:$0xff] }
 0x220   : > { %1525 = vmatprep.mubr.bf16.mxu0 %v16277_v6 }
 0x227   : > { %1526 = vmatmul.mubr.bf16.gmra.mrb[72].mxu0 %v16279_v7 }
 0x228   : > { %1533 = vmatprep.mubr.bf16.mxu0 %v16281_v8 }
 0x22f   : > { %1534 = vmatmul.mubr.bf16.gmra.mrb[76].mxu0 %v16283_v9 }
 0x230   : > { %1541 = vmatprep.mubr.bf16.mxu0 %v16285_v10 }
 0x237   : > { %1542 = vmatmul.mubr.bf16.gmra.mrb[80].mxu0 %v16287_v11 }
 0x238   : > { %1549 = vmatprep.mubr.bf16.mxu0 %v16288_v12 }
 0x23f   : > { %1550 = vmatmul.mubr.bf16.gmra.mrb[84].mxu0 %v16290_v13 }
 0x240   : > { %1557 = vmatprep.mubr.bf16.mxu0 %v16292_v14 }
 0x247   : > { %1558 = vmatmul.mubr.bf16.gmra.mrb[88].mxu0 %v16294_v15 }
 0x248   : > { %1565 = vmatprep.mubr.bf16.mxu0 %v16296_v16 }
 0x24f   : > { %1566 = vmatmul.mubr.bf16.gmra.mrb[92].mxu0 %v16298_v17 }
 0x250   : > { %1606 = vmatprep.mubr.bf16.mxu0 %v16301_v18 }
 0x257   : > { %1607 = vmatmul.mubr.bf16.vlgmr.msra.gmra.mrb[0].mxu0 %v16299_v19 }
 0x258   : > { %1614 = vmatprep.mubr.bf16.mxu0 %v16302_v20 }
 0x25f   : > { %1615 = vmatmul.mubr.bf16.gmra.mrb[4].mxu0 %v16304_v21 }
 0x260   : > { %1622 = vmatprep.mubr.bf16.mxu0 %v16305_v22 }
 0x267   : > { %1623 = vmatmul.mubr.bf16.gmra.mrb[8].mxu0 %v16307_v23 }
 0x268   : > { %1630 = vmatprep.mubr.bf16.mxu0 %v16308_v24 }
 0x26f   : > { %1631 = vmatmul.mubr.bf16.gmra.mrb[12].mxu0 %v16310_v25 }
 0x270   : > { %1638 = vmatprep.mubr.bf16.mxu0 %v16311_v26 }
 0x277   : > { %1639 = vmatmul.mubr.bf16.gmra.mrb[16].mxu0 %v16313_v27 }
 0x278   : > { %1646 = vmatprep.mubr.bf16.mxu0 %v16314_v28 }
 0x27f   : > { %1647 = vmatmul.mubr.bf16.gmra.mrb[20].mxu0 %v16316_v29 }
 0x280   : > { %1654 = vmatprep.mubr.bf16.mxu0 %v16317_v30 }
 0x287   : > { %1655 = vmatmul.mubr.bf16.gmra.mrb[24].mxu0 %v16319_v31 }
 0x288   : > { %1662 = vmatprep.mubr.bf16.mxu0 %v16320_v32 }
 0x28f   : > { %1663 = vmatmul.mubr.bf16.gmra.mrb[28].mxu0 %v16322_v33 }
 0x290   : > { %1670 = vmatprep.mubr.bf16.mxu0 %v16323_v34 }
 0x297   : > { %1671 = vmatmul.mubr.bf16.gmra.mrb[32].mxu0 %v16325_v35 }
 0x298   : > { %1678 = vmatprep.mubr.bf16.mxu0 %v16326_v36 }
 0x29f   : > { %1679 = vmatmul.mubr.bf16.gmra.mrb[36].mxu0 %v16328_v37 }
 0x2a0   : > { %1686 = vmatprep.mubr.bf16.mxu0 %v16329_v38 }
 0x2a7   : > { %1687 = vmatmul.mubr.bf16.gmra.mrb[40].mxu0 %v16331_v39 }
 0x2a8   : > { %1694 = vmatprep.mubr.bf16.mxu0 %v16332_v40 }
 0x2af   : > { %1695 = vmatmul.mubr.bf16.gmra.mrb[44].mxu0 %v16334_v41 }
 0x2b0   : > { %1702 = vmatprep.mubr.bf16.mxu0 %v16335_v42 }
 0x2b7   : > { %1703 = vmatmul.mubr.bf16.gmra.mrb[48].mxu0 %v16337_v43 }
 0x2b8   : > { %1710 = vmatprep.mubr.bf16.mxu0 %v16338_v44 }
 0x2bf   : > { %1711 = vmatmul.mubr.bf16.gmra.mrb[52].mxu0 %v16340_v45 }
 0x2c0   : > { %1718 = vmatprep.mubr.bf16.mxu0 %v16341_v46 }
 0x2c7   : > { %1719 = vmatmul.mubr.bf16.gmra.mrb[56].mxu0 %v16343_v47 }
 0x2c8   : > { %1726 = vmatprep.mubr.bf16.mxu0 %v16344_v48 }
 0x2cf   : > { %1727 = vmatmul.mubr.bf16.gmra.mrb[60].mxu0 %v16346_v49 }
 0x2d0   : > { %1734 = vmatprep.mubr.bf16.mxu0 %v16347_v50 }
 0x2d7   : > { %1735 = vmatmul.mubr.bf16.gmra.mrb[64].mxu0 %v16349_v51 }
 0x2d8   : > { %1742 = vmatprep.mubr.bf16.mxu0 %v16350_v52 }
 0x2df   : > { %1743 = vmatmul.mubr.bf16.gmra.mrb[68].mxu0 %v16352_v53 }
 0x2e0   : > { %1750 = vmatprep.mubr.bf16.mxu0 %v16353_v54 }
 0x2e7   : > { %1751 = vmatmul.mubr.bf16.gmra.mrb[72].mxu0 %v16355_v55 }
 0x2e8   : > { %1758 = vmatprep.mubr.bf16.mxu0 %v16356_v56 }
 0x2ef   : > { %1759 = vmatmul.mubr.bf16.gmra.mrb[76].mxu0 %v16358_v57 }
 0x2f0   : > { %1766 = vmatprep.mubr.bf16.mxu0 %v16359_v58 }
 0x2f7   : > { %1767 = vmatmul.mubr.bf16.gmra.mrb[80].mxu0 %v16361_v59 }
 0x2f8   : > { %1774 = vmatprep.mubr.bf16.mxu0 %v16362_v60 }
 0x2ff   : > { %1775 = vmatmul.mubr.bf16.gmra.mrb[84].mxu0 %v16364_v61 }
 0x300   : > { %1782 = vmatprep.mubr.bf16.mxu0 %v16365_v62 }
 0x307   : > { %1783 = vmatmul.mubr.bf16.gmra.mrb[88].mxu0 %v16367_v63 }
 0x308   : > { %1790 = vmatprep.mubr.bf16.mxu0 %v16368_v1 }
 0x30f   : > { %1791 = vmatmul.mubr.bf16.gmra.mrb[92].mxu0 %v16370_v2 }
 0x32a   : > { %v1608_v4 = vpop.f32.mrb[0].mxu0 }
 0x32b   : > { %v1806_v6 = vmul.f32 %v18148_v3, %v1608_v4  ;;  %v1610_v7 = vpop.f32.mrb[1].mxu0 }
 0x32c   : > { %v1611_v8 = vpop.f32.mrb[2].mxu0 }
 0x32d   : > { %v1861_v9 = vadd.f32 %v18150_v5, %v1806_v6  ;;  %v1807_v10 = vmul.f32 %v18148_v3, %v1611_v8  ;;  %v1613_v11 = vpop.f32.mrb[3].mxu0 }
 0x32f   : > { %v1909_v12 = vmax.f32 %v1861_v9, 0.0  ;;  %v1862_v13 = vadd.f32 %v18150_v5, %v1807_v10 }
 0x331   : > { %v2005_v14 = vrot.slane %v1909_v12, 7  ;;  %v2150_v15 = vrot.slane %v1909_v12, 1  ;;  %v2392_v16 = vpack.c.bf16 %v1909_v12, %v1909_v12  ;;  %v1910_v17 = vmax.f32 %v1862_v13, 0.0 }
 0x332   : > { %v1616_v18 = vpop.f32.mrb[4].mxu0 }
 0x333   : > { %v2102_v19 = vsel %vm2101_vm0, 0.0, %v2005_v14  ;;  %v2247_v20 = vsel %vm2246_vm1, %v2150_v15, 0.0  ;;  %2440 = vst [vmem:[#allocation2 + $0x10] sm:$0xf] %v2392_v16  ;;  %v2006_v21 = vrot.slane %v1910_v17, 7  ;;  %v2151_v22 = vrot.slane %v1910_v17, 1 }
 0x334   : > { %v1618_v23 = vpop.f32.mrb[5].mxu0  ;;  %v2295_v24 = vpack.c.bf16 %v2102_v19, %v2102_v19  ;;  %v2488_v25 = vpack.c.bf16 %v2247_v20, %v2247_v20  ;;  %v2393_v26 = vpack.c.bf16 %v1910_v17, %v1910_v17  ;;  %v1808_v27 = vmul.f32 %v18148_v3, %v1616_v18 }
 0x335   : > { %v1619_v28 = vpop.f32.mrb[6].mxu0  ;;  %v2103_v29 = vsel %vm2101_vm0, 0.0, %v2006_v21  ;;  %v2248_v30 = vsel %vm2246_vm1, %v2151_v22, 0.0 }
 0x336   : > { %v1809_v31 = vmul.f32 %v18148_v3, %v1619_v28  ;;  %v1621_v32 = vpop.f32.mrb[7].mxu0  ;;  %2344 = vst [vmem:[#allocation2 + $0xc] sm:$0xf] %v2295_v24  ;;  %2536 = vst [vmem:[#allocation2 + $0x14] sm:$0xf] %v2488_v25  ;;  %v2296_v33 = vpack.c.bf16 %v2103_v29, %v2103_v29  ;;  %v2489_v34 = vpack.c.bf16 %v2248_v30, %v2248_v30 }
 0x337   : > { %2441 = vst [vmem:[#allocation2 + $0x1c] sm:$0xf] %v2393_v26  ;;  %v1863_v35 = vadd.f32 %v18150_v5, %v1808_v27 }
 0x338   : > { %v1864_v36 = vadd.f32 %v18150_v5, %v1809_v31  ;;  %2345 = vst [vmem:[#allocation2 + $0x18] sm:$0xf] %v2296_v33  ;;  %2537 = vst [vmem:[#allocation2 + $0x20] sm:$0xf] %v2489_v34 }
 0x339   : > { %v1911_v37 = vmax.f32 %v1863_v35, 0.0 }
 0x33a   : > { %v1912_v38 = vmax.f32 %v1864_v36, 0.0  ;;  %v1624_v42 = vpop.f32.mrb[8].mxu0 }
 0x33b   : > { %v2007_v39 = vrot.slane %v1911_v37, 7  ;;  %v2152_v40 = vrot.slane %v1911_v37, 1  ;;  %v2394_v41 = vpack.c.bf16 %v1911_v37, %v1911_v37  ;;  %v1810_v46 = vmul.f32 %v18148_v3, %v1624_v42  ;;  %v1626_v47 = vpop.f32.mrb[9].mxu0 }
 0x33c   : > { %v2008_v43 = vrot.slane %v1912_v38, 7  ;;  %v2153_v44 = vrot.slane %v1912_v38, 1  ;;  %v2395_v45 = vpack.c.bf16 %v1912_v38, %v1912_v38  ;;  %v1627_v50 = vpop.f32.mrb[10].mxu0 }
 0x33d   : > { %v2104_v48 = vsel %vm2101_vm0, 0.0, %v2007_v39  ;;  %v2249_v49 = vsel %vm2246_vm1, %v2152_v40, 0.0  ;;  %2442 = vst [vmem:[#allocation2 + $0x28] sm:$0xf] %v2394_v41  ;;  %v1629_v55 = vpop.f32.mrb[11].mxu0  ;;  %v1865_v58 = vadd.f32 %v18150_v5, %v1810_v46  ;;  %v1811_v59 = vmul.f32 %v18148_v3, %v1627_v50 }
 0x33e   : > { %v2297_v51 = vpack.c.bf16 %v2104_v48, %v2104_v48  ;;  %v2490_v52 = vpack.c.bf16 %v2249_v49, %v2249_v49  ;;  %v2105_v53 = vsel %vm2101_vm0, 0.0, %v2008_v43  ;;  %v2250_v54 = vsel %vm2246_vm1, %v2153_v44, 0.0  ;;  %2443 = vst [vmem:[#allocation2 + $0x34] sm:$0xf] %v2395_v45 }
 0x33f   : > { %v2298_v56 = vpack.c.bf16 %v2105_v53, %v2105_v53  ;;  %v2491_v57 = vpack.c.bf16 %v2250_v54, %v2250_v54  ;;  %v1913_v60 = vmax.f32 %v1865_v58, 0.0  ;;  %v1866_v61 = vadd.f32 %v18150_v5, %v1811_v59 }
 0x340   : > { %2346 = vst [vmem:[#allocation2 + $0x24] sm:$0xf] %v2297_v51  ;;  %2538 = vst [vmem:[#allocation2 + $0x2c] sm:$0xf] %v2490_v52 }
 0x341   : > { %2347 = vst [vmem:[#allocation2 + $0x30] sm:$0xf] %v2298_v56  ;;  %2539 = vst [vmem:[#allocation2 + $0x38] sm:$0xf] %v2491_v57  ;;  %v2009_v62 = vrot.slane %v1913_v60, 7  ;;  %v2154_v63 = vrot.slane %v1913_v60, 1  ;;  %v2396_v1 = vpack.c.bf16 %v1913_v60, %v1913_v60 }
 0x342   : > { %v1914_v2 = vmax.f32 %v1866_v61, 0.0  ;;  %v1632_v4 = vpop.f32.mrb[12].mxu0 }
 0x343   : > { %v1812_v6 = vmul.f32 %v18148_v3, %v1632_v4  ;;  %v1634_v7 = vpop.f32.mrb[13].mxu0  ;;  %v2106_v8 = vsel %vm2101_vm0, 0.0, %v2009_v62  ;;  %v2251_v9 = vsel %vm2246_vm1, %v2154_v63, 0.0  ;;  %2444 = vst [vmem:[#allocation2 + $0x40] sm:$0xf] %v2396_v1 }
 0x344   : > { %v2010_v10 = vrot.slane %v1914_v2, 7  ;;  %v2155_v11 = vrot.slane %v1914_v2, 1  ;;  %v1635_v12 = vpop.f32.mrb[14].mxu0  ;;  %v2299_v13 = vpack.c.bf16 %v2106_v8, %v2106_v8  ;;  %v2492_v14 = vpack.c.bf16 %v2251_v9, %v2251_v9 }
 0x345   : > { %v2397_v15 = vpack.c.bf16 %v1914_v2, %v1914_v2  ;;  %v1867_v16 = vadd.f32 %v18150_v5, %v1812_v6  ;;  %v1637_v17 = vpop.f32.mrb[15].mxu0  ;;  %v1813_v20 = vmul.f32 %v18148_v3, %v1635_v12 }
 0x346   : > { %v2107_v18 = vsel %vm2101_vm0, 0.0, %v2010_v10  ;;  %v2252_v19 = vsel %vm2246_vm1, %v2155_v11, 0.0  ;;  %2348 = vst [vmem:[#allocation2 + $0x3c] sm:$0xf] %v2299_v13  ;;  %2540 = vst [vmem:[#allocation2 + $0x44] sm:$0xf] %v2492_v14 }
 0x347   : > { %v2300_v21 = vpack.c.bf16 %v2107_v18, %v2107_v18  ;;  %2445 = vst [vmem:[#allocation2 + $0x4c] sm:$0xf] %v2397_v15  ;;  %v2493_v22 = vpack.c.bf16 %v2252_v19, %v2252_v19  ;;  %v1915_v23 = vmax.f32 %v1867_v16, 0.0  ;;  %v1868_v24 = vadd.f32 %v18150_v5, %v1813_v20 }
 0x349   : > { %2349 = vst [vmem:[#allocation2 + $0x48] sm:$0xf] %v2300_v21  ;;  %2541 = vst [vmem:[#allocation2 + $0x50] sm:$0xf] %v2493_v22  ;;  %v2011_v25 = vrot.slane %v1915_v23, 7  ;;  %v2156_v26 = vrot.slane %v1915_v23, 1  ;;  %v2398_v27 = vpack.c.bf16 %v1915_v23, %v1915_v23 }
 0x34a   : > { %v1916_v28 = vmax.f32 %v1868_v24, 0.0  ;;  %v1640_v29 = vpop.f32.mrb[16].mxu0 }
 0x34b   : > { %v2108_v30 = vsel %vm2101_vm0, 0.0, %v2011_v25  ;;  %v2253_v31 = vsel %vm2246_vm1, %v2156_v26, 0.0  ;;  %2446 = vst [vmem:[#allocation2 + $0x58] sm:$0xf] %v2398_v27  ;;  %v1814_v32 = vmul.f32 %v18148_v3, %v1640_v29  ;;  %v1642_v33 = vpop.f32.mrb[17].mxu0 }
 0x34c   : > { %v2301_v34 = vpack.c.bf16 %v2108_v30, %v2108_v30  ;;  %v2494_v35 = vpack.c.bf16 %v2253_v31, %v2253_v31  ;;  %v2012_v36 = vrot.slane %v1916_v28, 7  ;;  %v2157_v37 = vrot.slane %v1916_v28, 1  ;;  %v1643_v38 = vpop.f32.mrb[18].mxu0 }
 0x34d   : > { %v2399_v39 = vpack.c.bf16 %v1916_v28, %v1916_v28  ;;  %v1869_v40 = vadd.f32 %v18150_v5, %v1814_v32  ;;  %v1815_v41 = vmul.f32 %v18148_v3, %v1643_v38  ;;  %v1645_v42 = vpop.f32.mrb[19].mxu0 }
 0x34e   : > { %2350 = vst [vmem:[#allocation2 + $0x54] sm:$0xf] %v2301_v34  ;;  %2542 = vst [vmem:[#allocation2 + $0x5c] sm:$0xf] %v2494_v35  ;;  %v2109_v43 = vsel %vm2101_vm0, 0.0, %v2012_v36  ;;  %v2254_v44 = vsel %vm2246_vm1, %v2157_v37, 0.0 }
 0x34f   : > { %v2302_v45 = vpack.c.bf16 %v2109_v43, %v2109_v43  ;;  %2447 = vst [vmem:[#allocation2 + $0x64] sm:$0xf] %v2399_v39  ;;  %v2495_v46 = vpack.c.bf16 %v2254_v44, %v2254_v44  ;;  %v1917_v47 = vmax.f32 %v1869_v40, 0.0  ;;  %v1870_v48 = vadd.f32 %v18150_v5, %v1815_v41 }
 0x351   : > { %2351 = vst [vmem:[#allocation2 + $0x60] sm:$0xf] %v2302_v45  ;;  %2543 = vst [vmem:[#allocation2 + $0x68] sm:$0xf] %v2495_v46  ;;  %v2013_v49 = vrot.slane %v1917_v47, 7  ;;  %v2158_v50 = vrot.slane %v1917_v47, 1  ;;  %v2400_v51 = vpack.c.bf16 %v1917_v47, %v1917_v47 }
 0x352   : > { %v1918_v52 = vmax.f32 %v1870_v48, 0.0  ;;  %v1648_v53 = vpop.f32.mrb[20].mxu0 }
 0x353   : > { %v2110_v54 = vsel %vm2101_vm0, 0.0, %v2013_v49  ;;  %v2255_v55 = vsel %vm2246_vm1, %v2158_v50, 0.0  ;;  %2448 = vst [vmem:[#allocation2 + $0x88] sm:$0xf] %v2400_v51  ;;  %v1650_v58 = vpop.f32.mrb[21].mxu0  ;;  %v1816_v62 = vmul.f32 %v18148_v3, %v1648_v53 }
 0x354   : > { %v2014_v56 = vrot.slane %v1918_v52, 7  ;;  %v2159_v57 = vrot.slane %v1918_v52, 1  ;;  %v2303_v59 = vpack.c.bf16 %v2110_v54, %v2110_v54  ;;  %v2496_v60 = vpack.c.bf16 %v2255_v55, %v2255_v55  ;;  %v1651_v63 = vpop.f32.mrb[22].mxu0 }
 0x355   : > { %v2401_v61 = vpack.c.bf16 %v1918_v52, %v1918_v52  ;;  %v1817_v4 = vmul.f32 %v18148_v3, %v1651_v63  ;;  %v1653_v6 = vpop.f32.mrb[23].mxu0  ;;  %v1871_v9 = vadd.f32 %v18150_v5, %v1816_v62 }
 0x356   : > { %v2111_v1 = vsel %vm2101_vm0, 0.0, %v2014_v56  ;;  %v2256_v2 = vsel %vm2246_vm1, %v2159_v57, 0.0  ;;  %2352 = vst [vmem:[#allocation2 + $0x84] sm:$0xf] %v2303_v59  ;;  %2544 = vst [vmem:[#allocation2 + $0x8c] sm:$0xf] %v2496_v60 }
 0x357   : > { %v2304_v7 = vpack.c.bf16 %v2111_v1, %v2111_v1  ;;  %2449 = vst [vmem:[#allocation2 + $0x94] sm:$0xf] %v2401_v61  ;;  %v2497_v8 = vpack.c.bf16 %v2256_v2, %v2256_v2  ;;  %v1872_v10 = vadd.f32 %v18150_v5, %v1817_v4  ;;  %v1919_v11 = vmax.f32 %v1871_v9, 0.0 }
 0x359   : > { %2353 = vst [vmem:[#allocation2 + $0x90] sm:$0xf] %v2304_v7  ;;  %2545 = vst [vmem:[#allocation2 + $0x98] sm:$0xf] %v2497_v8  ;;  %v1920_v12 = vmax.f32 %v1872_v10, 0.0  ;;  %v2015_v13 = vrot.slane %v1919_v11, 7  ;;  %v2402_v15 = vpack.c.bf16 %v1919_v11, %v1919_v11 }
 0x35a   : > { %v2160_v14 = vrot.slane %v1919_v11, 1  ;;  %v1656_v16 = vpop.f32.mrb[24].mxu0 }
 0x35b   : > { %v2016_v17 = vrot.slane %v1920_v12, 7  ;;  %v2161_v18 = vrot.slane %v1920_v12, 1  ;;  %v2403_v19 = vpack.c.bf16 %v1920_v12, %v1920_v12  ;;  %v1818_v20 = vmul.f32 %v18148_v3, %v1656_v16  ;;  %v1658_v21 = vpop.f32.mrb[25].mxu0  ;;  %2450 = vst [vmem:[#allocation2 + $0xa0] sm:$0xf] %v2402_v15 }
 0x35c   : > { %v2112_v22 = vsel %vm2101_vm0, 0.0, %v2015_v13  ;;  %v2257_v23 = vsel %vm2246_vm1, %v2160_v14, 0.0  ;;  %v1659_v24 = vpop.f32.mrb[26].mxu0 }
 0x35d   : > { %v2305_v25 = vpack.c.bf16 %v2112_v22, %v2112_v22  ;;  %v2498_v26 = vpack.c.bf16 %v2257_v23, %v2257_v23  ;;  %v2113_v27 = vsel %vm2101_vm0, 0.0, %v2016_v17  ;;  %v2258_v28 = vsel %vm2246_vm1, %v2161_v18, 0.0  ;;  %2451 = vst [vmem:[#allocation2 + $0xac] sm:$0xf] %v2403_v19  ;;  %v1661_v29 = vpop.f32.mrb[27].mxu0 }
 0x35e   : > { %v2306_v30 = vpack.c.bf16 %v2113_v27, %v2113_v27  ;;  %v2499_v31 = vpack.c.bf16 %v2258_v28, %v2258_v28  ;;  %v1873_v32 = vadd.f32 %v18150_v5, %v1818_v20  ;;  %v1819_v33 = vmul.f32 %v18148_v3, %v1659_v24 }
 0x35f   : > { %2354 = vst [vmem:[#allocation2 + $0x9c] sm:$0xf] %v2305_v25  ;;  %2546 = vst [vmem:[#allocation2 + $0xa4] sm:$0xf] %v2498_v26 }
 0x360   : > { %2355 = vst [vmem:[#allocation2 + $0xa8] sm:$0xf] %v2306_v30  ;;  %2547 = vst [vmem:[#allocation2 + $0xb0] sm:$0xf] %v2499_v31  ;;  %v1921_v34 = vmax.f32 %v1873_v32, 0.0  ;;  %v1874_v35 = vadd.f32 %v18150_v5, %v1819_v33 }
 0x362   : > { %v2017_v36 = vrot.slane %v1921_v34, 7  ;;  %v2162_v37 = vrot.slane %v1921_v34, 1  ;;  %v2404_v38 = vpack.c.bf16 %v1921_v34, %v1921_v34  ;;  %v1922_v39 = vmax.f32 %v1874_v35, 0.0  ;;  %v1664_v40 = vpop.f32.mrb[28].mxu0 }
 0x363   : > { %v1820_v41 = vmul.f32 %v18148_v3, %v1664_v40  ;;  %v1666_v42 = vpop.f32.mrb[29].mxu0 }
 0x364   : > { %v2114_v43 = vsel %vm2101_vm0, 0.0, %v2017_v36  ;;  %v2259_v44 = vsel %vm2246_vm1, %v2162_v37, 0.0  ;;  %2452 = vst [vmem:[#allocation2 + $0xb8] sm:$0xf] %v2404_v38  ;;  %v2018_v45 = vrot.slane %v1922_v39, 7  ;;  %v2163_v46 = vrot.slane %v1922_v39, 1 }
 0x365   : > { %v1667_v47 = vpop.f32.mrb[30].mxu0  ;;  %v2307_v48 = vpack.c.bf16 %v2114_v43, %v2114_v43  ;;  %v2500_v49 = vpack.c.bf16 %v2259_v44, %v2259_v44  ;;  %v2405_v50 = vpack.c.bf16 %v1922_v39, %v1922_v39  ;;  %v1875_v51 = vadd.f32 %v18150_v5, %v1820_v41 }
 0x366   : > { %v1669_v52 = vpop.f32.mrb[31].mxu0  ;;  %v2115_v53 = vsel %vm2101_vm0, 0.0, %v2018_v45  ;;  %v2260_v54 = vsel %vm2246_vm1, %v2163_v46, 0.0  ;;  %v1821_v55 = vmul.f32 %v18148_v3, %v1667_v47 }
 0x367   : > { %2356 = vst [vmem:[#allocation2 + $0xb4] sm:$0xf] %v2307_v48  ;;  %2548 = vst [vmem:[#allocation2 + $0xbc] sm:$0xf] %v2500_v49  ;;  %v2308_v56 = vpack.c.bf16 %v2115_v53, %v2115_v53  ;;  %v2501_v57 = vpack.c.bf16 %v2260_v54, %v2260_v54  ;;  %v1923_v58 = vmax.f32 %v1875_v51, 0.0 }
 0x368   : > { %2453 = vst [vmem:[#allocation2 + $0xc4] sm:$0xf] %v2405_v50  ;;  %v1876_v59 = vadd.f32 %v18150_v5, %v1821_v55 }
 0x369   : > { %2357 = vst [vmem:[#allocation2 + $0xc0] sm:$0xf] %v2308_v56  ;;  %2549 = vst [vmem:[#allocation2 + $0xc8] sm:$0xf] %v2501_v57  ;;  %v2019_v60 = vrot.slane %v1923_v58, 7  ;;  %v2164_v61 = vrot.slane %v1923_v58, 1  ;;  %v2406_v62 = vpack.c.bf16 %v1923_v58, %v1923_v58 }
 0x36a   : > { %v1924_v63 = vmax.f32 %v1876_v59, 0.0  ;;  %v1672_v1 = vpop.f32.mrb[32].mxu0 }
 0x36b   : > { %v2116_v2 = vsel %vm2101_vm0, 0.0, %v2019_v60  ;;  %v2261_v4 = vsel %vm2246_vm1, %v2164_v61, 0.0  ;;  %2454 = vst [vmem:[#allocation2 + $0xd0] sm:$0xf] %v2406_v62  ;;  %v1822_v6 = vmul.f32 %v18148_v3, %v1672_v1  ;;  %v1674_v7 = vpop.f32.mrb[33].mxu0 }
 0x36c   : > { %v2309_v8 = vpack.c.bf16 %v2116_v2, %v2116_v2  ;;  %v2502_v9 = vpack.c.bf16 %v2261_v4, %v2261_v4  ;;  %v2020_v10 = vrot.slane %v1924_v63, 7  ;;  %v2165_v11 = vrot.slane %v1924_v63, 1  ;;  %v1675_v12 = vpop.f32.mrb[34].mxu0 }
 0x36d   : > { %v2407_v13 = vpack.c.bf16 %v1924_v63, %v1924_v63  ;;  %v1877_v14 = vadd.f32 %v18150_v5, %v1822_v6  ;;  %v1823_v15 = vmul.f32 %v18148_v3, %v1675_v12  ;;  %v1677_v16 = vpop.f32.mrb[35].mxu0 }
 0x36e   : > { %2358 = vst [vmem:[#allocation2 + $0xcc] sm:$0xf] %v2309_v8  ;;  %2550 = vst [vmem:[#allocation2 + $0xd4] sm:$0xf] %v2502_v9  ;;  %v2117_v17 = vsel %vm2101_vm0, 0.0, %v2020_v10  ;;  %v2262_v18 = vsel %vm2246_vm1, %v2165_v11, 0.0 }
 0x36f   : > { %v2310_v19 = vpack.c.bf16 %v2117_v17, %v2117_v17  ;;  %2455 = vst [vmem:[#allocation2 + $0xdc] sm:$0xf] %v2407_v13  ;;  %v2503_v20 = vpack.c.bf16 %v2262_v18, %v2262_v18  ;;  %v1925_v21 = vmax.f32 %v1877_v14, 0.0  ;;  %v1878_v22 = vadd.f32 %v18150_v5, %v1823_v15 }
 0x371   : > { %2359 = vst [vmem:[#allocation2 + $0xd8] sm:$0xf] %v2310_v19  ;;  %2551 = vst [vmem:[#allocation2 + $0xe0] sm:$0xf] %v2503_v20  ;;  %v2021_v23 = vrot.slane %v1925_v21, 7  ;;  %v2166_v24 = vrot.slane %v1925_v21, 1  ;;  %v2408_v25 = vpack.c.bf16 %v1925_v21, %v1925_v21 }
 0x372   : > { %v1926_v26 = vmax.f32 %v1878_v22, 0.0  ;;  %v1680_v27 = vpop.f32.mrb[36].mxu0 }
 0x373   : > { %v2118_v28 = vsel %vm2101_vm0, 0.0, %v2021_v23  ;;  %v2263_v29 = vsel %vm2246_vm1, %v2166_v24, 0.0  ;;  %2456 = vst [vmem:[#allocation2 + $0x100] sm:$0xf] %v2408_v25  ;;  %v1682_v32 = vpop.f32.mrb[37].mxu0  ;;  %v1824_v36 = vmul.f32 %v18148_v3, %v1680_v27 }
 0x374   : > { %v2022_v30 = vrot.slane %v1926_v26, 7  ;;  %v2167_v31 = vrot.slane %v1926_v26, 1  ;;  %v2311_v33 = vpack.c.bf16 %v2118_v28, %v2118_v28  ;;  %v2504_v34 = vpack.c.bf16 %v2263_v29, %v2263_v29  ;;  %v1683_v37 = vpop.f32.mrb[38].mxu0 }
 0x375   : > { %v2409_v35 = vpack.c.bf16 %v1926_v26, %v1926_v26  ;;  %v1825_v40 = vmul.f32 %v18148_v3, %v1683_v37  ;;  %v1685_v41 = vpop.f32.mrb[39].mxu0  ;;  %v1879_v44 = vadd.f32 %v18150_v5, %v1824_v36 }
 0x376   : > { %v2119_v38 = vsel %vm2101_vm0, 0.0, %v2022_v30  ;;  %v2264_v39 = vsel %vm2246_vm1, %v2167_v31, 0.0  ;;  %2360 = vst [vmem:[#allocation2 + $0xfc] sm:$0xf] %v2311_v33  ;;  %2552 = vst [vmem:[#allocation2 + $0x104] sm:$0xf] %v2504_v34 }
 0x377   : > { %v2312_v42 = vpack.c.bf16 %v2119_v38, %v2119_v38  ;;  %2457 = vst [vmem:[#allocation2 + $0x10c] sm:$0xf] %v2409_v35  ;;  %v2505_v43 = vpack.c.bf16 %v2264_v39, %v2264_v39  ;;  %v1880_v45 = vadd.f32 %v18150_v5, %v1825_v40  ;;  %v1927_v46 = vmax.f32 %v1879_v44, 0.0 }
 0x379   : > { %2361 = vst [vmem:[#allocation2 + $0x108] sm:$0xf] %v2312_v42  ;;  %2553 = vst [vmem:[#allocation2 + $0x110] sm:$0xf] %v2505_v43  ;;  %v1928_v47 = vmax.f32 %v1880_v45, 0.0  ;;  %v2023_v48 = vrot.slane %v1927_v46, 7  ;;  %v2410_v50 = vpack.c.bf16 %v1927_v46, %v1927_v46 }
 0x37a   : > { %v2168_v49 = vrot.slane %v1927_v46, 1  ;;  %v1688_v51 = vpop.f32.mrb[40].mxu0 }
 0x37b   : > { %v2024_v52 = vrot.slane %v1928_v47, 7  ;;  %v2169_v53 = vrot.slane %v1928_v47, 1  ;;  %v2411_v54 = vpack.c.bf16 %v1928_v47, %v1928_v47  ;;  %v1826_v55 = vmul.f32 %v18148_v3, %v1688_v51  ;;  %v1690_v56 = vpop.f32.mrb[41].mxu0  ;;  %2458 = vst [vmem:[#allocation2 + $0x118] sm:$0xf] %v2410_v50 }
 0x37c   : > { %v2120_v57 = vsel %vm2101_vm0, 0.0, %v2023_v48  ;;  %v2265_v58 = vsel %vm2246_vm1, %v2168_v49, 0.0  ;;  %v1691_v59 = vpop.f32.mrb[42].mxu0 }
 0x37d   : > { %v2313_v60 = vpack.c.bf16 %v2120_v57, %v2120_v57  ;;  %v2506_v61 = vpack.c.bf16 %v2265_v58, %v2265_v58  ;;  %v2121_v62 = vsel %vm2101_vm0, 0.0, %v2024_v52  ;;  %v2266_v63 = vsel %vm2246_vm1, %v2169_v53, 0.0  ;;  %2459 = vst [vmem:[#allocation2 + $0x124] sm:$0xf] %v2411_v54  ;;  %v1693_v1 = vpop.f32.mrb[43].mxu0 }
 0x37e   : > { %v2314_v2 = vpack.c.bf16 %v2121_v62, %v2121_v62  ;;  %v2507_v4 = vpack.c.bf16 %v2266_v63, %v2266_v63  ;;  %v1881_v6 = vadd.f32 %v18150_v5, %v1826_v55  ;;  %v1827_v7 = vmul.f32 %v18148_v3, %v1691_v59 }
 0x37f   : > { %2362 = vst [vmem:[#allocation2 + $0x114] sm:$0xf] %v2313_v60  ;;  %2554 = vst [vmem:[#allocation2 + $0x11c] sm:$0xf] %v2506_v61 }
 0x380   : > { %2363 = vst [vmem:[#allocation2 + $0x120] sm:$0xf] %v2314_v2  ;;  %2555 = vst [vmem:[#allocation2 + $0x128] sm:$0xf] %v2507_v4  ;;  %v1929_v8 = vmax.f32 %v1881_v6, 0.0  ;;  %v1882_v9 = vadd.f32 %v18150_v5, %v1827_v7 }
 0x382   : > { %v2025_v10 = vrot.slane %v1929_v8, 7  ;;  %v2170_v11 = vrot.slane %v1929_v8, 1  ;;  %v2412_v12 = vpack.c.bf16 %v1929_v8, %v1929_v8  ;;  %v1930_v13 = vmax.f32 %v1882_v9, 0.0  ;;  %v1696_v14 = vpop.f32.mrb[44].mxu0 }
 0x383   : > { %v1828_v15 = vmul.f32 %v18148_v3, %v1696_v14  ;;  %v1698_v16 = vpop.f32.mrb[45].mxu0 }
 0x384   : > { %v2122_v17 = vsel %vm2101_vm0, 0.0, %v2025_v10  ;;  %v2267_v18 = vsel %vm2246_vm1, %v2170_v11, 0.0  ;;  %2460 = vst [vmem:[#allocation2 + $0x130] sm:$0xf] %v2412_v12  ;;  %v2026_v19 = vrot.slane %v1930_v13, 7  ;;  %v2171_v20 = vrot.slane %v1930_v13, 1 }
 0x385   : > { %v1699_v21 = vpop.f32.mrb[46].mxu0  ;;  %v2315_v22 = vpack.c.bf16 %v2122_v17, %v2122_v17  ;;  %v2508_v23 = vpack.c.bf16 %v2267_v18, %v2267_v18  ;;  %v2413_v24 = vpack.c.bf16 %v1930_v13, %v1930_v13  ;;  %v1883_v25 = vadd.f32 %v18150_v5, %v1828_v15 }
 0x386   : > { %v1701_v26 = vpop.f32.mrb[47].mxu0  ;;  %v2123_v27 = vsel %vm2101_vm0, 0.0, %v2026_v19  ;;  %v2268_v28 = vsel %vm2246_vm1, %v2171_v20, 0.0  ;;  %v1829_v29 = vmul.f32 %v18148_v3, %v1699_v21 }
 0x387   : > { %2364 = vst [vmem:[#allocation2 + $0x12c] sm:$0xf] %v2315_v22  ;;  %2556 = vst [vmem:[#allocation2 + $0x134] sm:$0xf] %v2508_v23  ;;  %v2316_v30 = vpack.c.bf16 %v2123_v27, %v2123_v27  ;;  %v2509_v31 = vpack.c.bf16 %v2268_v28, %v2268_v28  ;;  %v1931_v32 = vmax.f32 %v1883_v25, 0.0 }
 0x388   : > { %2461 = vst [vmem:[#allocation2 + $0x13c] sm:$0xf] %v2413_v24  ;;  %v1884_v33 = vadd.f32 %v18150_v5, %v1829_v29 }
 0x389   : > { %2365 = vst [vmem:[#allocation2 + $0x138] sm:$0xf] %v2316_v30  ;;  %2557 = vst [vmem:[#allocation2 + $0x140] sm:$0xf] %v2509_v31  ;;  %v2027_v34 = vrot.slane %v1931_v32, 7  ;;  %v2172_v35 = vrot.slane %v1931_v32, 1  ;;  %v2414_v36 = vpack.c.bf16 %v1931_v32, %v1931_v32 }
 0x38a   : > { %v1932_v37 = vmax.f32 %v1884_v33, 0.0  ;;  %v1704_v38 = vpop.f32.mrb[48].mxu0 }
 0x38b   : > { %v2124_v39 = vsel %vm2101_vm0, 0.0, %v2027_v34  ;;  %v2269_v40 = vsel %vm2246_vm1, %v2172_v35, 0.0  ;;  %2462 = vst [vmem:[#allocation2 + $0x148] sm:$0xf] %v2414_v36  ;;  %v1830_v41 = vmul.f32 %v18148_v3, %v1704_v38  ;;  %v1706_v42 = vpop.f32.mrb[49].mxu0 }
 0x38c   : > { %v2317_v43 = vpack.c.bf16 %v2124_v39, %v2124_v39  ;;  %v2510_v44 = vpack.c.bf16 %v2269_v40, %v2269_v40  ;;  %v2028_v45 = vrot.slane %v1932_v37, 7  ;;  %v2173_v46 = vrot.slane %v1932_v37, 1  ;;  %v1707_v47 = vpop.f32.mrb[50].mxu0 }
 0x38d   : > { %v2415_v48 = vpack.c.bf16 %v1932_v37, %v1932_v37  ;;  %v1885_v49 = vadd.f32 %v18150_v5, %v1830_v41  ;;  %v1831_v50 = vmul.f32 %v18148_v3, %v1707_v47  ;;  %v1709_v51 = vpop.f32.mrb[51].mxu0 }
 0x38e   : > { %2366 = vst [vmem:[#allocation2 + $0x144] sm:$0xf] %v2317_v43  ;;  %2558 = vst [vmem:[#allocation2 + $0x14c] sm:$0xf] %v2510_v44  ;;  %v2125_v52 = vsel %vm2101_vm0, 0.0, %v2028_v45  ;;  %v2270_v53 = vsel %vm2246_vm1, %v2173_v46, 0.0 }
 0x38f   : > { %v2318_v54 = vpack.c.bf16 %v2125_v52, %v2125_v52  ;;  %2463 = vst [vmem:[#allocation2 + $0x154] sm:$0xf] %v2415_v48  ;;  %v2511_v55 = vpack.c.bf16 %v2270_v53, %v2270_v53  ;;  %v1933_v56 = vmax.f32 %v1885_v49, 0.0  ;;  %v1886_v57 = vadd.f32 %v18150_v5, %v1831_v50 }
 0x391   : > { %2367 = vst [vmem:[#allocation2 + $0x150] sm:$0xf] %v2318_v54  ;;  %2559 = vst [vmem:[#allocation2 + $0x158] sm:$0xf] %v2511_v55  ;;  %v2029_v58 = vrot.slane %v1933_v56, 7  ;;  %v2174_v59 = vrot.slane %v1933_v56, 1  ;;  %v2416_v60 = vpack.c.bf16 %v1933_v56, %v1933_v56 }
 0x392   : > { %v1934_v61 = vmax.f32 %v1886_v57, 0.0  ;;  %v1712_v62 = vpop.f32.mrb[52].mxu0 }
 0x393   : > { %v2126_v63 = vsel %vm2101_vm0, 0.0, %v2029_v58  ;;  %v2271_v1 = vsel %vm2246_vm1, %v2174_v59, 0.0  ;;  %2464 = vst [vmem:[#allocation2 + $0x178] sm:$0xf] %v2416_v60  ;;  %v1714_v6 = vpop.f32.mrb[53].mxu0  ;;  %v1832_v10 = vmul.f32 %v18148_v3, %v1712_v62 }
 0x394   : > { %v2030_v2 = vrot.slane %v1934_v61, 7  ;;  %v2175_v4 = vrot.slane %v1934_v61, 1  ;;  %v2319_v7 = vpack.c.bf16 %v2126_v63, %v2126_v63  ;;  %v2512_v8 = vpack.c.bf16 %v2271_v1, %v2271_v1  ;;  %v1715_v11 = vpop.f32.mrb[54].mxu0 }
 0x395   : > { %v2417_v9 = vpack.c.bf16 %v1934_v61, %v1934_v61  ;;  %v1833_v14 = vmul.f32 %v18148_v3, %v1715_v11  ;;  %v1717_v15 = vpop.f32.mrb[55].mxu0  ;;  %v1887_v18 = vadd.f32 %v18150_v5, %v1832_v10 }
 0x396   : > { %v2127_v12 = vsel %vm2101_vm0, 0.0, %v2030_v2  ;;  %v2272_v13 = vsel %vm2246_vm1, %v2175_v4, 0.0  ;;  %2368 = vst [vmem:[#allocation2 + $0x174] sm:$0xf] %v2319_v7  ;;  %2560 = vst [vmem:[#allocation2 + $0x17c] sm:$0xf] %v2512_v8 }
 0x397   : > { %v2320_v16 = vpack.c.bf16 %v2127_v12, %v2127_v12  ;;  %2465 = vst [vmem:[#allocation2 + $0x184] sm:$0xf] %v2417_v9  ;;  %v2513_v17 = vpack.c.bf16 %v2272_v13, %v2272_v13  ;;  %v1888_v19 = vadd.f32 %v18150_v5, %v1833_v14  ;;  %v1935_v20 = vmax.f32 %v1887_v18, 0.0 }
 0x399   : > { %2369 = vst [vmem:[#allocation2 + $0x180] sm:$0xf] %v2320_v16  ;;  %2561 = vst [vmem:[#allocation2 + $0x188] sm:$0xf] %v2513_v17  ;;  %v1936_v21 = vmax.f32 %v1888_v19, 0.0  ;;  %v2031_v22 = vrot.slane %v1935_v20, 7  ;;  %v2418_v24 = vpack.c.bf16 %v1935_v20, %v1935_v20 }
 0x39a   : > { %v2176_v23 = vrot.slane %v1935_v20, 1  ;;  %v1720_v25 = vpop.f32.mrb[56].mxu0 }
 0x39b   : > { %v2032_v26 = vrot.slane %v1936_v21, 7  ;;  %v2177_v27 = vrot.slane %v1936_v21, 1  ;;  %v2419_v28 = vpack.c.bf16 %v1936_v21, %v1936_v21  ;;  %v1834_v29 = vmul.f32 %v18148_v3, %v1720_v25  ;;  %v1722_v30 = vpop.f32.mrb[57].mxu0  ;;  %2466 = vst [vmem:[#allocation2 + $0x190] sm:$0xf] %v2418_v24 }
 0x39c   : > { %v2128_v31 = vsel %vm2101_vm0, 0.0, %v2031_v22  ;;  %v2273_v32 = vsel %vm2246_vm1, %v2176_v23, 0.0  ;;  %v1723_v33 = vpop.f32.mrb[58].mxu0 }
 0x39d   : > { %v2321_v34 = vpack.c.bf16 %v2128_v31, %v2128_v31  ;;  %v2514_v35 = vpack.c.bf16 %v2273_v32, %v2273_v32  ;;  %v2129_v36 = vsel %vm2101_vm0, 0.0, %v2032_v26  ;;  %v2274_v37 = vsel %vm2246_vm1, %v2177_v27, 0.0  ;;  %2467 = vst [vmem:[#allocation2 + $0x19c] sm:$0xf] %v2419_v28  ;;  %v1725_v38 = vpop.f32.mrb[59].mxu0 }
 0x39e   : > { %v2322_v39 = vpack.c.bf16 %v2129_v36, %v2129_v36  ;;  %v2515_v40 = vpack.c.bf16 %v2274_v37, %v2274_v37  ;;  %v1889_v41 = vadd.f32 %v18150_v5, %v1834_v29  ;;  %v1835_v42 = vmul.f32 %v18148_v3, %v1723_v33 }
 0x39f   : > { %2370 = vst [vmem:[#allocation2 + $0x18c] sm:$0xf] %v2321_v34  ;;  %2562 = vst [vmem:[#allocation2 + $0x194] sm:$0xf] %v2514_v35 }
 0x3a0   : > { %2371 = vst [vmem:[#allocation2 + $0x198] sm:$0xf] %v2322_v39  ;;  %2563 = vst [vmem:[#allocation2 + $0x1a0] sm:$0xf] %v2515_v40  ;;  %v1937_v43 = vmax.f32 %v1889_v41, 0.0  ;;  %v1890_v44 = vadd.f32 %v18150_v5, %v1835_v42 }
 0x3a2   : > { %v2033_v45 = vrot.slane %v1937_v43, 7  ;;  %v2178_v46 = vrot.slane %v1937_v43, 1  ;;  %v2420_v47 = vpack.c.bf16 %v1937_v43, %v1937_v43  ;;  %v1938_v48 = vmax.f32 %v1890_v44, 0.0  ;;  %v1728_v49 = vpop.f32.mrb[60].mxu0 }
 0x3a3   : > { %v1836_v50 = vmul.f32 %v18148_v3, %v1728_v49  ;;  %v1730_v51 = vpop.f32.mrb[61].mxu0 }
 0x3a4   : > { %v2130_v52 = vsel %vm2101_vm0, 0.0, %v2033_v45  ;;  %v2275_v53 = vsel %vm2246_vm1, %v2178_v46, 0.0  ;;  %2468 = vst [vmem:[#allocation2 + $0x1a8] sm:$0xf] %v2420_v47  ;;  %v2034_v54 = vrot.slane %v1938_v48, 7  ;;  %v2179_v55 = vrot.slane %v1938_v48, 1 }
 0x3a5   : > { %v1731_v56 = vpop.f32.mrb[62].mxu0  ;;  %v2323_v57 = vpack.c.bf16 %v2130_v52, %v2130_v52  ;;  %v2516_v58 = vpack.c.bf16 %v2275_v53, %v2275_v53  ;;  %v2421_v59 = vpack.c.bf16 %v1938_v48, %v1938_v48  ;;  %v1891_v60 = vadd.f32 %v18150_v5, %v1836_v50  ;;  %v18290_v52 = vld [vmem:[#allocation9] ss:$0 sm:$0xff] }
 0x3a6   : > { %v1733_v61 = vpop.f32.mrb[63].mxu0  ;;  %v2131_v62 = vsel %vm2101_vm0, 0.0, %v2034_v54  ;;  %v2276_v63 = vsel %vm2246_vm1, %v2179_v55, 0.0  ;;  %v1837_v1 = vmul.f32 %v18148_v3, %v1731_v56 }
 0x3a7   : > { %2372 = vst [vmem:[#allocation2 + $0x1a4] sm:$0xf] %v2323_v57  ;;  %2564 = vst [vmem:[#allocation2 + $0x1ac] sm:$0xf] %v2516_v58  ;;  %v2324_v2 = vpack.c.bf16 %v2131_v62, %v2131_v62  ;;  %v2517_v4 = vpack.c.bf16 %v2276_v63, %v2276_v63  ;;  %v1939_v6 = vmax.f32 %v1891_v60, 0.0 }
 0x3a8   : > { %2469 = vst [vmem:[#allocation2 + $0x1b4] sm:$0xf] %v2421_v59  ;;  %v1892_v7 = vadd.f32 %v18150_v5, %v1837_v1  ;;  %v18294_v63 = vld [vmem:[#allocation8] ss:$0 sm:$0xff] }
 0x3a9   : > { %2373 = vst [vmem:[#allocation2 + $0x1b0] sm:$0xf] %v2324_v2  ;;  %2565 = vst [vmem:[#allocation2 + $0x1b8] sm:$0xf] %v2517_v4  ;;  %v2035_v8 = vrot.slane %v1939_v6, 7  ;;  %v2180_v9 = vrot.slane %v1939_v6, 1  ;;  %v2422_v10 = vpack.c.bf16 %v1939_v6, %v1939_v6 }
 0x3aa   : > { %v1940_v11 = vmax.f32 %v1892_v7, 0.0  ;;  %v1736_v12 = vpop.f32.mrb[64].mxu0 }
 0x3ab   : > { %v2132_v13 = vsel %vm2101_vm0, 0.0, %v2035_v8  ;;  %v2277_v14 = vsel %vm2246_vm1, %v2180_v9, 0.0  ;;  %2470 = vst [vmem:[#allocation2 + $0x1c0] sm:$0xf] %v2422_v10  ;;  %v1838_v15 = vmul.f32 %v18148_v3, %v1736_v12  ;;  %v1738_v16 = vpop.f32.mrb[65].mxu0 }
 0x3ac   : > { %v2325_v17 = vpack.c.bf16 %v2132_v13, %v2132_v13  ;;  %v2518_v18 = vpack.c.bf16 %v2277_v14, %v2277_v14  ;;  %v2036_v19 = vrot.slane %v1940_v11, 7  ;;  %v2181_v20 = vrot.slane %v1940_v11, 1  ;;  %v1739_v21 = vpop.f32.mrb[66].mxu0 }
 0x3ad   : > { %v2423_v22 = vpack.c.bf16 %v1940_v11, %v1940_v11  ;;  %v1893_v23 = vadd.f32 %v18150_v5, %v1838_v15  ;;  %v1839_v24 = vmul.f32 %v18148_v3, %v1739_v21  ;;  %v1741_v25 = vpop.f32.mrb[67].mxu0 }
 0x3ae   : > { %2374 = vst [vmem:[#allocation2 + $0x1bc] sm:$0xf] %v2325_v17  ;;  %2566 = vst [vmem:[#allocation2 + $0x1c4] sm:$0xf] %v2518_v18  ;;  %v2133_v26 = vsel %vm2101_vm0, 0.0, %v2036_v19  ;;  %v2278_v27 = vsel %vm2246_vm1, %v2181_v20, 0.0 }
 0x3af   : > { %v2326_v28 = vpack.c.bf16 %v2133_v26, %v2133_v26  ;;  %2471 = vst [vmem:[#allocation2 + $0x1cc] sm:$0xf] %v2423_v22  ;;  %v2519_v29 = vpack.c.bf16 %v2278_v27, %v2278_v27  ;;  %v1941_v30 = vmax.f32 %v1893_v23, 0.0  ;;  %v1894_v31 = vadd.f32 %v18150_v5, %v1839_v24 }
 0x3b1   : > { %2375 = vst [vmem:[#allocation2 + $0x1c8] sm:$0xf] %v2326_v28  ;;  %2567 = vst [vmem:[#allocation2 + $0x1d0] sm:$0xf] %v2519_v29  ;;  %v2037_v32 = vrot.slane %v1941_v30, 7  ;;  %v2182_v33 = vrot.slane %v1941_v30, 1  ;;  %v2424_v34 = vpack.c.bf16 %v1941_v30, %v1941_v30 }
 0x3b2   : > { %v1942_v35 = vmax.f32 %v1894_v31, 0.0  ;;  %v1744_v36 = vpop.f32.mrb[68].mxu0 }
 0x3b3   : > { %v2134_v37 = vsel %vm2101_vm0, 0.0, %v2037_v32  ;;  %v2279_v38 = vsel %vm2246_vm1, %v2182_v33, 0.0  ;;  %2472 = vst [vmem:[#allocation2 + $0x1f0] sm:$0xf] %v2424_v34  ;;  %v1746_v41 = vpop.f32.mrb[69].mxu0  ;;  %v1840_v5 = vmul.f32 %v18148_v3, %v1744_v36 }
 0x3b4   : > { %v2038_v39 = vrot.slane %v1942_v35, 7  ;;  %v2183_v40 = vrot.slane %v1942_v35, 1  ;;  %v2327_v42 = vpack.c.bf16 %v2134_v37, %v2134_v37  ;;  %v2520_v43 = vpack.c.bf16 %v2279_v38, %v2279_v38  ;;  %v1747_v45 = vpop.f32.mrb[70].mxu0 }
 0x3b5   : > { %v2425_v44 = vpack.c.bf16 %v1942_v35, %v1942_v35  ;;  %v1841_v48 = vmul.f32 %v18148_v3, %v1747_v45  ;;  %v1749_v49 = vpop.f32.mrb[71].mxu0  ;;  %v1895_v53 = vadd.f32 %v18290_v52, %v1840_v5 }
 0x3b6   : > { %v2135_v46 = vsel %vm2101_vm0, 0.0, %v2038_v39  ;;  %v2280_v47 = vsel %vm2246_vm1, %v2183_v40, 0.0  ;;  %2376 = vst [vmem:[#allocation2 + $0x1ec] sm:$0xf] %v2327_v42  ;;  %2568 = vst [vmem:[#allocation2 + $0x1f4] sm:$0xf] %v2520_v43 }
 0x3b7   : > { %v2328_v50 = vpack.c.bf16 %v2135_v46, %v2135_v46  ;;  %2473 = vst [vmem:[#allocation2 + $0x1fc] sm:$0xf] %v2425_v44  ;;  %v2521_v51 = vpack.c.bf16 %v2280_v47, %v2280_v47  ;;  %v1896_v54 = vadd.f32 %v18290_v52, %v1841_v48  ;;  %v1943_v55 = vmax.f32 %v1895_v53, 0.0 }
 0x3b9   : > { %2377 = vst [vmem:[#allocation2 + $0x1f8] sm:$0xf] %v2328_v50  ;;  %2569 = vst [vmem:[#allocation2 + $0x200] sm:$0xf] %v2521_v51  ;;  %v1944_v56 = vmax.f32 %v1896_v54, 0.0  ;;  %v2039_v57 = vrot.slane %v1943_v55, 7  ;;  %v2426_v59 = vpack.c.bf16 %v1943_v55, %v1943_v55 }
 0x3ba   : > { %v2184_v58 = vrot.slane %v1943_v55, 1  ;;  %v1752_v3 = vpop.f32.mrb[72].mxu0 }
 0x3bb   : > { %v2040_v60 = vrot.slane %v1944_v56, 7  ;;  %v2185_v61 = vrot.slane %v1944_v56, 1  ;;  %v2427_v62 = vpack.c.bf16 %v1944_v56, %v1944_v56  ;;  %v1842_v1 = vmul.f32 %v18294_v63, %v1752_v3  ;;  %v1754_v2 = vpop.f32.mrb[73].mxu0  ;;  %2474 = vst [vmem:[#allocation2 + $0x208] sm:$0xf] %v2426_v59 }
 0x3bc   : > { %v2136_v4 = vsel %vm2101_vm0, 0.0, %v2039_v57  ;;  %v2281_v6 = vsel %vm2246_vm1, %v2184_v58, 0.0  ;;  %v1755_v7 = vpop.f32.mrb[74].mxu0 }
 0x3bd   : > { %v2329_v8 = vpack.c.bf16 %v2136_v4, %v2136_v4  ;;  %v2522_v9 = vpack.c.bf16 %v2281_v6, %v2281_v6  ;;  %v2137_v10 = vsel %vm2101_vm0, 0.0, %v2040_v60  ;;  %v2282_v11 = vsel %vm2246_vm1, %v2185_v61, 0.0  ;;  %2475 = vst [vmem:[#allocation2 + $0x214] sm:$0xf] %v2427_v62  ;;  %v1757_v12 = vpop.f32.mrb[75].mxu0 }
 0x3be   : > { %v2330_v13 = vpack.c.bf16 %v2137_v10, %v2137_v10  ;;  %v2523_v14 = vpack.c.bf16 %v2282_v11, %v2282_v11  ;;  %v1897_v15 = vadd.f32 %v18290_v52, %v1842_v1  ;;  %v1843_v16 = vmul.f32 %v18294_v63, %v1755_v7 }
 0x3bf   : > { %2378 = vst [vmem:[#allocation2 + $0x204] sm:$0xf] %v2329_v8  ;;  %2570 = vst [vmem:[#allocation2 + $0x20c] sm:$0xf] %v2522_v9 }
 0x3c0   : > { %2379 = vst [vmem:[#allocation2 + $0x210] sm:$0xf] %v2330_v13  ;;  %2571 = vst [vmem:[#allocation2 + $0x218] sm:$0xf] %v2523_v14  ;;  %v1945_v17 = vmax.f32 %v1897_v15, 0.0  ;;  %v1898_v18 = vadd.f32 %v18290_v52, %v1843_v16 }
 0x3c2   : > { %v2041_v19 = vrot.slane %v1945_v17, 7  ;;  %v2186_v20 = vrot.slane %v1945_v17, 1  ;;  %v2428_v21 = vpack.c.bf16 %v1945_v17, %v1945_v17  ;;  %v1946_v22 = vmax.f32 %v1898_v18, 0.0  ;;  %v1760_v23 = vpop.f32.mrb[76].mxu0 }
 0x3c3   : > { %v1844_v24 = vmul.f32 %v18294_v63, %v1760_v23  ;;  %v1762_v25 = vpop.f32.mrb[77].mxu0 }
 0x3c4   : > { %v2138_v26 = vsel %vm2101_vm0, 0.0, %v2041_v19  ;;  %v2283_v27 = vsel %vm2246_vm1, %v2186_v20, 0.0  ;;  %2476 = vst [vmem:[#allocation2 + $0x220] sm:$0xf] %v2428_v21  ;;  %v2042_v28 = vrot.slane %v1946_v22, 7  ;;  %v2187_v29 = vrot.slane %v1946_v22, 1 }
 0x3c5   : > { %v1763_v30 = vpop.f32.mrb[78].mxu0  ;;  %v2331_v31 = vpack.c.bf16 %v2138_v26, %v2138_v26  ;;  %v2524_v32 = vpack.c.bf16 %v2283_v27, %v2283_v27  ;;  %v2429_v33 = vpack.c.bf16 %v1946_v22, %v1946_v22  ;;  %v1899_v34 = vadd.f32 %v18290_v52, %v1844_v24 }
 0x3c6   : > { %v1765_v35 = vpop.f32.mrb[79].mxu0  ;;  %v2139_v36 = vsel %vm2101_vm0, 0.0, %v2042_v28  ;;  %v2284_v37 = vsel %vm2246_vm1, %v2187_v29, 0.0  ;;  %v1845_v38 = vmul.f32 %v18294_v63, %v1763_v30 }
 0x3c7   : > { %2380 = vst [vmem:[#allocation2 + $0x21c] sm:$0xf] %v2331_v31  ;;  %2572 = vst [vmem:[#allocation2 + $0x224] sm:$0xf] %v2524_v32  ;;  %v2332_v39 = vpack.c.bf16 %v2139_v36, %v2139_v36  ;;  %v2525_v40 = vpack.c.bf16 %v2284_v37, %v2284_v37  ;;  %v1947_v41 = vmax.f32 %v1899_v34, 0.0 }
 0x3c8   : > { %2477 = vst [vmem:[#allocation2 + $0x22c] sm:$0xf] %v2429_v33  ;;  %v1900_v42 = vadd.f32 %v18290_v52, %v1845_v38 }
 0x3c9   : > { %2381 = vst [vmem:[#allocation2 + $0x228] sm:$0xf] %v2332_v39  ;;  %2573 = vst [vmem:[#allocation2 + $0x230] sm:$0xf] %v2525_v40  ;;  %v2043_v43 = vrot.slane %v1947_v41, 7  ;;  %v2188_v44 = vrot.slane %v1947_v41, 1  ;;  %v2430_v5 = vpack.c.bf16 %v1947_v41, %v1947_v41 }
 0x3ca   : > { %v1948_v45 = vmax.f32 %v1900_v42, 0.0  ;;  %v1768_v46 = vpop.f32.mrb[80].mxu0 }
 0x3cb   : > { %v2140_v47 = vsel %vm2101_vm0, 0.0, %v2043_v43  ;;  %v2285_v48 = vsel %vm2246_vm1, %v2188_v44, 0.0  ;;  %2478 = vst [vmem:[#allocation2 + $0x238] sm:$0xf] %v2430_v5  ;;  %v1846_v49 = vmul.f32 %v18294_v63, %v1768_v46  ;;  %v1770_v50 = vpop.f32.mrb[81].mxu0 }
 0x3cc   : > { %v2333_v51 = vpack.c.bf16 %v2140_v47, %v2140_v47  ;;  %v2526_v53 = vpack.c.bf16 %v2285_v48, %v2285_v48  ;;  %v2044_v54 = vrot.slane %v1948_v45, 7  ;;  %v2189_v55 = vrot.slane %v1948_v45, 1  ;;  %v1771_v56 = vpop.f32.mrb[82].mxu0 }
 0x3cd   : > { %v2431_v57 = vpack.c.bf16 %v1948_v45, %v1948_v45  ;;  %v1901_v58 = vadd.f32 %v18290_v52, %v1846_v49  ;;  %v1847_v59 = vmul.f32 %v18294_v63, %v1771_v56  ;;  %v1773_v3 = vpop.f32.mrb[83].mxu0 }
 0x3ce   : > { %2382 = vst [vmem:[#allocation2 + $0x234] sm:$0xf] %v2333_v51  ;;  %2574 = vst [vmem:[#allocation2 + $0x23c] sm:$0xf] %v2526_v53  ;;  %v2141_v60 = vsel %vm2101_vm0, 0.0, %v2044_v54  ;;  %v2286_v61 = vsel %vm2246_vm1, %v2189_v55, 0.0 }
 0x3cf   : > { %v2334_v62 = vpack.c.bf16 %v2141_v60, %v2141_v60  ;;  %2479 = vst [vmem:[#allocation2 + $0x244] sm:$0xf] %v2431_v57  ;;  %v2527_v1 = vpack.c.bf16 %v2286_v61, %v2286_v61  ;;  %v1949_v2 = vmax.f32 %v1901_v58, 0.0  ;;  %v1902_v4 = vadd.f32 %v18290_v52, %v1847_v59 }
 0x3d1   : > { %2383 = vst [vmem:[#allocation2 + $0x240] sm:$0xf] %v2334_v62  ;;  %2575 = vst [vmem:[#allocation2 + $0x248] sm:$0xf] %v2527_v1  ;;  %v2045_v6 = vrot.slane %v1949_v2, 7  ;;  %v2190_v7 = vrot.slane %v1949_v2, 1  ;;  %v2432_v8 = vpack.c.bf16 %v1949_v2, %v1949_v2 }
 0x3d2   : > { %v1950_v9 = vmax.f32 %v1902_v4, 0.0  ;;  %v1776_v10 = vpop.f32.mrb[84].mxu0 }
 0x3d3   : > { %v2142_v11 = vsel %vm2101_vm0, 0.0, %v2045_v6  ;;  %v2287_v12 = vsel %vm2246_vm1, %v2190_v7, 0.0  ;;  %2480 = vst [vmem:[#allocation2 + $0x268] sm:$0xf] %v2432_v8  ;;  %v1778_v15 = vpop.f32.mrb[85].mxu0  ;;  %v1848_v19 = vmul.f32 %v18294_v63, %v1776_v10 }
 0x3d4   : > { %v2046_v13 = vrot.slane %v1950_v9, 7  ;;  %v2191_v14 = vrot.slane %v1950_v9, 1  ;;  %v2335_v16 = vpack.c.bf16 %v2142_v11, %v2142_v11  ;;  %v2528_v17 = vpack.c.bf16 %v2287_v12, %v2287_v12  ;;  %v1779_v20 = vpop.f32.mrb[86].mxu0 }
 0x3d5   : > { %v2433_v18 = vpack.c.bf16 %v1950_v9, %v1950_v9  ;;  %v1849_v23 = vmul.f32 %v18294_v63, %v1779_v20  ;;  %v1781_v24 = vpop.f32.mrb[87].mxu0  ;;  %v1903_v27 = vadd.f32 %v18290_v52, %v1848_v19 }
 0x3d6   : > { %v2143_v21 = vsel %vm2101_vm0, 0.0, %v2046_v13  ;;  %v2288_v22 = vsel %vm2246_vm1, %v2191_v14, 0.0  ;;  %2384 = vst [vmem:[#allocation2 + $0x264] sm:$0xf] %v2335_v16  ;;  %2576 = vst [vmem:[#allocation2 + $0x26c] sm:$0xf] %v2528_v17 }
 0x3d7   : > { %v2336_v25 = vpack.c.bf16 %v2143_v21, %v2143_v21  ;;  %2481 = vst [vmem:[#allocation2 + $0x274] sm:$0xf] %v2433_v18  ;;  %v2529_v26 = vpack.c.bf16 %v2288_v22, %v2288_v22  ;;  %v1904_v28 = vadd.f32 %v18290_v52, %v1849_v23  ;;  %v1951_v29 = vmax.f32 %v1903_v27, 0.0 }
 0x3d9   : > { %2385 = vst [vmem:[#allocation2 + $0x270] sm:$0xf] %v2336_v25  ;;  %2577 = vst [vmem:[#allocation2 + $0x278] sm:$0xf] %v2529_v26  ;;  %v1952_v30 = vmax.f32 %v1904_v28, 0.0  ;;  %v2047_v31 = vrot.slane %v1951_v29, 7  ;;  %v2434_v33 = vpack.c.bf16 %v1951_v29, %v1951_v29 }
 0x3da   : > { %v2192_v32 = vrot.slane %v1951_v29, 1  ;;  %v1784_v34 = vpop.f32.mrb[88].mxu0 }
 0x3db   : > { %v2048_v35 = vrot.slane %v1952_v30, 7  ;;  %v2193_v36 = vrot.slane %v1952_v30, 1  ;;  %v2435_v37 = vpack.c.bf16 %v1952_v30, %v1952_v30  ;;  %v1850_v38 = vmul.f32 %v18294_v63, %v1784_v34  ;;  %v1786_v39 = vpop.f32.mrb[89].mxu0  ;;  %2482 = vst [vmem:[#allocation2 + $0x280] sm:$0xf] %v2434_v33 }
 0x3dc   : > { %v2144_v40 = vsel %vm2101_vm0, 0.0, %v2047_v31  ;;  %v2289_v41 = vsel %vm2246_vm1, %v2192_v32, 0.0  ;;  %v1787_v42 = vpop.f32.mrb[90].mxu0  ;;  %v17515_v30 = vmov (!%p12789_p0), 0  }
 0x3dd   : > { %v2337_v43 = vpack.c.bf16 %v2144_v40, %v2144_v40  ;;  %v2530_v44 = vpack.c.bf16 %v2289_v41, %v2289_v41  ;;  %v2145_v5 = vsel %vm2101_vm0, 0.0, %v2048_v35  ;;  %v2290_v45 = vsel %vm2246_vm1, %v2193_v36, 0.0  ;;  %2483 = vst [vmem:[#allocation2 + $0x28c] sm:$0xf] %v2435_v37  ;;  %v1789_v46 = vpop.f32.mrb[91].mxu0  ;;  %2613 = vst [vmem:[#allocation2] sm:$0xff] (!%p12789_p0), %v17515_v30 }
 0x3de   : > { %v2338_v47 = vpack.c.bf16 %v2145_v5, %v2145_v5  ;;  %v2531_v48 = vpack.c.bf16 %v2290_v45, %v2290_v45  ;;  %v1905_v49 = vadd.f32 %v18290_v52, %v1850_v38  ;;  %v1851_v50 = vmul.f32 %v18294_v63, %v1787_v42  ;;  %2614 = vst [vmem:[#allocation2 + $0x8] sm:$0xf] (!%p12789_p0), %v17515_v30 }
 0x3df   : > { %2386 = vst [vmem:[#allocation2 + $0x27c] sm:$0xf] %v2337_v43  ;;  %2578 = vst [vmem:[#allocation2 + $0x284] sm:$0xf] %v2530_v44 }
 0x3e0   : > { %2387 = vst [vmem:[#allocation2 + $0x288] sm:$0xf] %v2338_v47  ;;  %2579 = vst [vmem:[#allocation2 + $0x290] sm:$0xf] %v2531_v48  ;;  %v1953_v51 = vmax.f32 %v1905_v49, 0.0  ;;  %v1906_v53 = vadd.f32 %v18290_v52, %v1851_v50 }
 0x3e1   : > { %2615 = vst [vmem:[#allocation2 + $0xc] sm:$0xff] (!%p12789_p0), %v17515_v30  ;;  %2616 = vst [vmem:[#allocation2 + $0x14] sm:$0xf] (!%p12789_p0), %v17515_v30 }
 0x3e2   : > { %v2049_v54 = vrot.slane %v1953_v51, 7  ;;  %v2194_v55 = vrot.slane %v1953_v51, 1  ;;  %v2436_v56 = vpack.c.bf16 %v1953_v51, %v1953_v51  ;;  %v1954_v57 = vmax.f32 %v1906_v53, 0.0  ;;  %v1792_v58 = vpop.f32.mrb[92].mxu0  ;;  %2617 = vst [vmem:[#allocation2 + $0x18] sm:$0xff] (!%p12789_p0), %v17515_v30  ;;  %2619 = vst [vmem:[#allocation2 + $0x24] sm:$0xff] (!%p12789_p0), %v17515_v30 }
 0x3e3   : > { %v1852_v59 = vmul.f32 %v18294_v63, %v1792_v58  ;;  %v1794_v3 = vpop.f32.mrb[93].mxu0  ;;  %2618 = vst [vmem:[#allocation2 + $0x20] sm:$0xf] (!%p12789_p0), %v17515_v30  ;;  %2620 = vst [vmem:[#allocation2 + $0x2c] sm:$0xf] (!%p12789_p0), %v17515_v30 }
 0x3e4   : > { %v2146_v60 = vsel %vm2101_vm0, 0.0, %v2049_v54  ;;  %v2291_v61 = vsel %vm2246_vm1, %v2194_v55, 0.0  ;;  %2484 = vst [vmem:[#allocation2 + $0x298] sm:$0xf] %v2436_v56  ;;  %v2050_v62 = vrot.slane %v1954_v57, 7  ;;  %v2195_v1 = vrot.slane %v1954_v57, 1 }
 0x3e5   : > { %v1795_v2 = vpop.f32.mrb[94].mxu0  ;;  %v2339_v4 = vpack.c.bf16 %v2146_v60, %v2146_v60  ;;  %v2532_v6 = vpack.c.bf16 %v2291_v61, %v2291_v61  ;;  %v2437_v7 = vpack.c.bf16 %v1954_v57, %v1954_v57  ;;  %v1907_v8 = vadd.f32 %v18290_v52, %v1852_v59  ;;  %2621 = vst [vmem:[#allocation2 + $0x30] sm:$0xff] (!%p12789_p0), %v17515_v30 }
 0x3e6   : > { %v1797_v9 = vpop.f32.mrb[95].mxu0  ;;  %v2147_v10 = vsel %vm2101_vm0, 0.0, %v2050_v62  ;;  %v2292_v11 = vsel %vm2246_vm1, %v2195_v1, 0.0  ;;  %v1853_v12 = vmul.f32 %v18294_v63, %v1795_v2  ;;  %2622 = vst [vmem:[#allocation2 + $0x38] sm:$0xf] (!%p12789_p0), %v17515_v30  ;;  %2623 = vst [vmem:[#allocation2 + $0x3c] sm:$0xff] (!%p12789_p0), %v17515_v30 }
 0x3e7   : > { %2388 = vst [vmem:[#allocation2 + $0x294] sm:$0xf] %v2339_v4  ;;  %2580 = vst [vmem:[#allocation2 + $0x29c] sm:$0xf] %v2532_v6  ;;  %v2340_v13 = vpack.c.bf16 %v2147_v10, %v2147_v10  ;;  %v2533_v14 = vpack.c.bf16 %v2292_v11, %v2292_v11  ;;  %v1955_v15 = vmax.f32 %v1907_v8, 0.0 }
 0x3e8   : > { %2485 = vst [vmem:[#allocation2 + $0x2a4] sm:$0xf] %v2437_v7  ;;  %v1908_v16 = vadd.f32 %v18290_v52, %v1853_v12  ;;  %2624 = vst [vmem:[#allocation2 + $0x44] sm:$0xf] (!%p12789_p0), %v17515_v30 }
 0x3e9   : > { %2389 = vst [vmem:[#allocation2 + $0x2a0] sm:$0xf] %v2340_v13  ;;  %2581 = vst [vmem:[#allocation2 + $0x2a8] sm:$0xf] %v2533_v14  ;;  %v2051_v17 = vrot.slane %v1955_v15, 7  ;;  %v2196_v18 = vrot.slane %v1955_v15, 1  ;;  %v2438_v19 = vpack.c.bf16 %v1955_v15, %v1955_v15 }
 0x3ea   : > { %v1956_v20 = vmax.f32 %v1908_v16, 0.0  ;;  %2625 = vst [vmem:[#allocation2 + $0x48] sm:$0xff] (!%p12789_p0), %v17515_v30  ;;  %2626 = vst [vmem:[#allocation2 + $0x50] sm:$0xf] (!%p12789_p0), %v17515_v30 }
 0x3eb   : > { %v2148_v21 = vsel %vm2101_vm0, 0.0, %v2051_v17  ;;  %v2293_v22 = vsel %vm2246_vm1, %v2196_v18, 0.0  ;;  %2486 = vst [vmem:[#allocation2 + $0x2b0] sm:$0xf] %v2438_v19  ;;  %2612 = sbr.rel (%p12789_p0) target bundleno = 1010 (0x3f2), region = 104  ;;  %2627 = vst [vmem:[#allocation2 + $0x54] sm:$0xff] (!%p12789_p0), %v17515_v30 }
 0x3ec   : > { %v2341_v63 = vpack.c.bf16 %v2148_v21, %v2148_v21  ;;  %v2534_v23 = vpack.c.bf16 %v2293_v22, %v2293_v22  ;;  %v2052_v24 = vrot.slane %v1956_v20, 7  ;;  %v2197_v25 = vrot.slane %v1956_v20, 1  ;;  %2628 = vst [vmem:[#allocation2 + $0x5c] sm:$0xf] (!%p12789_p0), %v17515_v30  ;;  %2629 = vst [vmem:[#allocation2 + $0x60] sm:$0xff] (!%p12789_p0), %v17515_v30 }
 0x3ed   : > { %v2439_v26 = vpack.c.bf16 %v1956_v20, %v1956_v20  ;;  %2630 = vst [vmem:[#allocation2 + $0x68] sm:$0xf] (!%p12789_p0), %v17515_v30  ;;  %2631 = vst [vmem:[#allocation2 + $0x6c] sm:$0xff] (!%p12789_p0), %v17515_v30 }
 0x3ee   : > { %2390 = vst [vmem:[#allocation2 + $0x2ac] sm:$0xf] %v2341_v63  ;;  %2582 = vst [vmem:[#allocation2 + $0x2b4] sm:$0xf] %v2534_v23  ;;  %v2149_v52 = vsel %vm2101_vm0, 0.0, %v2052_v24  ;;  %v2294_v27 = vsel %vm2246_vm1, %v2197_v25, 0.0 }
 0x3ef   : > { %v2342_v28 = vpack.c.bf16 %v2149_v52, %v2149_v52  ;;  %2487 = vst [vmem:[#allocation2 + $0x2bc] sm:$0xf] %v2439_v26  ;;  %v2535_v29 = vpack.c.bf16 %v2294_v27, %v2294_v27  ;;  %2632 = vst [vmem:[#allocation2 + $0x74] sm:$0xf] (!%p12789_p0), %v17515_v30 }
 0x3f1   : > { %2391 = vst [vmem:[#allocation2 + $0x2b8] sm:$0xf] %v2342_v28  ;;  %2583 = vst [vmem:[#allocation2 + $0x2c0] sm:$0xf] %v2535_v29 }
 0x3f2 PF: > { %s21036_s1 = sld [smem:[#allocation31_spill]] }
 0x3f8   : > { %p12790_p1 = scmp.ne.s32.totalorder %s21036_s1, 1 }
 0x3f9   : > { %v17516_v31 = vmov (!%p12790_p1), 0  }
 0x3fa   : > { %2636 = sbr.rel (%p12790_p1) target bundleno = 1028 (0x404), region = 108  ;;  %2638 = vst [vmem:[#allocation2 + $0x258] sm:$0xff] (!%p12790_p1), %v17516_v31  ;;  %2639 = vst [vmem:[#allocation2 + $0x260] sm:$0xf] (!%p12790_p1), %v17516_v31 }
 0x3fb   : > { %2640 = vst [vmem:[#allocation2 + $0x264] sm:$0xff] (!%p12790_p1), %v17516_v31  ;;  %2641 = vst [vmem:[#allocation2 + $0x26c] sm:$0xf] (!%p12790_p1), %v17516_v31 }
 0x3fc   : > { %2642 = vst [vmem:[#allocation2 + $0x270] sm:$0xff] (!%p12790_p1), %v17516_v31  ;;  %2643 = vst [vmem:[#allocation2 + $0x278] sm:$0xf] (!%p12790_p1), %v17516_v31 }
 0x3fd   : > { %2644 = vst [vmem:[#allocation2 + $0x27c] sm:$0xff] (!%p12790_p1), %v17516_v31  ;;  %2645 = vst [vmem:[#allocation2 + $0x284] sm:$0xf] (!%p12790_p1), %v17516_v31 }
 0x3fe   : > { %2646 = vst [vmem:[#allocation2 + $0x288] sm:$0xff] (!%p12790_p1), %v17516_v31  ;;  %2647 = vst [vmem:[#allocation2 + $0x290] sm:$0xf] (!%p12790_p1), %v17516_v31 }
 0x3ff   : > { %2648 = vst [vmem:[#allocation2 + $0x294] sm:$0xff] (!%p12790_p1), %v17516_v31  ;;  %2649 = vst [vmem:[#allocation2 + $0x29c] sm:$0xf] (!%p12790_p1), %v17516_v31 }
 0x400   : > { %2650 = vst [vmem:[#allocation2 + $0x2a0] sm:$0xff] (!%p12790_p1), %v17516_v31  ;;  %2651 = vst [vmem:[#allocation2 + $0x2a8] sm:$0xf] (!%p12790_p1), %v17516_v31 }
 0x401   : > { %2652 = vst [vmem:[#allocation2 + $0x2ac] sm:$0xff] %v17516_v31  ;;  %2653 = vst [vmem:[#allocation2 + $0x2b4] sm:$0xf] %v17516_v31 }
 0x402   : > { %2654 = vst [vmem:[#allocation2 + $0x2b8] sm:$0xff] %v17516_v31  ;;  %2655 = vst [vmem:[#allocation2 + $0x2c0] sm:$0xf] %v17516_v31 }
 0x403   : > { %2656 = vst [vmem:[#allocation2 + $0x2c4] sm:$0xff] %v17516_v31  ;;  %2657 = vst [vmem:[#allocation2 + $0x2cc] sm:$0xf] %v17516_v31 }
 0x404 PF: > { %v16373_v32 = vld [vmem:[#allocation11 + $0x100] sm:$0xff]   ;;  %v16375_v34 = vld [vmem:[#allocation11 + $0x108] sm:$0xff]   ;;  %v16377_v36 = vld [vmem:[#allocation11 + $0x110] sm:$0xff]   ;;  %s21489_s24 = sld [smem:[#allocation31_spill]]  ;;  %s21490_s12 = sld [smem:[#allocation32_spill]] }
 0x405   : > { %v16374_v33 = vld [vmem:[#allocation11 + $0xc0] sm:$0xff]   ;;  %13678 = vmatprep.subr.bf16.mxu1 %v16373_v32  ;;  %v16376_v35 = vld [vmem:[#allocation11 + $0xc8] sm:$0xff]   ;;  %v16378_v37 = vld [vmem:[#allocation11 + $0xd0] sm:$0xff]   ;;  %s12452_s26 = sshll.u32 %s18349_s3, 4  ;;  %p21493_p2 = scmp.ne.s32.totalorder %s21023_s20, 0  ;;  %s20820_s26 = int_to_ptr.vmem [resolvable:$true] %s12452_s26 }
 0x406   : > { %13679 = vmatpush3.bf16.msra.mxu1 %v16374_v33  ;;  %v16379_v38 = vld [vmem:[#allocation11 + $0x118] sm:$0xff]   ;;  %v16381_v40 = vld [vmem:[#allocation11 + $0x120] sm:$0xff]   ;;  %v16383_v42 = vld [vmem:[#allocation11 + $0x128] sm:$0xff]  }
 0x407   : > { %13680 = vmatprep.subr.bf16.mxu1 %v16375_v34  ;;  %v16380_v39 = vld [vmem:[#allocation11 + $0xd8] sm:$0xff]   ;;  %v16382_v41 = vld [vmem:[#allocation11 + $0xe0] sm:$0xff]   ;;  %v16384_v45 = vld [vmem:[#allocation11 + $0xe8] sm:$0xff]  }
 0x408   : > { %v2770_v43 = vld [vmem:[#allocation2 + $0xc] sm:$0xff]  ;;  %v2772_v44 = vld [vmem:[#allocation2 + $0x18] sm:$0xff]  ;;  %v16385_v46 = vld [vmem:[#allocation11 + $0x130] sm:$0xff]  }
 0x409   : > { %v12792_v5 = vcombine.high %v2770_v43, %v2772_v44  ;;  %v16386_v47 = vld [vmem:[#allocation11 + $0xf0] sm:$0xff]   ;;  %v16387_v48 = vld [vmem:[#allocation11 + $0x138] sm:$0xff]   ;;  %v16391_v50 = vld [vmem:[#allocation11 + $0x140] sm:$0xff]   ;;  %v12791_v54 = vcombine.low %v2770_v43, %v2772_v44 }
 0x40a   : > { %13681 = vmatpush3.bf16.msra.mxu1 %v16376_v35  ;;  %v16388_v49 = vld [vmem:[#allocation11 + $0xf8] sm:$0xff]   ;;  %v2774_v51 = vld [vmem:[#allocation2 + $0x24] sm:$0xff]  ;;  %v16396_v56 = vld [vmem:[#allocation11 + $0x148] sm:$0xff]   ;;  %s13677_s13 = sshll.u32 %s21489_s24, 7  ;;  %s13606_s0 = sshll.u32 %s21490_s12, 8 }
 0x40b   : > { %13682 = vmatprep.subr.bf16.mxu1 %v16377_v36  ;;  %3315 = vmatprep.mubr.bf16.mxu1 %v12792_v5  ;;  %v2776_v53 = vld [vmem:[#allocation2 + $0x30] sm:$0xff]  ;;  %v2778_v58 = vld [vmem:[#allocation2 + $0x3c] sm:$0xff]  ;;  %v2780_v59 = vld [vmem:[#allocation2 + $0x48] sm:$0xff]  ;;  %s12449_s10 = sadd.s32 %s13677_s13, %s13606_s0  ;;  %s20830_s24 = scalar_lea.sflag [#allocation5], %s508_s27 }
 0x40c   : > { %v12795_v55 = vcombine.high %v2774_v51, %v2776_v53  ;;  %v16422_v57 = vld [vmem:[#allocation11 + $0x280] sm:$0xff]   ;;  %v16401_v3 = vld [vmem:[#allocation11 + $0x150] sm:$0xff]   ;;  %v16426_v61 = vld [vmem:[#allocation11 + $0x288] sm:$0xff]   ;;  %v12794_v2 = vcombine.low %v2774_v51, %v2776_v53  ;;  %v12798_v4 = vcombine.high %v2778_v58, %v2780_v59  ;;  %v12797_v14 = vcombine.low %v2778_v58, %v2780_v59  ;;  %s13607_s16 = sshll.u32 %s12449_s10, 6  ;;  %s17356_s12 = scalar_lea.vmem %s20820_s26, 8192 }
 0x40d   : > { %14086 = vmatprep.subr.bf16.mxu0 %v16422_v57  ;;  %v16424_v60 = vld [vmem:[#allocation11 + $0x240] sm:$0xff]   ;;  %v16427_v62 = vld [vmem:[#allocation11 + $0x248] sm:$0xff]   ;;  %v16428_v1 = vld [vmem:[#allocation11 + $0x290] sm:$0xff]   ;;  %p17357_p5 = scmp.ne.s32.totalorder %s20820_s26, %s17356_s12  ;;  %s17517_s13 = smov [#allocation20]  }
 0x40e   : > { %13683 = vmatpush3.bf16.msra.mxu1 %v16378_v37  ;;  %14087 = vmatpush3.bf16.msra.mxu0 %v16424_v60  ;;  %v16406_v6 = vld [vmem:[#allocation11 + $0x158] sm:$0xff]   ;;  %v16430_v7 = vld [vmem:[#allocation11 + $0x250] sm:$0xff]   ;;  %v2782_v9 = vld [vmem:[#allocation2 + $0x54] sm:$0xff]  ;;  %s17360_s0 = sshll.u32 %s17517_s13, 4  ;;  %s17361_s0 = int_to_ptr.vmem [resolvable:$false] %s17360_s0 }
 0x40f   : > { %13684 = vmatprep.subr.bf16.mxu1 %v16379_v38  ;;  %14088 = vmatprep.subr.bf16.mxu0 %v16426_v61  ;;  %v16433_v8 = vld [vmem:[#allocation11 + $0x298] sm:$0xff]   ;;  %v2784_v10 = vld [vmem:[#allocation2 + $0x60] sm:$0xff]  ;;  %v16411_v11 = vld [vmem:[#allocation11 + $0x160] sm:$0xff]   ;;  %p17358_p9 = pnand %p17357_p5, %p21493_p2  ;;  %s17362_s10 = scalar_lea.vmem %s17361_s0, 16384 }
 0x410   : > { %v16434_v12 = vld [vmem:[#allocation11 + $0x258] sm:$0xff]   ;;  %v16435_v13 = vld [vmem:[#allocation11 + $0x2a0] sm:$0xff]   ;;  %v12801_v15 = vcombine.high %v2782_v9, %v2784_v10  ;;  %v16416_v16 = vld [vmem:[#allocation11 + $0x168] sm:$0xff]   ;;  %v12800_v23 = vcombine.low %v2782_v9, %v2784_v10  ;;  %p17363_p11 = scmp.lt.s32.totalorder %s20820_s26, %s17361_s0  ;;  %p17364_p3 = scmp.lt.s32.totalorder %s17362_s10, %s17356_s12 }
 0x411   : > { %v16437_v17 = vld [vmem:[#allocation11 + $0x260] sm:$0xff]   ;;  %v16439_v18 = vld [vmem:[#allocation11 + $0x2a8] sm:$0xff]   ;;  %v2786_v19 = vld [vmem:[#allocation2 + $0x84] sm:$0xff]  ;;  %p17359_p7 = pneg %p17358_p9 }
 0x412   : > { %13685 = vmatpush3.bf16.msra.mxu1 %v16380_v39  ;;  %14089 = vmatpush3.bf16.msra.mxu0 %v16427_v62  ;;  %v2788_v20 = vld [vmem:[#allocation2 + $0x90] sm:$0xff]  ;;  %v16421_v21 = vld [vmem:[#allocation11 + $0x170] sm:$0xff]   ;;  %v16440_v22 = vld [vmem:[#allocation11 + $0x268] sm:$0xff]   ;;  %p17365_p13 = por %p17364_p3, %p17363_p11 }
 0x413   : > { %13686 = vmatprep.subr.bf16.mxu1 %v16381_v40  ;;  %14090 = vmatprep.subr.bf16.mxu0 %v16428_v1  ;;  %v16441_v63 = vld [vmem:[#allocation11 + $0x2b0] sm:$0xff]   ;;  %v5196_v24 = vld [vmem:[#allocation2 + $0x78] sm:$0xff]  ;;  %v12804_v25 = vcombine.high %v2786_v19, %v2788_v20  ;;  %v16432_v26 = vld [vmem:[#allocation11 + $0x178] sm:$0xff]   ;;  %v12803_v33 = vcombine.low %v2786_v19, %v2788_v20 }
 0x414   : > { %v18353_v52 = vcombine.high %v5196_v24, %v2786_v19  ;;  %v16443_v27 = vld [vmem:[#allocation11 + $0x270] sm:$0xff]   ;;  %v16447_v28 = vld [vmem:[#allocation11 + $0x2b8] sm:$0xff]   ;;  %v2790_v29 = vld [vmem:[#allocation2 + $0x9c] sm:$0xff]  ;;  %v18356_v35 = vcombine.low %v5196_v24, %v2786_v19  ;;  %p17366_p4 = pnand %p17365_p13, %p17359_p7 }
 0x415   : > { %v2792_v30 = vld [vmem:[#allocation2 + $0xa8] sm:$0xff]  ;;  %v16445_v31 = vld [vmem:[#allocation11 + $0x40] sm:$0xff]   ;;  %v18358_v36 = vcombine.high %v2788_v20, %v2790_v29  ;;  %v2796_v38 = vld [vmem:[#allocation2 + $0xc0] sm:$0xff] }
 0x416   : > { %13687 = vmatpush3.bf16.msra.mxu1 %v16382_v41  ;;  %14091 = vmatpush3.bf16.msra.mxu0 %v16430_v7  ;;  %v16448_v32 = vld [vmem:[#allocation11 + $0x278] sm:$0xff]   ;;  %v12807_v34 = vcombine.high %v2790_v29, %v2792_v30  ;;  %v2794_v37 = vld [vmem:[#allocation2 + $0xb4] sm:$0xff]  ;;  %v12806_v39 = vcombine.low %v2790_v29, %v2792_v30  ;;  %v18362_v41 = vcombine.low %v2788_v20, %v2790_v29  ;;  %v2808_v57 = vld [vmem:[#allocation2 + $0x120] sm:$0xff] }
 0x417   : > { %13688 = vmatprep.subr.bf16.mxu1 %v16383_v42  ;;  %14092 = vmatprep.subr.bf16.mxu0 %v16433_v8  ;;  %v12810_v40 = vcombine.high %v2794_v37, %v2796_v38  ;;  %v18364_v42 = vcombine.high %v2792_v30, %v2794_v37  ;;  %v2798_v43 = vld [vmem:[#allocation2 + $0xcc] sm:$0xff]  ;;  %v2800_v44 = vld [vmem:[#allocation2 + $0xd8] sm:$0xff]  ;;  %v12809_v5 = vcombine.low %v2794_v37, %v2796_v38  ;;  %v2814_v7 = vld [vmem:[#allocation2 + $0x144] sm:$0xff] }
 0x418   : > { %5741 = vmatprep.mubr.bf16.mxu0 %v18353_v52  ;;  %v12812_v51 = vcombine.low %v2798_v43, %v2800_v44  ;;  %v2810_v61 = vld [vmem:[#allocation2 + $0x12c] sm:$0xff]  ;;  %v2812_v62 = vld [vmem:[#allocation2 + $0x138] sm:$0xff] }
 0x419   : > { %v2816_v8 = vld [vmem:[#allocation2 + $0x150] sm:$0xff]  ;;  %v12821_v9 = vcombine.low %v2810_v61, %v2812_v62 }
 0x41a   : > { %13689 = vmatpush3.bf16.msra.mxu1 %v16384_v45  ;;  %14093 = vmatpush3.bf16.msra.mxu0 %v16434_v12  ;;  %v12813_v45 = vcombine.high %v2798_v43, %v2800_v44  ;;  %v12825_v10 = vcombine.high %v2814_v7, %v2816_v8  ;;  %v13029_v12 = vcombine.high %v2812_v62, %v2814_v7  ;;  %v2822_v20 = vld [vmem:[#allocation2 + $0x18c] sm:$0xff] }
 0x41b   : > { %13690 = vmatprep.subr.bf16.mxu1 %v16385_v46  ;;  %14094 = vmatprep.subr.bf16.mxu0 %v16435_v13  ;;  %v18368_v46 = vcombine.low %v2792_v30, %v2794_v37  ;;  %v2818_v13 = vld [vmem:[#allocation2 + $0x174] sm:$0xff]  ;;  %v2830_v37 = vld [vmem:[#allocation2 + $0x1bc] sm:$0xff] }
 0x41c   : > { %v16591_v0 = vld [vmem:[#allocation2 + $0xb0] ss:$12 sps:$4 sm:$0xff]  }
 0x41e   : > { %13691 = vmatpush3.bf16.msra.mxu1 %v16386_v47  ;;  %14095 = vmatpush3.bf16.msra.mxu0 %v16437_v17  ;;  %v18370_v47 = vcombine.high %v2796_v38, %v2798_v43 }
 0x41f   : > { %13692 = vmatprep.subr.bf16.mxu1 %v16387_v48  ;;  %14096 = vmatprep.subr.bf16.mxu0 %v16439_v18  ;;  %v2802_v48 = vld [vmem:[#allocation2 + $0xfc] sm:$0xff]  ;;  %v13028_v18 = vcombine.low %v2812_v62, %v2814_v7 }
 0x422   : > { %13693 = vmatpush3.bf16.msra.mxu1 %v16388_v49  ;;  %14097 = vmatpush3.bf16.msra.mxu0 %v16440_v22  ;;  %v2804_v49 = vld [vmem:[#allocation2 + $0x108] sm:$0xff] }
 0x423   : > { %14902 = vmatprep.subr.bf16.mxu1 %v16391_v50  ;;  %14098 = vmatprep.subr.bf16.mxu0 %v16441_v63  ;;  %v12816_v53 = vcombine.high %v2802_v48, %v2804_v49  ;;  %v12815_v58 = vcombine.low %v2802_v48, %v2804_v49 }
 0x425   : > { %3316 = vmatmul.mubr.bf16.vlgmr.msra.gmra.mrb[0].mxu1 %v12791_v54  ;;  %v18374_v54 = vcombine.low %v2796_v38, %v2798_v43  ;;  %v2832_v38 = vld [vmem:[#allocation2 + $0x1c8] sm:$0xff] }
 0x426   : > { %14903 = vmatpush3.bf16.msra.mxu1 %v16391_v50  ;;  %3323 = vmatprep.mubr.bf16.mxu1 %v12795_v55  ;;  %v5212_v50 = vld [vmem:[#allocation2 + $0xf0] sm:$0xff]  ;;  %v12837_v43 = vcombine.high %v2830_v37, %v2832_v38 }
 0x427   : > { %14904 = vmatprep.subr.bf16.mxu1 %v16396_v56  ;;  %14099 = vmatpush3.bf16.msra.mxu0 %v16443_v27  ;;  %v13020_v55 = vcombine.high %v5212_v50, %v2802_v48 }
 0x428   : > { %14100 = vmatprep.subr.bf16.mxu0 %v16447_v28  ;;  %v16514_v28 = vld [vmem:[#allocation11 + $0x340] sm:$0xff]  }
 0x42a   : > { %14905 = vmatpush3.bf16.msra.mxu1 %v16396_v56  ;;  %v2806_v56 = vld [vmem:[#allocation2 + $0x114] sm:$0xff] }
 0x42b   : > { %14906 = vmatprep.subr.bf16.mxu1 %v16401_v3  ;;  %14101 = vmatpush3.bf16.msra.mxu0 %v16448_v32  ;;  %v12819_v59 = vcombine.high %v2806_v56, %v2808_v57  ;;  %v13023_v60 = vcombine.high %v2804_v49, %v2806_v56  ;;  %v12818_v1 = vcombine.low %v2806_v56, %v2808_v57 }
 0x42c   : > { %14222 = vmatprep.subr.bf16.mxu0 %v16514_v28  ;;  %v5256_v28 = vld [vmem:[#allocation2 + $0x228] sm:$0xff] }
 0x42d   : > { %3324 = vmatmul.mubr.bf16.gmra.mrb[4].mxu1 %v12794_v2  ;;  %v12822_v2 = vcombine.high %v2810_v61, %v2812_v62  ;;  %v5248_v62 = vld [vmem:[#allocation2 + $0x1f8] sm:$0xff] }
 0x42e   : > { %3331 = vmatprep.mubr.bf16.mxu1 %v12798_v4  ;;  %14907 = vmatpush3.bf16.msra.mxu1 %v16401_v3  ;;  %v13019_v3 = vcombine.low %v5212_v50, %v2802_v48  ;;  %v13022_v4 = vcombine.low %v2804_v49, %v2806_v56  ;;  %v16523_v48 = vld [vmem:[#allocation11 + $0x358] sm:$0xff]   ;;  %v5244_v50 = vld [vmem:[#allocation2 + $0x1e0] sm:$0xff]  ;;  %v16527_v56 = vld [vmem:[#allocation11 + $0x360] sm:$0xff]  }
 0x42f   : > { %14908 = vmatprep.subr.bf16.mxu1 %v16406_v6  ;;  %5742 = vmatmul.mubr.bf16.vlgmr.msra.gmra.mrb[96].mxu0 %v18356_v35  ;;  %v16524_v49 = vld [vmem:[#allocation11 + $0x318] sm:$0xff]  }
 0x430   : > { %5749 = vmatprep.mubr.bf16.mxu0 %v18358_v36 }
 0x432   : > { %14909 = vmatpush3.bf16.msra.mxu1 %v16406_v6  ;;  %v13026_v6 = vcombine.high %v2808_v57, %v2810_v61 }
 0x433   : > { %14910 = vmatprep.subr.bf16.mxu1 %v16411_v11 }
 0x435   : > { %3332 = vmatmul.mubr.bf16.gmra.mrb[8].mxu1 %v12797_v14  ;;  %v2820_v14 = vld [vmem:[#allocation2 + $0x180] sm:$0xff] }
 0x436   : > { %3339 = vmatprep.mubr.bf16.mxu1 %v12801_v15  ;;  %14911 = vmatpush3.bf16.msra.mxu1 %v16411_v11  ;;  %v13025_v11 = vcombine.low %v2808_v57, %v2810_v61  ;;  %v5228_v15 = vld [vmem:[#allocation2 + $0x168] sm:$0xff]  ;;  %v12828_v17 = vcombine.high %v2818_v13, %v2820_v14  ;;  %v12827_v22 = vcombine.low %v2818_v13, %v2820_v14 }
 0x437   : > { %14912 = vmatprep.subr.bf16.mxu1 %v16416_v16  ;;  %5750 = vmatmul.mubr.bf16.gmra.mrb[100].mxu0 %v18362_v41  ;;  %v13032_v19 = vcombine.high %v5228_v15, %v2818_v13  ;;  %v13035_v24 = vcombine.high %v2820_v14, %v2822_v20  ;;  %v13034_v30 = vcombine.low %v2820_v14, %v2822_v20  ;;  %v16444_v61 = vld [vmem:[#allocation2 + $0x2c] ss:$12 sps:$4 sm:$0xff]  }
 0x438   : > { %5757 = vmatprep.mubr.bf16.mxu0 %v18364_v42  ;;  %v16539_v14 = vld [vmem:[#allocation11 + $0x338] sm:$0xff]  }
 0x43a   : > { %14913 = vmatpush3.bf16.msra.mxu1 %v16416_v16  ;;  %v12824_v16 = vcombine.low %v2814_v7, %v2816_v8  ;;  %v16533_v7 = vld [vmem:[#allocation11 + $0x370] sm:$0xff]  }
 0x43b   : > { %14914 = vmatprep.subr.bf16.mxu1 %v16421_v21  ;;  %v16535_v8 = vld [vmem:[#allocation11 + $0x330] sm:$0xff]  }
 0x43d   : > { %3340 = vmatmul.mubr.bf16.gmra.mrb[12].mxu1 %v12800_v23  ;;  %v13031_v23 = vcombine.low %v5228_v15, %v2818_v13  ;;  %v16538_v13 = vld [vmem:[#allocation11 + $0x378] sm:$0xff]   ;;  %v16452_v15 = vld [vmem:[#allocation2 + $0x5c] ss:$12 sps:$4 sm:$0xff]  }
 0x43e   : > { %3347 = vmatprep.mubr.bf16.mxu1 %v12804_v25  ;;  %14915 = vmatpush3.bf16.msra.mxu1 %v16421_v21  ;;  %v2824_v21 = vld [vmem:[#allocation2 + $0x198] sm:$0xff]  ;;  %v2826_v25 = vld [vmem:[#allocation2 + $0x1a4] sm:$0xff] }
 0x43f   : > { %14916 = vmatprep.subr.bf16.mxu1 %v16432_v26  ;;  %5758 = vmatmul.mubr.bf16.gmra.mrb[104].mxu0 %v18368_v46  ;;  %v12831_v63 = vcombine.high %v2822_v20, %v2824_v21  ;;  %v12830_v27 = vcombine.low %v2822_v20, %v2824_v21  ;;  %v13038_v32 = vcombine.high %v2824_v21, %v2826_v25  ;;  %v16465_v20 = vld [vmem:[#allocation11 + $0x58] sm:$0xff]  }
 0x440   : > { %5765 = vmatprep.mubr.bf16.mxu0 %v18370_v47  ;;  %v13037_v44 = vcombine.low %v2824_v21, %v2826_v25  ;;  %v18377_v21 = vld [vmem:[#allocation2 + $0x108] sm:$0xff] }
 0x442   : > { %14917 = vmatpush3.bf16.msra.mxu1 %v16432_v26  ;;  %v2828_v26 = vld [vmem:[#allocation2 + $0x1b0] sm:$0xff] }
 0x443   : > { %13814 = vmatprep.subr.bf16.mxu1 %v16445_v31  ;;  %v12834_v29 = vcombine.high %v2826_v25, %v2828_v26  ;;  %v16515_v31 = vld [vmem:[#allocation11 + $0x300] sm:$0xff]   ;;  %v13040_v57 = vcombine.low %v2828_v26, %v2830_v37 }
 0x444   : > { %14223 = vmatpush3.bf16.msra.mxu0 %v16515_v31  ;;  %v16472_v31 = vld [vmem:[#allocation11 + $0x20] sm:$0xff]  }
 0x445   : > { %3348 = vmatmul.mubr.bf16.gmra.mrb[16].mxu1 %v12803_v33  ;;  %v16516_v33 = vld [vmem:[#allocation11 + $0x348] sm:$0xff]  }
 0x446   : > { %3355 = vmatprep.mubr.bf16.mxu1 %v12807_v34  ;;  %v16517_v34 = vld [vmem:[#allocation11 + $0x308] sm:$0xff]   ;;  %14224 = vmatprep.subr.bf16.mxu0 %v16516_v33 }
 0x447   : > { %5766 = vmatmul.mubr.bf16.gmra.mrb[108].mxu0 %v18374_v54  ;;  %v18385_v33 = vld [vmem:[#allocation2 + $0x120] sm:$0xff] }
 0x448   : > { %5773 = vmatprep.mubr.bf16.mxu0 %v13020_v55  ;;  %14225 = vmatpush3.bf16.msra.mxu0 %v16517_v34  ;;  %v12836_v55 = vcombine.low %v2830_v37, %v2832_v38  ;;  %v18387_v34 = vld [vmem:[#allocation2 + $0x12c] sm:$0xff] }
 0x449   : > { %v18391_v38 = vcombine.low %v18385_v33, %v18387_v34 }
 0x44d   : > { %3356 = vmatmul.mubr.bf16.gmra.mrb[20].mxu1 %v12806_v39  ;;  %v12833_v39 = vcombine.low %v2826_v25, %v2828_v26 }
 0x44e   : > { %3363 = vmatprep.mubr.bf16.mxu1 %v12810_v40  ;;  %v16520_v40 = vld [vmem:[#allocation11 + $0x350] sm:$0xff]  }
 0x44f   : > { %5774 = vmatmul.mubr.bf16.gmra.mrb[112].mxu0 %v13019_v3  ;;  %14226 = vmatprep.subr.bf16.mxu0 %v16520_v40  ;;  %v16529_v3 = vld [vmem:[#allocation11 + $0x368] sm:$0xff]  }
 0x450   : > { %5781 = vmatprep.mubr.bf16.mxu0 %v13023_v60  ;;  %v16530_v60 = vld [vmem:[#allocation11 + $0x328] sm:$0xff]  }
 0x455   : > { %3364 = vmatmul.mubr.bf16.gmra.mrb[24].mxu1 %v12809_v5  ;;  %v16521_v5 = vld [vmem:[#allocation11 + $0x310] sm:$0xff]  }
 0x456   : > { %3371 = vmatprep.mubr.bf16.mxu1 %v12813_v45  ;;  %v13041_v45 = vcombine.high %v2828_v26, %v2830_v37  ;;  %14227 = vmatpush3.bf16.msra.mxu0 %v16521_v5  ;;  %v16471_v26 = vld [vmem:[#allocation11 + $0x60] sm:$0xff]   ;;  %v6064_v5 = vld [vmem:[#allocation2 + $0x84] sm:$0xff] }
 0x457   : > { %5782 = vmatmul.mubr.bf16.gmra.mrb[116].mxu0 %v13022_v4  ;;  %14228 = vmatprep.subr.bf16.mxu0 %v16523_v48  ;;  %v16453_v4 = vld [vmem:[#allocation11 + $0x48] sm:$0xff]   ;;  %v16469_v48 = vld [vmem:[#allocation2 + $0x104] ss:$12 sps:$4 sm:$0xff]  }
 0x458   : > { %5789 = vmatprep.mubr.bf16.mxu0 %v13026_v6  ;;  %v5250_v6 = vld [vmem:[#allocation2 + $0x204] sm:$0xff] }
 0x45a   : > { %14229 = vmatpush3.bf16.msra.mxu0 %v16524_v49  ;;  %v16484_v49 = vld [vmem:[#allocation11 + $0x30] sm:$0xff]  }
 0x45b   : > { %14230 = vmatprep.subr.bf16.mxu0 %v16527_v56 }
 0x45d   : > { %3372 = vmatmul.mubr.bf16.gmra.mrb[28].mxu1 %v12812_v51  ;;  %v5246_v51 = vld [vmem:[#allocation2 + $0x1ec] sm:$0xff] }
 0x45e   : > { %3379 = vmatprep.mubr.bf16.mxu1 %v12816_v53  ;;  %v16442_v53 = vld [vmem:[#allocation2 + $0x14] ss:$12 sps:$4 sm:$0xff]  }
 0x45f   : > { %5790 = vmatmul.mubr.bf16.gmra.mrb[120].mxu0 %v13025_v11  ;;  %v13047_v11 = vcombine.high %v5248_v62, %v5250_v6 }
 0x460   : > { %5797 = vmatprep.mubr.bf16.mxu0 %v13029_v12  ;;  %v16459_v12 = vld [vmem:[#allocation11 + $0x50] sm:$0xff]  }
 0x465   : > { %3380 = vmatmul.mubr.bf16.gmra.mrb[32].mxu1 %v12815_v58  ;;  %v16528_v58 = vld [vmem:[#allocation11 + $0x320] sm:$0xff]  }
 0x466   : > { %3387 = vmatprep.mubr.bf16.mxu1 %v12819_v59  ;;  %v13044_v59 = vcombine.high %v5244_v50, %v5246_v51  ;;  %14231 = vmatpush3.bf16.msra.mxu0 %v16528_v58 }
 0x467   : > { %5798 = vmatmul.mubr.bf16.gmra.mrb[124].mxu0 %v13028_v18  ;;  %14232 = vmatprep.subr.bf16.mxu0 %v16529_v3  ;;  %v16457_v18 = vld [vmem:[#allocation2 + $0x8c] ss:$12 sps:$4 sm:$0xff]  }
 0x468   : > { %5805 = vmatprep.mubr.bf16.mxu0 %v13032_v19  ;;  %v16460_v19 = vld [vmem:[#allocation11 + $0x10] sm:$0xff]   ;;  %v16495_v3 = vld [vmem:[#allocation11 + $0x80] sm:$0xff]  }
 0x46a   : > { %14233 = vmatpush3.bf16.msra.mxu0 %v16530_v60  ;;  %v6068_v60 = vld [vmem:[#allocation2 + $0x9c] sm:$0xff] }
 0x46b   : > { %14234 = vmatprep.subr.bf16.mxu0 %v16533_v7  ;;  %v6074_v7 = vld [vmem:[#allocation2 + $0xc0] sm:$0xff] }
 0x46d   : > { %3388 = vmatmul.mubr.bf16.gmra.mrb[36].mxu1 %v12818_v1  ;;  %v16446_v1 = vld [vmem:[#allocation11] sm:$0xff]  }
 0x46e   : > { %3395 = vmatprep.mubr.bf16.mxu1 %v12822_v2  ;;  %v16451_v2 = vld [vmem:[#allocation2 + $0x44] ss:$12 sps:$4 sm:$0xff]   ;;  %14235 = vmatpush3.bf16.msra.mxu0 %v16535_v8  ;;  %v16481_v8 = vld [vmem:[#allocation2 + $0x17c] ss:$12 sps:$4 sm:$0xff]  }
 0x46f   : > { %5806 = vmatmul.mubr.bf16.gmra.mrb[128].mxu0 %v13031_v23  ;;  %14236 = vmatprep.subr.bf16.mxu0 %v16538_v13 }
 0x470   : > { %5813 = vmatprep.mubr.bf16.mxu0 %v13035_v24  ;;  %v16466_v24 = vld [vmem:[#allocation11 + $0x18] sm:$0xff]  }
 0x472   : > { %14237 = vmatpush3.bf16.msra.mxu0 %v16539_v14  ;;  %v16482_v14 = vld [vmem:[#allocation2 + $0x194] ss:$12 sps:$4 sm:$0xff]  }
 0x475   : > { %3396 = vmatmul.mubr.bf16.gmra.mrb[40].mxu1 %v12821_v9  ;;  %v13043_v9 = vcombine.low %v5244_v50, %v5246_v51  ;;  %v16489_v50 = vld [vmem:[#allocation11 + $0x78] sm:$0xff]   ;;  %v18393_v51 = vld [vmem:[#allocation2 + $0x138] sm:$0xff] }
 0x476   : > { %3403 = vmatprep.mubr.bf16.mxu1 %v12825_v10  ;;  %v16454_v10 = vld [vmem:[#allocation11 + $0x8] sm:$0xff]  }
 0x477   : > { %5814 = vmatmul.mubr.bf16.gmra.mrb[132].mxu0 %v13034_v30  ;;  %v16463_v30 = vld [vmem:[#allocation2 + $0xbc] ss:$12 sps:$4 sm:$0xff]  }
 0x478   : > { %5821 = vmatprep.mubr.bf16.mxu0 %v13038_v32  ;;  %v16477_v32 = vld [vmem:[#allocation11 + $0x68] sm:$0xff]  }
 0x47d   : > { %3404 = vmatmul.mubr.bf16.gmra.mrb[44].mxu1 %v12824_v16  ;;  %v5252_v16 = vld [vmem:[#allocation2 + $0x210] sm:$0xff] }
 0x47e   : > { %3411 = vmatprep.mubr.bf16.mxu1 %v12828_v17  ;;  %v5254_v17 = vld [vmem:[#allocation2 + $0x21c] sm:$0xff] }
 0x47f   : > { %5822 = vmatmul.mubr.bf16.gmra.mrb[136].mxu0 %v13037_v44  ;;  %v13050_v25 = vcombine.high %v5252_v16, %v5254_v17  ;;  %v13049_v37 = vcombine.low %v5252_v16, %v5254_v17  ;;  %v16464_v44 = vld [vmem:[#allocation2 + $0xd4] ss:$12 sps:$4 sm:$0xff]   ;;  %v6078_v16 = vld [vmem:[#allocation2 + $0xd8] sm:$0xff] }
 0x480   : > { %5829 = vmatprep.mubr.bf16.mxu0 %v13041_v45  ;;  %v6066_v45 = vld [vmem:[#allocation2 + $0x90] sm:$0xff]  ;;  %v16487_v17 = vld [vmem:[#allocation2 + $0x1ac] ss:$12 sps:$4 sm:$0xff]  }
 0x481   : > { %v13080_v58 = vcombine.high %v6064_v5, %v6066_v45 }
 0x485   : > { %3412 = vmatmul.mubr.bf16.gmra.mrb[48].mxu1 %v12827_v22  ;;  %v18379_v22 = vld [vmem:[#allocation2 + $0x114] sm:$0xff] }
 0x486   : > { %3419 = vmatprep.mubr.bf16.mxu1 %v12831_v63  ;;  %v13046_v63 = vcombine.low %v5248_v62, %v5250_v6  ;;  %v18383_v23 = vcombine.low %v18377_v21, %v18379_v22  ;;  %v6070_v62 = vld [vmem:[#allocation2 + $0xa8] sm:$0xff]  ;;  %v6072_v6 = vld [vmem:[#allocation2 + $0xb4] sm:$0xff] }
 0x487   : > { %5830 = vmatmul.mubr.bf16.gmra.mrb[140].mxu0 %v13040_v57  ;;  %v16490_v57 = vld [vmem:[#allocation11 + $0x38] sm:$0xff]   ;;  %v13086_v13 = vcombine.high %v6072_v6, %v6074_v7 }
 0x488   : > { %5837 = vmatprep.mubr.bf16.mxu0 %v13044_v59  ;;  %v16470_v59 = vld [vmem:[#allocation2 + $0x11c] ss:$12 sps:$4 sm:$0xff]  }
 0x48d   : > { %3420 = vmatmul.mubr.bf16.gmra.mrb[52].mxu1 %v12830_v27  ;;  %v16458_v27 = vld [vmem:[#allocation2 + $0xa4] ss:$12 sps:$4 sm:$0xff]  }
 0x48e   : > { %3427 = vmatprep.mubr.bf16.mxu1 %v12834_v29  ;;  %v5258_v29 = vld [vmem:[#allocation2 + $0x234] sm:$0xff] }
 0x48f   : > { %5838 = vmatmul.mubr.bf16.gmra.mrb[144].mxu0 %v13043_v9  ;;  %v13053_v40 = vcombine.high %v5256_v28, %v5258_v29  ;;  %v18401_v9 = vld [vmem:[#allocation2 + $0x180] sm:$0xff] }
 0x490   : > { %5845 = vmatprep.mubr.bf16.mxu0 %v13047_v11  ;;  %v13082_v11 = vcombine.low %v6068_v60, %v6070_v62 }
 0x495   : > { %3428 = vmatmul.mubr.bf16.gmra.mrb[56].mxu1 %v12833_v39  ;;  %v16478_v39 = vld [vmem:[#allocation11 + $0x28] sm:$0xff]  }
 0x496   : > { %3435 = vmatprep.mubr.bf16.mxu1 %v12837_v43  ;;  %v16483_v43 = vld [vmem:[#allocation11 + $0x70] sm:$0xff]  }
 0x497   : > { %5846 = vmatmul.mubr.bf16.gmra.mrb[148].mxu0 %v13046_v63 }
 0x498   : > { %5853 = vmatprep.mubr.bf16.mxu0 %v13050_v25  ;;  %v2658_v25 = vld [vmem:[#allocation2] sm:$0xff] }
 0x49d   : > { %3436 = vmatmul.mubr.bf16.gmra.mrb[60].mxu1 %v12836_v55  ;;  %v13052_v55 = vcombine.low %v5256_v28, %v5258_v29  ;;  %v18419_v28 = vld [vmem:[#allocation2 + $0x1b0] sm:$0xff]  ;;  %v18421_v29 = vld [vmem:[#allocation2 + $0x1bc] sm:$0xff] }
 0x49e   : > { %14918 = vmatprep.mubr.bf16.mxu1 %v16442_v53  ;;  %v18395_v53 = vld [vmem:[#allocation2 + $0x144] sm:$0xff] }
 0x49f   : > { %5854 = vmatmul.mubr.bf16.gmra.mrb[152].mxu0 %v13049_v37  ;;  %v18399_v56 = vcombine.low %v18393_v51, %v18395_v53  ;;  %v18425_v37 = vcombine.low %v18419_v28, %v18421_v29 }
 0x4a0   : > { %5861 = vmatprep.mubr.bf16.mxu0 %v13053_v40 }
 0x4a5   : > { %14919 = vmatmul.mubr.bf16.vlgmr.msra.gmra.mrb[64].mxu1 %v16444_v61  ;;  %v16475_v61 = vld [vmem:[#allocation2 + $0x134] ss:$12 sps:$4 sm:$0xff]  }
 0x4a6   : > { %13815 = vmatpush3.bf16.msra.mxu1 %v16446_v1  ;;  %14922 = vmatprep.mubr.bf16.mxu1 %v16451_v2  ;;  %v13079_v1 = vcombine.low %v6064_v5, %v6066_v45  ;;  %v13083_v2 = vcombine.high %v6068_v60, %v6070_v62  ;;  %v16504_v45 = vld [vmem:[#allocation11 + $0x88] sm:$0xff]   ;;  %v16522_v60 = vld [vmem:[#allocation11 + $0x98] sm:$0xff]   ;;  %v16537_v62 = vld [vmem:[#allocation11 + $0xa0] sm:$0xff]  }
 0x4a7   : > { %13816 = vmatprep.subr.bf16.mxu1 %v16453_v4  ;;  %5862 = vmatmul.mubr.bf16.gmra.mrb[156].mxu0 %v13052_v55  ;;  %v16476_v4 = vld [vmem:[#allocation2 + $0x14c] ss:$12 sps:$4 sm:$0xff]  }
 0x4a8   : > { %6609 = vmatprep.mubr.bf16.mxu0 %v13080_v58  ;;  %v17039_v58 = vld [vmem:[#allocation2 + $0x3c] sm:$0xff] }
 0x4aa   : > { %13817 = vmatpush3.bf16.msra.mxu1 %v16454_v10  ;;  %v18403_v10 = vld [vmem:[#allocation2 + $0x18c] sm:$0xff] }
 0x4ab   : > { %13818 = vmatprep.subr.bf16.mxu1 %v16459_v12  ;;  %v18407_v12 = vcombine.low %v18401_v9, %v18403_v10 }
 0x4ad   : > { %14923 = vmatmul.mubr.bf16.gmra.mrb[68].mxu1 %v16452_v15  ;;  %v6076_v15 = vld [vmem:[#allocation2 + $0xcc] sm:$0xff] }
 0x4ae   : > { %14926 = vmatprep.mubr.bf16.mxu1 %v16457_v18  ;;  %13819 = vmatpush3.bf16.msra.mxu1 %v16460_v19  ;;  %v18409_v18 = vld [vmem:[#allocation2 + $0x198] sm:$0xff]  ;;  %v18411_v19 = vld [vmem:[#allocation2 + $0x1a4] sm:$0xff] }
 0x4af   : > { %13820 = vmatprep.subr.bf16.mxu1 %v16465_v20  ;;  %6610 = vmatmul.mubr.bf16.vlgmr.msra.gmra.mrb[160].mxu0 %v13079_v1  ;;  %v13085_v20 = vcombine.low %v6072_v6, %v6074_v7  ;;  %v18415_v63 = vcombine.low %v18409_v18, %v18411_v19  ;;  %v16548_v7 = vld [vmem:[#allocation11 + $0xa8] sm:$0xff]  }
 0x4b0   : > { %6617 = vmatprep.mubr.bf16.mxu0 %v13083_v2  ;;  %v17040_v2 = vld [vmem:[#allocation2 + $0x48] sm:$0xff] }
 0x4b2   : > { %13821 = vmatpush3.bf16.msra.mxu1 %v16466_v24  ;;  %v13089_v24 = vcombine.high %v6076_v15, %v6078_v16 }
 0x4b3   : > { %13822 = vmatprep.subr.bf16.mxu1 %v16471_v26  ;;  %v16488_v26 = vld [vmem:[#allocation2 + $0x1c4] ss:$12 sps:$4 sm:$0xff]  }
 0x4b5   : > { %14927 = vmatmul.mubr.bf16.gmra.mrb[72].mxu1 %v16458_v27  ;;  %v18417_v27 = vld [vmem:[#allocation2 + $0xfc] sm:$0xff] }
 0x4b6   : > { %14930 = vmatprep.mubr.bf16.mxu1 %v16463_v30  ;;  %13823 = vmatpush3.bf16.msra.mxu1 %v16472_v31  ;;  %v17035_v30 = vld [vmem:[#allocation2 + $0xc] sm:$0xff] }
 0x4b7   : > { %13824 = vmatprep.subr.bf16.mxu1 %v16477_v32  ;;  %6618 = vmatmul.mubr.bf16.gmra.mrb[164].mxu0 %v13082_v11  ;;  %v12864_v31 = vcombine.high %v2658_v25, %v17035_v30  ;;  %v13088_v32 = vcombine.low %v6076_v15, %v6078_v16  ;;  %v12863_v40 = vcombine.low %v2658_v25, %v17035_v30  ;;  %v18440_v15 = vld [vmem:[#allocation2 + $0x174] sm:$0xff]  ;;  %v16566_v16 = vld [vmem:[#allocation11 + $0xb8] sm:$0xff]  }
 0x4b8   : > { %6625 = vmatprep.mubr.bf16.mxu0 %v13086_v13  ;;  %v13104_v25 = vcombine.high %v18440_v15, %v18401_v9 }
 0x4ba   : > { %13825 = vmatpush3.bf16.msra.mxu1 %v16478_v39  ;;  %v13092_v39 = vcombine.high %v18417_v27, %v18377_v21 }
 0x4bb   : > { %13826 = vmatprep.subr.bf16.mxu1 %v16483_v43  ;;  %v17036_v43 = vld [vmem:[#allocation2 + $0x18] sm:$0xff] }
 0x4bd   : > { %14931 = vmatmul.mubr.bf16.gmra.mrb[76].mxu1 %v16464_v44  ;;  %v17037_v44 = vld [vmem:[#allocation2 + $0x24] sm:$0xff] }
 0x4be   : > { %14934 = vmatprep.mubr.bf16.mxu1 %v16469_v48  ;;  %13827 = vmatpush3.bf16.msra.mxu1 %v16484_v49  ;;  %v12867_v5 = vcombine.high %v17036_v43, %v17037_v44  ;;  %v13091_v48 = vcombine.low %v18417_v27, %v18377_v21  ;;  %v13095_v49 = vcombine.high %v18379_v22, %v18385_v33 }
 0x4bf   : > { %13828 = vmatprep.subr.bf16.mxu1 %v16489_v50  ;;  %6626 = vmatmul.mubr.bf16.gmra.mrb[168].mxu0 %v13085_v20  ;;  %v16511_v50 = vld [vmem:[#allocation11 + $0x90] sm:$0xff]   ;;  %v12866_v55 = vcombine.low %v17036_v43, %v17037_v44  ;;  %v13094_v21 = vcombine.low %v18379_v22, %v18385_v33  ;;  %v13097_v22 = vcombine.low %v18387_v34, %v18393_v51  ;;  %v16603_v44 = vld [vmem:[#allocation11 + $0x400] sm:$0xff]  }
 0x4c0   : > { %6633 = vmatprep.mubr.bf16.mxu0 %v13089_v24  ;;  %14358 = vmatprep.subr.bf16.mxu0 %v16603_v44 }
 0x4c2   : > { %13829 = vmatpush3.bf16.msra.mxu1 %v16490_v57  ;;  %v17038_v57 = vld [vmem:[#allocation2 + $0x30] sm:$0xff] }
 0x4c3   : > { %14950 = vmatprep.subr.bf16.mxu1 %v16495_v3  ;;  %v12869_v1 = vcombine.low %v17038_v57, %v17039_v58 }
 0x4c5   : > { %14935 = vmatmul.mubr.bf16.gmra.mrb[80].mxu1 %v16470_v59  ;;  %v12870_v59 = vcombine.high %v17038_v57, %v17039_v58  ;;  %v16610_v58 = vld [vmem:[#allocation11 + $0x3c8] sm:$0xff]  }
 0x4c6   : > { %14938 = vmatprep.mubr.bf16.mxu1 %v16475_v61  ;;  %v13098_v61 = vcombine.high %v18387_v34, %v18393_v51 }
 0x4c7   : > { %6634 = vmatmul.mubr.bf16.gmra.mrb[172].mxu0 %v13088_v32 }
 0x4c8   : > { %6641 = vmatprep.mubr.bf16.mxu0 %v13092_v39 }
 0x4cd   : > { %14939 = vmatmul.mubr.bf16.gmra.mrb[84].mxu1 %v16476_v4  ;;  %v17041_v4 = vld [vmem:[#allocation2 + $0x54] sm:$0xff] }
 0x4ce   : > { %14942 = vmatprep.mubr.bf16.mxu1 %v16481_v8  ;;  %v12873_v6 = vcombine.high %v17040_v2, %v17041_v4  ;;  %v16557_v8 = vld [vmem:[#allocation11 + $0xb0] sm:$0xff]  }
 0x4cf   : > { %6642 = vmatmul.mubr.bf16.gmra.mrb[176].mxu0 %v13091_v48 }
 0x4d0   : > { %6649 = vmatprep.mubr.bf16.mxu0 %v13095_v49 }
 0x4d5   : > { %14943 = vmatmul.mubr.bf16.gmra.mrb[88].mxu1 %v16482_v14  ;;  %v12872_v14 = vcombine.low %v17040_v2, %v17041_v4  ;;  %v16619_v2 = vld [vmem:[#allocation11 + $0x418] sm:$0xff]  }
 0x4d6   : > { %14946 = vmatprep.mubr.bf16.mxu1 %v16487_v17  ;;  %v16620_v4 = vld [vmem:[#allocation11 + $0x3d8] sm:$0xff]  }
 0x4d7   : > { %6650 = vmatmul.mubr.bf16.gmra.mrb[180].mxu0 %v13094_v21  ;;  %v16615_v21 = vld [vmem:[#allocation11 + $0x3d0] sm:$0xff]  }
 0x4d8   : > { %6657 = vmatprep.mubr.bf16.mxu0 %v13098_v61 }
 0x4dd   : > { %14947 = vmatmul.mubr.bf16.gmra.mrb[92].mxu1 %v16488_v26  ;;  %v16575_v26 = vld [vmem:[#allocation11 + $0x1c0] sm:$0xff]  }
 0x4de   : > { %4037 = vmatprep.mubr.bf16.mxu1 %v12864_v31 }
 0x4df   : > { %6658 = vmatmul.mubr.bf16.gmra.mrb[184].mxu0 %v13097_v22 }
 0x4e5   : > { %4038 = vmatmul.mubr.bf16.vlgmr.msra.gmra.mrb[96].mxu1 %v12863_v40  ;;  %v13103_v40 = vcombine.low %v18440_v15, %v18401_v9 }
 0x4e6   : > { %14951 = vmatpush3.bf16.msra.mxu1 %v16495_v3  ;;  %4045 = vmatprep.mubr.bf16.mxu1 %v12867_v5  ;;  %v6094_v3 = vld [vmem:[#allocation2 + $0x150] sm:$0xff] }
 0x4e7   : > { %14952 = vmatprep.subr.bf16.mxu1 %v16504_v45  ;;  %v13101_v33 = vcombine.high %v18395_v53, %v6094_v3  ;;  %v13100_v51 = vcombine.low %v18395_v53, %v6094_v3  ;;  %v16605_v5 = vld [vmem:[#allocation11 + $0x3c0] sm:$0xff]  }
 0x4e8   : > { %14359 = vmatpush3.bf16.msra.mxu0 %v16605_v5 }
 0x4e9   : > { %6665 = vmatprep.mubr.bf16.mxu0 %v13101_v33 }
 0x4ea   : > { %14953 = vmatpush3.bf16.msra.mxu1 %v16504_v45  ;;  %6666 = vmatmul.mubr.bf16.gmra.mrb[188].mxu0 %v13100_v51  ;;  %v16630_v51 = vld [vmem:[#allocation11 + $0x3e8] sm:$0xff]  }
 0x4eb   : > { %14954 = vmatprep.subr.bf16.mxu1 %v16511_v50  ;;  %6673 = vmatprep.mubr.bf16.mxu0 %v13104_v25  ;;  %v16633_v25 = vld [vmem:[#allocation11 + $0x430] sm:$0xff]  }
 0x4ed   : > { %4046 = vmatmul.mubr.bf16.gmra.mrb[100].mxu1 %v12866_v55  ;;  %v13106_v55 = vcombine.low %v18403_v10, %v18409_v18 }
 0x4ee   : > { %4053 = vmatprep.mubr.bf16.mxu1 %v12870_v59  ;;  %14955 = vmatpush3.bf16.msra.mxu1 %v16511_v50  ;;  %v16613_v59 = vld [vmem:[#allocation11 + $0x410] sm:$0xff]  }
 0x4ef   : > { %14956 = vmatprep.subr.bf16.mxu1 %v16522_v60 }
 0x4f2   : > { %14957 = vmatpush3.bf16.msra.mxu1 %v16522_v60  ;;  %6674 = vmatmul.mubr.bf16.gmra.mrb[192].mxu0 %v13103_v40  ;;  %v18470_v60 = vld [vmem:[#allocation2 + $0x1c8] sm:$0xff] }
 0x4f3   : > { %14958 = vmatprep.subr.bf16.mxu1 %v16537_v62  ;;  %v17045_v40 = vld [vmem:[#allocation2 + $0x108] sm:$0xff] }
 0x4f5   : > { %4054 = vmatmul.mubr.bf16.gmra.mrb[104].mxu1 %v12869_v1  ;;  %v13113_v1 = vcombine.high %v18421_v29, %v18470_v60 }
 0x4f6   : > { %4061 = vmatprep.mubr.bf16.mxu1 %v12873_v6  ;;  %14959 = vmatpush3.bf16.msra.mxu1 %v16537_v62  ;;  %v16623_v6 = vld [vmem:[#allocation11 + $0x420] sm:$0xff]  }
 0x4f7   : > { %14960 = vmatprep.subr.bf16.mxu1 %v16548_v7 }
 0x4f8   : > { %v13694_v11 = vpop.f32.mrb[0].mxu1 }
 0x4f9   : > { %v13695_v13 = vpop.f32.mrb[1].mxu1 }
 0x4fa   : > { %v18442_v17 = vadd.f32 %v13695_v13, %v13694_v11  ;;  %v13697_v20 = vpop.f32.mrb[2].mxu1  ;;  %14961 = vmatpush3.bf16.msra.mxu1 %v16548_v7  ;;  %v16625_v7 = vld [vmem:[#allocation11 + $0x3e0] sm:$0xff]  }
 0x4fb   : > { %v13698_v34 = vpop.f32.mrb[3].mxu1  ;;  %14962 = vmatprep.subr.bf16.mxu1 %v16557_v8 }
 0x4fc   : > { %v18445_v24 = vadd.f32 %v13698_v34, %v13697_v20  ;;  %v16629_v34 = vld [vmem:[#allocation11 + $0x428] sm:$0xff]  }
 0x4fd   : > { %4062 = vmatmul.mubr.bf16.gmra.mrb[108].mxu1 %v12872_v14  ;;  %v17043_v14 = vld [vmem:[#allocation2 + $0x1ec] sm:$0xff] }
 0x4fe   : > { %4069 = vmatprep.mubr.bf16.mxu1 %v18353_v52  ;;  %14963 = vmatpush3.bf16.msra.mxu1 %v16557_v8  ;;  %v13107_v52 = vcombine.high %v18403_v10, %v18409_v18  ;;  %v17042_v8 = vld [vmem:[#allocation2 + $0xf0] sm:$0xff] }
 0x4ff   : > { %14964 = vmatprep.subr.bf16.mxu1 %v16566_v16  ;;  %v12888_v11 = vcombine.high %v17042_v8, %v18417_v27 }
 0x500   : > { %v13700_v30 = vpop.f32.mrb[4].mxu1  ;;  %6681 = vmatprep.mubr.bf16.mxu0 %v13107_v52  ;;  %v17046_v52 = vld [vmem:[#allocation2 + $0x114] sm:$0xff] }
 0x501   : > { %v13701_v31 = vpop.f32.mrb[5].mxu1  ;;  %6682 = vmatmul.mubr.bf16.gmra.mrb[196].mxu0 %v13106_v55  ;;  %v16639_v55 = vld [vmem:[#allocation11 + $0x438] sm:$0xff]  }
 0x502   : > { %v18450_v32 = vadd.f32 %v13701_v31, %v13700_v30  ;;  %v13703_v39 = vpop.f32.mrb[6].mxu1  ;;  %14965 = vmatpush3.bf16.msra.mxu1 %v16566_v16  ;;  %v17044_v16 = vld [vmem:[#allocation2 + $0x1f8] sm:$0xff] }
 0x503   : > { %v13704_v53 = vpop.f32.mrb[7].mxu1  ;;  %13950 = vmatprep.subr.bf16.mxu1 %v16575_v26  ;;  %v13116_v20 = vcombine.high %v17043_v14, %v17044_v16  ;;  %v16637_v26 = vld [vmem:[#allocation11 + $0x3f0] sm:$0xff]   ;;  %v13115_v5 = vcombine.low %v17043_v14, %v17044_v16 }
 0x504   : > { %v18454_v43 = vadd.f32 %v13704_v53, %v13703_v39 }
 0x505   : > { %4070 = vmatmul.mubr.bf16.gmra.mrb[112].mxu1 %v18356_v35  ;;  %v13110_v35 = vcombine.high %v18411_v19, %v18419_v28 }
 0x506   : > { %4077 = vmatprep.mubr.bf16.mxu1 %v18358_v36  ;;  %v16609_v36 = vld [vmem:[#allocation11 + $0x408] sm:$0xff]  }
 0x507   : > { %14360 = vmatprep.subr.bf16.mxu0 %v16609_v36  ;;  %6689 = vmatprep.mubr.bf16.mxu0 %v13110_v35 }
 0x508   : > { %v13706_v45 = vpop.f32.mrb[8].mxu1  ;;  %14361 = vmatpush3.bf16.msra.mxu0 %v16610_v58 }
 0x509   : > { %v13707_v48 = vpop.f32.mrb[9].mxu1  ;;  %14362 = vmatprep.subr.bf16.mxu0 %v16613_v59 }
 0x50a   : > { %v18460_v49 = vadd.f32 %v13707_v48, %v13706_v45  ;;  %v13709_v9 = vpop.f32.mrb[10].mxu1  ;;  %v17047_v48 = vld [vmem:[#allocation2 + $0x204] sm:$0xff] }
 0x50b   : > { %v13710_v50 = vpop.f32.mrb[11].mxu1 }
 0x50c   : > { %v18464_v57 = vadd.f32 %v13710_v50, %v13709_v9  ;;  %14363 = vmatpush3.bf16.msra.mxu0 %v16615_v21  ;;  %v17048_v9 = vld [vmem:[#allocation2 + $0x210] sm:$0xff]  ;;  %v17049_v21 = vld [vmem:[#allocation2 + $0x120] sm:$0xff] }
 0x50d   : > { %4078 = vmatmul.mubr.bf16.gmra.mrb[116].mxu1 %v18362_v41  ;;  %v13109_v41 = vcombine.low %v18411_v19, %v18419_v28  ;;  %14364 = vmatprep.subr.bf16.mxu0 %v16619_v2  ;;  %v13119_v50 = vcombine.high %v17047_v48, %v17048_v9  ;;  %v17052_v2 = vld [vmem:[#allocation2 + $0x228] sm:$0xff] }
 0x50e   : > { %4085 = vmatprep.mubr.bf16.mxu1 %v18364_v42 }
 0x50f   : > { %6690 = vmatmul.mubr.bf16.gmra.mrb[200].mxu0 %v13109_v41 }
 0x510   : > { %v13712_v61 = vpop.f32.mrb[12].mxu1  ;;  %6697 = vmatprep.mubr.bf16.mxu0 %v13113_v1  ;;  %14365 = vmatpush3.bf16.msra.mxu0 %v16620_v4  ;;  %v17051_v1 = vld [vmem:[#allocation2 + $0x21c] sm:$0xff] }
 0x511   : > { %v13713_v10 = vpop.f32.mrb[13].mxu1  ;;  %14366 = vmatprep.subr.bf16.mxu0 %v16623_v6  ;;  %v13122_v4 = vcombine.high %v17051_v1, %v17052_v2  ;;  %v18506_v6 = vld [vmem:[#allocation2 + $0x240] sm:$0xff]  ;;  %v13121_v14 = vcombine.low %v17051_v1, %v17052_v2  ;;  %v17061_v1 = vld [vmem:[#allocation2 + $0xa8] sm:$0xff]  ;;  %v17062_v2 = vld [vmem:[#allocation2 + $0xb4] sm:$0xff] }
 0x512   : > { %v18472_v18 = vadd.f32 %v13713_v10, %v13712_v61  ;;  %v13715_v62 = vpop.f32.mrb[14].mxu1  ;;  %v17050_v61 = vld [vmem:[#allocation2 + $0x12c] sm:$0xff] }
 0x513   : > { %v13716_v3 = vpop.f32.mrb[15].mxu1  ;;  %v18500_v10 = vcombine.high %v17049_v21, %v17050_v61 }
 0x514   : > { %v18476_v42 = vadd.f32 %v13716_v3, %v13715_v62  ;;  %14367 = vmatpush3.bf16.msra.mxu0 %v16625_v7  ;;  %v13118_v3 = vcombine.low %v17047_v48, %v17048_v9 }
 0x515   : > { %4086 = vmatmul.mubr.bf16.gmra.mrb[120].mxu1 %v18368_v46  ;;  %14368 = vmatprep.subr.bf16.mxu0 %v16629_v34 }
 0x516   : > { %4093 = vmatprep.mubr.bf16.mxu1 %v18370_v47  ;;  %v13112_v47 = vcombine.low %v18421_v29, %v18470_v60  ;;  %v12887_v29 = vcombine.low %v17042_v8, %v18417_v27  ;;  %v16640_v27 = vld [vmem:[#allocation11 + $0x3f8] sm:$0xff]   ;;  %v17053_v8 = vld [vmem:[#allocation2 + $0x138] sm:$0xff] }
 0x518   : > { %v13718_v22 = vpop.f32.mrb[16].mxu1  ;;  %6698 = vmatmul.mubr.bf16.gmra.mrb[204].mxu0 %v13112_v47 }
 0x519   : > { %v13719_v19 = vpop.f32.mrb[17].mxu1  ;;  %6705 = vmatprep.mubr.bf16.mxu0 %v13116_v20  ;;  %14369 = vmatpush3.bf16.msra.mxu0 %v16630_v51  ;;  %v17055_v20 = vld [vmem:[#allocation2 + $0x234] sm:$0xff] }
 0x51a   : > { %v18482_v28 = vadd.f32 %v13719_v19, %v13718_v22  ;;  %v13721_v33 = vpop.f32.mrb[18].mxu1  ;;  %14370 = vmatprep.subr.bf16.mxu0 %v16633_v25  ;;  %v13125_v34 = vcombine.high %v17055_v20, %v18506_v6 }
 0x51b   : > { %v13722_v46 = vpop.f32.mrb[19].mxu1 }
 0x51c   : > { %v18487_v13 = vadd.f32 %v13722_v46, %v13721_v33 }
 0x51d   : > { %4094 = vmatmul.mubr.bf16.gmra.mrb[124].mxu1 %v18374_v54  ;;  %v18493_v54 = vcombine.high %v17045_v40, %v17046_v52  ;;  %14371 = vmatpush3.bf16.msra.mxu0 %v16637_v26  ;;  %v13124_v40 = vcombine.low %v17055_v20, %v18506_v6  ;;  %v18545_v20 = vcombine.low %v17061_v1, %v17062_v2 }
 0x51e   : > { %4101 = vmatprep.mubr.bf16.mxu1 %v12888_v11  ;;  %14372 = vmatprep.subr.bf16.mxu0 %v16639_v55  ;;  %v17054_v11 = vld [vmem:[#allocation2 + $0x144] sm:$0xff] }
 0x51f   : > { %v18510_v46 = vcombine.high %v17053_v8, %v17054_v11  ;;  %v17063_v8 = vld [vmem:[#allocation2 + $0x198] sm:$0xff]  ;;  %v17064_v11 = vld [vmem:[#allocation2 + $0x1a4] sm:$0xff] }
 0x520   : > { %v13724_v30 = vpop.f32.mrb[20].mxu1  ;;  %6706 = vmatmul.mubr.bf16.gmra.mrb[208].mxu0 %v13115_v5  ;;  %v17058_v5 = vld [vmem:[#allocation2 + $0x9c] sm:$0xff] }
 0x521   : > { %v13725_v31 = vpop.f32.mrb[21].mxu1  ;;  %6713 = vmatprep.mubr.bf16.mxu0 %v13119_v50  ;;  %14373 = vmatpush3.bf16.msra.mxu0 %v16640_v27 }
 0x522   : > { %v18491_v39 = vadd.f32 %v13725_v31, %v13724_v30  ;;  %v13727_v53 = vpop.f32.mrb[22].mxu1  ;;  %v17056_v31 = vld [vmem:[#allocation2 + $0x168] sm:$0xff] }
 0x523   : > { %v13728_v44 = vpop.f32.mrb[23].mxu1  ;;  %v12899_v55 = vcombine.low %v17056_v31, %v18440_v15 }
 0x524   : > { %v18495_v45 = vadd.f32 %v13728_v44, %v13727_v53  ;;  %v17057_v44 = vld [vmem:[#allocation2 + $0x90] sm:$0xff] }
 0x525   : > { %4102 = vmatmul.mubr.bf16.gmra.mrb[128].mxu1 %v12887_v29  ;;  %v12900_v29 = vcombine.high %v17056_v31, %v18440_v15  ;;  %v18523_v48 = vcombine.high %v17057_v44, %v17058_v5 }
 0x526   : > { %4109 = vmatprep.mubr.bf16.mxu1 %v18493_v54 }
 0x528   : > { %v13730_v35 = vpop.f32.mrb[24].mxu1  ;;  %6714 = vmatmul.mubr.bf16.gmra.mrb[212].mxu0 %v13118_v3 }
 0x529   : > { %v13731_v36 = vpop.f32.mrb[25].mxu1  ;;  %6721 = vmatprep.mubr.bf16.mxu0 %v13122_v4  ;;  %v18536_v4 = vcombine.high %v17061_v1, %v17062_v2 }
 0x52a   : > { %v18498_v58 = vadd.f32 %v13731_v36, %v13730_v35  ;;  %v13733_v59 = vpop.f32.mrb[26].mxu1  ;;  %v17059_v36 = vld [vmem:[#allocation2 + $0x180] sm:$0xff] }
 0x52b   : > { %v13734_v62 = vpop.f32.mrb[27].mxu1 }
 0x52c   : > { %v18502_v41 = vadd.f32 %v13734_v62, %v13733_v59  ;;  %v17060_v59 = vld [vmem:[#allocation2 + $0x18c] sm:$0xff]  ;;  %v18532_v62 = vcombine.low %v17057_v44, %v17058_v5 }
 0x52d   : > { %4110 = vmatmul.mubr.bf16.gmra.mrb[132].mxu1 %v18383_v23  ;;  %v18530_v21 = vcombine.high %v17059_v36, %v17060_v59  ;;  %v17067_v5 = vld [vmem:[#allocation2 + $0x1b0] sm:$0xff]  ;;  %v17069_v59 = vld [vmem:[#allocation2 + $0xd8] sm:$0xff] }
 0x52e   : > { %4117 = vmatprep.mubr.bf16.mxu1 %v18500_v10 }
 0x530   : > { %v13736_v7 = vpop.f32.mrb[28].mxu1  ;;  %6722 = vmatmul.mubr.bf16.gmra.mrb[216].mxu0 %v13121_v14 }
 0x531   : > { %v13737_v22 = vpop.f32.mrb[29].mxu1  ;;  %6729 = vmatprep.mubr.bf16.mxu0 %v13125_v34 }
 0x532   : > { %v18508_v19 = vadd.f32 %v13737_v22, %v13736_v7  ;;  %v13739_v33 = vpop.f32.mrb[30].mxu1 }
 0x533   : > { %v13740_v47 = vpop.f32.mrb[31].mxu1 }
 0x534   : > { %v18512_v16 = vadd.f32 %v13740_v47, %v13739_v33  ;;  %v18543_v47 = vcombine.high %v17063_v8, %v17064_v11 }
 0x535   : > { %4118 = vmatmul.mubr.bf16.gmra.mrb[136].mxu1 %v18391_v38 }
 0x536   : > { %4125 = vmatprep.mubr.bf16.mxu1 %v18510_v46 }
 0x538   : > { %v13742_v51 = vpop.f32.mrb[32].mxu1  ;;  %6730 = vmatmul.mubr.bf16.gmra.mrb[220].mxu0 %v13124_v40 }
 0x539   : > { %v13743_v25 = vpop.f32.mrb[33].mxu1  ;;  %7477 = vmatprep.mubr.bf16.mxu0 %v18523_v48 }
 0x53a   : > { %v18517_v26 = vadd.f32 %v13743_v25, %v13742_v51  ;;  %v13745_v30 = vpop.f32.mrb[34].mxu1  ;;  %v17065_v51 = vld [vmem:[#allocation2 + $0xc0] sm:$0xff]  ;;  %v17066_v25 = vld [vmem:[#allocation2 + $0xcc] sm:$0xff] }
 0x53b   : > { %v13746_v53 = vpop.f32.mrb[35].mxu1 }
 0x53c   : > { %v18521_v52 = vadd.f32 %v13746_v53, %v13745_v30  ;;  %v18549_v30 = vcombine.high %v17065_v51, %v17066_v25  ;;  %v6946_v53 = vld [vmem:[#allocation2 + $0xe4] sm:$0xff] }
 0x53d   : > { %4126 = vmatmul.mubr.bf16.gmra.mrb[140].mxu1 %v18399_v56  ;;  %v18571_v11 = vcombine.low %v17069_v59, %v6946_v53 }
 0x53e   : > { %4133 = vmatprep.mubr.bf16.mxu1 %v12900_v29 }
 0x540   : > { %v13748_v9 = vpop.f32.mrb[36].mxu1  ;;  %7478 = vmatmul.mubr.bf16.vlgmr.msra.gmra.mrb[224].mxu0 %v18532_v62 }
 0x541   : > { %v13749_v50 = vpop.f32.mrb[37].mxu1  ;;  %7485 = vmatprep.mubr.bf16.mxu0 %v18536_v4 }
 0x542   : > { %v18528_v27 = vadd.f32 %v13749_v50, %v13748_v9  ;;  %v13751_v35 = vpop.f32.mrb[38].mxu1  ;;  %v17068_v9 = vld [vmem:[#allocation2 + $0x1bc] sm:$0xff] }
 0x543   : > { %v13752_v61 = vpop.f32.mrb[39].mxu1  ;;  %v18557_v50 = vcombine.high %v17067_v5, %v17068_v9  ;;  %v16576_v5 = vld [vmem:[#allocation11 + $0x180] sm:$0xff]  }
 0x544   : > { %v18534_v3 = vadd.f32 %v13752_v61, %v13751_v35  ;;  %v18559_v35 = vcombine.low %v17065_v51, %v17066_v25  ;;  %v18563_v61 = vcombine.high %v17069_v59, %v6946_v53  ;;  %v16579_v9 = vld [vmem:[#allocation2 + $0x38] ss:$12 sps:$4 sm:$0xff]   ;;  %v16581_v53 = vld [vmem:[#allocation11 + $0x1c8] sm:$0xff]  }
 0x545   : > { %4134 = vmatmul.mubr.bf16.gmra.mrb[144].mxu1 %v12899_v55 }
 0x546   : > { %4141 = vmatprep.mubr.bf16.mxu1 %v18530_v21 }
 0x548   : > { %v13754_v15 = vpop.f32.mrb[40].mxu1  ;;  %7486 = vmatmul.mubr.bf16.gmra.mrb[228].mxu0 %v18545_v20 }
 0x549   : > { %v13755_v7 = vpop.f32.mrb[41].mxu1  ;;  %7493 = vmatprep.mubr.bf16.mxu0 %v18549_v30 }
 0x54a   : > { %v18541_v22 = vadd.f32 %v13755_v7, %v13754_v15  ;;  %v13757_v33 = vpop.f32.mrb[42].mxu1 }
 0x54b   : > { %v13758_v14 = vpop.f32.mrb[43].mxu1 }
 0x54c   : > { %v18547_v34 = vadd.f32 %v13758_v14, %v13757_v33  ;;  %v16573_v33 = vld [vmem:[#allocation2 + $0x8] ss:$12 sps:$4 sm:$0xff]  }
 0x54d   : > { %4142 = vmatmul.mubr.bf16.gmra.mrb[148].mxu1 %v18407_v12 }
 0x54e   : > { %4149 = vmatprep.mubr.bf16.mxu1 %v18543_v47 }
 0x550   : > { %v13760_v31 = vpop.f32.mrb[44].mxu1  ;;  %7494 = vmatmul.mubr.bf16.gmra.mrb[232].mxu0 %v18559_v35 }
 0x551   : > { %v13761_v29 = vpop.f32.mrb[45].mxu1  ;;  %7501 = vmatprep.mubr.bf16.mxu0 %v18563_v61 }
 0x552   : > { %v18555_v40 = vadd.f32 %v13761_v29, %v13760_v31  ;;  %v13763_v44 = vpop.f32.mrb[46].mxu1  ;;  %v16574_v31 = vld [vmem:[#allocation2 + $0x20] ss:$12 sps:$4 sm:$0xff]  }
 0x553   : > { %v13764_v55 = vpop.f32.mrb[47].mxu1 }
 0x554   : > { %v18561_v36 = vadd.f32 %v13764_v55, %v13763_v44 }
 0x555   : > { %4150 = vmatmul.mubr.bf16.gmra.mrb[152].mxu1 %v18415_v63 }
 0x556   : > { %4157 = vmatprep.mubr.bf16.mxu1 %v18557_v50 }
 0x558   : > { %v13766_v1 = vpop.f32.mrb[48].mxu1  ;;  %7502 = vmatmul.mubr.bf16.gmra.mrb[236].mxu0 %v18571_v11 }
 0x559   : > { %v13767_v2 = vpop.f32.mrb[49].mxu1  ;;  %7509 = vmatprep.mubr.bf16.mxu0 %v18493_v54 }
 0x55a   : > { %v18569_v15 = vadd.f32 %v13767_v2, %v13766_v1  ;;  %v13769_v7 = vpop.f32.mrb[50].mxu1  ;;  %v16582_v1 = vld [vmem:[#allocation11 + $0x188] sm:$0xff]   ;;  %v16587_v2 = vld [vmem:[#allocation11 + $0x1d0] sm:$0xff]  }
 0x55b   : > { %v13770_v8 = vpop.f32.mrb[51].mxu1 }
 0x55c   : > { %v18573_v14 = vadd.f32 %v13770_v8, %v13769_v7 }
 0x55d   : > { %4158 = vmatmul.mubr.bf16.gmra.mrb[156].mxu1 %v18425_v37 }
 0x55e   : > { %14966 = vmatprep.mubr.bf16.mxu1 %v16573_v33  ;;  %v16580_v33 = vld [vmem:[#allocation2 + $0x50] ss:$12 sps:$4 sm:$0xff]  }
 0x560   : > { %v13772_v51 = vpop.f32.mrb[52].mxu1  ;;  %7510 = vmatmul.mubr.bf16.gmra.mrb[240].mxu0 %v18383_v23  ;;  %v16594_v23 = vld [vmem:[#allocation11 + $0x198] sm:$0xff]  }
 0x561   : > { %v13773_v25 = vpop.f32.mrb[53].mxu1  ;;  %7517 = vmatprep.mubr.bf16.mxu0 %v18500_v10 }
 0x562   : > { %v18578_v29 = vadd.f32 %v13773_v25, %v13772_v51  ;;  %v13775_v44 = vpop.f32.mrb[54].mxu1  ;;  %v16585_v25 = vld [vmem:[#allocation2 + $0x80] ss:$12 sps:$4 sm:$0xff]  }
 0x563   : > { %v13776_v55 = vpop.f32.mrb[55].mxu1 }
 0x564   : > { %v18580_v59 = vadd.f32 %v13776_v55, %v13775_v44  ;;  %v16588_v44 = vld [vmem:[#allocation11 + $0x190] sm:$0xff]  }
 0x565   : > { %14967 = vmatmul.mubr.bf16.vlgmr.msra.gmra.mrb[64].mxu1 %v16574_v31  ;;  %v16593_v31 = vld [vmem:[#allocation11 + $0x1d8] sm:$0xff]  }
 0x566   : > { %13951 = vmatpush3.bf16.msra.mxu1 %v16576_v5  ;;  %14970 = vmatprep.mubr.bf16.mxu1 %v16579_v9  ;;  %v16599_v9 = vld [vmem:[#allocation11 + $0x1e0] sm:$0xff]  }
 0x567   : > { %13952 = vmatprep.subr.bf16.mxu1 %v16581_v53 }
 0x568   : > { %v13778_v54 = vpop.f32.mrb[56].mxu1  ;;  %7518 = vmatmul.mubr.bf16.gmra.mrb[244].mxu0 %v18391_v38  ;;  %v16608_v38 = vld [vmem:[#allocation11 + $0x1a8] sm:$0xff]  }
 0x569   : > { %v13779_v7 = vpop.f32.mrb[57].mxu1  ;;  %7525 = vmatprep.mubr.bf16.mxu0 %v18510_v46  ;;  %v16617_v46 = vld [vmem:[#allocation11 + $0x1f0] sm:$0xff]  }
 0x56a   : > { %v18584_v8 = vadd.f32 %v13779_v7, %v13778_v54  ;;  %v13781_v51 = vpop.f32.mrb[58].mxu1  ;;  %13953 = vmatpush3.bf16.msra.mxu1 %v16582_v1  ;;  %v16586_v1 = vld [vmem:[#allocation2 + $0x98] ss:$12 sps:$4 sm:$0xff]   ;;  %v6962_v54 = vld [vmem:[#allocation2 + $0x15c] sm:$0xff] }
 0x56b   : > { %v13782_v55 = vpop.f32.mrb[59].mxu1  ;;  %13954 = vmatprep.subr.bf16.mxu1 %v16587_v2 }
 0x56c   : > { %v18586_v5 = vadd.f32 %v13782_v55, %v13781_v51  ;;  %v16600_v51 = vld [vmem:[#allocation11 + $0x1a0] sm:$0xff]  }
 0x56d   : > { %14971 = vmatmul.mubr.bf16.gmra.mrb[68].mxu1 %v16580_v33  ;;  %v17070_v55 = vld [vmem:[#allocation2 + $0x150] sm:$0xff] }
 0x56e   : > { %21037 = vst [vmem:[#allocation35_spill] sm:$0xff] %v18586_v5  ;;  %14974 = vmatprep.mubr.bf16.mxu1 %v16585_v25  ;;  %13955 = vmatpush3.bf16.msra.mxu1 %v16588_v44  ;;  %v16607_v25 = vld [vmem:[#allocation11 + $0x1e8] sm:$0xff]  }
 0x56f   : > { %13956 = vmatprep.subr.bf16.mxu1 %v16593_v31  ;;  %v18594_v31 = vcombine.high %v17070_v55, %v6962_v54 }
 0x570   : > { %v13784_v10 = vpop.f32.mrb[60].mxu1  ;;  %7526 = vmatmul.mubr.bf16.gmra.mrb[248].mxu0 %v18399_v56 }
 0x571   : > { %v13785_v53 = vpop.f32.mrb[61].mxu1  ;;  %7533 = vmatprep.mubr.bf16.mxu0 %v18594_v31 }
 0x572   : > { %v18590_v7 = vadd.f32 %v13785_v53, %v13784_v10  ;;  %v13787_v2 = vpop.f32.mrb[62].mxu1  ;;  %13957 = vmatpush3.bf16.msra.mxu1 %v16594_v23  ;;  %v16592_v23 = vld [vmem:[#allocation2 + $0xc8] ss:$12 sps:$4 sm:$0xff]   ;;  %v16597_v10 = vld [vmem:[#allocation2 + $0xf8] ss:$12 sps:$4 sm:$0xff]   ;;  %v16627_v53 = vld [vmem:[#allocation11 + $0x1f8] sm:$0xff]  }
 0x573   : > { %v13788_v33 = vpop.f32.mrb[63].mxu1  ;;  %13958 = vmatprep.subr.bf16.mxu1 %v16599_v9  ;;  %v16618_v9 = vld [vmem:[#allocation11 + $0x1b0] sm:$0xff]  }
 0x574   : > { %21038 = vst [vmem:[#allocation36_spill] sm:$0xff] %v18590_v7  ;;  %v18592_v44 = vadd.f32 %v13788_v33, %v13787_v2  ;;  %v18598_v2 = vcombine.low %v17070_v55, %v6962_v54  ;;  %v16604_v54 = vld [vmem:[#allocation2 + $0x128] ss:$12 sps:$4 sm:$0xff]   ;;  %v16606_v7 = vld [vmem:[#allocation2 + $0x140] ss:$12 sps:$4 sm:$0xff]  }
 0x575   : > { %14975 = vmatmul.mubr.bf16.gmra.mrb[72].mxu1 %v16586_v1  ;;  %v14102_v1 = vpop.f32.mrb[96].mxu0 }
 0x576   : > { %21039 = vst [vmem:[#allocation37_spill] sm:$0xff] %v18592_v44  ;;  %14978 = vmatprep.mubr.bf16.mxu1 %v16591_v0  ;;  %13959 = vmatpush3.bf16.msra.mxu1 %v16600_v51  ;;  %v16628_v0 = vld [vmem:[#allocation11 + $0x1b8] sm:$0xff]   ;;  %v18600_v51 = vld [vmem:[#allocation11 + $0x200] sm:$0xff]   ;;  %v14103_v56 = vpop.f32.mrb[97].mxu0 }
 0x577   : > { %13960 = vmatprep.subr.bf16.mxu1 %v16607_v25  ;;  %v18604_v33 = vadd.f32 %v14103_v56, %v14102_v1  ;;  %v14105_v25 = vpop.f32.mrb[98].mxu0 }
 0x578   : > { %7534 = vmatmul.mubr.bf16.gmra.mrb[252].mxu0 %v18598_v2 }
 0x579   : > { %7541 = vmatprep.mubr.bf16.mxu0 %v18530_v21  ;;  %21040 = vst [vmem:[#allocation38_spill] sm:$0xff] %v18604_v33 }
 0x57a   : > { %13961 = vmatpush3.bf16.msra.mxu1 %v16608_v38  ;;  %v16598_v38 = vld [vmem:[#allocation2 + $0x110] ss:$12 sps:$4 sm:$0xff]  }
 0x57b   : > { %13962 = vmatprep.subr.bf16.mxu1 %v16617_v46  ;;  %v14106_v46 = vpop.f32.mrb[99].mxu0 }
 0x57c   : > { %v14108_v55 = vpop.f32.mrb[100].mxu0 }
 0x57d   : > { %14979 = vmatmul.mubr.bf16.gmra.mrb[76].mxu1 %v16592_v23  ;;  %v14109_v23 = vpop.f32.mrb[101].mxu0 }
 0x57e   : > { %14982 = vmatprep.mubr.bf16.mxu1 %v16597_v10  ;;  %13963 = vmatpush3.bf16.msra.mxu1 %v16618_v9  ;;  %v18607_v10 = vadd.f32 %v14106_v46, %v14105_v25  ;;  %v14111_v9 = vpop.f32.mrb[102].mxu0  ;;  %v18609_v44 = vadd.f32 %v14109_v23, %v14108_v55  ;;  %v16614_v46 = vld [vmem:[#allocation2 + $0x170] ss:$12 sps:$4 sm:$0xff]  }
 0x57f   : > { %13964 = vmatprep.subr.bf16.mxu1 %v16627_v53  ;;  %v14112_v53 = vpop.f32.mrb[103].mxu0 }
 0x580   : > { %21041 = vst [vmem:[#allocation39_spill] sm:$0xff] %v18607_v10  ;;  %v18611_v21 = vadd.f32 %v14112_v53, %v14111_v9  ;;  %v14114_v1 = vpop.f32.mrb[104].mxu0  ;;  %7542 = vmatmul.mubr.bf16.gmra.mrb[0].mxu0 %v18407_v12 }
 0x581   : > { %v14115_v56 = vpop.f32.mrb[105].mxu0  ;;  %7549 = vmatprep.mubr.bf16.mxu0 %v18543_v47 }
 0x582   : > { %13965 = vmatpush3.bf16.msra.mxu1 %v16628_v0  ;;  %21042 = vst [vmem:[#allocation40_spill] sm:$0xff] %v18611_v21  ;;  %v18615_v0 = vadd.f32 %v14115_v56, %v14114_v1  ;;  %v14117_v33 = vpop.f32.mrb[106].mxu0  ;;  %v16616_v56 = vld [vmem:[#allocation2 + $0x188] ss:$12 sps:$4 sm:$0xff]  }
 0x583   : > { %14998 = vmatprep.subr.bf16.mxu1 %v18600_v51  ;;  %v14118_v25 = vpop.f32.mrb[107].mxu0  ;;  %v16686_v21 = vld [vmem:[#allocation2 + $0x214] ss:$12 sps:$4 sm:$0xff]  }
 0x584   : > { %21043 = vst [vmem:[#allocation41_spill] sm:$0xff] %v18615_v0  ;;  %v14120_v10 = vpop.f32.mrb[108].mxu0  ;;  %v18617_v5 = vadd.f32 %v14118_v25, %v14117_v33  ;;  %v18627_v33 = vld [vmem:[#allocation2 + $0x1d4] sm:$0xff] }
 0x585   : > { %14983 = vmatmul.mubr.bf16.gmra.mrb[80].mxu1 %v16598_v38  ;;  %v14121_v38 = vpop.f32.mrb[109].mxu0 }
 0x586   : > { %14986 = vmatprep.mubr.bf16.mxu1 %v16604_v54  ;;  %21044 = vst [vmem:[#allocation42_spill] sm:$0xff] %v18617_v5  ;;  %v14123_v54 = vpop.f32.mrb[110].mxu0  ;;  %v18619_v23 = vadd.f32 %v14121_v38, %v14120_v10  ;;  %v13185_v10 = vcombine.high %v18470_v60, %v18627_v33 }
 0x587   : > { %v14124_v55 = vpop.f32.mrb[111].mxu0 }
 0x588   : > { %21045 = vst [vmem:[#allocation43_spill] sm:$0xff] %v18619_v23  ;;  %v18621_v12 = vadd.f32 %v14124_v55, %v14123_v54  ;;  %v14126_v9 = vpop.f32.mrb[112].mxu0  ;;  %7550 = vmatmul.mubr.bf16.gmra.mrb[4].mxu0 %v18415_v63  ;;  %v16626_v23 = vld [vmem:[#allocation2 + $0x1b8] ss:$12 sps:$4 sm:$0xff]  }
 0x589   : > { %v14127_v47 = vpop.f32.mrb[113].mxu0  ;;  %7557 = vmatprep.mubr.bf16.mxu0 %v18557_v50 }
 0x58a   : > { %21046 = vst [vmem:[#allocation44_spill] sm:$0xff] %v18621_v12  ;;  %v18625_v53 = vadd.f32 %v14127_v47, %v14126_v9  ;;  %v14129_v1 = vpop.f32.mrb[114].mxu0 }
 0x58b   : > { %v14130_v25 = vpop.f32.mrb[115].mxu0 }
 0x58c   : > { %21047 = vst [vmem:[#allocation45_spill] sm:$0xff] %v18625_v53  ;;  %v14132_v5 = vpop.f32.mrb[116].mxu0  ;;  %v18631_v38 = vadd.f32 %v14130_v25, %v14129_v1  ;;  %v16636_v1 = vld [vmem:[#allocation2 + $0x1c] ss:$12 sps:$4 sm:$0xff]  }
 0x58d   : > { %14987 = vmatmul.mubr.bf16.gmra.mrb[84].mxu1 %v16606_v7  ;;  %v16624_v7 = vld [vmem:[#allocation2 + $0x1a0] ss:$12 sps:$4 sm:$0xff]  }
 0x58e   : > { %14990 = vmatprep.mubr.bf16.mxu1 %v16614_v46  ;;  %v14133_v46 = vpop.f32.mrb[117].mxu0  ;;  %21048 = vst [vmem:[#allocation46_spill] sm:$0xff] %v18631_v38  ;;  %v16643_v38 = vld [vmem:[#allocation2 + $0x34] ss:$12 sps:$4 sm:$0xff]  }
 0x58f   : > { %v14135_v54 = vpop.f32.mrb[118].mxu0  ;;  %v18633_v50 = vadd.f32 %v14133_v46, %v14132_v5  ;;  %v16680_v5 = vld [vmem:[#allocation2 + $0x1fc] ss:$12 sps:$4 sm:$0xff]  }
 0x590   : > { %v14136_v63 = vpop.f32.mrb[119].mxu0  ;;  %7558 = vmatmul.mubr.bf16.gmra.mrb[8].mxu0 %v18425_v37 }
 0x591   : > { %21049 = vst [vmem:[#allocation47_spill] sm:$0xff] %v18633_v50  ;;  %v18635_v55 = vadd.f32 %v14136_v63, %v14135_v54  ;;  %v14138_v9 = vpop.f32.mrb[120].mxu0  ;;  %7565 = vmatprep.mubr.bf16.mxu0 %v13185_v10 }
 0x592   : > { %v14139_v47 = vpop.f32.mrb[121].mxu0 }
 0x593   : > { %21050 = vst [vmem:[#allocation48_spill] sm:$0xff] %v18635_v55  ;;  %v18638_v53 = vadd.f32 %v14139_v47, %v14138_v9  ;;  %v14141_v12 = vpop.f32.mrb[122].mxu0 }
 0x594   : > { %v14142_v0 = vpop.f32.mrb[123].mxu0 }
 0x595   : > { %14991 = vmatmul.mubr.bf16.gmra.mrb[88].mxu1 %v16616_v56  ;;  %21051 = vst [vmem:[#allocation49_spill] sm:$0xff] %v18638_v53  ;;  %v14144_v25 = vpop.f32.mrb[124].mxu0  ;;  %v13184_v56 = vcombine.low %v18470_v60, %v18627_v33  ;;  %v18642_v46 = vadd.f32 %v14142_v0, %v14141_v12  ;;  %v16634_v60 = vld [vmem:[#allocation2 + $0x18] ss:$12 sps:$4 sm:$0xff]   ;;  %v16651_v12 = vld [vmem:[#allocation11 + $0x208] sm:$0xff]  }
 0x596   : > { %14994 = vmatprep.mubr.bf16.mxu1 %v16624_v7  ;;  %v14145_v7 = vpop.f32.mrb[125].mxu0 }
 0x597   : > { %21052 = vst [vmem:[#allocation50_spill] sm:$0xff] %v18642_v46  ;;  %v14147_v54 = vpop.f32.mrb[126].mxu0  ;;  %v18644_v37 = vadd.f32 %v14145_v7, %v14144_v25  ;;  %v16682_v46 = vld [vmem:[#allocation2 + $0x1f8] ss:$12 sps:$4 sm:$0xff]  }
 0x598   : > { %v14148_v63 = vpop.f32.mrb[127].mxu0  ;;  %7566 = vmatmul.mubr.bf16.gmra.mrb[12].mxu0 %v13184_v56 }
 0x599   : > { %21053 = vst [vmem:[#allocation51_spill] sm:$0xff] %v18644_v37  ;;  %v18646_v10 = vadd.f32 %v14148_v63, %v14147_v54  ;;  %v14150_v9 = vpop.f32.mrb[128].mxu0  ;;  %7573 = vmatprep.mubr.bf16.mxu0 %v16680_v5  ;;  %v16659_v63 = vld [vmem:[#allocation11 + $0x210] sm:$0xff]  }
 0x59a   : > { %v14151_v47 = vpop.f32.mrb[129].mxu0 }
 0x59b   : > { %21054 = vst [vmem:[#allocation52_spill] sm:$0xff] %v18646_v10  ;;  %v18648_v53 = vadd.f32 %v14151_v47, %v14150_v9  ;;  %v14153_v55 = vpop.f32.mrb[130].mxu0 }
 0x59c   : > { %v14154_v50 = vpop.f32.mrb[131].mxu0 }
 0x59d   : > { %14995 = vmatmul.mubr.bf16.gmra.mrb[92].mxu1 %v16626_v23  ;;  %21055 = vst [vmem:[#allocation53_spill] sm:$0xff] %v18648_v53  ;;  %v14156_v0 = vpop.f32.mrb[132].mxu0 }
 0x59e   : > { %4873 = vmatprep.mubr.bf16.mxu1 %v16636_v1  ;;  %v14157_v23 = vpop.f32.mrb[133].mxu0  ;;  %v18650_v1 = vadd.f32 %v14154_v50, %v14153_v55  ;;  %v16645_v55 = vld [vmem:[#allocation2 + $0x30] ss:$12 sps:$4 sm:$0xff]  }
 0x59f   : > { %v14159_v25 = vpop.f32.mrb[134].mxu0  ;;  %v18653_v56 = vadd.f32 %v14157_v23, %v14156_v0  ;;  %v16693_v23 = vld [vmem:[#allocation2 + $0x22c] ss:$12 sps:$4 sm:$0xff]  }
 0x5a0   : > { %21056 = vst [vmem:[#allocation54_spill] sm:$0xff] %v18650_v1  ;;  %v14160_v7 = vpop.f32.mrb[135].mxu0  ;;  %7574 = vmatmul.mubr.bf16.gmra.mrb[16].mxu0 %v16682_v46 }
 0x5a1   : > { %21057 = vst [vmem:[#allocation55_spill] sm:$0xff] %v18653_v56  ;;  %v18655_v5 = vadd.f32 %v14160_v7, %v14159_v25  ;;  %v14162_v54 = vpop.f32.mrb[136].mxu0  ;;  %7581 = vmatprep.mubr.bf16.mxu0 %v16686_v21 }
 0x5a2   : > { %v14163_v9 = vpop.f32.mrb[137].mxu0 }
 0x5a3   : > { %21058 = vst [vmem:[#allocation56_spill] sm:$0xff] %v18655_v5  ;;  %v18657_v47 = vadd.f32 %v14163_v9, %v14162_v54  ;;  %v14165_v50 = vpop.f32.mrb[138].mxu0 }
 0x5a4   : > { %v14166_v1 = vpop.f32.mrb[139].mxu0 }
 0x5a5   : > { %4874 = vmatmul.mubr.bf16.vlgmr.msra.gmra.mrb[160].mxu1 %v16634_v60  ;;  %21059 = vst [vmem:[#allocation57_spill] sm:$0xff] %v18657_v47  ;;  %v16648_v60 = vld [vmem:[#allocation2 + $0x4c] ss:$12 sps:$4 sm:$0xff]   ;;  %v14168_v53 = vpop.f32.mrb[140].mxu0  ;;  %v18659_v25 = vadd.f32 %v14166_v1, %v14165_v50  ;;  %v16650_v1 = vld [vmem:[#allocation2 + $0x48] ss:$12 sps:$4 sm:$0xff]  }
 0x5a6   : > { %14999 = vmatpush3.bf16.msra.mxu1 %v18600_v51  ;;  %4881 = vmatprep.mubr.bf16.mxu1 %v16643_v38  ;;  %v16660_v51 = vld [vmem:[#allocation11 + $0x218] sm:$0xff]   ;;  %v14169_v0 = vpop.f32.mrb[141].mxu0 }
 0x5a7   : > { %15000 = vmatprep.subr.bf16.mxu1 %v16651_v12  ;;  %v16688_v38 = vld [vmem:[#allocation2 + $0x210] ss:$12 sps:$4 sm:$0xff]   ;;  %21060 = vst [vmem:[#allocation58_spill] sm:$0xff] %v18659_v25  ;;  %v14171_v7 = vpop.f32.mrb[142].mxu0  ;;  %v18661_v21 = vadd.f32 %v14169_v0, %v14168_v53 }
 0x5a8   : > { %v14172_v46 = vpop.f32.mrb[143].mxu0  ;;  %7582 = vmatmul.mubr.bf16.gmra.mrb[20].mxu0 %v16688_v38  ;;  %v6994_v50 = vld [vmem:[#allocation2 + $0x24c] sm:$0xff]  ;;  %v16673_v53 = vld [vmem:[#allocation11 + $0x228] sm:$0xff]  }
 0x5a9   : > { %21061 = vst [vmem:[#allocation59_spill] sm:$0xff] %v18661_v21  ;;  %v18663_v54 = vadd.f32 %v14172_v46, %v14171_v7  ;;  %v14174_v9 = vpop.f32.mrb[144].mxu0  ;;  %7589 = vmatprep.mubr.bf16.mxu0 %v16693_v23  ;;  %v13197_v7 = vcombine.high %v18506_v6, %v6994_v50 }
 0x5aa   : > { %15001 = vmatpush3.bf16.msra.mxu1 %v16651_v12  ;;  %v16666_v12 = vld [vmem:[#allocation11 + $0x220] sm:$0xff]   ;;  %v14175_v47 = vpop.f32.mrb[145].mxu0 }
 0x5ab   : > { %15002 = vmatprep.subr.bf16.mxu1 %v16659_v63  ;;  %21062 = vst [vmem:[#allocation60_spill] sm:$0xff] %v18663_v54  ;;  %v18665_v5 = vadd.f32 %v14175_v47, %v14174_v9  ;;  %v14177_v56 = vpop.f32.mrb[146].mxu0 }
 0x5ac   : > { %v14178_v25 = vpop.f32.mrb[147].mxu0 }
 0x5ad   : > { %4882 = vmatmul.mubr.bf16.gmra.mrb[164].mxu1 %v16645_v55  ;;  %21063 = vst [vmem:[#allocation61_spill] sm:$0xff] %v18665_v5  ;;  %v16654_v55 = vld [vmem:[#allocation2 + $0x64] ss:$12 sps:$4 sm:$0xff]   ;;  %v18668_v46 = vadd.f32 %v14178_v25, %v14177_v56 }
 0x5ae   : > { %4889 = vmatprep.mubr.bf16.mxu1 %v16648_v60  ;;  %15003 = vmatpush3.bf16.msra.mxu1 %v16659_v63  ;;  %v14180_v60 = vpop.f32.mrb[148].mxu0  ;;  %v16695_v63 = vld [vmem:[#allocation2 + $0x228] ss:$12 sps:$4 sm:$0xff]  }
 0x5af   : > { %15004 = vmatprep.subr.bf16.mxu1 %v16660_v51  ;;  %v14181_v0 = vpop.f32.mrb[149].mxu0  ;;  %21064 = vst [vmem:[#allocation62_spill] sm:$0xff] %v18668_v46  ;;  %v16656_v46 = vld [vmem:[#allocation2 + $0x60] ss:$12 sps:$4 sm:$0xff]  }
 0x5b0   : > { %v14183_v38 = vpop.f32.mrb[150].mxu0  ;;  %v18670_v47 = vadd.f32 %v14181_v0, %v14180_v60  ;;  %7590 = vmatmul.mubr.bf16.gmra.mrb[24].mxu0 %v16695_v63  ;;  %v13196_v63 = vcombine.low %v18506_v6, %v6994_v50  ;;  %v18690_v6 = vld [vmem:[#allocation11 + $0x2c0] sm:$0xff]  }
 0x5b1   : > { %v14184_v23 = vpop.f32.mrb[151].mxu0  ;;  %7597 = vmatprep.mubr.bf16.mxu0 %v13197_v7 }
 0x5b2   : > { %15005 = vmatpush3.bf16.msra.mxu1 %v16660_v51  ;;  %21065 = vst [vmem:[#allocation63_spill] sm:$0xff] %v18670_v47  ;;  %v18672_v9 = vadd.f32 %v14184_v23, %v14183_v38  ;;  %v14186_v5 = vpop.f32.mrb[152].mxu0  ;;  %v16679_v51 = vld [vmem:[#allocation11 + $0x230] sm:$0xff]   ;;  %v16692_v38 = vld [vmem:[#allocation11 + $0x238] sm:$0xff]  }
 0x5b3   : > { %15006 = vmatprep.subr.bf16.mxu1 %v16666_v12  ;;  %v14187_v54 = vpop.f32.mrb[153].mxu0 }
 0x5b4   : > { %21066 = vst [vmem:[#allocation64_spill] sm:$0xff] %v18672_v9  ;;  %v18674_v10 = vadd.f32 %v14187_v54, %v14186_v5  ;;  %v14189_v56 = vpop.f32.mrb[154].mxu0 }
 0x5b5   : > { %4890 = vmatmul.mubr.bf16.gmra.mrb[168].mxu1 %v16650_v1  ;;  %v14190_v1 = vpop.f32.mrb[155].mxu0 }
 0x5b6   : > { %4897 = vmatprep.mubr.bf16.mxu1 %v16654_v55  ;;  %15007 = vmatpush3.bf16.msra.mxu1 %v16666_v12  ;;  %21067 = vst [vmem:[#allocation65_spill] sm:$0xff] %v18674_v10  ;;  %v18676_v12 = vadd.f32 %v14190_v1, %v14189_v56  ;;  %v14192_v60 = vpop.f32.mrb[156].mxu0 }
 0x5b7   : > { %15008 = vmatprep.subr.bf16.mxu1 %v16673_v53  ;;  %v14193_v23 = vpop.f32.mrb[157].mxu0 }
 0x5b8   : > { %v13830_v21 = vpop.f32.mrb[96].mxu1  ;;  %21068 = vst [vmem:[#allocation66_spill] sm:$0xff] %v18676_v12  ;;  %v18679_v7 = vadd.f32 %v14193_v23, %v14192_v60  ;;  %v14195_v5 = vpop.f32.mrb[158].mxu0  ;;  %7598 = vmatmul.mubr.bf16.gmra.mrb[28].mxu0 %v13196_v63 }
 0x5b9   : > { %v13831_v25 = vpop.f32.mrb[97].mxu1 }
 0x5ba   : > { %v13832_v37 = vadd.f32 %v13831_v25, %v13830_v21  ;;  %v13833_v55 = vpop.f32.mrb[98].mxu1  ;;  %15009 = vmatpush3.bf16.msra.mxu1 %v16673_v53  ;;  %21069 = vst [vmem:[#allocation67_spill] sm:$0xff] %v18679_v7  ;;  %v14196_v21 = vpop.f32.mrb[159].mxu0 }
 0x5bb   : > { %v13834_v0 = vpop.f32.mrb[99].mxu1  ;;  %15010 = vmatprep.subr.bf16.mxu1 %v16679_v51  ;;  %v18685_v53 = vadd.f32 %v14196_v21, %v14195_v5  ;;  %v14238_v56 = vpop.f32.mrb[160].mxu0 }
 0x5bc   : > { %v13835_v9 = vadd.f32 %v13834_v0, %v13833_v55  ;;  %v18682_v54 = vadd.f32 %v13832_v37, %v18442_v17  ;;  %v14239_v50 = vpop.f32.mrb[161].mxu0 }
 0x5bd   : > { %4898 = vmatmul.mubr.bf16.gmra.mrb[172].mxu1 %v16656_v46  ;;  %21070 = vst [vmem:[#allocation68_spill] sm:$0xff] %v18685_v53  ;;  %v18692_v55 = vadd.f32 %v14239_v50, %v14238_v56  ;;  %v14241_v17 = vpop.f32.mrb[162].mxu0 }
 0x5be   : > { %4905 = vmatprep.mubr.bf16.mxu1 %v18523_v48  ;;  %15011 = vmatpush3.bf16.msra.mxu1 %v16679_v51  ;;  %v18688_v25 = vadd.f32 %v13835_v9, %v18445_v24  ;;  %v14242_v46 = vpop.f32.mrb[163].mxu0 }
 0x5bf   : > { %15012 = vmatprep.subr.bf16.mxu1 %v16692_v38  ;;  %v18694_v51 = vadd.f32 %v14242_v46, %v14241_v17  ;;  %v14244_v0 = vpop.f32.mrb[164].mxu0 }
 0x5c0   : > { %v13836_v1 = vpop.f32.mrb[100].mxu1  ;;  %v14245_v24 = vpop.f32.mrb[165].mxu0 }
 0x5c1   : > { %v13837_v37 = vpop.f32.mrb[101].mxu1  ;;  %v18697_v63 = vadd.f32 %v14245_v24, %v14244_v0  ;;  %v14247_v5 = vpop.f32.mrb[166].mxu0 }
 0x5c2   : > { %v13838_v60 = vadd.f32 %v13837_v37, %v13836_v1  ;;  %v13839_v48 = vpop.f32.mrb[102].mxu1  ;;  %15013 = vmatpush3.bf16.msra.mxu1 %v16692_v38  ;;  %v14248_v56 = vpop.f32.mrb[167].mxu0 }
 0x5c3   : > { %v13840_v23 = vpop.f32.mrb[103].mxu1  ;;  %15046 = vmatprep.subr.bf16.mxu1 %v18690_v6  ;;  %v18704_v38 = vadd.f32 %v14248_v56, %v14247_v5  ;;  %v14250_v50 = vpop.f32.mrb[168].mxu0 }
 0x5c4   : > { %v13841_v9 = vadd.f32 %v13840_v23, %v13839_v48  ;;  %v18700_v21 = vadd.f32 %v13838_v60, %v18450_v32  ;;  %v14251_v17 = vpop.f32.mrb[169].mxu0 }
 0x5c5   : > { %4906 = vmatmul.mubr.bf16.gmra.mrb[176].mxu1 %v18532_v62  ;;  %v18709_v46 = vadd.f32 %v14251_v17, %v14250_v50  ;;  %v14253_v48 = vpop.f32.mrb[170].mxu0 }
 0x5c6   : > { %4913 = vmatprep.mubr.bf16.mxu1 %v18536_v4  ;;  %v18707_v1 = vadd.f32 %v13841_v9, %v18454_v43  ;;  %v14254_v23 = vpop.f32.mrb[171].mxu0 }
 0x5c7   : > { %v18711_v24 = vadd.f32 %v14254_v23, %v14253_v48  ;;  %v14256_v62 = vpop.f32.mrb[172].mxu0 }
 0x5c8   : > { %v13842_v37 = vpop.f32.mrb[104].mxu1  ;;  %v14257_v4 = vpop.f32.mrb[173].mxu0 }
 0x5c9   : > { %v13843_v0 = vpop.f32.mrb[105].mxu1  ;;  %v18713_v56 = vadd.f32 %v14257_v4, %v14256_v62  ;;  %v14259_v7 = vpop.f32.mrb[174].mxu0 }
 0x5ca   : > { %v13844_v32 = vadd.f32 %v13843_v0, %v13842_v37  ;;  %v13845_v60 = vpop.f32.mrb[106].mxu1  ;;  %v14260_v9 = vpop.f32.mrb[175].mxu0 }
 0x5cb   : > { %v13846_v53 = vpop.f32.mrb[107].mxu1  ;;  %v18720_v50 = vadd.f32 %v14260_v9, %v14259_v7  ;;  %v14262_v17 = vpop.f32.mrb[176].mxu0 }
 0x5cc   : > { %v13847_v5 = vadd.f32 %v13846_v53, %v13845_v60  ;;  %v18716_v43 = vadd.f32 %v13844_v32, %v18460_v49  ;;  %v14263_v48 = vpop.f32.mrb[177].mxu0 }
 0x5cd   : > { %4914 = vmatmul.mubr.bf16.gmra.mrb[180].mxu1 %v18545_v20  ;;  %v18725_v53 = vadd.f32 %v14263_v48, %v14262_v17  ;;  %v14265_v23 = vpop.f32.mrb[178].mxu0 }
 0x5ce   : > { %4921 = vmatprep.mubr.bf16.mxu1 %v18549_v30  ;;  %v18723_v37 = vadd.f32 %v13847_v5, %v18464_v57  ;;  %v14266_v62 = vpop.f32.mrb[179].mxu0 }
 0x5cf   : > { %v18727_v4 = vadd.f32 %v14266_v62, %v14265_v23  ;;  %v14268_v20 = vpop.f32.mrb[180].mxu0 }
 0x5d0   : > { %v13848_v0 = vpop.f32.mrb[108].mxu1  ;;  %v14269_v30 = vpop.f32.mrb[181].mxu0 }
 0x5d1   : > { %v13849_v60 = vpop.f32.mrb[109].mxu1  ;;  %v18729_v9 = vadd.f32 %v14269_v30, %v14268_v20  ;;  %v14271_v10 = vpop.f32.mrb[182].mxu0  ;;  %v16663_v30 = vld [vmem:[#allocation2 + $0x10c] ss:$12 sps:$4 sm:$0xff]  }
 0x5d2   : > { %v13850_v49 = vadd.f32 %v13849_v60, %v13848_v0  ;;  %v13851_v32 = vpop.f32.mrb[110].mxu1  ;;  %v14272_v5 = vpop.f32.mrb[183].mxu0 }
 0x5d3   : > { %v13852_v12 = vpop.f32.mrb[111].mxu1  ;;  %21071 = vst [vmem:[#allocation69_spill] sm:$0xff] %v18729_v9  ;;  %v18736_v17 = vadd.f32 %v14272_v5, %v14271_v10  ;;  %v14274_v48 = vpop.f32.mrb[184].mxu0 }
 0x5d4   : > { %v13853_v7 = vadd.f32 %v13852_v12, %v13851_v32  ;;  %v18732_v57 = vadd.f32 %v13850_v49, %v18472_v18  ;;  %v14275_v23 = vpop.f32.mrb[185].mxu0 }
 0x5d5   : > { %4922 = vmatmul.mubr.bf16.gmra.mrb[184].mxu1 %v18559_v35  ;;  %21072 = vst [vmem:[#allocation70_spill] sm:$0xff] %v18736_v17  ;;  %v18741_v12 = vadd.f32 %v14275_v23, %v14274_v48  ;;  %v14277_v62 = vpop.f32.mrb[186].mxu0 }
 0x5d6   : > { %4929 = vmatprep.mubr.bf16.mxu1 %v18563_v61  ;;  %v18739_v0 = vadd.f32 %v13853_v7, %v18476_v42  ;;  %v14278_v20 = vpop.f32.mrb[187].mxu0 }
 0x5d7   : > { %21073 = vst [vmem:[#allocation71_spill] sm:$0xff] %v18741_v12  ;;  %v18743_v35 = vadd.f32 %v14278_v20, %v14277_v62  ;;  %v14280_v47 = vpop.f32.mrb[188].mxu0 }
 0x5d8   : > { %v13854_v60 = vpop.f32.mrb[112].mxu1  ;;  %v14281_v10 = vpop.f32.mrb[189].mxu0 }
 0x5d9   : > { %v13855_v32 = vpop.f32.mrb[113].mxu1  ;;  %21074 = vst [vmem:[#allocation72_spill] sm:$0xff] %v18743_v35  ;;  %v18745_v17 = vadd.f32 %v14281_v10, %v14280_v47  ;;  %v14283_v42 = vpop.f32.mrb[190].mxu0 }
 0x5da   : > { %v13856_v18 = vadd.f32 %v13855_v32, %v13854_v60  ;;  %v13857_v49 = vpop.f32.mrb[114].mxu1  ;;  %v14284_v48 = vpop.f32.mrb[191].mxu0 }
 0x5db   : > { %v13858_v61 = vpop.f32.mrb[115].mxu1  ;;  %21075 = vst [vmem:[#allocation73_spill] sm:$0xff] %v18745_v17  ;;  %v18751_v23 = vadd.f32 %v14284_v48, %v14283_v42  ;;  %v14286_v60 = vpop.f32.mrb[192].mxu0  ;;  %v16667_v17 = vld [vmem:[#allocation2 + $0x124] ss:$12 sps:$4 sm:$0xff]  }
 0x5dc   : > { %v13859_v5 = vadd.f32 %v13858_v61, %v13857_v49  ;;  %v18748_v7 = vadd.f32 %v13856_v18, %v18482_v28  ;;  %v14287_v32 = vpop.f32.mrb[193].mxu0  ;;  %v16665_v61 = vld [vmem:[#allocation2 + $0x108] ss:$12 sps:$4 sm:$0xff]  }
 0x5dd   : > { %4930 = vmatmul.mubr.bf16.gmra.mrb[188].mxu1 %v18571_v11  ;;  %21076 = vst [vmem:[#allocation74_spill] sm:$0xff] %v18751_v23  ;;  %v18756_v35 = vadd.f32 %v14287_v32, %v14286_v60  ;;  %v14289_v47 = vpop.f32.mrb[194].mxu0 }
 0x5de   : > { %4937 = vmatprep.mubr.bf16.mxu1 %v16663_v30  ;;  %v18754_v62 = vadd.f32 %v13859_v5, %v18487_v13  ;;  %v14290_v10 = vpop.f32.mrb[195].mxu0 }
 0x5df   : > { %21077 = vst [vmem:[#allocation75_spill] sm:$0xff] %v18756_v35  ;;  %v18758_v11 = vadd.f32 %v14290_v10, %v14289_v47  ;;  %v14292_v30 = vpop.f32.mrb[196].mxu0  ;;  %v16669_v10 = vld [vmem:[#allocation2 + $0x120] ss:$12 sps:$4 sm:$0xff]  }
 0x5e0   : > { %v13860_v20 = vpop.f32.mrb[116].mxu1  ;;  %v14293_v48 = vpop.f32.mrb[197].mxu0 }
 0x5e1   : > { %v13861_v49 = vpop.f32.mrb[117].mxu1  ;;  %21078 = vst [vmem:[#allocation76_spill] sm:$0xff] %v18758_v11  ;;  %v18760_v12 = vadd.f32 %v14293_v48, %v14292_v30  ;;  %v14295_v13 = vpop.f32.mrb[198].mxu0 }
 0x5e2   : > { %v13862_v28 = vadd.f32 %v13861_v49, %v13860_v20  ;;  %v13863_v18 = vpop.f32.mrb[118].mxu1  ;;  %v14296_v60 = vpop.f32.mrb[199].mxu0 }
 0x5e3   : > { %v13864_v42 = vpop.f32.mrb[119].mxu1  ;;  %21079 = vst [vmem:[#allocation77_spill] sm:$0xff] %v18760_v12  ;;  %v18765_v32 = vadd.f32 %v14296_v60, %v14295_v13  ;;  %v14298_v30 = vpop.f32.mrb[200].mxu0 }
 0x5e4   : > { %v13865_v23 = vadd.f32 %v13864_v42, %v13863_v18  ;;  %v18763_v5 = vadd.f32 %v13862_v28, %v18491_v39  ;;  %v16670_v18 = vld [vmem:[#allocation2 + $0x13c] ss:$12 sps:$4 sm:$0xff]   ;;  %v14299_v48 = vpop.f32.mrb[201].mxu0 }
 0x5e5   : > { %4938 = vmatmul.mubr.bf16.gmra.mrb[192].mxu1 %v16665_v61  ;;  %21080 = vst [vmem:[#allocation78_spill] sm:$0xff] %v18765_v32  ;;  %v18773_v28 = vadd.f32 %v14299_v48, %v14298_v30 }
 0x5e6   : > { %4945 = vmatprep.mubr.bf16.mxu1 %v16667_v17  ;;  %v18768_v20 = vadd.f32 %v13865_v23, %v18495_v45  ;;  %v14301_v17 = vpop.f32.mrb[202].mxu0 }
 0x5e7   : > { %21081 = vst [vmem:[#allocation79_spill] sm:$0xff] %v18773_v28  ;;  %v14302_v13 = vpop.f32.mrb[203].mxu0 }
 0x5e8   : > { %v13866_v47 = vpop.f32.mrb[120].mxu1  ;;  %v18778_v23 = vadd.f32 %v14302_v13, %v14301_v17 }
 0x5e9   : > { %v13867_v49 = vpop.f32.mrb[121].mxu1 }
 0x5ea   : > { %v13868_v11 = vadd.f32 %v13867_v49, %v13866_v47  ;;  %v13869_v35 = vpop.f32.mrb[122].mxu1  ;;  %21082 = vst [vmem:[#allocation80_spill] sm:$0xff] %v18778_v23  ;;  %v16672_v49 = vld [vmem:[#allocation2 + $0x138] ss:$12 sps:$4 sm:$0xff]  }
 0x5eb   : > { %v13870_v42 = vpop.f32.mrb[123].mxu1  ;;  %v14304_v9 = vpop.f32.mrb[204].mxu0 }
 0x5ec   : > { %v18771_v39 = vadd.f32 %v13868_v11, %v18498_v58  ;;  %v13871_v61 = vadd.f32 %v13870_v42, %v13869_v35  ;;  %v14305_v11 = vpop.f32.mrb[205].mxu0 }
 0x5ed   : > { %4946 = vmatmul.mubr.bf16.gmra.mrb[196].mxu1 %v16669_v10  ;;  %v18783_v10 = vadd.f32 %v14305_v11, %v14304_v9  ;;  %v14307_v42 = vpop.f32.mrb[206].mxu0 }
 0x5ee   : > { %v18776_v45 = vadd.f32 %v13871_v61, %v18502_v41  ;;  %4953 = vmatprep.mubr.bf16.mxu1 %v16670_v18  ;;  %v14308_v41 = vpop.f32.mrb[207].mxu0 }
 0x5ef   : > { %21083 = vst [vmem:[#allocation81_spill] sm:$0xff] %v18783_v10  ;;  %v18789_v48 = vadd.f32 %v14308_v41, %v14307_v42  ;;  %v16754_v10 = vld [vmem:[#allocation11 + $0x560] sm:$0xff]  }
 0x5f0   : > { %v13872_v60 = vpop.f32.mrb[124].mxu1 }
 0x5f1   : > { %v13873_v47 = vpop.f32.mrb[125].mxu1  ;;  %21084 = vst [vmem:[#allocation82_spill] sm:$0xff] %v18789_v48 }
 0x5f2   : > { %v13874_v32 = vadd.f32 %v13873_v47, %v13872_v60  ;;  %v13875_v12 = vpop.f32.mrb[126].mxu1  ;;  %v16676_v47 = vld [vmem:[#allocation2 + $0x184] ss:$12 sps:$4 sm:$0xff]  }
 0x5f3   : > { %v13876_v58 = vpop.f32.mrb[127].mxu1 }
 0x5f4   : > { %v18781_v35 = vadd.f32 %v13874_v32, %v18508_v19  ;;  %v13877_v30 = vadd.f32 %v13876_v58, %v13875_v12  ;;  %v14310_v19 = vpop.f32.mrb[208].mxu0 }
 0x5f5   : > { %4954 = vmatmul.mubr.bf16.gmra.mrb[200].mxu1 %v16672_v49  ;;  %v14311_v12 = vpop.f32.mrb[209].mxu0 }
 0x5f6   : > { %v18786_v18 = vadd.f32 %v13877_v30, %v18512_v16  ;;  %4961 = vmatprep.mubr.bf16.mxu1 %v18594_v31  ;;  %v18794_v58 = vadd.f32 %v14311_v12, %v14310_v19  ;;  %v14313_v16 = vpop.f32.mrb[210].mxu0 }
 0x5f7   : > { %v14314_v31 = vpop.f32.mrb[211].mxu0 }
 0x5f8   : > { %v13878_v61 = vpop.f32.mrb[128].mxu1  ;;  %21085 = vst [vmem:[#allocation83_spill] sm:$0xff] %v18794_v58  ;;  %v18800_v30 = vadd.f32 %v14314_v31, %v14313_v16  ;;  %v16739_v31 = vld [vmem:[#allocation11 + $0x580] sm:$0xff]  }
 0x5f9   : > { %v13879_v17 = vpop.f32.mrb[129].mxu1  ;;  %v16685_v58 = vld [vmem:[#allocation2 + $0x198] ss:$12 sps:$4 sm:$0xff]   ;;  %14630 = vmatprep.subr.bf16.mxu0 %v16739_v31 }
 0x5fa   : > { %v13880_v13 = vadd.f32 %v13879_v17, %v13878_v61  ;;  %v13881_v60 = vpop.f32.mrb[130].mxu1  ;;  %21087 = vst [vmem:[#allocation85_spill] sm:$0xff] %v18800_v30  ;;  %v16678_v61 = vld [vmem:[#allocation2 + $0x180] ss:$12 sps:$4 sm:$0xff]  }
 0x5fb   : > { %v13882_v32 = vpop.f32.mrb[131].mxu1 }
 0x5fc   : > { %v18792_v9 = vadd.f32 %v13880_v13, %v18517_v26  ;;  %v13883_v49 = vadd.f32 %v13882_v32, %v13881_v60  ;;  %v16683_v26 = vld [vmem:[#allocation2 + $0x19c] ss:$12 sps:$4 sm:$0xff]   ;;  %v14316_v13 = vpop.f32.mrb[212].mxu0 }
 0x5fd   : > { %4962 = vmatmul.mubr.bf16.gmra.mrb[204].mxu1 %v18598_v2  ;;  %v14317_v19 = vpop.f32.mrb[213].mxu0 }
 0x5fe   : > { %v18798_v11 = vadd.f32 %v13883_v49, %v18521_v52  ;;  %4969 = vmatprep.mubr.bf16.mxu1 %v16676_v47  ;;  %v18805_v12 = vadd.f32 %v14317_v19, %v14316_v13  ;;  %v14319_v52 = vpop.f32.mrb[214].mxu0  ;;  %v16744_v19 = vld [vmem:[#allocation11 + $0x588] sm:$0xff]  }
 0x5ff   : > { %v14320_v47 = vpop.f32.mrb[215].mxu0 }
 0x600   : > { %21086 = vst [vmem:[#allocation84_spill] sm:$0xff] %v18798_v11  ;;  %v13884_v42 = vpop.f32.mrb[132].mxu1  ;;  %21089 = vst [vmem:[#allocation87_spill] sm:$0xff] %v18805_v12  ;;  %v18810_v16 = vadd.f32 %v14320_v47, %v14319_v52  ;;  %v16745_v47 = vld [vmem:[#allocation11 + $0x548] sm:$0xff]  }
 0x601   : > { %v13885_v41 = vpop.f32.mrb[133].mxu1 }
 0x602   : > { %v13886_v17 = vadd.f32 %v13885_v41, %v13884_v42  ;;  %v13887_v48 = vpop.f32.mrb[134].mxu1  ;;  %21091 = vst [vmem:[#allocation89_spill] sm:$0xff] %v18810_v16  ;;  %v16740_v41 = vld [vmem:[#allocation11 + $0x540] sm:$0xff]  }
 0x603   : > { %v13888_v60 = vpop.f32.mrb[135].mxu1  ;;  %v14322_v13 = vpop.f32.mrb[216].mxu0  ;;  %14631 = vmatpush3.bf16.msra.mxu0 %v16740_v41  ;;  %v16746_v41 = vld [vmem:[#allocation11 + $0x590] sm:$0xff]  }
 0x604   : > { %v18803_v32 = vadd.f32 %v13886_v17, %v18528_v27  ;;  %v13889_v2 = vadd.f32 %v13888_v60, %v13887_v48  ;;  %v16689_v48 = vld [vmem:[#allocation2 + $0x1b4] ss:$12 sps:$4 sm:$0xff]   ;;  %14632 = vmatprep.subr.bf16.mxu0 %v16744_v19 }
 0x605   : > { %4970 = vmatmul.mubr.bf16.gmra.mrb[208].mxu1 %v16678_v61  ;;  %v14323_v61 = vpop.f32.mrb[217].mxu0 }
 0x606   : > { %21088 = vst [vmem:[#allocation86_spill] sm:$0xff] %v18803_v32  ;;  %v18808_v49 = vadd.f32 %v13889_v2, %v18534_v3  ;;  %4977 = vmatprep.mubr.bf16.mxu1 %v16683_v26  ;;  %v18815_v2 = vadd.f32 %v14323_v61, %v14322_v13  ;;  %v14325_v52 = vpop.f32.mrb[218].mxu0 }
 0x607   : > { %v14326_v16 = vpop.f32.mrb[219].mxu0  ;;  %14633 = vmatpush3.bf16.msra.mxu0 %v16745_v47 }
 0x608   : > { %21090 = vst [vmem:[#allocation88_spill] sm:$0xff] %v18808_v49  ;;  %v13890_v42 = vpop.f32.mrb[136].mxu1  ;;  %21093 = vst [vmem:[#allocation91_spill] sm:$0xff] %v18815_v2  ;;  %v18820_v31 = vadd.f32 %v14326_v16, %v14325_v52  ;;  %14634 = vmatprep.subr.bf16.mxu0 %v16746_v41 }
 0x609   : > { %v13891_v30 = vpop.f32.mrb[137].mxu1 }
 0x60a   : > { %v13892_v27 = vadd.f32 %v13891_v30, %v13890_v42  ;;  %v13893_v17 = vpop.f32.mrb[138].mxu1  ;;  %21095 = vst [vmem:[#allocation93_spill] sm:$0xff] %v18820_v31  ;;  %v4388_v42 = vld [vmem:[#allocation2 + $0x1c8] sm:$0xff] }
 0x60b   : > { %v13894_v60 = vpop.f32.mrb[139].mxu1  ;;  %v14328_v61 = vpop.f32.mrb[220].mxu0  ;;  %v16752_v31 = vld [vmem:[#allocation11 + $0x558] sm:$0xff]  }
 0x60c   : > { %v18813_v3 = vadd.f32 %v13892_v27, %v18541_v22  ;;  %v13895_v26 = vadd.f32 %v13894_v60, %v13893_v17  ;;  %v16747_v22 = vld [vmem:[#allocation11 + $0x550] sm:$0xff]   ;;  %v16691_v17 = vld [vmem:[#allocation2 + $0x1b0] ss:$12 sps:$4 sm:$0xff]  }
 0x60d   : > { %4978 = vmatmul.mubr.bf16.gmra.mrb[212].mxu1 %v16685_v58  ;;  %v12981_v58 = vcombine.high %v4388_v42, %v18627_v33  ;;  %14635 = vmatpush3.bf16.msra.mxu0 %v16747_v22  ;;  %v16753_v22 = vld [vmem:[#allocation11 + $0x5a0] sm:$0xff]  }
 0x60e   : > { %21092 = vst [vmem:[#allocation90_spill] sm:$0xff] %v18813_v3  ;;  %v18818_v30 = vadd.f32 %v13895_v26, %v18547_v34  ;;  %4985 = vmatprep.mubr.bf16.mxu1 %v16689_v48  ;;  %v14329_v34 = vpop.f32.mrb[221].mxu0  ;;  %v16751_v26 = vld [vmem:[#allocation11 + $0x598] sm:$0xff]  }
 0x60f   : > { %v18826_v52 = vadd.f32 %v14329_v34, %v14328_v61  ;;  %v14331_v47 = vpop.f32.mrb[222].mxu0  ;;  %14636 = vmatprep.subr.bf16.mxu0 %v16751_v26 }
 0x610   : > { %21094 = vst [vmem:[#allocation92_spill] sm:$0xff] %v18818_v30  ;;  %v13896_v12 = vpop.f32.mrb[140].mxu1  ;;  %v14332_v2 = vpop.f32.mrb[223].mxu0 }
 0x611   : > { %v13897_v27 = vpop.f32.mrb[141].mxu1  ;;  %21097 = vst [vmem:[#allocation95_spill] sm:$0xff] %v18826_v52  ;;  %v18831_v41 = vadd.f32 %v14332_v2, %v14331_v47  ;;  %14637 = vmatpush3.bf16.msra.mxu0 %v16752_v31  ;;  %v16759_v47 = vld [vmem:[#allocation11 + $0x568] sm:$0xff]  }
 0x612   : > { %v13898_v13 = vadd.f32 %v13897_v27, %v13896_v12  ;;  %v13899_v60 = vpop.f32.mrb[142].mxu1  ;;  %14638 = vmatprep.subr.bf16.mxu0 %v16753_v22 }
 0x613   : > { %v13900_v19 = vpop.f32.mrb[143].mxu1  ;;  %21099 = vst [vmem:[#allocation97_spill] sm:$0xff] %v18831_v41 }
 0x614   : > { %v18824_v16 = vadd.f32 %v13898_v13, %v18555_v40  ;;  %v13901_v48 = vadd.f32 %v13900_v19, %v13899_v60  ;;  %v12980_v13 = vcombine.low %v4388_v42, %v18627_v33  ;;  %v16700_v19 = vld [vmem:[#allocation2 + $0x20] ss:$12 sps:$4 sm:$0xff]  }
 0x615   : > { %4986 = vmatmul.mubr.bf16.gmra.mrb[216].mxu1 %v16691_v17  ;;  %v14374_v17 = vpop.f32.mrb[224].mxu0  ;;  %14639 = vmatpush3.bf16.msra.mxu0 %v16754_v10  ;;  %v16760_v10 = vld [vmem:[#allocation11 + $0x5b0] sm:$0xff]  }
 0x616   : > { %21096 = vst [vmem:[#allocation94_spill] sm:$0xff] %v18824_v16  ;;  %v18829_v12 = vadd.f32 %v13901_v48, %v18561_v36  ;;  %4993 = vmatprep.mubr.bf16.mxu1 %v12981_v58  ;;  %v14375_v26 = vpop.f32.mrb[225].mxu0  ;;  %v16758_v36 = vld [vmem:[#allocation11 + $0x5a8] sm:$0xff]   ;;  %v18896_v16 = vld [vmem:[#allocation2 + $0x18c] sm:$0xff] }
 0x617   : > { %v18837_v31 = vadd.f32 %v14375_v26, %v14374_v17  ;;  %v14377_v48 = vpop.f32.mrb[226].mxu0  ;;  %14640 = vmatprep.subr.bf16.mxu0 %v16758_v36  ;;  %v16703_v17 = vld [vmem:[#allocation2 + $0x50] ss:$12 sps:$4 sm:$0xff]   ;;  %21112 = vst [vmem:[#allocation104_spill] sm:$0xff] %v18896_v16 }
 0x618   : > { %21098 = vst [vmem:[#allocation96_spill] sm:$0xff] %v18829_v12  ;;  %v13902_v27 = vpop.f32.mrb[144].mxu1  ;;  %v14378_v41 = vpop.f32.mrb[227].mxu0  ;;  %v16705_v26 = vld [vmem:[#allocation11 + $0x2c8] sm:$0xff]  }
 0x619   : > { %v13903_v40 = vpop.f32.mrb[145].mxu1  ;;  %v18842_v42 = vadd.f32 %v14378_v41, %v14377_v48  ;;  %14641 = vmatpush3.bf16.msra.mxu0 %v16759_v47  ;;  %v16766_v47 = vld [vmem:[#allocation11 + $0x578] sm:$0xff]  }
 0x61a   : > { %v13904_v60 = vadd.f32 %v13903_v40, %v13902_v27  ;;  %v13905_v61 = vpop.f32.mrb[146].mxu1  ;;  %v16761_v27 = vld [vmem:[#allocation11 + $0x570] sm:$0xff]   ;;  %14642 = vmatprep.subr.bf16.mxu0 %v16760_v10 }
 0x61b   : > { %v13906_v34 = vpop.f32.mrb[147].mxu1  ;;  %v16701_v40 = vld [vmem:[#allocation2 + $0x38] ss:$12 sps:$4 sm:$0xff]  }
 0x61c   : > { %v18835_v58 = vadd.f32 %v13904_v60, %v18569_v15  ;;  %v13907_v2 = vadd.f32 %v13906_v34, %v13905_v61  ;;  %v14380_v34 = vpop.f32.mrb[228].mxu0 }
 0x61d   : > { %4994 = vmatmul.mubr.bf16.gmra.mrb[220].mxu1 %v12980_v13  ;;  %14643 = vmatpush3.bf16.msra.mxu0 %v16761_v27  ;;  %v14381_v36 = vpop.f32.mrb[229].mxu0  ;;  %v16769_v27 = vld [vmem:[#allocation2 + $0x100] ss:$12 sps:$4 sm:$0xff]  }
 0x61e   : > { %21100 = vst [vmem:[#allocation98_spill] sm:$0xff] %v18835_v58  ;;  %v18840_v33 = vadd.f32 %v13907_v2, %v18573_v14  ;;  %15014 = vmatprep.mubr.bf16.mxu1 %v16700_v19  ;;  %v16765_v14 = vld [vmem:[#allocation11 + $0x5b8] sm:$0xff]   ;;  %v18847_v2 = vadd.f32 %v14381_v36, %v14380_v34  ;;  %v14383_v48 = vpop.f32.mrb[230].mxu0  ;;  %9213 = vmatprep.mubr.bf16.mxu0 %v16769_v27  ;;  %v16704_v34 = vld [vmem:[#allocation2 + $0x68] ss:$12 sps:$4 sm:$0xff]  }
 0x61f   : > { %v14384_v52 = vpop.f32.mrb[231].mxu0  ;;  %14644 = vmatprep.subr.bf16.mxu0 %v16765_v14  ;;  %v16706_v36 = vld [vmem:[#allocation2 + $0x98] ss:$12 sps:$4 sm:$0xff]  }
 0x620   : > { %21101 = vst [vmem:[#allocation99_spill] sm:$0xff] %v18840_v33  ;;  %v13908_v22 = vpop.f32.mrb[148].mxu1  ;;  %v16781_v58 = vld [vmem:[#allocation2 + $0x12c] ss:$12 sps:$4 sm:$0xff]  }
 0x621   : > { %v13909_v15 = vpop.f32.mrb[149].mxu1  ;;  %14645 = vmatpush3.bf16.msra.mxu0 %v16766_v47 }
 0x622   : > { %v13910_v60 = vadd.f32 %v13909_v15, %v13908_v22  ;;  %v13911_v61 = vpop.f32.mrb[150].mxu1  ;;  %v18853_v22 = vadd.f32 %v14384_v52, %v14383_v48  ;;  %v16767_v15 = vld [vmem:[#allocation2 + $0xfc] ss:$12 sps:$4 sm:$0xff]  }
 0x623   : > { %v13912_v13 = vpop.f32.mrb[151].mxu1 }
 0x624   : > { %v18845_v19 = vadd.f32 %v13910_v60, %v18578_v29  ;;  %v13913_v41 = vadd.f32 %v13912_v13, %v13911_v61  ;;  %v16708_v29 = vld [vmem:[#allocation11 + $0x2d0] sm:$0xff]   ;;  %9214 = vmatmul.mubr.bf16.vlgmr.msra.gmra.mrb[32].mxu0 %v16767_v15 }
 0x625   : > { %15015 = vmatmul.mubr.bf16.vlgmr.msra.gmra.mrb[64].mxu1 %v16701_v40  ;;  %v16773_v15 = vld [vmem:[#allocation2 + $0x118] ss:$12 sps:$4 sm:$0xff]  }
 0x626   : > { %21102 = vst [vmem:[#allocation100_spill] sm:$0xff] %v18845_v19  ;;  %v18850_v10 = vadd.f32 %v13913_v41, %v18580_v59  ;;  %15047 = vmatpush3.bf16.msra.mxu1 %v18690_v6  ;;  %15018 = vmatprep.mubr.bf16.mxu1 %v16703_v17  ;;  %v14386_v59 = vpop.f32.mrb[232].mxu0  ;;  %v16711_v6 = vld [vmem:[#allocation11 + $0x2d8] sm:$0xff]   ;;  %v16775_v19 = vld [vmem:[#allocation2 + $0x114] ss:$12 sps:$4 sm:$0xff]  }
 0x627   : > { %15048 = vmatprep.subr.bf16.mxu1 %v16705_v26  ;;  %v14387_v52 = vpop.f32.mrb[233].mxu0  ;;  %9221 = vmatprep.mubr.bf16.mxu0 %v16773_v15 }
 0x628   : > { %21103 = vst [vmem:[#allocation101_spill] sm:$0xff] %v18850_v10  ;;  %v13914_v60 = vpop.f32.mrb[152].mxu1  ;;  %v18858_v48 = vadd.f32 %v14387_v52, %v14386_v59  ;;  %v14389_v47 = vpop.f32.mrb[234].mxu0  ;;  %v21105_v10 = vld [vmem:[#allocation35_spill] sm:$0xff]  ;;  %v21107_v52 = vld [vmem:[#allocation36_spill] sm:$0xff] }
 0x629   : > { %v13915_v61 = vpop.f32.mrb[153].mxu1  ;;  %v14390_v27 = vpop.f32.mrb[235].mxu0 }
 0x62a   : > { %v13916_v40 = vadd.f32 %v13915_v61, %v13914_v60  ;;  %v13917_v13 = vpop.f32.mrb[154].mxu1  ;;  %15049 = vmatpush3.bf16.msra.mxu1 %v16705_v26  ;;  %v18863_v26 = vadd.f32 %v14390_v27, %v14389_v47  ;;  %v16714_v61 = vld [vmem:[#allocation11 + $0x2e0] sm:$0xff]  }
 0x62b   : > { %v13918_v14 = vpop.f32.mrb[155].mxu1  ;;  %15050 = vmatprep.subr.bf16.mxu1 %v16708_v29 }
 0x62c   : > { %v18856_v17 = vadd.f32 %v13916_v40, %v18584_v8  ;;  %v13919_v41 = vadd.f32 %v13918_v14, %v13917_v13  ;;  %v16707_v40 = vld [vmem:[#allocation2 + $0xb0] ss:$12 sps:$4 sm:$0xff]   ;;  %v16709_v14 = vld [vmem:[#allocation2 + $0xc8] ss:$12 sps:$4 sm:$0xff]   ;;  %9222 = vmatmul.mubr.bf16.gmra.mrb[36].mxu0 %v16775_v19 }
 0x62d   : > { %15019 = vmatmul.mubr.bf16.gmra.mrb[68].mxu1 %v16704_v34  ;;  %v14392_v34 = vpop.f32.mrb[236].mxu0  ;;  %v16779_v19 = vld [vmem:[#allocation2 + $0x130] ss:$12 sps:$4 sm:$0xff]  }
 0x62e   : > { %21104 = vst [vmem:[#allocation102_spill] sm:$0xff] %v18856_v17  ;;  %v18861_v60 = vadd.f32 %v13919_v41, %v21105_v10  ;;  %15022 = vmatprep.mubr.bf16.mxu1 %v16706_v36  ;;  %15051 = vmatpush3.bf16.msra.mxu1 %v16708_v29  ;;  %v16717_v36 = vld [vmem:[#allocation11 + $0x2e8] sm:$0xff]   ;;  %v14393_v29 = vpop.f32.mrb[237].mxu0  ;;  %v21109_v17 = vld [vmem:[#allocation37_spill] sm:$0xff] }
 0x62f   : > { %15052 = vmatprep.subr.bf16.mxu1 %v16711_v6  ;;  %v18868_v27 = vadd.f32 %v14393_v29, %v14392_v34  ;;  %9229 = vmatprep.mubr.bf16.mxu0 %v16779_v19  ;;  %v16715_v19 = vld [vmem:[#allocation2 + $0x140] ss:$12 sps:$4 sm:$0xff]  }
 0x630   : > { %21106 = vst [vmem:[#allocation35_spill] sm:$0xff] %v18861_v60  ;;  %v13920_v33 = vpop.f32.mrb[156].mxu1  ;;  %v14395_v60 = vpop.f32.mrb[238].mxu0 }
 0x631   : > { %v13921_v8 = vpop.f32.mrb[157].mxu1  ;;  %v14396_v15 = vpop.f32.mrb[239].mxu0 }
 0x632   : > { %v13922_v13 = vadd.f32 %v13921_v8, %v13920_v33  ;;  %v13923_v59 = vpop.f32.mrb[158].mxu1  ;;  %15053 = vmatpush3.bf16.msra.mxu1 %v16711_v6  ;;  %v18873_v6 = vadd.f32 %v14396_v15, %v14395_v60  ;;  %v16720_v8 = vld [vmem:[#allocation11 + $0x2f0] sm:$0xff]  }
 0x633   : > { %v13924_v10 = vpop.f32.mrb[159].mxu1  ;;  %15054 = vmatprep.subr.bf16.mxu1 %v16714_v61  ;;  %v18877_v60 = vld [vmem:[#allocation2 + $0x144] sm:$0xff] }
 0x634   : > { %v18866_v41 = vadd.f32 %v13922_v13, %v21107_v52  ;;  %v13925_v47 = vadd.f32 %v13924_v10, %v13923_v59  ;;  %v16710_v13 = vld [vmem:[#allocation2 + $0xe0] ss:$12 sps:$4 sm:$0xff]   ;;  %v16712_v52 = vld [vmem:[#allocation2 + $0x110] ss:$12 sps:$4 sm:$0xff]   ;;  %v14398_v59 = vpop.f32.mrb[240].mxu0  ;;  %9230 = vmatmul.mubr.bf16.gmra.mrb[40].mxu0 %v16781_v58 }
 0x635   : > { %15023 = vmatmul.mubr.bf16.gmra.mrb[72].mxu1 %v16707_v40  ;;  %v16723_v40 = vld [vmem:[#allocation11 + $0x2f8] sm:$0xff]   ;;  %v14399_v34 = vpop.f32.mrb[241].mxu0  ;;  %v16713_v15 = vld [vmem:[#allocation2 + $0x128] ss:$12 sps:$4 sm:$0xff]  }
 0x636   : > { %21108 = vst [vmem:[#allocation36_spill] sm:$0xff] %v18866_v41  ;;  %v18871_v33 = vadd.f32 %v13925_v47, %v21109_v17  ;;  %15026 = vmatprep.mubr.bf16.mxu1 %v16709_v14  ;;  %15055 = vmatpush3.bf16.msra.mxu1 %v16714_v61  ;;  %v18875_v10 = vadd.f32 %v14399_v34, %v14398_v59  ;;  %v14401_v17 = vpop.f32.mrb[242].mxu0  ;;  %v8682_v14 = vld [vmem:[#allocation2 + $0x150] sm:$0xff] }
 0x637   : > { %15056 = vmatprep.subr.bf16.mxu1 %v16717_v36  ;;  %v14402_v61 = vpop.f32.mrb[243].mxu0  ;;  %v13305_v47 = vcombine.high %v18877_v60, %v8682_v14  ;;  %v13304_v58 = vcombine.low %v18877_v60, %v8682_v14 }
 0x638   : > { %21110 = vst [vmem:[#allocation37_spill] sm:$0xff] %v18871_v33  ;;  %v18879_v29 = vadd.f32 %v14402_v61, %v14401_v17  ;;  %v8684_v17 = vld [vmem:[#allocation2 + $0x174] sm:$0xff]  ;;  %v18888_v61 = vld [vmem:[#allocation2 + $0x180] sm:$0xff] }
 0x639   : > { %9237 = vmatprep.mubr.bf16.mxu0 %v13305_v47  ;;  %21111 = vst [vmem:[#allocation103_spill] sm:$0xff] %v18888_v61  ;;  %v13308_v14 = vcombine.high %v8684_v17, %v18888_v61  ;;  %v16716_v47 = vld [vmem:[#allocation2 + $0x158] ss:$12 sps:$4 sm:$0xff]  }
 0x63a   : > { %15057 = vmatpush3.bf16.msra.mxu1 %v16717_v36  ;;  %v18882_v36 = vld [vmem:[#allocation11 + $0x380] sm:$0xff]  }
 0x63b   : > { %15058 = vmatprep.subr.bf16.mxu1 %v16720_v8 }
 0x63c   : > { %9238 = vmatmul.mubr.bf16.gmra.mrb[44].mxu0 %v13304_v58  ;;  %v16718_v58 = vld [vmem:[#allocation2 + $0x188] ss:$12 sps:$4 sm:$0xff]  }
 0x63d   : > { %15027 = vmatmul.mubr.bf16.gmra.mrb[76].mxu1 %v16710_v13  ;;  %v14404_v13 = vpop.f32.mrb[244].mxu0  ;;  %9245 = vmatprep.mubr.bf16.mxu0 %v13308_v14  ;;  %v16719_v14 = vld [vmem:[#allocation2 + $0x1a0] ss:$12 sps:$4 sm:$0xff]  }
 0x63e   : > { %15030 = vmatprep.mubr.bf16.mxu1 %v16712_v52  ;;  %15059 = vmatpush3.bf16.msra.mxu1 %v16720_v8  ;;  %v14405_v59 = vpop.f32.mrb[245].mxu0 }
 0x63f   : > { %15060 = vmatprep.subr.bf16.mxu1 %v16723_v40  ;;  %v18886_v52 = vadd.f32 %v14405_v59, %v14404_v13  ;;  %v14407_v8 = vpop.f32.mrb[246].mxu0 }
 0x640   : > { %v14408_v34 = vpop.f32.mrb[247].mxu0 }
 0x641   : > { %v18890_v33 = vadd.f32 %v14408_v34, %v14407_v8 }
 0x642   : > { %15061 = vmatpush3.bf16.msra.mxu1 %v16723_v40  ;;  %v13307_v40 = vcombine.low %v8684_v17, %v18888_v61 }
 0x643   : > { %15094 = vmatprep.subr.bf16.mxu1 %v18882_v36  ;;  %v14410_v41 = vpop.f32.mrb[248].mxu0 }
 0x644   : > { %9246 = vmatmul.mubr.bf16.gmra.mrb[48].mxu0 %v13307_v40  ;;  %v14411_v13 = vpop.f32.mrb[249].mxu0 }
 0x645   : > { %15031 = vmatmul.mubr.bf16.gmra.mrb[80].mxu1 %v16713_v15  ;;  %v18894_v59 = vadd.f32 %v14411_v13, %v14410_v41  ;;  %v14413_v15 = vpop.f32.mrb[250].mxu0  ;;  %v16721_v41 = vld [vmem:[#allocation2 + $0x1b8] ss:$12 sps:$4 sm:$0xff]  }
 0x646   : > { %15034 = vmatprep.mubr.bf16.mxu1 %v16715_v19  ;;  %v14414_v12 = vpop.f32.mrb[251].mxu0  ;;  %v18898_v19 = vld [vmem:[#allocation2 + $0x198] sm:$0xff] }
 0x647   : > { %21113 = vst [vmem:[#allocation105_spill] sm:$0xff] %v18898_v19  ;;  %v18900_v8 = vadd.f32 %v14414_v12, %v14413_v15  ;;  %v13311_v34 = vcombine.high %v18896_v16, %v18898_v19  ;;  %v13310_v17 = vcombine.low %v18896_v16, %v18898_v19  ;;  %v18910_v12 = vld [vmem:[#allocation2 + $0x1b0] sm:$0xff] }
 0x648   : > { %21115 = vst [vmem:[#allocation107_spill] sm:$0xff] %v18910_v12 }
 0x649   : > { %9253 = vmatprep.mubr.bf16.mxu0 %v13311_v34 }
 0x64b   : > { %v14416_v40 = vpop.f32.mrb[252].mxu0 }
 0x64c   : > { %9254 = vmatmul.mubr.bf16.gmra.mrb[52].mxu0 %v13310_v17  ;;  %v16722_v17 = vld [vmem:[#allocation2 + $0x1d0] ss:$12 sps:$4 sm:$0xff]  }
 0x64d   : > { %15035 = vmatmul.mubr.bf16.gmra.mrb[84].mxu1 %v16716_v47  ;;  %v14417_v47 = vpop.f32.mrb[253].mxu0 }
 0x64e   : > { %15038 = vmatprep.mubr.bf16.mxu1 %v16718_v58  ;;  %v18906_v13 = vadd.f32 %v14417_v47, %v14416_v40  ;;  %v14419_v23 = vpop.f32.mrb[254].mxu0  ;;  %v18908_v58 = vld [vmem:[#allocation2 + $0x1a4] sm:$0xff]  ;;  %v16724_v40 = vld [vmem:[#allocation2 + $0x80] ss:$12 sps:$4 sm:$0xff]  }
 0x64f   : > { %v14420_v28 = vpop.f32.mrb[255].mxu0  ;;  %21114 = vst [vmem:[#allocation106_spill] sm:$0xff] %v18908_v58  ;;  %v13314_v34 = vcombine.high %v18908_v58, %v18910_v12  ;;  %v13313_v30 = vcombine.low %v18908_v58, %v18910_v12 }
 0x650   : > { %v18912_v15 = vadd.f32 %v14420_v28, %v14419_v23  ;;  %v18922_v28 = vld [vmem:[#allocation2 + $0x1c8] sm:$0xff] }
 0x651   : > { %9261 = vmatprep.mubr.bf16.mxu0 %v13314_v34  ;;  %21119 = vst [vmem:[#allocation111_spill] sm:$0xff] %v18922_v28 }
 0x652   : > { %21116 = vst [vmem:[#allocation108_spill] sm:$0xff] %v18912_v15  ;;  %v18972_v15 = vld [vmem:[#allocation2 + $0x240] sm:$0xff] }
 0x653   : > { %v14422_v47 = vpop.f32.mrb[0].mxu0 }
 0x654   : > { %9262 = vmatmul.mubr.bf16.gmra.mrb[56].mxu0 %v13313_v30  ;;  %v16725_v30 = vld [vmem:[#allocation2 + $0x98] ss:$12 sps:$4 sm:$0xff]  }
 0x655   : > { %15039 = vmatmul.mubr.bf16.gmra.mrb[88].mxu1 %v16719_v14  ;;  %v14423_v14 = vpop.f32.mrb[1].mxu0 }
 0x656   : > { %15042 = vmatprep.mubr.bf16.mxu1 %v16721_v41  ;;  %v18918_v19 = vadd.f32 %v14423_v14, %v14422_v47  ;;  %v14425_v3 = vpop.f32.mrb[2].mxu0  ;;  %v18920_v41 = vld [vmem:[#allocation2 + $0x1bc] sm:$0xff] }
 0x657   : > { %v14426_v49 = vpop.f32.mrb[3].mxu0  ;;  %21118 = vst [vmem:[#allocation110_spill] sm:$0xff] %v18920_v41  ;;  %v13317_v34 = vcombine.high %v18920_v41, %v18922_v28  ;;  %v13316_v12 = vcombine.low %v18920_v41, %v18922_v28  ;;  %v16727_v47 = vld [vmem:[#allocation2 + $0xb0] ss:$12 sps:$4 sm:$0xff]   ;;  %v16732_v28 = vld [vmem:[#allocation11 + $0x390] sm:$0xff]  }
 0x658   : > { %21117 = vst [vmem:[#allocation109_spill] sm:$0xff] %v18918_v19  ;;  %v18924_v23 = vadd.f32 %v14426_v49, %v14425_v3  ;;  %v8700_v49 = vld [vmem:[#allocation2 + $0x1ec] sm:$0xff]  ;;  %v18932_v3 = vld [vmem:[#allocation2 + $0x1f8] sm:$0xff] }
 0x659   : > { %9269 = vmatprep.mubr.bf16.mxu0 %v13317_v34  ;;  %21122 = vst [vmem:[#allocation114_spill] sm:$0xff] %v18932_v3  ;;  %v13320_v34 = vcombine.high %v8700_v49, %v18932_v3  ;;  %v16735_v41 = vld [vmem:[#allocation11 + $0x398] sm:$0xff]  }
 0x65a   : > { %21120 = vst [vmem:[#allocation112_spill] sm:$0xff] %v18924_v23 }
 0x65b   : > { %v14428_v14 = vpop.f32.mrb[4].mxu0 }
 0x65c   : > { %9270 = vmatmul.mubr.bf16.gmra.mrb[60].mxu0 %v13316_v12  ;;  %v14429_v58 = vpop.f32.mrb[5].mxu0  ;;  %v13319_v12 = vcombine.low %v8700_v49, %v18932_v3  ;;  %v16743_v3 = vld [vmem:[#allocation11 + $0x3a8] sm:$0xff]  }
 0x65d   : > { %15043 = vmatmul.mubr.bf16.gmra.mrb[92].mxu1 %v16722_v17  ;;  %v16729_v17 = vld [vmem:[#allocation11 + $0x388] sm:$0xff]   ;;  %v18930_v61 = vadd.f32 %v14429_v58, %v14428_v14  ;;  %v14431_v16 = vpop.f32.mrb[6].mxu0  ;;  %9277 = vmatprep.mubr.bf16.mxu0 %v13320_v34  ;;  %v16728_v58 = vld [vmem:[#allocation2 + $0xc8] ss:$12 sps:$4 sm:$0xff]   ;;  %v16730_v14 = vld [vmem:[#allocation2 + $0xf8] ss:$12 sps:$4 sm:$0xff]  }
 0x65e   : > { %15062 = vmatprep.mubr.bf16.mxu1 %v16724_v40  ;;  %v14432_v40 = vpop.f32.mrb[7].mxu0  ;;  %v16738_v34 = vld [vmem:[#allocation11 + $0x3a0] sm:$0xff]  }
 0x65f   : > { %21121 = vst [vmem:[#allocation113_spill] sm:$0xff] %v18930_v61  ;;  %v18935_v23 = vadd.f32 %v14432_v40, %v14431_v16  ;;  %v18943_v40 = vld [vmem:[#allocation2 + $0x210] sm:$0xff] }
 0x660   : > { %21126 = vst [vmem:[#allocation118_spill] sm:$0xff] %v18943_v40 }
 0x661   : > { %21123 = vst [vmem:[#allocation115_spill] sm:$0xff] %v18935_v23  ;;  %v16736_v23 = vld [vmem:[#allocation2 + $0x170] ss:$12 sps:$4 sm:$0xff]  }
 0x664   : > { %9278 = vmatmul.mubr.bf16.gmra.mrb[64].mxu0 %v13319_v12  ;;  %v16731_v12 = vld [vmem:[#allocation2 + $0x110] ss:$12 sps:$4 sm:$0xff]  }
 0x665   : > { %15063 = vmatmul.mubr.bf16.vlgmr.msra.gmra.mrb[64].mxu1 %v16725_v30  ;;  %v14434_v30 = vpop.f32.mrb[8].mxu0 }
 0x666   : > { %15095 = vmatpush3.bf16.msra.mxu1 %v18882_v36  ;;  %15066 = vmatprep.mubr.bf16.mxu1 %v16727_v47  ;;  %v14435_v61 = vpop.f32.mrb[9].mxu0  ;;  %v18941_v47 = vld [vmem:[#allocation2 + $0x204] sm:$0xff] }
 0x667   : > { %15096 = vmatprep.subr.bf16.mxu1 %v16729_v17  ;;  %v18939_v32 = vadd.f32 %v14435_v61, %v14434_v30  ;;  %v14437_v36 = vpop.f32.mrb[10].mxu0  ;;  %21125 = vst [vmem:[#allocation117_spill] sm:$0xff] %v18941_v47  ;;  %v13322_v61 = vcombine.low %v18941_v47, %v18943_v40 }
 0x668   : > { %v14438_v16 = vpop.f32.mrb[11].mxu0 }
 0x669   : > { %21124 = vst [vmem:[#allocation116_spill] sm:$0xff] %v18939_v32  ;;  %v18945_v49 = vadd.f32 %v14438_v16, %v14437_v36  ;;  %v18955_v32 = vld [vmem:[#allocation2 + $0x228] sm:$0xff] }
 0x66a   : > { %15097 = vmatpush3.bf16.msra.mxu1 %v16729_v17  ;;  %v13323_v17 = vcombine.high %v18941_v47, %v18943_v40  ;;  %21130 = vst [vmem:[#allocation122_spill] sm:$0xff] %v18955_v32  ;;  %v16734_v40 = vld [vmem:[#allocation2 + $0x140] ss:$12 sps:$4 sm:$0xff]  }
 0x66b   : > { %15098 = vmatprep.subr.bf16.mxu1 %v16732_v28  ;;  %21127 = vst [vmem:[#allocation119_spill] sm:$0xff] %v18945_v49  ;;  %v14440_v30 = vpop.f32.mrb[12].mxu0  ;;  %v18953_v49 = vld [vmem:[#allocation2 + $0x21c] sm:$0xff] }
 0x66c   : > { %9285 = vmatprep.mubr.bf16.mxu0 %v13323_v17  ;;  %21129 = vst [vmem:[#allocation121_spill] sm:$0xff] %v18953_v49 }
 0x66d   : > { %15067 = vmatmul.mubr.bf16.gmra.mrb[68].mxu1 %v16728_v58  ;;  %v16733_v58 = vld [vmem:[#allocation2 + $0x128] ss:$12 sps:$4 sm:$0xff]   ;;  %9286 = vmatmul.mubr.bf16.gmra.mrb[68].mxu0 %v13322_v61 }
 0x66e   : > { %15070 = vmatprep.mubr.bf16.mxu1 %v16730_v14  ;;  %15099 = vmatpush3.bf16.msra.mxu1 %v16732_v28  ;;  %v14441_v14 = vpop.f32.mrb[13].mxu0  ;;  %v16750_v61 = vld [vmem:[#allocation11 + $0x3b0] sm:$0xff]  }
 0x66f   : > { %15100 = vmatprep.subr.bf16.mxu1 %v16735_v41  ;;  %v18951_v28 = vadd.f32 %v14441_v14, %v14440_v30  ;;  %v14443_v36 = vpop.f32.mrb[14].mxu0  ;;  %v13325_v30 = vcombine.low %v18953_v49, %v18955_v32 }
 0x670   : > { %v14444_v16 = vpop.f32.mrb[15].mxu0 }
 0x671   : > { %21128 = vst [vmem:[#allocation120_spill] sm:$0xff] %v18951_v28  ;;  %v18957_v17 = vadd.f32 %v14444_v16, %v14443_v36  ;;  %v16757_v36 = vld [vmem:[#allocation11 + $0x3b8] sm:$0xff]  }
 0x672   : > { %15101 = vmatpush3.bf16.msra.mxu1 %v16735_v41  ;;  %v13326_v41 = vcombine.high %v18953_v49, %v18955_v32  ;;  %v18966_v49 = vld [vmem:[#allocation2 + $0x234] sm:$0xff] }
 0x673   : > { %15102 = vmatprep.subr.bf16.mxu1 %v16738_v34  ;;  %21131 = vst [vmem:[#allocation123_spill] sm:$0xff] %v18957_v17 }
 0x674   : > { %9293 = vmatprep.mubr.bf16.mxu0 %v13326_v41 }
 0x675   : > { %15071 = vmatmul.mubr.bf16.gmra.mrb[72].mxu1 %v16731_v12  ;;  %9294 = vmatmul.mubr.bf16.gmra.mrb[72].mxu0 %v13325_v30 }
 0x676   : > { %15074 = vmatprep.mubr.bf16.mxu1 %v16733_v58  ;;  %15103 = vmatpush3.bf16.msra.mxu1 %v16738_v34  ;;  %v14446_v58 = vpop.f32.mrb[16].mxu0 }
 0x677   : > { %15104 = vmatprep.subr.bf16.mxu1 %v16743_v3  ;;  %v14447_v16 = vpop.f32.mrb[17].mxu0 }
 0x678   : > { %v13966_v14 = vpop.f32.mrb[160].mxu1  ;;  %v18964_v11 = vadd.f32 %v14447_v16, %v14446_v58  ;;  %v14449_v32 = vpop.f32.mrb[18].mxu0 }
 0x679   : > { %v13967_v12 = vpop.f32.mrb[161].mxu1  ;;  %v14450_v41 = vpop.f32.mrb[19].mxu0 }
 0x67a   : > { %v13968_v47 = vadd.f32 %v13967_v12, %v13966_v14  ;;  %v13969_v28 = vpop.f32.mrb[162].mxu1  ;;  %15105 = vmatpush3.bf16.msra.mxu1 %v16743_v3  ;;  %v21132_v14 = vld [vmem:[#allocation38_spill] sm:$0xff]  ;;  %v18970_v30 = vadd.f32 %v14450_v41, %v14449_v32 }
 0x67b   : > { %v13970_v34 = vpop.f32.mrb[163].mxu1  ;;  %15106 = vmatprep.subr.bf16.mxu1 %v16750_v61  ;;  %21133 = vst [vmem:[#allocation38_spill] sm:$0xff] %v18972_v15  ;;  %v14452_v16 = vpop.f32.mrb[20].mxu0 }
 0x67c   : > { %v15360_v17 = vadd.f32 %v18682_v54, %v13968_v47  ;;  %v13971_v19 = vadd.f32 %v13970_v34, %v13969_v28  ;;  %v18974_v54 = vld [vmem:[#allocation11 + $0x440] sm:$0xff]   ;;  %v13329_v47 = vcombine.high %v18966_v49, %v18972_v15  ;;  %v21134_v28 = vld [vmem:[#allocation39_spill] sm:$0xff] }
 0x67d   : > { %15075 = vmatmul.mubr.bf16.gmra.mrb[76].mxu1 %v16734_v40  ;;  %v13328_v40 = vcombine.low %v18966_v49, %v18972_v15  ;;  %v16741_v34 = vld [vmem:[#allocation2 + $0x1a0] ss:$12 sps:$4 sm:$0xff]  }
 0x67e   : > { %v15361_v12 = vadd.f32 %v15360_v17, %v21132_v14  ;;  %v15378_v3 = vadd.f32 %v18688_v25, %v13971_v19  ;;  %15078 = vmatprep.mubr.bf16.mxu1 %v16736_v23  ;;  %15107 = vmatpush3.bf16.msra.mxu1 %v16750_v61  ;;  %v16737_v23 = vld [vmem:[#allocation2 + $0x188] ss:$12 sps:$4 sm:$0xff]  }
 0x67f   : > { %15108 = vmatprep.subr.bf16.mxu1 %v16757_v36  ;;  %9301 = vmatprep.mubr.bf16.mxu0 %v13329_v47 }
 0x680   : > { %v15379_v58 = vadd.f32 %v15378_v3, %v21134_v28  ;;  %v13972_v17 = vpop.f32.mrb[164].mxu1  ;;  %v15362_v25 = vadd.f32 %v15361_v12, %v18692_v55  ;;  %9302 = vmatmul.mubr.bf16.gmra.mrb[76].mxu0 %v13328_v40  ;;  %v14453_v3 = vpop.f32.mrb[21].mxu0  ;;  %v8716_v40 = vld [vmem:[#allocation2 + $0x264] sm:$0xff] }
 0x681   : > { %v13973_v19 = vpop.f32.mrb[165].mxu1  ;;  %v18988_v28 = vadd.f32 %v14453_v3, %v14452_v16  ;;  %v14455_v47 = vpop.f32.mrb[22].mxu0  ;;  %v16748_v3 = vld [vmem:[#allocation2 + $0x1e8] ss:$12 sps:$4 sm:$0xff]  }
 0x682   : > { %v13974_v32 = vadd.f32 %v13973_v19, %v13972_v17  ;;  %v13975_v61 = vpop.f32.mrb[166].mxu1  ;;  %15109 = vmatpush3.bf16.msra.mxu1 %v16757_v36  ;;  %v18983_v41 = vadd.f32 %v15362_v25, %v18837_v31  ;;  %v15380_v14 = vadd.f32 %v15379_v58, %v18694_v51  ;;  %v14456_v36 = vpop.f32.mrb[23].mxu0  ;;  %v18997_v25 = vld [vmem:[#allocation2 + $0x270] sm:$0xff] }
 0x683   : > { %v13976_v15 = vpop.f32.mrb[167].mxu1  ;;  %15142 = vmatprep.subr.bf16.mxu1 %v18974_v54  ;;  %v18995_v58 = vadd.f32 %v14456_v36, %v14455_v47  ;;  %v13332_v19 = vcombine.high %v8716_v40, %v18997_v25 }
 0x684   : > { %v15351_v55 = vadd.f32 %v18700_v21, %v13974_v32  ;;  %v13977_v12 = vadd.f32 %v13976_v15, %v13975_v61  ;;  %v18991_v17 = vadd.f32 %v15380_v14, %v18842_v42  ;;  %v16837_v21 = vld [vmem:[#allocation11 + $0x640] sm:$0xff]   ;;  %v13331_v32 = vcombine.low %v8716_v40, %v18997_v25  ;;  %v21135_v42 = vld [vmem:[#allocation40_spill] sm:$0xff] }
 0x685   : > { %15079 = vmatmul.mubr.bf16.gmra.mrb[80].mxu1 %v16737_v23  ;;  %v16838_v15 = vld [vmem:[#allocation11 + $0x600] sm:$0xff]   ;;  %14766 = vmatprep.subr.bf16.mxu0 %v16837_v21 }
 0x686   : > { %v15352_v31 = vadd.f32 %v15351_v55, %v18609_v44  ;;  %v15369_v51 = vadd.f32 %v18707_v1, %v13977_v12  ;;  %15082 = vmatprep.mubr.bf16.mxu1 %v16741_v34  ;;  %v16742_v14 = vld [vmem:[#allocation2 + $0x1b8] ss:$12 sps:$4 sm:$0xff]   ;;  %9309 = vmatprep.mubr.bf16.mxu0 %v13332_v19  ;;  %v14458_v55 = vpop.f32.mrb[24].mxu0 }
 0x687   : > { %14767 = vmatpush3.bf16.msra.mxu0 %v16838_v15  ;;  %v14459_v40 = vpop.f32.mrb[25].mxu0  ;;  %v16844_v15 = vld [vmem:[#allocation11 + $0x608] sm:$0xff]  }
 0x688   : > { %v15370_v61 = vadd.f32 %v15369_v51, %v21135_v42  ;;  %v13978_v23 = vpop.f32.mrb[168].mxu1  ;;  %v15353_v16 = vadd.f32 %v15352_v31, %v18697_v63  ;;  %9310 = vmatmul.mubr.bf16.gmra.mrb[80].mxu0 %v13331_v32  ;;  %v16842_v51 = vld [vmem:[#allocation11 + $0x648] sm:$0xff]   ;;  %v19008_v31 = vadd.f32 %v14459_v40, %v14458_v55  ;;  %v14461_v19 = vpop.f32.mrb[26].mxu0 }
 0x689   : > { %v13979_v44 = vpop.f32.mrb[169].mxu1  ;;  %v14462_v32 = vpop.f32.mrb[27].mxu0  ;;  %14768 = vmatprep.subr.bf16.mxu0 %v16842_v51 }
 0x68a   : > { %v13980_v1 = vadd.f32 %v13979_v44, %v13978_v23  ;;  %v13981_v34 = vpop.f32.mrb[170].mxu1  ;;  %v19004_v12 = vadd.f32 %v15353_v16, %v18847_v2  ;;  %v15371_v47 = vadd.f32 %v15370_v61, %v18704_v38  ;;  %v19013_v2 = vld [vmem:[#allocation2 + $0x27c] sm:$0xff]  ;;  %v21136_v23 = vld [vmem:[#allocation41_spill] sm:$0xff]  ;;  %v19017_v16 = vadd.f32 %v14462_v32, %v14461_v19  ;;  %v16847_v44 = vld [vmem:[#allocation11 + $0x650] sm:$0xff]  }
 0x68b   : > { %v13982_v36 = vpop.f32.mrb[171].mxu1  ;;  %14769 = vmatpush3.bf16.msra.mxu0 %v16844_v15  ;;  %v16755_v19 = vld [vmem:[#allocation2 + $0x218] ss:$12 sps:$4 sm:$0xff]   ;;  %v14464_v15 = vpop.f32.mrb[28].mxu0 }
 0x68c   : > { %v15396_v21 = vadd.f32 %v18716_v43, %v13980_v1  ;;  %v13983_v63 = vadd.f32 %v13982_v36, %v13981_v34  ;;  %v19011_v42 = vadd.f32 %v15371_v47, %v18853_v22  ;;  %v19019_v43 = vld [vmem:[#allocation2 + $0x288] sm:$0xff]  ;;  %v21137_v34 = vld [vmem:[#allocation42_spill] sm:$0xff]  ;;  %14770 = vmatprep.subr.bf16.mxu0 %v16847_v44 }
 0x68d   : > { %15083 = vmatmul.mubr.bf16.gmra.mrb[84].mxu1 %v16742_v14  ;;  %v13335_v22 = vcombine.high %v19013_v2, %v19019_v43  ;;  %v13334_v14 = vcombine.low %v19013_v2, %v19019_v43  ;;  %v16848_v1 = vld [vmem:[#allocation11 + $0x610] sm:$0xff]  }
 0x68e   : > { %v15397_v38 = vadd.f32 %v15396_v21, %v21136_v23  ;;  %v15414_v61 = vadd.f32 %v18723_v37, %v13983_v63  ;;  %15086 = vmatprep.mubr.bf16.mxu1 %v16748_v3  ;;  %v16749_v3 = vld [vmem:[#allocation2 + $0x200] ss:$12 sps:$4 sm:$0xff]   ;;  %v14465_v23 = vpop.f32.mrb[29].mxu0 }
 0x68f   : > { %9317 = vmatprep.mubr.bf16.mxu0 %v13335_v22  ;;  %14771 = vmatpush3.bf16.msra.mxu0 %v16848_v1  ;;  %v19035_v22 = vadd.f32 %v14465_v23, %v14464_v15 }
 0x690   : > { %v15415_v55 = vadd.f32 %v15414_v61, %v21137_v34  ;;  %v15398_v47 = vadd.f32 %v15397_v38, %v18709_v46  ;;  %v13984_v36 = vpop.f32.mrb[172].mxu1  ;;  %9318 = vmatmul.mubr.bf16.gmra.mrb[84].mxu0 %v13334_v14  ;;  %v16852_v61 = vld [vmem:[#allocation11 + $0x658] sm:$0xff]   ;;  %v21138_v14 = vld [vmem:[#allocation43_spill] sm:$0xff] }
 0x691   : > { %v13985_v37 = vpop.f32.mrb[173].mxu1  ;;  %v16854_v34 = vld [vmem:[#allocation11 + $0x618] sm:$0xff]   ;;  %14772 = vmatprep.subr.bf16.mxu0 %v16852_v61 }
 0x692   : > { %v19028_v40 = vadd.f32 %v15398_v47, %v18858_v48  ;;  %v13986_v51 = vadd.f32 %v13985_v37, %v13984_v36  ;;  %v15416_v21 = vadd.f32 %v15415_v55, %v18711_v24  ;;  %v13987_v63 = vpop.f32.mrb[174].mxu1  ;;  %v14467_v48 = vpop.f32.mrb[30].mxu0  ;;  %v19037_v55 = vld [vmem:[#allocation2 + $0x294] sm:$0xff] }
 0x693   : > { %v13988_v32 = vpop.f32.mrb[175].mxu1  ;;  %v14468_v24 = vpop.f32.mrb[31].mxu0  ;;  %14773 = vmatpush3.bf16.msra.mxu0 %v16854_v34 }
 0x694   : > { %v15387_v46 = vadd.f32 %v18732_v57, %v13986_v51  ;;  %v19033_v38 = vadd.f32 %v15416_v21, %v18863_v26  ;;  %v13989_v44 = vadd.f32 %v13988_v32, %v13987_v63  ;;  %v19041_v36 = vadd.f32 %v14468_v24, %v14467_v48  ;;  %v19043_v57 = vld [vmem:[#allocation2 + $0x2a0] sm:$0xff]  ;;  %v16857_v26 = vld [vmem:[#allocation11 + $0x660] sm:$0xff]   ;;  %v21139_v21 = vld [vmem:[#allocation44_spill] sm:$0xff] }
 0x695   : > { %15087 = vmatmul.mubr.bf16.gmra.mrb[88].mxu1 %v16749_v3  ;;  %v13338_v37 = vcombine.high %v19037_v55, %v19043_v57  ;;  %v13337_v3 = vcombine.low %v19037_v55, %v19043_v57  ;;  %v16858_v51 = vld [vmem:[#allocation11 + $0x620] sm:$0xff]   ;;  %14774 = vmatprep.subr.bf16.mxu0 %v16857_v26  ;;  %v16862_v24 = vld [vmem:[#allocation11 + $0x668] sm:$0xff]  }
 0x696   : > { %v15388_v47 = vadd.f32 %v15387_v46, %v21138_v14  ;;  %v15405_v1 = vadd.f32 %v18739_v0, %v13989_v44  ;;  %15090 = vmatprep.mubr.bf16.mxu1 %v16755_v19  ;;  %v16756_v19 = vld [vmem:[#allocation2 + $0x230] ss:$12 sps:$4 sm:$0xff]   ;;  %v16762_v48 = vld [vmem:[#allocation2 + $0x8c] ss:$12 sps:$4 sm:$0xff]  }
 0x697   : > { %9325 = vmatprep.mubr.bf16.mxu0 %v13338_v37  ;;  %14775 = vmatpush3.bf16.msra.mxu0 %v16858_v51  ;;  %v21140_v26 = vld [vmem:[#allocation45_spill] sm:$0xff]  ;;  %v16867_v51 = vld [vmem:[#allocation11 + $0x670] sm:$0xff]  }
 0x698   : > { %v15406_v63 = vadd.f32 %v15405_v1, %v21139_v21  ;;  %v15389_v15 = vadd.f32 %v15388_v47, %v18713_v56  ;;  %v13990_v32 = vpop.f32.mrb[176].mxu1  ;;  %9326 = vmatmul.mubr.bf16.gmra.mrb[88].mxu0 %v13337_v3  ;;  %v16864_v1 = vld [vmem:[#allocation11 + $0x628] sm:$0xff]   ;;  %14776 = vmatprep.subr.bf16.mxu0 %v16862_v24  ;;  %v16868_v21 = vld [vmem:[#allocation11 + $0x630] sm:$0xff]  }
 0x699   : > { %v13991_v0 = vpop.f32.mrb[177].mxu1  ;;  %v19063_v3 = vld [vmem:[#allocation2 + $0x2b8] sm:$0xff] }
 0x69a   : > { %v19052_v23 = vadd.f32 %v15389_v15, %v18868_v27  ;;  %v13992_v61 = vadd.f32 %v13991_v0, %v13990_v32  ;;  %v15407_v46 = vadd.f32 %v15406_v63, %v18720_v50  ;;  %v13993_v44 = vpop.f32.mrb[178].mxu1  ;;  %v19059_v27 = vld [vmem:[#allocation2 + $0x2ac] sm:$0xff]  ;;  %v21141_v63 = vld [vmem:[#allocation46_spill] sm:$0xff] }
 0x69b   : > { %v13994_v34 = vpop.f32.mrb[179].mxu1  ;;  %14777 = vmatpush3.bf16.msra.mxu0 %v16864_v1 }
 0x69c   : > { %v15432_v14 = vadd.f32 %v18748_v7, %v13992_v61  ;;  %v19057_v56 = vadd.f32 %v15407_v46, %v18873_v6  ;;  %v13995_v47 = vadd.f32 %v13994_v34, %v13993_v44  ;;  %v13341_v7 = vcombine.high %v19059_v27, %v19063_v3  ;;  %14778 = vmatprep.subr.bf16.mxu0 %v16867_v51  ;;  %v16770_v34 = vld [vmem:[#allocation2 + $0xbc] ss:$12 sps:$4 sm:$0xff]  }
 0x69d   : > { %15091 = vmatmul.mubr.bf16.gmra.mrb[92].mxu1 %v16756_v19  ;;  %v13340_v6 = vcombine.low %v19059_v27, %v19063_v3  ;;  %v19082_v51 = vld [vmem:[#allocation2 + $0x108] ss:$12 sps:$4 sm:$0xff]  }
 0x69e   : > { %v15433_v37 = vadd.f32 %v15432_v14, %v21140_v26  ;;  %v15450_v50 = vadd.f32 %v18754_v62, %v13995_v47  ;;  %15110 = vmatprep.mubr.bf16.mxu1 %v16762_v48  ;;  %v16763_v62 = vld [vmem:[#allocation2 + $0xa4] ss:$12 sps:$4 sm:$0xff]   ;;  %9333 = vmatprep.mubr.bf16.mxu0 %v13341_v7  ;;  %v16772_v14 = vld [vmem:[#allocation11 + $0x448] sm:$0xff]   ;;  %v19084_v7 = vld [vmem:[#allocation2 + $0x10c] ss:$12 sps:$4 sm:$0xff]  }
 0x69f   : > { %14779 = vmatpush3.bf16.msra.mxu0 %v16868_v21  ;;  %v16873_v47 = vld [vmem:[#allocation11 + $0x678] sm:$0xff]  }
 0x6a0   : > { %v15451_v15 = vadd.f32 %v15450_v50, %v21141_v63  ;;  %v15434_v32 = vadd.f32 %v15433_v37, %v18725_v53  ;;  %v13996_v0 = vpop.f32.mrb[180].mxu1  ;;  %9334 = vmatmul.mubr.bf16.gmra.mrb[92].mxu0 %v13340_v6  ;;  %v16874_v37 = vld [vmem:[#allocation11 + $0x638] sm:$0xff]   ;;  %14780 = vmatprep.subr.bf16.mxu0 %v16873_v47 }
 0x6a1   : > { %v13997_v19 = vpop.f32.mrb[181].mxu1  ;;  %v21144_v21 = vld [vmem:[#allocation69_spill] sm:$0xff]  ;;  %10081 = vmatprep.mubr.bf16.mxu0 %v19084_v7 }
 0x6a2   : > { %v19072_v61 = vadd.f32 %v15434_v32, %v18875_v10  ;;  %v13998_v46 = vadd.f32 %v13997_v19, %v13996_v0  ;;  %v15452_v44 = vadd.f32 %v15451_v15, %v18727_v4  ;;  %v13999_v48 = vpop.f32.mrb[182].mxu1  ;;  %v21142_v10 = vld [vmem:[#allocation47_spill] sm:$0xff]  ;;  %v21145_v19 = vld [vmem:[#allocation70_spill] sm:$0xff] }
 0x6a3   : > { %v14000_v24 = vpop.f32.mrb[183].mxu1  ;;  %14781 = vmatpush3.bf16.msra.mxu0 %v16874_v37  ;;  %v16771_v0 = vld [vmem:[#allocation2 + $0xd4] ss:$12 sps:$4 sm:$0xff]  }
 0x6a4   : > { %v15423_v53 = vadd.f32 %v18763_v5, %v13998_v46  ;;  %v19077_v1 = vadd.f32 %v15452_v44, %v18879_v29  ;;  %v14001_v26 = vadd.f32 %v14000_v24, %v13999_v48  ;;  %v16778_v5 = vld [vmem:[#allocation11 + $0x450] sm:$0xff]  }
 0x6a5   : > { %15111 = vmatmul.mubr.bf16.vlgmr.msra.gmra.mrb[64].mxu1 %v16763_v62  ;;  %v21143_v29 = vld [vmem:[#allocation48_spill] sm:$0xff]  ;;  %v16776_v44 = vld [vmem:[#allocation2 + $0x104] ss:$12 sps:$4 sm:$0xff]  }
 0x6a6   : > { %v15424_v50 = vadd.f32 %v15423_v53, %v21142_v10  ;;  %v15441_v4 = vadd.f32 %v18768_v20, %v14001_v26  ;;  %15143 = vmatpush3.bf16.msra.mxu1 %v18974_v54  ;;  %15114 = vmatprep.mubr.bf16.mxu1 %v16770_v34  ;;  %v16784_v34 = vld [vmem:[#allocation11 + $0x458] sm:$0xff]  }
 0x6a7   : > { %15144 = vmatprep.subr.bf16.mxu1 %v16772_v14  ;;  %v21146_v26 = vld [vmem:[#allocation49_spill] sm:$0xff] }
 0x6a8   : > { %v15442_v6 = vadd.f32 %v15441_v4, %v21143_v29  ;;  %v15425_v63 = vadd.f32 %v15424_v50, %v21144_v21  ;;  %v14002_v15 = vpop.f32.mrb[184].mxu1  ;;  %10082 = vmatmul.mubr.bf16.vlgmr.msra.gmra.mrb[96].mxu0 %v19082_v51  ;;  %v16789_v50 = vld [vmem:[#allocation11 + $0x460] sm:$0xff]  }
 0x6a9   : > { %v14003_v32 = vpop.f32.mrb[185].mxu1 }
 0x6aa   : > { %v19090_v20 = vadd.f32 %v15425_v63, %v18886_v52  ;;  %v14004_v54 = vadd.f32 %v14003_v32, %v14002_v15  ;;  %v15443_v62 = vadd.f32 %v15442_v6, %v21145_v19  ;;  %v14005_v46 = vpop.f32.mrb[186].mxu1  ;;  %15145 = vmatpush3.bf16.msra.mxu1 %v16772_v14  ;;  %v19098_v52 = vld [vmem:[#allocation2 + $0x124] ss:$12 sps:$4 sm:$0xff]   ;;  %v19102_v14 = vld [vmem:[#allocation2 + $0x120] ss:$12 sps:$4 sm:$0xff]  }
 0x6ab   : > { %v14006_v48 = vpop.f32.mrb[187].mxu1  ;;  %15146 = vmatprep.subr.bf16.mxu1 %v16778_v5  ;;  %10089 = vmatprep.mubr.bf16.mxu0 %v19098_v52  ;;  %v16777_v63 = vld [vmem:[#allocation2 + $0x11c] ss:$12 sps:$4 sm:$0xff]  }
 0x6ac   : > { %v15468_v24 = vadd.f32 %v18771_v39, %v14004_v54  ;;  %v19096_v47 = vadd.f32 %v15443_v62, %v18890_v33  ;;  %v14007_v53 = vadd.f32 %v14006_v48, %v14005_v46  ;;  %v21147_v39 = vld [vmem:[#allocation50_spill] sm:$0xff]  ;;  %v21148_v33 = vld [vmem:[#allocation71_spill] sm:$0xff] }
 0x6ad   : > { %15115 = vmatmul.mubr.bf16.gmra.mrb[68].mxu1 %v16771_v0  ;;  %v16782_v54 = vld [vmem:[#allocation2 + $0x134] ss:$12 sps:$4 sm:$0xff]  }
 0x6ae   : > { %v15469_v37 = vadd.f32 %v15468_v24, %v21146_v26  ;;  %v15486_v10 = vadd.f32 %v18776_v45, %v14007_v53  ;;  %15118 = vmatprep.mubr.bf16.mxu1 %v16776_v44  ;;  %15147 = vmatpush3.bf16.msra.mxu1 %v16778_v5  ;;  %v21149_v45 = vld [vmem:[#allocation72_spill] sm:$0xff]  ;;  %v16794_v62 = vld [vmem:[#allocation11 + $0x468] sm:$0xff]  }
 0x6af   : > { %15148 = vmatprep.subr.bf16.mxu1 %v16784_v34  ;;  %v21151_v24 = vld [vmem:[#allocation51_spill] sm:$0xff] }
 0x6b0   : > { %v15487_v4 = vadd.f32 %v15486_v10, %v21147_v39  ;;  %v15470_v29 = vadd.f32 %v15469_v37, %v21148_v33  ;;  %v14008_v6 = vpop.f32.mrb[188].mxu1  ;;  %10090 = vmatmul.mubr.bf16.gmra.mrb[100].mxu0 %v19102_v14  ;;  %v16799_v37 = vld [vmem:[#allocation11 + $0x470] sm:$0xff]   ;;  %v21153_v39 = vld [vmem:[#allocation73_spill] sm:$0xff] }
 0x6b1   : > { %v14009_v21 = vpop.f32.mrb[189].mxu1 }
 0x6b2   : > { %v19108_v15 = vadd.f32 %v15470_v29, %v18894_v59  ;;  %v14010_v32 = vadd.f32 %v14009_v21, %v14008_v6  ;;  %v15488_v0 = vadd.f32 %v15487_v4, %v21149_v45  ;;  %v14011_v5 = vpop.f32.mrb[190].mxu1  ;;  %15149 = vmatpush3.bf16.msra.mxu1 %v16784_v34  ;;  %v9544_v59 = vld [vmem:[#allocation2 + $0x138] sm:$0xff] }
 0x6b3   : > { %v14012_v19 = vpop.f32.mrb[191].mxu1  ;;  %15150 = vmatprep.subr.bf16.mxu1 %v16789_v50  ;;  %v19119_v34 = vcombine.low %v9544_v59, %v18877_v60  ;;  %v19122_v10 = vcombine.high %v9544_v59, %v18877_v60  ;;  %v16783_v6 = vld [vmem:[#allocation2 + $0x14c] ss:$12 sps:$4 sm:$0xff]   ;;  %v16787_v45 = vld [vmem:[#allocation2 + $0x17c] ss:$12 sps:$4 sm:$0xff]  }
 0x6b4   : > { %v15459_v46 = vadd.f32 %v18781_v35, %v14010_v32  ;;  %v19114_v44 = vadd.f32 %v15488_v0, %v18900_v8  ;;  %v14013_v48 = vadd.f32 %v14012_v19, %v14011_v5  ;;  %v21152_v35 = vld [vmem:[#allocation52_spill] sm:$0xff]  ;;  %v21155_v21 = vld [vmem:[#allocation74_spill] sm:$0xff] }
 0x6b5   : > { %15119 = vmatmul.mubr.bf16.gmra.mrb[72].mxu1 %v16777_v63  ;;  %10097 = vmatprep.mubr.bf16.mxu0 %v19122_v10  ;;  %v16804_v0 = vld [vmem:[#allocation11 + $0x478] sm:$0xff]  }
 0x6b6   : > { %21150 = vst [vmem:[#allocation39_spill] sm:$0xff] %v19114_v44  ;;  %v15460_v53 = vadd.f32 %v15459_v46, %v21151_v24  ;;  %v15477_v26 = vadd.f32 %v18786_v18, %v14013_v48  ;;  %15122 = vmatprep.mubr.bf16.mxu1 %v16782_v54  ;;  %15151 = vmatpush3.bf16.msra.mxu1 %v16789_v50  ;;  %v21156_v54 = vld [vmem:[#allocation108_spill] sm:$0xff]  ;;  %v21158_v48 = vld [vmem:[#allocation53_spill] sm:$0xff] }
 0x6b7   : > { %15152 = vmatprep.subr.bf16.mxu1 %v16794_v62  ;;  %v21159_v24 = vld [vmem:[#allocation84_spill] sm:$0xff] }
 0x6b8   : > { %v15478_v8 = vadd.f32 %v15477_v26, %v21152_v35  ;;  %v15461_v4 = vadd.f32 %v15460_v53, %v21153_v39  ;;  %v14014_v33 = vpop.f32.mrb[192].mxu1  ;;  %10098 = vmatmul.mubr.bf16.gmra.mrb[104].mxu0 %v19119_v34  ;;  %v16809_v26 = vld [vmem:[#allocation11 + $0x4c0] sm:$0xff]   ;;  %v21161_v39 = vld [vmem:[#allocation75_spill] sm:$0xff] }
 0x6b9   : > { %v14015_v29 = vpop.f32.mrb[193].mxu1  ;;  %v21160_v35 = vld [vmem:[#allocation54_spill] sm:$0xff] }
 0x6ba   : > { %v19128_v18 = vadd.f32 %v15461_v4, %v18906_v13  ;;  %v14016_v50 = vadd.f32 %v14015_v29, %v14014_v33  ;;  %v15479_v63 = vadd.f32 %v15478_v8, %v21155_v21  ;;  %v14017_v32 = vpop.f32.mrb[194].mxu1  ;;  %15153 = vmatpush3.bf16.msra.mxu1 %v16794_v62  ;;  %v16886_v13 = vld [vmem:[#allocation2 + $0x154] ss:$12 sps:$4 sm:$0xff]   ;;  %v16884_v62 = vld [vmem:[#allocation2 + $0x150] ss:$12 sps:$4 sm:$0xff]  }
 0x6bb   : > { %v14018_v60 = vpop.f32.mrb[195].mxu1  ;;  %15154 = vmatprep.subr.bf16.mxu1 %v16799_v37  ;;  %10105 = vmatprep.mubr.bf16.mxu0 %v16886_v13  ;;  %v16788_v29 = vld [vmem:[#allocation2 + $0x194] ss:$12 sps:$4 sm:$0xff]  }
 0x6bc   : > { %21154 = vst [vmem:[#allocation40_spill] sm:$0xff] %v19128_v18  ;;  %v15504_v5 = vadd.f32 %v18792_v9, %v14016_v50  ;;  %v19134_v19 = vadd.f32 %v15479_v63, %v21156_v54  ;;  %v14019_v46 = vadd.f32 %v14018_v60, %v14017_v32  ;;  %v21162_v50 = vld [vmem:[#allocation109_spill] sm:$0xff]  ;;  %v21164_v63 = vld [vmem:[#allocation76_spill] sm:$0xff]  ;;  %v21208_v18 = vld [vmem:[#allocation83_spill] sm:$0xff] }
 0x6bd   : > { %15123 = vmatmul.mubr.bf16.gmra.mrb[76].mxu1 %v16783_v6 }
 0x6be   : > { %21157 = vst [vmem:[#allocation41_spill] sm:$0xff] %v19134_v19  ;;  %v15505_v59 = vadd.f32 %v15504_v5, %v21158_v48  ;;  %v15522_v53 = vadd.f32 %v21159_v24, %v14019_v46  ;;  %15126 = vmatprep.mubr.bf16.mxu1 %v16787_v45  ;;  %15155 = vmatpush3.bf16.msra.mxu1 %v16799_v37  ;;  %v16792_v45 = vld [vmem:[#allocation2 + $0x1ac] ss:$12 sps:$4 sm:$0xff]   ;;  %v21169_v24 = vld [vmem:[#allocation103_spill] sm:$0xff] }
 0x6bf   : > { %15156 = vmatprep.subr.bf16.mxu1 %v16804_v0  ;;  %v21165_v5 = vld [vmem:[#allocation86_spill] sm:$0xff]  ;;  %v21166_v46 = vld [vmem:[#allocation112_spill] sm:$0xff] }
 0x6c0   : > { %v15523_v8 = vadd.f32 %v15522_v53, %v21160_v35  ;;  %v15506_v9 = vadd.f32 %v15505_v59, %v21161_v39  ;;  %v14020_v4 = vpop.f32.mrb[196].mxu1  ;;  %10106 = vmatmul.mubr.bf16.gmra.mrb[108].mxu0 %v16884_v62  ;;  %v21168_v59 = vld [vmem:[#allocation104_spill] sm:$0xff]  ;;  %v21170_v35 = vld [vmem:[#allocation55_spill] sm:$0xff] }
 0x6c1   : > { %v14021_v33 = vpop.f32.mrb[197].mxu1  ;;  %v19150_v53 = vcombine.high %v21169_v24, %v21168_v59  ;;  %v21172_v62 = vld [vmem:[#allocation56_spill] sm:$0xff] }
 0x6c2   : > { %v19141_v6 = vadd.f32 %v15506_v9, %v21162_v50  ;;  %v14022_v21 = vadd.f32 %v14021_v33, %v14020_v4  ;;  %v15524_v32 = vadd.f32 %v15523_v8, %v21164_v63  ;;  %v14023_v60 = vpop.f32.mrb[198].mxu1  ;;  %15157 = vmatpush3.bf16.msra.mxu1 %v16804_v0  ;;  %v21171_v8 = vld [vmem:[#allocation88_spill] sm:$0xff]  ;;  %v19156_v0 = vcombine.low %v21169_v24, %v21168_v59  ;;  %v21173_v4 = vld [vmem:[#allocation77_spill] sm:$0xff]  ;;  %v21178_v24 = vld [vmem:[#allocation115_spill] sm:$0xff] }
 0x6c3   : > { %v14024_v37 = vpop.f32.mrb[199].mxu1  ;;  %14494 = vmatprep.subr.bf16.mxu1 %v16809_v26  ;;  %10113 = vmatprep.mubr.bf16.mxu0 %v19150_v53  ;;  %v21174_v63 = vld [vmem:[#allocation113_spill] sm:$0xff] }
 0x6c4   : > { %21163 = vst [vmem:[#allocation42_spill] sm:$0xff] %v19141_v6  ;;  %v15495_v54 = vadd.f32 %v21165_v5, %v14022_v21  ;;  %v19146_v13 = vadd.f32 %v15524_v32, %v21166_v46  ;;  %v14025_v48 = vadd.f32 %v14024_v37, %v14023_v60  ;;  %v16793_v21 = vld [vmem:[#allocation2 + $0x1c4] ss:$12 sps:$4 sm:$0xff]   ;;  %v21176_v37 = vld [vmem:[#allocation78_spill] sm:$0xff] }
 0x6c5   : > { %15127 = vmatmul.mubr.bf16.gmra.mrb[80].mxu1 %v16788_v29  ;;  %v21202_v6 = vld [vmem:[#allocation123_spill] sm:$0xff] }
 0x6c6   : > { %21167 = vst [vmem:[#allocation43_spill] sm:$0xff] %v19146_v13  ;;  %v15496_v39 = vadd.f32 %v15495_v54, %v21170_v35  ;;  %v15513_v9 = vadd.f32 %v21171_v8, %v14025_v48  ;;  %15130 = vmatprep.mubr.bf16.mxu1 %v16792_v45  ;;  %v16797_v54 = vld [vmem:[#allocation2 + $0x1f4] ss:$12 sps:$4 sm:$0xff]   ;;  %v21177_v48 = vld [vmem:[#allocation90_spill] sm:$0xff] }
 0x6c7   : > { %v21180_v8 = vld [vmem:[#allocation106_spill] sm:$0xff] }
 0x6c8   : > { %v15514_v26 = vadd.f32 %v15513_v9, %v21172_v62  ;;  %v15497_v33 = vadd.f32 %v15496_v39, %v21173_v4  ;;  %v14026_v29 = vpop.f32.mrb[200].mxu1  ;;  %10114 = vmatmul.mubr.bf16.gmra.mrb[112].mxu0 %v19156_v0  ;;  %v21181_v9 = vld [vmem:[#allocation105_spill] sm:$0xff] }
 0x6c9   : > { %v14027_v50 = vpop.f32.mrb[201].mxu1  ;;  %v19172_v62 = vcombine.high %v21181_v9, %v21180_v8  ;;  %v21182_v4 = vld [vmem:[#allocation57_spill] sm:$0xff] }
 0x6ca   : > { %v19162_v32 = vadd.f32 %v15497_v33, %v21174_v63  ;;  %v14028_v60 = vadd.f32 %v14027_v50, %v14026_v29  ;;  %v15515_v5 = vadd.f32 %v15514_v26, %v21176_v37  ;;  %v14029_v45 = vpop.f32.mrb[202].mxu1  ;;  %v21183_v29 = vld [vmem:[#allocation92_spill] sm:$0xff]  ;;  %v19178_v50 = vcombine.low %v21181_v9, %v21180_v8  ;;  %v21184_v63 = vld [vmem:[#allocation58_spill] sm:$0xff]  ;;  %v21185_v37 = vld [vmem:[#allocation79_spill] sm:$0xff] }
 0x6cb   : > { %v14030_v46 = vpop.f32.mrb[203].mxu1  ;;  %10121 = vmatprep.mubr.bf16.mxu0 %v19172_v62  ;;  %v21189_v9 = vld [vmem:[#allocation94_spill] sm:$0xff] }
 0x6cc   : > { %21175 = vst [vmem:[#allocation44_spill] sm:$0xff] %v19162_v32  ;;  %v15540_v59 = vadd.f32 %v21177_v48, %v14028_v60  ;;  %v19168_v35 = vadd.f32 %v15515_v5, %v21178_v24  ;;  %v14031_v39 = vadd.f32 %v14030_v46, %v14029_v45  ;;  %v16798_v46 = vld [vmem:[#allocation2 + $0x20c] ss:$12 sps:$4 sm:$0xff]   ;;  %v21190_v32 = vld [vmem:[#allocation119_spill] sm:$0xff] }
 0x6cd   : > { %15131 = vmatmul.mubr.bf16.gmra.mrb[84].mxu1 %v16793_v21  ;;  %v21186_v48 = vld [vmem:[#allocation116_spill] sm:$0xff] }
 0x6ce   : > { %21179 = vst [vmem:[#allocation45_spill] sm:$0xff] %v19168_v35  ;;  %v15541_v33 = vadd.f32 %v15540_v59, %v21182_v4  ;;  %v15558_v26 = vadd.f32 %v21183_v29, %v14031_v39  ;;  %15134 = vmatprep.mubr.bf16.mxu1 %v16797_v54  ;;  %v21188_v4 = vld [vmem:[#allocation80_spill] sm:$0xff]  ;;  %v16802_v29 = vld [vmem:[#allocation2 + $0x224] ss:$12 sps:$4 sm:$0xff]  }
 0x6d0   : > { %v15559_v60 = vadd.f32 %v15558_v26, %v21184_v63  ;;  %v15542_v5 = vadd.f32 %v15541_v33, %v21185_v37  ;;  %v14032_v21 = vpop.f32.mrb[204].mxu1  ;;  %10122 = vmatmul.mubr.bf16.gmra.mrb[116].mxu0 %v19178_v50  ;;  %v21192_v63 = vld [vmem:[#allocation110_spill] sm:$0xff]  ;;  %v21193_v37 = vld [vmem:[#allocation107_spill] sm:$0xff] }
 0x6d1   : > { %v14033_v45 = vpop.f32.mrb[205].mxu1  ;;  %v19194_v13 = vcombine.high %v21193_v37, %v21192_v63 }
 0x6d2   : > { %v19184_v24 = vadd.f32 %v15542_v5, %v21186_v48  ;;  %v14034_v59 = vadd.f32 %v14033_v45, %v14032_v21  ;;  %v15560_v39 = vadd.f32 %v15559_v60, %v21188_v4  ;;  %v14035_v54 = vpop.f32.mrb[206].mxu1  ;;  %v21194_v5 = vld [vmem:[#allocation59_spill] sm:$0xff]  ;;  %v21195_v45 = vld [vmem:[#allocation96_spill] sm:$0xff]  ;;  %v19200_v48 = vcombine.low %v21193_v37, %v21192_v63  ;;  %v21197_v4 = vld [vmem:[#allocation81_spill] sm:$0xff] }
 0x6d3   : > { %v14036_v8 = vpop.f32.mrb[207].mxu1  ;;  %10129 = vmatprep.mubr.bf16.mxu0 %v19194_v13  ;;  %v21201_v37 = vld [vmem:[#allocation98_spill] sm:$0xff] }
 0x6d4   : > { %21187 = vst [vmem:[#allocation46_spill] sm:$0xff] %v19184_v24  ;;  %v15531_v35 = vadd.f32 %v21189_v9, %v14034_v59  ;;  %v19190_v26 = vadd.f32 %v15560_v39, %v21190_v32  ;;  %v14037_v33 = vadd.f32 %v14036_v8, %v14035_v54  ;;  %v21196_v59 = vld [vmem:[#allocation60_spill] sm:$0xff] }
 0x6d5   : > { %15135 = vmatmul.mubr.bf16.gmra.mrb[88].mxu1 %v16798_v46  ;;  %v16803_v8 = vld [vmem:[#allocation2 + $0x23c] ss:$12 sps:$4 sm:$0xff]  }
 0x6d6   : > { %21191 = vst [vmem:[#allocation47_spill] sm:$0xff] %v19190_v26  ;;  %v15532_v21 = vadd.f32 %v15531_v35, %v21194_v5  ;;  %v15549_v60 = vadd.f32 %v21195_v45, %v14037_v33  ;;  %15138 = vmatprep.mubr.bf16.mxu1 %v16802_v29  ;;  %v21198_v9 = vld [vmem:[#allocation120_spill] sm:$0xff]  ;;  %v21200_v5 = vld [vmem:[#allocation82_spill] sm:$0xff] }
 0x6d7   : > { %v16807_v45 = vld [vmem:[#allocation2 + $0x98] ss:$12 sps:$4 sm:$0xff]  }
 0x6d8   : > { %v15550_v32 = vadd.f32 %v15549_v60, %v21196_v59  ;;  %v15533_v39 = vadd.f32 %v15532_v21, %v21197_v4  ;;  %v14038_v46 = vpop.f32.mrb[208].mxu1  ;;  %10130 = vmatmul.mubr.bf16.gmra.mrb[120].mxu0 %v19200_v48  ;;  %v9566_v59 = vld [vmem:[#allocation2 + $0x1d4] sm:$0xff] }
 0x6d9   : > { %v14039_v54 = vpop.f32.mrb[209].mxu1  ;;  %v21204_v4 = vld [vmem:[#allocation61_spill] sm:$0xff] }
 0x6da   : > { %v19206_v26 = vadd.f32 %v15533_v39, %v21198_v9  ;;  %v14040_v35 = vadd.f32 %v14039_v54, %v14038_v46  ;;  %v15551_v33 = vadd.f32 %v15550_v32, %v21200_v5  ;;  %v14041_v29 = vpop.f32.mrb[210].mxu1  ;;  %v21205_v39 = vld [vmem:[#allocation99_spill] sm:$0xff]  ;;  %v21207_v5 = vld [vmem:[#allocation62_spill] sm:$0xff] }
 0x6db   : > { %v14042_v63 = vpop.f32.mrb[211].mxu1  ;;  %v21206_v46 = vld [vmem:[#allocation111_spill] sm:$0xff] }
 0x6dc   : > { %21199 = vst [vmem:[#allocation48_spill] sm:$0xff] %v19206_v26  ;;  %v15576_v24 = vadd.f32 %v21201_v37, %v14040_v35  ;;  %v19212_v60 = vadd.f32 %v15551_v33, %v21202_v6  ;;  %v14043_v21 = vadd.f32 %v14042_v63, %v14041_v29  ;;  %v13388_v32 = vcombine.low %v21206_v46, %v9566_v59  ;;  %v16808_v33 = vld [vmem:[#allocation2 + $0xb0] ss:$12 sps:$4 sm:$0xff]  }
 0x6dd   : > { %15139 = vmatmul.mubr.bf16.gmra.mrb[92].mxu1 %v16803_v8  ;;  %v13389_v54 = vcombine.high %v21206_v46, %v9566_v59  ;;  %v16815_v59 = vld [vmem:[#allocation11 + $0x4c8] sm:$0xff]   ;;  %v21213_v46 = vld [vmem:[#allocation117_spill] sm:$0xff] }
 0x6de   : > { %21203 = vst [vmem:[#allocation69_spill] sm:$0xff] %v19212_v60  ;;  %v15577_v19 = vadd.f32 %v15576_v24, %v21204_v4  ;;  %v15594_v9 = vadd.f32 %v21205_v39, %v14043_v21  ;;  %15158 = vmatprep.mubr.bf16.mxu1 %v16807_v45  ;;  %v21210_v24 = vld [vmem:[#allocation85_spill] sm:$0xff]  ;;  %v21211_v39 = vld [vmem:[#allocation100_spill] sm:$0xff] }
 0x6df   : > { %10137 = vmatprep.mubr.bf16.mxu0 %v13389_v54  ;;  %v16810_v45 = vld [vmem:[#allocation11 + $0x480] sm:$0xff]  }
 0x6e0   : > { %v15595_v26 = vadd.f32 %v15594_v9, %v21207_v5  ;;  %v15578_v44 = vadd.f32 %v15577_v19, %v21208_v18  ;;  %v14044_v35 = vpop.f32.mrb[212].mxu1  ;;  %v16813_v21 = vld [vmem:[#allocation2 + $0xc8] ss:$12 sps:$4 sm:$0xff]   ;;  %10138 = vmatmul.mubr.bf16.gmra.mrb[124].mxu0 %v13388_v32  ;;  %v21214_v54 = vld [vmem:[#allocation114_spill] sm:$0xff] }
 0x6e1   : > { %v14045_v6 = vpop.f32.mrb[213].mxu1  ;;  %v16816_v32 = vld [vmem:[#allocation11 + $0x488] sm:$0xff]  }
 0x6e2   : > { %v19221_v8 = vadd.f32 %v15578_v44, %v18964_v11  ;;  %v14046_v29 = vadd.f32 %v14045_v6, %v14044_v35  ;;  %v15596_v63 = vadd.f32 %v15595_v26, %v21210_v24  ;;  %v14047_v37 = vpop.f32.mrb[214].mxu1  ;;  %v19230_v11 = vcombine.high %v21214_v54, %v21213_v46  ;;  %v21215_v44 = vld [vmem:[#allocation63_spill] sm:$0xff]  ;;  %v21216_v26 = vld [vmem:[#allocation101_spill] sm:$0xff] }
 0x6e3   : > { %v14048_v4 = vpop.f32.mrb[215].mxu1  ;;  %v19236_v6 = vcombine.low %v21214_v54, %v21213_v46  ;;  %v21218_v24 = vld [vmem:[#allocation87_spill] sm:$0xff]  ;;  %v16819_v46 = vld [vmem:[#allocation2 + $0x110] ss:$12 sps:$4 sm:$0xff]  }
 0x6e4   : > { %21209 = vst [vmem:[#allocation70_spill] sm:$0xff] %v19221_v8  ;;  %v15567_v9 = vadd.f32 %v21211_v39, %v14046_v29  ;;  %v19226_v18 = vadd.f32 %v15596_v63, %v18970_v30  ;;  %v14049_v19 = vadd.f32 %v14048_v4, %v14047_v37  ;;  %v16821_v30 = vld [vmem:[#allocation11 + $0x4d0] sm:$0xff]   ;;  %10145 = vmatprep.mubr.bf16.mxu0 %v19230_v11  ;;  %v16814_v39 = vld [vmem:[#allocation2 + $0xe0] ss:$12 sps:$4 sm:$0xff]  }
 0x6e5   : > { %15159 = vmatmul.mubr.bf16.vlgmr.msra.gmra.mrb[64].mxu1 %v16808_v33  ;;  %v21217_v33 = vld [vmem:[#allocation64_spill] sm:$0xff] }
 0x6e6   : > { %21212 = vst [vmem:[#allocation49_spill] sm:$0xff] %v19226_v18  ;;  %v15568_v5 = vadd.f32 %v15567_v9, %v21215_v44  ;;  %v15585_v35 = vadd.f32 %v21216_v26, %v14049_v19  ;;  %14495 = vmatpush3.bf16.msra.mxu1 %v16810_v45  ;;  %15162 = vmatprep.mubr.bf16.mxu1 %v16813_v21  ;;  %v21220_v21 = vld [vmem:[#allocation89_spill] sm:$0xff] }
 0x6e7   : > { %14496 = vmatprep.subr.bf16.mxu1 %v16815_v59  ;;  %v16822_v59 = vld [vmem:[#allocation11 + $0x490] sm:$0xff]   ;;  %v16827_v26 = vld [vmem:[#allocation11 + $0x4d8] sm:$0xff]  }
 0x6e8   : > { %v15586_v29 = vadd.f32 %v15585_v35, %v21217_v33  ;;  %v15569_v63 = vadd.f32 %v15568_v5, %v21218_v24  ;;  %v14050_v37 = vpop.f32.mrb[216].mxu1  ;;  %10146 = vmatmul.mubr.bf16.gmra.mrb[128].mxu0 %v19236_v6  ;;  %v21221_v35 = vld [vmem:[#allocation102_spill] sm:$0xff]  ;;  %v16930_v8 = vld [vmem:[#allocation2 + $0x188] ss:$12 sps:$4 sm:$0xff]  }
 0x6e9   : > { %v14051_v4 = vpop.f32.mrb[217].mxu1 }
 0x6ea   : > { %v19242_v9 = vadd.f32 %v15569_v63, %v18988_v28  ;;  %v14052_v45 = vadd.f32 %v14051_v4, %v14050_v37  ;;  %v15587_v19 = vadd.f32 %v15586_v29, %v21220_v21  ;;  %v14053_v44 = vpop.f32.mrb[218].mxu1  ;;  %14497 = vmatpush3.bf16.msra.mxu1 %v16816_v32  ;;  %v21223_v28 = vld [vmem:[#allocation121_spill] sm:$0xff]  ;;  %v21224_v63 = vld [vmem:[#allocation118_spill] sm:$0xff]  ;;  %v21226_v4 = vld [vmem:[#allocation35_spill] sm:$0xff] }
 0x6eb   : > { %v14054_v54 = vpop.f32.mrb[219].mxu1  ;;  %14498 = vmatprep.subr.bf16.mxu1 %v16821_v30  ;;  %v19252_v37 = vcombine.high %v21224_v63, %v21223_v28  ;;  %v21225_v29 = vld [vmem:[#allocation65_spill] sm:$0xff]  ;;  %v19258_v30 = vcombine.low %v21224_v63, %v21223_v28  ;;  %v16825_v28 = vld [vmem:[#allocation2 + $0x140] ss:$12 sps:$4 sm:$0xff]  }
 0x6ec   : > { %21219 = vst [vmem:[#allocation50_spill] sm:$0xff] %v19242_v9  ;;  %v15612_v5 = vadd.f32 %v21221_v35, %v14052_v45  ;;  %v19248_v33 = vadd.f32 %v15587_v19, %v18995_v58  ;;  %v14055_v24 = vadd.f32 %v14054_v54, %v14053_v44  ;;  %v16828_v9 = vld [vmem:[#allocation11 + $0x498] sm:$0xff]   ;;  %v16833_v58 = vld [vmem:[#allocation11 + $0x4e0] sm:$0xff]   ;;  %v21228_v19 = vld [vmem:[#allocation91_spill] sm:$0xff] }
 0x6ed   : > { %15163 = vmatmul.mubr.bf16.gmra.mrb[68].mxu1 %v16814_v39  ;;  %10153 = vmatprep.mubr.bf16.mxu0 %v19252_v37  ;;  %v21227_v39 = vld [vmem:[#allocation66_spill] sm:$0xff] }
 0x6ee   : > { %21222 = vst [vmem:[#allocation71_spill] sm:$0xff] %v19248_v33  ;;  %v15613_v32 = vadd.f32 %v15612_v5, %v21225_v29  ;;  %v15630_v21 = vadd.f32 %v21226_v4, %v14055_v24  ;;  %15166 = vmatprep.mubr.bf16.mxu1 %v16819_v46  ;;  %14499 = vmatpush3.bf16.msra.mxu1 %v16822_v59  ;;  %v16820_v5 = vld [vmem:[#allocation2 + $0x128] ss:$12 sps:$4 sm:$0xff]  }
 0x6ef   : > { %14500 = vmatprep.subr.bf16.mxu1 %v16827_v26  ;;  %v21230_v59 = vld [vmem:[#allocation93_spill] sm:$0xff] }
 0x6f0   : > { %v15631_v45 = vadd.f32 %v15630_v21, %v21227_v39  ;;  %v15614_v44 = vadd.f32 %v15613_v32, %v21228_v19  ;;  %v14056_v54 = vpop.f32.mrb[220].mxu1  ;;  %v16834_v26 = vld [vmem:[#allocation11 + $0x4a0] sm:$0xff]   ;;  %10154 = vmatmul.mubr.bf16.gmra.mrb[132].mxu0 %v19258_v30  ;;  %v16841_v21 = vld [vmem:[#allocation11 + $0x4e8] sm:$0xff]   ;;  %v21231_v39 = vld [vmem:[#allocation36_spill] sm:$0xff] }
 0x6f1   : > { %v14057_v35 = vpop.f32.mrb[221].mxu1 }
 0x6f2   : > { %v19264_v24 = vadd.f32 %v15614_v44, %v19008_v31  ;;  %v14058_v46 = vadd.f32 %v14057_v35, %v14056_v54  ;;  %v15632_v29 = vadd.f32 %v15631_v45, %v21230_v59  ;;  %v14059_v4 = vpop.f32.mrb[222].mxu1  ;;  %14501 = vmatpush3.bf16.msra.mxu1 %v16828_v9  ;;  %v21233_v31 = vld [vmem:[#allocation122_spill] sm:$0xff]  ;;  %v21234_v45 = vld [vmem:[#allocation67_spill] sm:$0xff]  ;;  %v21235_v9 = vld [vmem:[#allocation37_spill] sm:$0xff] }
 0x6f3   : > { %v14060_v63 = vpop.f32.mrb[223].mxu1  ;;  %14502 = vmatprep.subr.bf16.mxu1 %v16833_v58  ;;  %v19274_v44 = vcombine.high %v21233_v31, %v18966_v49  ;;  %v16843_v59 = vld [vmem:[#allocation11 + $0x4a8] sm:$0xff]   ;;  %v19280_v58 = vcombine.low %v21233_v31, %v18966_v49  ;;  %v16861_v49 = vld [vmem:[#allocation11 + $0x4f8] sm:$0xff]  }
 0x6f4   : > { %21229 = vst [vmem:[#allocation72_spill] sm:$0xff] %v19264_v24  ;;  %v15603_v32 = vadd.f32 %v21231_v39, %v14058_v46  ;;  %v19270_v19 = vadd.f32 %v15632_v29, %v19017_v16  ;;  %v14061_v33 = vadd.f32 %v14060_v63, %v14059_v4  ;;  %v16851_v16 = vld [vmem:[#allocation11 + $0x4f0] sm:$0xff]   ;;  %v9582_v31 = vld [vmem:[#allocation2 + $0x24c] sm:$0xff] }
 0x6f5   : > { %15167 = vmatmul.mubr.bf16.gmra.mrb[72].mxu1 %v16820_v5  ;;  %10161 = vmatprep.mubr.bf16.mxu0 %v19274_v44  ;;  %v21236_v5 = vld [vmem:[#allocation68_spill] sm:$0xff]  ;;  %v21237_v29 = vld [vmem:[#allocation95_spill] sm:$0xff] }
 0x6f6   : > { %21232 = vst [vmem:[#allocation51_spill] sm:$0xff] %v19270_v19  ;;  %v15604_v54 = vadd.f32 %v15603_v32, %v21234_v45  ;;  %v15621_v35 = vadd.f32 %v21235_v9, %v14061_v33  ;;  %15170 = vmatprep.mubr.bf16.mxu1 %v16825_v28  ;;  %14503 = vmatpush3.bf16.msra.mxu1 %v16834_v26  ;;  %v16826_v63 = vld [vmem:[#allocation2 + $0x158] ss:$12 sps:$4 sm:$0xff]   ;;  %v21239_v33 = vld [vmem:[#allocation97_spill] sm:$0xff] }
 0x6f7   : > { %14504 = vmatprep.subr.bf16.mxu1 %v16841_v21  ;;  %v16831_v26 = vld [vmem:[#allocation2 + $0x188] ss:$12 sps:$4 sm:$0xff]   ;;  %v16863_v45 = vld [vmem:[#allocation11 + $0x4b8] sm:$0xff]  }
 0x6f8   : > { %v15622_v46 = vadd.f32 %v15621_v35, %v21236_v5  ;;  %v15605_v4 = vadd.f32 %v15604_v54, %v21237_v29  ;;  %v16853_v32 = vld [vmem:[#allocation11 + $0x4b0] sm:$0xff]   ;;  %10162 = vmatmul.mubr.bf16.gmra.mrb[136].mxu0 %v19280_v58  ;;  %v21241_v54 = vld [vmem:[#allocation38_spill] sm:$0xff]  ;;  %v16849_v29 = vld [vmem:[#allocation2 + $0x200] ss:$12 sps:$4 sm:$0xff]  }
 0x6f9   : > { %v13401_v9 = vcombine.high %v21241_v54, %v9582_v31  ;;  %v16872_v35 = vld [vmem:[#allocation11 + $0x500] sm:$0xff]  }
 0x6fa   : > { %v19286_v39 = vadd.f32 %v15605_v4, %v19035_v22  ;;  %v15623_v28 = vadd.f32 %v15622_v46, %v21239_v33  ;;  %14505 = vmatpush3.bf16.msra.mxu1 %v16843_v59  ;;  %v13400_v22 = vcombine.low %v21241_v54, %v9582_v31  ;;  %v16832_v59 = vld [vmem:[#allocation2 + $0x1a0] ss:$12 sps:$4 sm:$0xff]   ;;  %v16839_v5 = vld [vmem:[#allocation2 + $0x1b8] ss:$12 sps:$4 sm:$0xff]   ;;  %v16840_v46 = vld [vmem:[#allocation2 + $0x1d0] ss:$12 sps:$4 sm:$0xff]   ;;  %v19307_v4 = vcombine.high %v19019_v43, %v19037_v55 }
 0x6fb   : > { %14506 = vmatprep.subr.bf16.mxu1 %v16851_v16  ;;  %10169 = vmatprep.mubr.bf16.mxu0 %v13401_v9  ;;  %v19301_v16 = vcombine.low %v18997_v25, %v19013_v2  ;;  %v19317_v33 = vcombine.high %v19043_v57, %v19059_v27  ;;  %v16869_v31 = vld [vmem:[#allocation2 + $0xf0] ss:$12 sps:$4 sm:$0xff]   ;;  %v21242_v54 = vmov 0   ;;  %v7816_v9 = vld [vmem:[#allocation2 + $0x168] sm:$0xff] }
 0x6fc   : > { %21238 = vst [vmem:[#allocation52_spill] sm:$0xff] %v19286_v39  ;;  %v19291_v21 = vadd.f32 %v15623_v28, %v19041_v36  ;;  %v19297_v36 = vcombine.high %v18997_v25, %v19013_v2  ;;  %v16850_v25 = vld [vmem:[#allocation2 + $0x218] ss:$12 sps:$4 sm:$0xff]   ;;  %v16859_v2 = vld [vmem:[#allocation2 + $0x230] ss:$12 sps:$4 sm:$0xff]   ;;  %v19321_v28 = vcombine.low %v19043_v57, %v19059_v27 }
 0x6fd   : > { %15171 = vmatmul.mubr.bf16.gmra.mrb[76].mxu1 %v16826_v63  ;;  %v19311_v63 = vcombine.low %v19019_v43, %v19037_v55  ;;  %v16860_v43 = vld [vmem:[#allocation2 + $0x248] ss:$12 sps:$4 sm:$0xff]   ;;  %v16894_v27 = vld [vmem:[#allocation11 + $0x518] sm:$0xff]  }
 0x6fe   : > { %21240 = vst [vmem:[#allocation73_spill] sm:$0xff] %v19291_v21  ;;  %15174 = vmatprep.mubr.bf16.mxu1 %v16831_v26  ;;  %14507 = vmatpush3.bf16.msra.mxu1 %v16853_v32  ;;  %v16871_v55 = vld [vmem:[#allocation2 + $0xf4] ss:$12 sps:$4 sm:$0xff]   ;;  %v9598_v26 = vld [vmem:[#allocation2 + $0x2c4] sm:$0xff] }
 0x6ff   : > { %14508 = vmatprep.subr.bf16.mxu1 %v16861_v49  ;;  %v13412_v32 = vcombine.low %v19063_v3, %v9598_v26  ;;  %v13413_v49 = vcombine.high %v19063_v3, %v9598_v26  ;;  %v16889_v57 = vld [vmem:[#allocation11 + $0x510] sm:$0xff]   ;;  %v16901_v3 = vld [vmem:[#allocation11 + $0x520] sm:$0xff]  }
 0x700   : > { %10170 = vmatmul.mubr.bf16.gmra.mrb[140].mxu0 %v13400_v22  ;;  %v16906_v22 = vld [vmem:[#allocation11 + $0x528] sm:$0xff]  }
 0x701   : > { %10177 = vmatprep.mubr.bf16.mxu0 %v19297_v36 }
 0x702   : > { %14509 = vmatpush3.bf16.msra.mxu1 %v16863_v45  ;;  %v16881_v45 = vld [vmem:[#allocation11 + $0x508] sm:$0xff]  }
 0x703   : > { %15190 = vmatprep.subr.bf16.mxu1 %v16872_v35 }
 0x705   : > { %15175 = vmatmul.mubr.bf16.gmra.mrb[80].mxu1 %v16832_v59  ;;  %v17071_v59 = vld [vmem:[#allocation2 + $0x174] sm:$0xff] }
 0x706   : > { %15178 = vmatprep.mubr.bf16.mxu1 %v16839_v5  ;;  %v13236_v5 = vcombine.high %v7816_v9, %v17071_v59 }
 0x708   : > { %10178 = vmatmul.mubr.bf16.gmra.mrb[144].mxu0 %v19301_v16 }
 0x709   : > { %10185 = vmatprep.mubr.bf16.mxu0 %v19307_v4 }
 0x70d   : > { %15179 = vmatmul.mubr.bf16.gmra.mrb[84].mxu1 %v16840_v46 }
 0x70e   : > { %15182 = vmatprep.mubr.bf16.mxu1 %v16849_v29 }
 0x710   : > { %10186 = vmatmul.mubr.bf16.gmra.mrb[148].mxu0 %v19311_v63 }
 0x711   : > { %10193 = vmatprep.mubr.bf16.mxu0 %v19317_v33 }
 0x715   : > { %15183 = vmatmul.mubr.bf16.gmra.mrb[88].mxu1 %v16850_v25 }
 0x716   : > { %15186 = vmatprep.mubr.bf16.mxu1 %v16859_v2 }
 0x718   : > { %10194 = vmatmul.mubr.bf16.gmra.mrb[152].mxu0 %v19321_v28 }
 0x719   : > { %10201 = vmatprep.mubr.bf16.mxu0 %v13413_v49 }
 0x71d   : > { %15187 = vmatmul.mubr.bf16.gmra.mrb[92].mxu1 %v16860_v43  ;;  %v13235_v43 = vcombine.low %v7816_v9, %v17071_v59 }
 0x71e   : > { %8345 = vmatprep.mubr.bf16.mxu1 %v16871_v55 }
 0x720   : > { %10202 = vmatmul.mubr.bf16.gmra.mrb[156].mxu0 %v13412_v32 }
 0x721   : > { %10753 = vmatprep.mubr.bf16.mxu0 %v21242_v54 }
 0x725   : > { %8346 = vmatmul.mubr.bf16.vlgmr.msra.gmra.mrb[224].mxu1 %v16869_v31 }
 0x726   : > { %15191 = vmatpush3.bf16.msra.mxu1 %v16872_v35  ;;  %8353 = vmatprep.mubr.bf16.mxu1 %v19084_v7  ;;  %v14646_v7 = vpop.f32.mrb[32].mxu0  ;;  %v16913_v35 = vld [vmem:[#allocation11 + $0x530] sm:$0xff]  }
 0x727   : > { %15192 = vmatprep.subr.bf16.mxu1 %v16881_v45 }
 0x72a   : > { %15193 = vmatpush3.bf16.msra.mxu1 %v16881_v45 }
 0x72b   : > { %15194 = vmatprep.subr.bf16.mxu1 %v16889_v57 }
 0x72d   : > { %8354 = vmatmul.mubr.bf16.gmra.mrb[228].mxu1 %v19082_v51  ;;  %v16918_v51 = vld [vmem:[#allocation11 + $0x538] sm:$0xff]  }
 0x72e   : > { %8361 = vmatprep.mubr.bf16.mxu1 %v19098_v52  ;;  %15195 = vmatpush3.bf16.msra.mxu1 %v16889_v57  ;;  %v14647_v52 = vpop.f32.mrb[33].mxu0 }
 0x72f   : > { %15196 = vmatprep.subr.bf16.mxu1 %v16894_v27  ;;  %v19334_v46 = vadd.f32 %v14647_v52, %v14646_v7 }
 0x732   : > { %15197 = vmatpush3.bf16.msra.mxu1 %v16894_v27 }
 0x733   : > { %15198 = vmatprep.subr.bf16.mxu1 %v16901_v3 }
 0x735   : > { %8362 = vmatmul.mubr.bf16.gmra.mrb[232].mxu1 %v19102_v14  ;;  %v14649_v14 = vpop.f32.mrb[34].mxu0 }
 0x736   : > { %8369 = vmatprep.mubr.bf16.mxu1 %v19122_v10  ;;  %15199 = vmatpush3.bf16.msra.mxu1 %v16901_v3  ;;  %v19336_v10 = vld [vmem:[#allocation11 + $0x5c0] sm:$0xff]   ;;  %v14650_v29 = vpop.f32.mrb[35].mxu0 }
 0x737   : > { %15200 = vmatprep.subr.bf16.mxu1 %v16906_v22  ;;  %v19338_v25 = vadd.f32 %v14650_v29, %v14649_v14  ;;  %v14652_v2 = vpop.f32.mrb[36].mxu0 }
 0x738   : > { %v14653_v55 = vpop.f32.mrb[37].mxu0 }
 0x739   : > { %v19340_v26 = vadd.f32 %v14653_v55, %v14652_v2  ;;  %v14655_v32 = vpop.f32.mrb[38].mxu0 }
 0x73a   : > { %15201 = vmatpush3.bf16.msra.mxu1 %v16906_v22 }
 0x73b   : > { %15202 = vmatprep.subr.bf16.mxu1 %v16913_v35 }
 0x73d   : > { %8370 = vmatmul.mubr.bf16.gmra.mrb[236].mxu1 %v19119_v34  ;;  %v14656_v34 = vpop.f32.mrb[39].mxu0 }
 0x73e   : > { %8377 = vmatprep.mubr.bf16.mxu1 %v13236_v5  ;;  %15203 = vmatpush3.bf16.msra.mxu1 %v16913_v35  ;;  %v19343_v49 = vadd.f32 %v14656_v34, %v14655_v32  ;;  %v14658_v31 = vpop.f32.mrb[40].mxu0 }
 0x73f   : > { %15204 = vmatprep.subr.bf16.mxu1 %v16918_v51  ;;  %v14659_v45 = vpop.f32.mrb[41].mxu0 }
 0x740   : > { %v19346_v57 = vadd.f32 %v14659_v45, %v14658_v31  ;;  %v14661_v27 = vpop.f32.mrb[42].mxu0 }
 0x741   : > { %v14662_v3 = vpop.f32.mrb[43].mxu0 }
 0x742   : > { %15205 = vmatpush3.bf16.msra.mxu1 %v16918_v51  ;;  %v19348_v22 = vadd.f32 %v14662_v3, %v14661_v27  ;;  %v14664_v7 = vpop.f32.mrb[44].mxu0 }
 0x743   : > { %15238 = vmatprep.subr.bf16.mxu1 %v19336_v10  ;;  %v14665_v9 = vpop.f32.mrb[45].mxu0 }
 0x744   : > { %v19350_v35 = vadd.f32 %v14665_v9, %v14664_v7  ;;  %v14667_v59 = vpop.f32.mrb[46].mxu0  ;;  %v7832_v9 = vld [vmem:[#allocation2 + $0x1e0] sm:$0xff] }
 0x745   : > { %8378 = vmatmul.mubr.bf16.gmra.mrb[240].mxu1 %v13235_v43  ;;  %v14668_v5 = vpop.f32.mrb[47].mxu0 }
 0x746   : > { %8385 = vmatprep.mubr.bf16.mxu1 %v19150_v53  ;;  %v19352_v51 = vadd.f32 %v14668_v5, %v14667_v59  ;;  %v14670_v52 = vpop.f32.mrb[48].mxu0 }
 0x747   : > { %v14671_v14 = vpop.f32.mrb[49].mxu0 }
 0x748   : > { %v19356_v53 = vadd.f32 %v14671_v14, %v14670_v52  ;;  %v14673_v29 = vpop.f32.mrb[50].mxu0 }
 0x749   : > { %v14674_v2 = vpop.f32.mrb[51].mxu0 }
 0x74a   : > { %v19358_v43 = vadd.f32 %v14674_v2, %v14673_v29  ;;  %v14676_v55 = vpop.f32.mrb[52].mxu0  ;;  %v17072_v29 = vld [vmem:[#allocation2 + $0x1ec] sm:$0xff] }
 0x74b   : > { %v14677_v32 = vpop.f32.mrb[53].mxu0  ;;  %v13248_v2 = vcombine.high %v7832_v9, %v17072_v29  ;;  %v13247_v39 = vcombine.low %v7832_v9, %v17072_v29 }
 0x74c   : > { %v19360_v34 = vadd.f32 %v14677_v32, %v14676_v55  ;;  %v14679_v31 = vpop.f32.mrb[54].mxu0 }
 0x74d   : > { %8386 = vmatmul.mubr.bf16.gmra.mrb[244].mxu1 %v19156_v0  ;;  %v14680_v45 = vpop.f32.mrb[55].mxu0 }
 0x74e   : > { %8393 = vmatprep.mubr.bf16.mxu1 %v19172_v62  ;;  %v19362_v27 = vadd.f32 %v14680_v45, %v14679_v31  ;;  %v14682_v3 = vpop.f32.mrb[56].mxu0 }
 0x74f   : > { %v14683_v0 = vpop.f32.mrb[57].mxu0 }
 0x750   : > { %v19366_v62 = vadd.f32 %v14683_v0, %v14682_v3  ;;  %v14685_v7 = vpop.f32.mrb[58].mxu0 }
 0x751   : > { %v14686_v59 = vpop.f32.mrb[59].mxu0 }
 0x752   : > { %v19368_v5 = vadd.f32 %v14686_v59, %v14685_v7  ;;  %v14688_v52 = vpop.f32.mrb[60].mxu0 }
 0x753   : > { %v14689_v14 = vpop.f32.mrb[61].mxu0 }
 0x754   : > { %v19370_v55 = vadd.f32 %v14689_v14, %v14688_v52  ;;  %v14691_v32 = vpop.f32.mrb[62].mxu0 }
 0x755   : > { %8394 = vmatmul.mubr.bf16.gmra.mrb[248].mxu1 %v19178_v50  ;;  %v14692_v31 = vpop.f32.mrb[63].mxu0 }
 0x756   : > { %8401 = vmatprep.mubr.bf16.mxu1 %v19194_v13  ;;  %v19372_v45 = vadd.f32 %v14692_v31, %v14691_v32  ;;  %v14694_v50 = vpop.f32.mrb[64].mxu0 }
 0x757   : > { %v14695_v13 = vpop.f32.mrb[65].mxu0 }
 0x758   : > { %v19375_v3 = vadd.f32 %v14695_v13, %v14694_v50  ;;  %v14697_v0 = vpop.f32.mrb[66].mxu0 }
 0x759   : > { %v14698_v7 = vpop.f32.mrb[67].mxu0 }
 0x75a   : > { %21243 = vst [vmem:[#allocation74_spill] sm:$0xff] %v19375_v3  ;;  %v19377_v59 = vadd.f32 %v14698_v7, %v14697_v0  ;;  %v14700_v21 = vpop.f32.mrb[68].mxu0 }
 0x75b   : > { %v14701_v19 = vpop.f32.mrb[69].mxu0 }
 0x75c   : > { %21244 = vst [vmem:[#allocation108_spill] sm:$0xff] %v19377_v59  ;;  %v19379_v52 = vadd.f32 %v14701_v19, %v14700_v21  ;;  %v14703_v14 = vpop.f32.mrb[70].mxu0 }
 0x75d   : > { %8402 = vmatmul.mubr.bf16.gmra.mrb[252].mxu1 %v19200_v48  ;;  %v14704_v24 = vpop.f32.mrb[71].mxu0 }
 0x75e   : > { %8409 = vmatprep.mubr.bf16.mxu1 %v13248_v2  ;;  %21245 = vst [vmem:[#allocation53_spill] sm:$0xff] %v19379_v52  ;;  %v19381_v32 = vadd.f32 %v14704_v24, %v14703_v14  ;;  %v14706_v31 = vpop.f32.mrb[72].mxu0 }
 0x75f   : > { %v14707_v48 = vpop.f32.mrb[73].mxu0 }
 0x760   : > { %21246 = vst [vmem:[#allocation84_spill] sm:$0xff] %v19381_v32  ;;  %v19384_v2 = vadd.f32 %v14707_v48, %v14706_v31  ;;  %v14709_v50 = vpop.f32.mrb[74].mxu0  ;;  %v16939_v32 = vld [vmem:[#allocation2 + $0x230] ss:$12 sps:$4 sm:$0xff]  }
 0x761   : > { %v14710_v13 = vpop.f32.mrb[75].mxu0 }
 0x762   : > { %21247 = vst [vmem:[#allocation54_spill] sm:$0xff] %v19384_v2  ;;  %v19386_v0 = vadd.f32 %v14710_v13, %v14709_v50  ;;  %v14712_v7 = vpop.f32.mrb[76].mxu0 }
 0x763   : > { %v14713_v9 = vpop.f32.mrb[77].mxu0 }
 0x764   : > { %21248 = vst [vmem:[#allocation75_spill] sm:$0xff] %v19386_v0  ;;  %v19388_v29 = vadd.f32 %v14713_v9, %v14712_v7  ;;  %v14715_v19 = vpop.f32.mrb[78].mxu0  ;;  %v16936_v0 = vld [vmem:[#allocation2 + $0x200] ss:$12 sps:$4 sm:$0xff]  }
 0x765   : > { %8410 = vmatmul.mubr.bf16.gmra.mrb[0].mxu1 %v13247_v39  ;;  %v14716_v21 = vpop.f32.mrb[79].mxu0 }
 0x766   : > { %8417 = vmatprep.mubr.bf16.mxu1 %v19230_v11  ;;  %21249 = vst [vmem:[#allocation109_spill] sm:$0xff] %v19388_v29  ;;  %v19390_v54 = vadd.f32 %v14716_v21, %v14715_v19  ;;  %v14718_v24 = vpop.f32.mrb[80].mxu0  ;;  %v16933_v29 = vld [vmem:[#allocation2 + $0x1b8] ss:$12 sps:$4 sm:$0xff]  }
 0x767   : > { %v14719_v39 = vpop.f32.mrb[81].mxu0 }
 0x768   : > { %21250 = vst [vmem:[#allocation76_spill] sm:$0xff] %v19390_v54  ;;  %v19394_v11 = vadd.f32 %v14719_v39, %v14718_v24  ;;  %v14721_v14 = vpop.f32.mrb[82].mxu0  ;;  %v7848_v39 = vld [vmem:[#allocation2 + $0x258] sm:$0xff] }
 0x769   : > { %v14722_v31 = vpop.f32.mrb[83].mxu0 }
 0x76a   : > { %21251 = vst [vmem:[#allocation86_spill] sm:$0xff] %v19394_v11  ;;  %v19396_v48 = vadd.f32 %v14722_v31, %v14721_v14  ;;  %v14724_v50 = vpop.f32.mrb[84].mxu0 }
 0x76b   : > { %v14725_v13 = vpop.f32.mrb[85].mxu0 }
 0x76c   : > { %21252 = vst [vmem:[#allocation112_spill] sm:$0xff] %v19396_v48  ;;  %v19398_v7 = vadd.f32 %v14725_v13, %v14724_v50  ;;  %v14727_v9 = vpop.f32.mrb[86].mxu0  ;;  %v17073_v13 = vld [vmem:[#allocation2 + $0x264] sm:$0xff] }
 0x76d   : > { %8418 = vmatmul.mubr.bf16.gmra.mrb[4].mxu1 %v19236_v6  ;;  %v14728_v18 = vpop.f32.mrb[87].mxu0 }
 0x76e   : > { %8425 = vmatprep.mubr.bf16.mxu1 %v19252_v37  ;;  %21253 = vst [vmem:[#allocation104_spill] sm:$0xff] %v19398_v7  ;;  %v19400_v19 = vadd.f32 %v14728_v18, %v14727_v9  ;;  %v14730_v21 = vpop.f32.mrb[88].mxu0  ;;  %v13260_v7 = vcombine.high %v7848_v39, %v17073_v13 }
 0x76f   : > { %v14731_v6 = vpop.f32.mrb[89].mxu0 }
 0x770   : > { %21254 = vst [vmem:[#allocation103_spill] sm:$0xff] %v19400_v19  ;;  %v19404_v37 = vadd.f32 %v14731_v6, %v14730_v21  ;;  %v14733_v24 = vpop.f32.mrb[90].mxu0 }
 0x771   : > { %v14734_v14 = vpop.f32.mrb[91].mxu0 }
 0x772   : > { %21255 = vst [vmem:[#allocation55_spill] sm:$0xff] %v19404_v37  ;;  %v19406_v31 = vadd.f32 %v14734_v14, %v14733_v24  ;;  %v13259_v14 = vcombine.low %v7848_v39, %v17073_v13 }
 0x773   : > { %v14736_v48 = vpop.f32.mrb[92].mxu0 }
 0x774   : > { %21256 = vst [vmem:[#allocation88_spill] sm:$0xff] %v19406_v31  ;;  %v14737_v50 = vpop.f32.mrb[93].mxu0 }
 0x775   : > { %8426 = vmatmul.mubr.bf16.gmra.mrb[8].mxu1 %v19258_v30  ;;  %v14739_v11 = vpop.f32.mrb[94].mxu0  ;;  %v19408_v9 = vadd.f32 %v14737_v50, %v14736_v48 }
 0x776   : > { %8433 = vmatprep.mubr.bf16.mxu1 %v19274_v44  ;;  %v14740_v18 = vpop.f32.mrb[95].mxu0 }
 0x777   : > { %21257 = vst [vmem:[#allocation56_spill] sm:$0xff] %v19408_v9  ;;  %v19411_v44 = vadd.f32 %v14740_v18, %v14739_v11 }
 0x779   : > { %21258 = vst [vmem:[#allocation77_spill] sm:$0xff] %v19411_v44 }
 0x77b   : > { %v14782_v30 = vpop.f32.mrb[96].mxu0 }
 0x77c   : > { %v14783_v21 = vpop.f32.mrb[97].mxu0 }
 0x77d   : > { %8434 = vmatmul.mubr.bf16.gmra.mrb[12].mxu1 %v19280_v58  ;;  %v19413_v6 = vadd.f32 %v14783_v21, %v14782_v30  ;;  %v14785_v37 = vpop.f32.mrb[98].mxu0 }
 0x77e   : > { %8441 = vmatprep.mubr.bf16.mxu1 %v13260_v7  ;;  %v14786_v24 = vpop.f32.mrb[99].mxu0 }
 0x77f   : > { %v19415_v31 = vadd.f32 %v14786_v24, %v14785_v37 }
 0x783   : > { %v14788_v19 = vpop.f32.mrb[100].mxu0 }
 0x784   : > { %v14789_v48 = vpop.f32.mrb[101].mxu0 }
 0x785   : > { %8442 = vmatmul.mubr.bf16.gmra.mrb[16].mxu1 %v13259_v14  ;;  %v19418_v50 = vadd.f32 %v14789_v48, %v14788_v19  ;;  %v14791_v58 = vpop.f32.mrb[102].mxu0 }
 0x786   : > { %8449 = vmatprep.mubr.bf16.mxu1 %v19297_v36  ;;  %v14792_v9 = vpop.f32.mrb[103].mxu0 }
 0x787   : > { %v19420_v7 = vadd.f32 %v14792_v9, %v14791_v58 }
 0x78b   : > { %v14794_v11 = vpop.f32.mrb[104].mxu0 }
 0x78c   : > { %v14795_v18 = vpop.f32.mrb[105].mxu0 }
 0x78d   : > { %8450 = vmatmul.mubr.bf16.gmra.mrb[20].mxu1 %v19301_v16  ;;  %v19424_v39 = vadd.f32 %v14795_v18, %v14794_v11  ;;  %v14797_v37 = vpop.f32.mrb[106].mxu0  ;;  %v16924_v18 = vld [vmem:[#allocation2 + $0x110] ss:$12 sps:$4 sm:$0xff]  }
 0x78e   : > { %8457 = vmatprep.mubr.bf16.mxu1 %v19307_v4  ;;  %v14798_v13 = vpop.f32.mrb[107].mxu0  ;;  %v16923_v4 = vld [vmem:[#allocation2 + $0xf8] ss:$12 sps:$4 sm:$0xff]  }
 0x78f   : > { %v19426_v30 = vadd.f32 %v14798_v13, %v14797_v37  ;;  %v16928_v13 = vld [vmem:[#allocation11 + $0x5c8] sm:$0xff]  }
 0x793   : > { %v14800_v36 = vpop.f32.mrb[108].mxu0 }
 0x794   : > { %v14801_v19 = vpop.f32.mrb[109].mxu0 }
 0x795   : > { %8458 = vmatmul.mubr.bf16.gmra.mrb[24].mxu1 %v19311_v63  ;;  %v19430_v9 = vadd.f32 %v14801_v19, %v14800_v36  ;;  %v14803_v21 = vpop.f32.mrb[110].mxu0 }
 0x796   : > { %8465 = vmatprep.mubr.bf16.mxu1 %v19317_v33  ;;  %v14804_v16 = vpop.f32.mrb[111].mxu0  ;;  %v16926_v33 = vld [vmem:[#allocation2 + $0x128] ss:$12 sps:$4 sm:$0xff]  }
 0x797   : > { %v19432_v24 = vadd.f32 %v14804_v16, %v14803_v21 }
 0x79b   : > { %v14806_v14 = vpop.f32.mrb[112].mxu0 }
 0x79c   : > { %v14807_v48 = vpop.f32.mrb[113].mxu0 }
 0x79d   : > { %8466 = vmatmul.mubr.bf16.gmra.mrb[28].mxu1 %v19321_v28  ;;  %v19435_v58 = vadd.f32 %v14807_v48, %v14806_v14  ;;  %v14809_v11 = vpop.f32.mrb[114].mxu0  ;;  %v16931_v28 = vld [vmem:[#allocation11 + $0x5d0] sm:$0xff]   ;;  %v16927_v14 = vld [vmem:[#allocation2 + $0x140] ss:$12 sps:$4 sm:$0xff]  }
 0x79e   : > { %15206 = vmatprep.mubr.bf16.mxu1 %v16923_v4  ;;  %v14810_v63 = vpop.f32.mrb[115].mxu0 }
 0x79f   : > { %v19437_v37 = vadd.f32 %v14810_v63, %v14809_v11  ;;  %v16929_v11 = vld [vmem:[#allocation2 + $0x170] ss:$12 sps:$4 sm:$0xff]  }
 0x7a0   : > { %v16934_v63 = vld [vmem:[#allocation11 + $0x5d8] sm:$0xff]  }
 0x7a3   : > { %v14812_v36 = vpop.f32.mrb[116].mxu0 }
 0x7a4   : > { %v14813_v19 = vpop.f32.mrb[117].mxu0 }
 0x7a5   : > { %15207 = vmatmul.mubr.bf16.vlgmr.msra.gmra.mrb[64].mxu1 %v16924_v18  ;;  %v19440_v21 = vadd.f32 %v14813_v19, %v14812_v36  ;;  %v14815_v16 = vpop.f32.mrb[118].mxu0 }
 0x7a6   : > { %15239 = vmatpush3.bf16.msra.mxu1 %v19336_v10  ;;  %15210 = vmatprep.mubr.bf16.mxu1 %v16926_v33  ;;  %v14816_v4 = vpop.f32.mrb[119].mxu0  ;;  %v16937_v33 = vld [vmem:[#allocation11 + $0x5e0] sm:$0xff]  }
 0x7a7   : > { %15240 = vmatprep.subr.bf16.mxu1 %v16928_v13  ;;  %v19442_v48 = vadd.f32 %v14816_v4, %v14815_v16  ;;  %v16932_v16 = vld [vmem:[#allocation2 + $0x1a0] ss:$12 sps:$4 sm:$0xff]  }
 0x7aa   : > { %15241 = vmatpush3.bf16.msra.mxu1 %v16928_v13  ;;  %v16940_v13 = vld [vmem:[#allocation11 + $0x5e8] sm:$0xff]  }
 0x7ab   : > { %15242 = vmatprep.subr.bf16.mxu1 %v16931_v28  ;;  %v14818_v18 = vpop.f32.mrb[120].mxu0 }
 0x7ac   : > { %v14819_v10 = vpop.f32.mrb[121].mxu0 }
 0x7ad   : > { %15211 = vmatmul.mubr.bf16.gmra.mrb[68].mxu1 %v16927_v14  ;;  %v19444_v44 = vadd.f32 %v14819_v10, %v14818_v18  ;;  %v14821_v36 = vpop.f32.mrb[122].mxu0 }
 0x7ae   : > { %15214 = vmatprep.mubr.bf16.mxu1 %v16929_v11  ;;  %15243 = vmatpush3.bf16.msra.mxu1 %v16931_v28  ;;  %v14822_v19 = vpop.f32.mrb[123].mxu0  ;;  %v16943_v28 = vld [vmem:[#allocation11 + $0x5f0] sm:$0xff]  }
 0x7af   : > { %15244 = vmatprep.subr.bf16.mxu1 %v16934_v63  ;;  %v19446_v54 = vadd.f32 %v14822_v19, %v14821_v36  ;;  %v16935_v36 = vld [vmem:[#allocation2 + $0x1e8] ss:$12 sps:$4 sm:$0xff]  }
 0x7b2   : > { %15245 = vmatpush3.bf16.msra.mxu1 %v16934_v63  ;;  %v16946_v63 = vld [vmem:[#allocation11 + $0x5f8] sm:$0xff]  }
 0x7b3   : > { %15246 = vmatprep.subr.bf16.mxu1 %v16937_v33  ;;  %v14824_v4 = vpop.f32.mrb[124].mxu0 }
 0x7b4   : > { %v14825_v14 = vpop.f32.mrb[125].mxu0 }
 0x7b5   : > { %15215 = vmatmul.mubr.bf16.gmra.mrb[72].mxu1 %v16930_v8  ;;  %v19448_v11 = vadd.f32 %v14825_v14, %v14824_v4  ;;  %v14827_v18 = vpop.f32.mrb[126].mxu0 }
 0x7b6   : > { %15218 = vmatprep.mubr.bf16.mxu1 %v16932_v16  ;;  %15247 = vmatpush3.bf16.msra.mxu1 %v16937_v33  ;;  %v14828_v10 = vpop.f32.mrb[127].mxu0  ;;  %v16949_v33 = vld [vmem:[#allocation11 + $0x680] sm:$0xff]  }
 0x7b7   : > { %15248 = vmatprep.subr.bf16.mxu1 %v16940_v13  ;;  %v19450_v60 = vadd.f32 %v14828_v10, %v14827_v18  ;;  %v16938_v18 = vld [vmem:[#allocation2 + $0x218] ss:$12 sps:$4 sm:$0xff]  }
 0x7b9   : > { %21259 = vst [vmem:[#allocation113_spill] sm:$0xff] %v19450_v60 }
 0x7ba   : > { %15249 = vmatpush3.bf16.msra.mxu1 %v16940_v13 }
 0x7bb   : > { %15250 = vmatprep.subr.bf16.mxu1 %v16943_v28  ;;  %v14830_v19 = vpop.f32.mrb[128].mxu0 }
 0x7bc   : > { %v14831_v8 = vpop.f32.mrb[129].mxu0 }
 0x7bd   : > { %15219 = vmatmul.mubr.bf16.gmra.mrb[76].mxu1 %v16933_v29  ;;  %v19452_v16 = vadd.f32 %v14831_v8, %v14830_v19  ;;  %v14833_v4 = vpop.f32.mrb[130].mxu0  ;;  %v16941_v19 = vld [vmem:[#allocation2 + $0x260] ss:$12 sps:$4 sm:$0xff]  }
 0x7be   : > { %15222 = vmatprep.mubr.bf16.mxu1 %v16935_v36  ;;  %15251 = vmatpush3.bf16.msra.mxu1 %v16943_v28  ;;  %v14834_v14 = vpop.f32.mrb[131].mxu0 }
 0x7bf   : > { %15252 = vmatprep.subr.bf16.mxu1 %v16946_v63  ;;  %21260 = vst [vmem:[#allocation78_spill] sm:$0xff] %v19452_v16  ;;  %v19454_v2 = vadd.f32 %v14834_v14, %v14833_v4  ;;  %v16959_v16 = vld [vmem:[#allocation2 + $0x1f4] ss:$12 sps:$4 sm:$0xff]  }
 0x7c1   : > { %21261 = vst [vmem:[#allocation90_spill] sm:$0xff] %v19454_v2 }
 0x7c2   : > { %15253 = vmatpush3.bf16.msra.mxu1 %v16946_v63 }
 0x7c3   : > { %15286 = vmatprep.subr.bf16.mxu1 %v16949_v33  ;;  %v14836_v13 = vpop.f32.mrb[132].mxu0 }
 0x7c4   : > { %v14837_v29 = vpop.f32.mrb[133].mxu0 }
 0x7c5   : > { %15223 = vmatmul.mubr.bf16.gmra.mrb[80].mxu1 %v16936_v0  ;;  %v19456_v10 = vadd.f32 %v14837_v29, %v14836_v13  ;;  %v14839_v28 = vpop.f32.mrb[134].mxu0  ;;  %v16942_v0 = vld [vmem:[#allocation2 + $0x278] ss:$12 sps:$4 sm:$0xff]  }
 0x7c6   : > { %15226 = vmatprep.mubr.bf16.mxu1 %v16938_v18  ;;  %v14840_v36 = vpop.f32.mrb[135].mxu0  ;;  %v16944_v18 = vld [vmem:[#allocation2 + $0x290] ss:$12 sps:$4 sm:$0xff]  }
 0x7c7   : > { %21262 = vst [vmem:[#allocation115_spill] sm:$0xff] %v19456_v10  ;;  %v19458_v52 = vadd.f32 %v14840_v36, %v14839_v28 }
 0x7c9   : > { %21263 = vst [vmem:[#allocation106_spill] sm:$0xff] %v19458_v52 }
 0x7cb   : > { %v14842_v8 = vpop.f32.mrb[136].mxu0 }
 0x7cc   : > { %v14843_v4 = vpop.f32.mrb[137].mxu0 }
 0x7cd   : > { %15227 = vmatmul.mubr.bf16.gmra.mrb[84].mxu1 %v16939_v32  ;;  %v19460_v14 = vadd.f32 %v14843_v4, %v14842_v8  ;;  %v14845_v63 = vpop.f32.mrb[138].mxu0  ;;  %v16945_v32 = vld [vmem:[#allocation2 + $0x2a8] ss:$12 sps:$4 sm:$0xff]  }
 0x7ce   : > { %15230 = vmatprep.mubr.bf16.mxu1 %v16941_v19  ;;  %v14846_v2 = vpop.f32.mrb[139].mxu0  ;;  %v16947_v19 = vld [vmem:[#allocation2 + $0x104] ss:$12 sps:$4 sm:$0xff]  }
 0x7cf   : > { %21264 = vst [vmem:[#allocation105_spill] sm:$0xff] %v19460_v14  ;;  %v19462_v59 = vadd.f32 %v14846_v2, %v14845_v63 }
 0x7d1   : > { %21265 = vst [vmem:[#allocation57_spill] sm:$0xff] %v19462_v59 }
 0x7d3   : > { %v14848_v13 = vpop.f32.mrb[140].mxu0 }
 0x7d4   : > { %v14849_v29 = vpop.f32.mrb[141].mxu0 }
 0x7d5   : > { %15231 = vmatmul.mubr.bf16.gmra.mrb[88].mxu1 %v16942_v0  ;;  %v19464_v10 = vadd.f32 %v14849_v29, %v14848_v13  ;;  %v14851_v28 = vpop.f32.mrb[142].mxu0  ;;  %v16948_v0 = vld [vmem:[#allocation2 + $0x11c] ss:$12 sps:$4 sm:$0xff]  }
 0x7d6   : > { %15234 = vmatprep.mubr.bf16.mxu1 %v16944_v18  ;;  %v14852_v36 = vpop.f32.mrb[143].mxu0  ;;  %v16950_v18 = vld [vmem:[#allocation2 + $0x134] ss:$12 sps:$4 sm:$0xff]  }
 0x7d7   : > { %21266 = vst [vmem:[#allocation92_spill] sm:$0xff] %v19464_v10  ;;  %v19466_v52 = vadd.f32 %v14852_v36, %v14851_v28  ;;  %v16952_v13 = vld [vmem:[#allocation11 + $0x688] sm:$0xff]   ;;  %v16955_v36 = vld [vmem:[#allocation11 + $0x690] sm:$0xff]  }
 0x7d9   : > { %21267 = vst [vmem:[#allocation58_spill] sm:$0xff] %v19466_v52 }
 0x7db   : > { %v14854_v8 = vpop.f32.mrb[144].mxu0 }
 0x7dc   : > { %v14855_v4 = vpop.f32.mrb[145].mxu0 }
 0x7dd   : > { %15235 = vmatmul.mubr.bf16.gmra.mrb[92].mxu1 %v16945_v32  ;;  %v19468_v14 = vadd.f32 %v14855_v4, %v14854_v8  ;;  %v14857_v2 = vpop.f32.mrb[146].mxu0  ;;  %v16951_v8 = vld [vmem:[#allocation2 + $0x14c] ss:$12 sps:$4 sm:$0xff]  }
 0x7de   : > { %15254 = vmatprep.mubr.bf16.mxu1 %v16947_v19  ;;  %v14858_v63 = vpop.f32.mrb[147].mxu0 }
 0x7df   : > { %21268 = vst [vmem:[#allocation79_spill] sm:$0xff] %v19468_v14  ;;  %v19470_v59 = vadd.f32 %v14858_v63, %v14857_v2  ;;  %v16953_v14 = vld [vmem:[#allocation2 + $0x17c] ss:$12 sps:$4 sm:$0xff]   ;;  %v16958_v2 = vld [vmem:[#allocation11 + $0x698] sm:$0xff]  }
 0x7e1   : > { %21269 = vst [vmem:[#allocation116_spill] sm:$0xff] %v19470_v59 }
 0x7e3   : > { %v14860_v29 = vpop.f32.mrb[148].mxu0 }
 0x7e4   : > { %v14861_v28 = vpop.f32.mrb[149].mxu0 }
 0x7e5   : > { %15255 = vmatmul.mubr.bf16.vlgmr.msra.gmra.mrb[64].mxu1 %v16948_v0  ;;  %v19472_v32 = vadd.f32 %v14861_v28, %v14860_v29  ;;  %v14863_v19 = vpop.f32.mrb[150].mxu0  ;;  %v16961_v0 = vld [vmem:[#allocation11 + $0x6a0] sm:$0xff]  }
 0x7e6   : > { %15287 = vmatpush3.bf16.msra.mxu1 %v16949_v33  ;;  %15258 = vmatprep.mubr.bf16.mxu1 %v16950_v18  ;;  %v14864_v52 = vpop.f32.mrb[151].mxu0 }
 0x7e7   : > { %15288 = vmatprep.subr.bf16.mxu1 %v16952_v13  ;;  %21270 = vst [vmem:[#allocation80_spill] sm:$0xff] %v19472_v32  ;;  %v19474_v4 = vadd.f32 %v14864_v52, %v14863_v19  ;;  %v16954_v32 = vld [vmem:[#allocation2 + $0x194] ss:$12 sps:$4 sm:$0xff]   ;;  %v16956_v52 = vld [vmem:[#allocation2 + $0x1ac] ss:$12 sps:$4 sm:$0xff]  }
 0x7e9   : > { %21271 = vst [vmem:[#allocation94_spill] sm:$0xff] %v19474_v4  ;;  %v16967_v4 = vld [vmem:[#allocation11 + $0x6b0] sm:$0xff]  }
 0x7ea   : > { %15289 = vmatpush3.bf16.msra.mxu1 %v16952_v13  ;;  %v16964_v13 = vld [vmem:[#allocation11 + $0x6a8] sm:$0xff]  }
 0x7eb   : > { %15290 = vmatprep.subr.bf16.mxu1 %v16955_v36  ;;  %v14866_v63 = vpop.f32.mrb[152].mxu0 }
 0x7ec   : > { %v14867_v33 = vpop.f32.mrb[153].mxu0 }
 0x7ed   : > { %15259 = vmatmul.mubr.bf16.gmra.mrb[68].mxu1 %v16951_v8  ;;  %v19476_v18 = vadd.f32 %v14867_v33, %v14866_v63  ;;  %v14869_v29 = vpop.f32.mrb[154].mxu0  ;;  %v16989_v8 = vld [vmem:[#allocation15 + $0x4] ss:$16 sps:$4 sm:$0xff]  }
 0x7ee   : > { %15262 = vmatprep.mubr.bf16.mxu1 %v16953_v14  ;;  %15291 = vmatpush3.bf16.msra.mxu1 %v16955_v36  ;;  %v14870_v28 = vpop.f32.mrb[155].mxu0  ;;  %v16987_v36 = vld [vmem:[#allocation15] ss:$16 sps:$4 sm:$0xff]  }
 0x7ef   : > { %15292 = vmatprep.subr.bf16.mxu1 %v16958_v2  ;;  %21272 = vst [vmem:[#allocation119_spill] sm:$0xff] %v19476_v18  ;;  %v19478_v59 = vadd.f32 %v14870_v28, %v14869_v29  ;;  %v16992_v18 = vld [vmem:[#allocation15 + $0x24] ss:$16 sps:$4 sm:$0xff]   ;;  %10721 = vmatprep.subr.bf16.mxu0 %v16989_v8  ;;  %v16993_v8 = vld [vmem:[#allocation15 + $0x40] ss:$16 sps:$4 sm:$0xff]  }
 0x7f0   : > { %10722 = vmatpush1.bf16.msra.mxu0 %v16987_v36  ;;  %v16998_v36 = vld [vmem:[#allocation15 + $0x64] ss:$16 sps:$4 sm:$0xff]  }
 0x7f1   : > { %21273 = vst [vmem:[#allocation110_spill] sm:$0xff] %v19478_v59  ;;  %10723 = vmatprep.subr.bf16.mxu0 %v16992_v18  ;;  %v19487_v18 = vld [vmem:[#allocation15 + $0xc] ss:$16 sps:$4 sm:$0xff]  }
 0x7f2   : > { %15293 = vmatpush3.bf16.msra.mxu1 %v16958_v2  ;;  %v16957_v2 = vld [vmem:[#allocation2 + $0x1c4] ss:$12 sps:$4 sm:$0xff]  }
 0x7f3   : > { %15294 = vmatprep.subr.bf16.mxu1 %v16961_v0  ;;  %v14872_v19 = vpop.f32.mrb[156].mxu0 }
 0x7f4   : > { %v14873_v14 = vpop.f32.mrb[157].mxu0 }
 0x7f5   : > { %15263 = vmatmul.mubr.bf16.gmra.mrb[72].mxu1 %v16954_v32  ;;  %v19480_v63 = vadd.f32 %v14873_v14, %v14872_v19  ;;  %v14875_v33 = vpop.f32.mrb[158].mxu0  ;;  %v16990_v32 = vld [vmem:[#allocation15 + $0x20] ss:$16 sps:$4 sm:$0xff]   ;;  %v16970_v19 = vld [vmem:[#allocation11 + $0x6b8] sm:$0xff]  }
 0x7f6   : > { %15266 = vmatprep.mubr.bf16.mxu1 %v16956_v52  ;;  %15295 = vmatpush3.bf16.msra.mxu1 %v16961_v0  ;;  %v14876_v29 = vpop.f32.mrb[159].mxu0  ;;  %v16995_v14 = vld [vmem:[#allocation15 + $0x44] ss:$16 sps:$4 sm:$0xff]  }
 0x7f7   : > { %15296 = vmatprep.subr.bf16.mxu1 %v16964_v13  ;;  %21274 = vst [vmem:[#allocation107_spill] sm:$0xff] %v19480_v63  ;;  %v19482_v59 = vadd.f32 %v14876_v29, %v14875_v33  ;;  %10724 = vmatpush1.bf16.msra.mxu0 %v16990_v32 }
 0x7f8   : > { %v14510_v10 = vpop.f32.mrb[224].mxu1  ;;  %10725 = vmatprep.subr.bf16.mxu0 %v16995_v14 }
 0x7f9   : > { %v14511_v28 = vpop.f32.mrb[225].mxu1 }
 0x7fa   : > { %v14512_v52 = vadd.f32 %v14511_v28, %v14510_v10  ;;  %v14513_v0 = vpop.f32.mrb[226].mxu1  ;;  %15297 = vmatpush3.bf16.msra.mxu1 %v16964_v13  ;;  %v16960_v28 = vld [vmem:[#allocation2 + $0x20c] ss:$12 sps:$4 sm:$0xff]  }
 0x7fb   : > { %v14514_v3 = vpop.f32.mrb[227].mxu1  ;;  %15298 = vmatprep.subr.bf16.mxu1 %v16967_v4  ;;  %10726 = vmatpush1.bf16.msra.mxu0 %v16993_v8 }
 0x7fc   : > { %v15364_v63 = vadd.f32 %v18983_v41, %v14512_v52  ;;  %v14515_v60 = vadd.f32 %v14514_v3, %v14513_v0  ;;  %10727 = vmatprep.subr.bf16.mxu0 %v16998_v36  ;;  %v17004_v0 = vld [vmem:[#allocation15 + $0xa4] ss:$16 sps:$4 sm:$0xff]  }
 0x7fd   : > { %15267 = vmatmul.mubr.bf16.gmra.mrb[76].mxu1 %v16957_v2  ;;  %v16996_v2 = vld [vmem:[#allocation15 + $0x60] ss:$16 sps:$4 sm:$0xff]  }
 0x7fe   : > { %v15382_v33 = vadd.f32 %v18991_v17, %v14515_v60  ;;  %15270 = vmatprep.mubr.bf16.mxu1 %v16959_v16  ;;  %15299 = vmatpush3.bf16.msra.mxu1 %v16967_v4  ;;  %v15365_v10 = vadd.f32 %v15364_v63, %v19334_v46  ;;  %v16962_v16 = vld [vmem:[#allocation2 + $0x224] ss:$12 sps:$4 sm:$0xff]   ;;  %v17001_v46 = vld [vmem:[#allocation15 + $0x84] ss:$16 sps:$4 sm:$0xff]  }
 0x7ff   : > { %15300 = vmatprep.subr.bf16.mxu1 %v16970_v19  ;;  %10728 = vmatpush1.bf16.msra.mxu0 %v16996_v2  ;;  %v16963_v36 = vld [vmem:[#allocation2 + $0x23c] ss:$12 sps:$4 sm:$0xff]  }
 0x800   : > { %v14516_v13 = vpop.f32.mrb[228].mxu1  ;;  %v19490_v29 = vadd.f32 %v15365_v10, %v19413_v6  ;;  %v15383_v41 = vadd.f32 %v15382_v33, %v19338_v25  ;;  %v16999_v25 = vld [vmem:[#allocation15 + $0x80] ss:$16 sps:$4 sm:$0xff]   ;;  %10729 = vmatprep.subr.bf16.mxu0 %v17001_v46 }
 0x801   : > { %v14517_v3 = vpop.f32.mrb[229].mxu1 }
 0x802   : > { %v14518_v17 = vadd.f32 %v14517_v3, %v14516_v13  ;;  %v14519_v60 = vpop.f32.mrb[230].mxu1  ;;  %15301 = vmatpush3.bf16.msra.mxu1 %v16970_v19  ;;  %v19494_v4 = vadd.f32 %v15383_v41, %v19415_v31  ;;  %v16965_v41 = vld [vmem:[#allocation2 + $0x26c] ss:$12 sps:$4 sm:$0xff]  }
 0x803   : > { %v14520_v63 = vpop.f32.mrb[231].mxu1  ;;  %15334 = vmatprep.subr.bf16.mxu1 %v19487_v18  ;;  %10730 = vmatpush1.bf16.msra.mxu0 %v16999_v25 }
 0x804   : > { %v15355_v6 = vadd.f32 %v19004_v12, %v14518_v17  ;;  %v14521_v32 = vadd.f32 %v14520_v63, %v14519_v60  ;;  %v17002_v12 = vld [vmem:[#allocation15 + $0xa0] ss:$16 sps:$4 sm:$0xff]   ;;  %10731 = vmatprep.subr.bf16.mxu0 %v17004_v0  ;;  %v17016_v17 = vld [vmem:[#allocation15 + $0xe4] ss:$16 sps:$4 sm:$0xff]  }
 0x805   : > { %15271 = vmatmul.mubr.bf16.gmra.mrb[80].mxu1 %v16960_v28 }
 0x806   : > { %v15373_v52 = vadd.f32 %v19011_v42, %v14521_v32  ;;  %15274 = vmatprep.mubr.bf16.mxu1 %v16962_v16  ;;  %v15356_v19 = vadd.f32 %v15355_v6, %v19340_v26  ;;  %v17007_v42 = vld [vmem:[#allocation15 + $0xc4] ss:$16 sps:$4 sm:$0xff]   ;;  %v16966_v6 = vld [vmem:[#allocation2 + $0x284] ss:$12 sps:$4 sm:$0xff]  }
 0x807   : > { %10732 = vmatpush1.bf16.msra.mxu0 %v17002_v12 }
 0x808   : > { %v14522_v14 = vpop.f32.mrb[232].mxu1  ;;  %v19501_v31 = vadd.f32 %v15356_v19, %v19418_v50  ;;  %v15374_v8 = vadd.f32 %v15373_v52, %v19343_v49  ;;  %v17005_v50 = vld [vmem:[#allocation15 + $0xc0] ss:$16 sps:$4 sm:$0xff]   ;;  %10733 = vmatprep.subr.bf16.mxu0 %v17007_v42 }
 0x809   : > { %v14523_v33 = vpop.f32.mrb[233].mxu1  ;;  %v16968_v52 = vld [vmem:[#allocation2 + $0x29c] ss:$12 sps:$4 sm:$0xff]  }
 0x80a   : > { %v14524_v10 = vadd.f32 %v14523_v33, %v14522_v14  ;;  %v14525_v13 = vpop.f32.mrb[234].mxu1  ;;  %v19505_v3 = vadd.f32 %v15374_v8, %v19420_v7 }
 0x80b   : > { %v14526_v28 = vpop.f32.mrb[235].mxu1  ;;  %10734 = vmatpush1.bf16.msra.mxu0 %v17005_v50 }
 0x80c   : > { %v15400_v26 = vadd.f32 %v19028_v40, %v14524_v10  ;;  %v14527_v2 = vadd.f32 %v14526_v28, %v14525_v13  ;;  %v17014_v40 = vld [vmem:[#allocation15 + $0xe0] ss:$16 sps:$4 sm:$0xff]   ;;  %10735 = vmatprep.subr.bf16.mxu0 %v17016_v17  ;;  %v16971_v10 = vld [vmem:[#allocation2 + $0x110] ss:$12 sps:$4 sm:$0xff]  }
 0x80d   : > { %15275 = vmatmul.mubr.bf16.gmra.mrb[84].mxu1 %v16963_v36  ;;  %v16969_v36 = vld [vmem:[#allocation2 + $0x2b4] ss:$12 sps:$4 sm:$0xff]  }
 0x80e   : > { %v15418_v49 = vadd.f32 %v19033_v38, %v14527_v2  ;;  %15278 = vmatprep.mubr.bf16.mxu1 %v16965_v41  ;;  %v15401_v60 = vadd.f32 %v15400_v26, %v19346_v57  ;;  %v16972_v2 = vld [vmem:[#allocation2 + $0x128] ss:$12 sps:$4 sm:$0xff]   ;;  %v19535_v17 = vld [vmem:[#allocation15 + $0x8] ss:$16 sps:$4 sm:$0xff]  }
 0x80f   : > { %10736 = vmatpush1.bf16.msra.mxu0 %v17014_v40 }
 0x810   : > { %v14528_v16 = vpop.f32.mrb[236].mxu1  ;;  %v19511_v46 = vadd.f32 %v15401_v60, %v19424_v39  ;;  %v15419_v7 = vadd.f32 %v15418_v49, %v19348_v22  ;;  %10914 = vmatprep.subr.bf16.mxu0 %v19487_v18  ;;  %v16973_v49 = vld [vmem:[#allocation2 + $0x140] ss:$12 sps:$4 sm:$0xff]   ;;  %v19540_v60 = vld [vmem:[#allocation15 + $0x2c] ss:$16 sps:$4 sm:$0xff]  }
 0x811   : > { %v14529_v63 = vpop.f32.mrb[237].mxu1 }
 0x812   : > { %v14530_v32 = vadd.f32 %v14529_v63, %v14528_v16  ;;  %v14531_v25 = vpop.f32.mrb[238].mxu1  ;;  %v19515_v38 = vadd.f32 %v15419_v7, %v19426_v30 }
 0x813   : > { %v14532_v0 = vpop.f32.mrb[239].mxu1 }
 0x814   : > { %v15391_v57 = vadd.f32 %v19052_v23, %v14530_v32  ;;  %v14533_v19 = vadd.f32 %v14532_v0, %v14531_v25  ;;  %v16974_v32 = vld [vmem:[#allocation2 + $0x158] ss:$12 sps:$4 sm:$0xff]   ;;  %v19556_v0 = vld [vmem:[#allocation15 + $0x48] ss:$16 sps:$4 sm:$0xff]  }
 0x815   : > { %15279 = vmatmul.mubr.bf16.gmra.mrb[88].mxu1 %v16966_v6 }
 0x816   : > { %v15409_v39 = vadd.f32 %v19057_v56, %v14533_v19  ;;  %15282 = vmatprep.mubr.bf16.mxu1 %v16968_v52  ;;  %v15392_v22 = vadd.f32 %v15391_v57, %v19350_v35  ;;  %v16975_v52 = vld [vmem:[#allocation2 + $0x188] ss:$12 sps:$4 sm:$0xff]  }
 0x818   : > { %v14534_v14 = vpop.f32.mrb[240].mxu1  ;;  %v19522_v8 = vadd.f32 %v15392_v22, %v19430_v9  ;;  %v15410_v30 = vadd.f32 %v15409_v39, %v19352_v51 }
 0x819   : > { %v14535_v33 = vpop.f32.mrb[241].mxu1 }
 0x81a   : > { %v14536_v12 = vadd.f32 %v14535_v33, %v14534_v14  ;;  %v14537_v23 = vpop.f32.mrb[242].mxu1  ;;  %v19526_v13 = vadd.f32 %v15410_v30, %v19432_v24 }
 0x81b   : > { %v14538_v56 = vpop.f32.mrb[243].mxu1 }
 0x81c   : > { %v15436_v41 = vadd.f32 %v19072_v61, %v14536_v12  ;;  %v14539_v35 = vadd.f32 %v14538_v56, %v14537_v23 }
 0x81d   : > { %15283 = vmatmul.mubr.bf16.gmra.mrb[92].mxu1 %v16969_v36  ;;  %v16976_v36 = vld [vmem:[#allocation2 + $0x1a0] ss:$12 sps:$4 sm:$0xff]  }
 0x81e   : > { %v15454_v18 = vadd.f32 %v19077_v1, %v14539_v35  ;;  %15302 = vmatprep.mubr.bf16.mxu1 %v16971_v10  ;;  %v15437_v9 = vadd.f32 %v15436_v41, %v19356_v53  ;;  %v21276_v41 = vld [vmem:[#allocation40_spill] sm:$0xff] }
 0x820   : > { %v14540_v42 = vpop.f32.mrb[244].mxu1  ;;  %v19532_v51 = vadd.f32 %v15437_v9, %v19435_v58  ;;  %v15455_v28 = vadd.f32 %v15454_v18, %v19358_v43  ;;  %v19545_v43 = vld [vmem:[#allocation15 + $0x28] ss:$16 sps:$4 sm:$0xff]  }
 0x821   : > { %v14541_v26 = vpop.f32.mrb[245].mxu1 }
 0x822   : > { %v14542_v24 = vadd.f32 %v14541_v26, %v14540_v42  ;;  %v14543_v50 = vpop.f32.mrb[246].mxu1  ;;  %v19538_v61 = vadd.f32 %v15455_v28, %v19437_v37  ;;  %v19549_v37 = vld [vmem:[#allocation15 + $0x4c] ss:$16 sps:$4 sm:$0xff]  }
 0x823   : > { %v14544_v1 = vpop.f32.mrb[247].mxu1 }
 0x824   : > { %v15427_v53 = vadd.f32 %v19090_v20, %v14542_v24  ;;  %v14545_v16 = vadd.f32 %v14544_v1, %v14543_v50  ;;  %v16979_v50 = vld [vmem:[#allocation2 + $0x200] ss:$12 sps:$4 sm:$0xff]  }
 0x825   : > { %15303 = vmatmul.mubr.bf16.vlgmr.msra.gmra.mrb[64].mxu1 %v16972_v2  ;;  %v16978_v2 = vld [vmem:[#allocation2 + $0x1d0] ss:$12 sps:$4 sm:$0xff]  }
 0x826   : > { %v15445_v58 = vadd.f32 %v19096_v47, %v14545_v16  ;;  %15306 = vmatprep.mubr.bf16.mxu1 %v16973_v49  ;;  %15342 = vmatpush1.bf16.msra.mxu1 %v19535_v17  ;;  %v15428_v7 = vadd.f32 %v15427_v53, %v19360_v34  ;;  %v21278_v49 = vld [vmem:[#allocation113_spill] sm:$0xff]  ;;  %v21279_v16 = vld [vmem:[#allocation42_spill] sm:$0xff] }
 0x827   : > { %15335 = vmatprep.subr.bf16.mxu1 %v19540_v60 }
 0x828   : > { %v14546_v63 = vpop.f32.mrb[248].mxu1  ;;  %v19552_v6 = vadd.f32 %v15428_v7, %v19440_v21  ;;  %v15446_v20 = vadd.f32 %v15445_v58, %v19362_v27  ;;  %v21275_v27 = vld [vmem:[#allocation39_spill] sm:$0xff] }
 0x829   : > { %v14547_v40 = vpop.f32.mrb[249].mxu1 }
 0x82a   : > { %v14548_v47 = vadd.f32 %v14547_v40, %v14546_v63  ;;  %v14549_v25 = vpop.f32.mrb[250].mxu1  ;;  %15343 = vmatpush1.bf16.msra.mxu1 %v19545_v43  ;;  %v19559_v34 = vadd.f32 %v15446_v20, %v19442_v48 }
 0x82b   : > { %v14550_v57 = vpop.f32.mrb[251].mxu1  ;;  %15336 = vmatprep.subr.bf16.mxu1 %v19549_v37 }
 0x82c   : > { %v15472_v21 = vadd.f32 %v19108_v15, %v14548_v47  ;;  %v14551_v19 = vadd.f32 %v14550_v57, %v14549_v25  ;;  %v16977_v15 = vld [vmem:[#allocation2 + $0x1b8] ss:$12 sps:$4 sm:$0xff]   ;;  %v21283_v47 = vld [vmem:[#allocation108_spill] sm:$0xff] }
 0x82d   : > { %15307 = vmatmul.mubr.bf16.gmra.mrb[68].mxu1 %v16974_v32  ;;  %v16980_v57 = vld [vmem:[#allocation2 + $0x218] ss:$12 sps:$4 sm:$0xff]  }
 0x82e   : > { %v15490_v39 = vadd.f32 %v21275_v27, %v14551_v19  ;;  %15310 = vmatprep.mubr.bf16.mxu1 %v16975_v52  ;;  %15344 = vmatpush1.bf16.msra.mxu1 %v19556_v0  ;;  %v15473_v22 = vadd.f32 %v15472_v21, %v19366_v62  ;;  %v21277_v62 = vld [vmem:[#allocation41_spill] sm:$0xff] }
 0x82f   : > { %v16981_v27 = vld [vmem:[#allocation2 + $0x230] ss:$12 sps:$4 sm:$0xff]  }
 0x830   : > { %v14552_v14 = vpop.f32.mrb[252].mxu1  ;;  %v19567_v30 = vadd.f32 %v15473_v22, %v19444_v44  ;;  %v15491_v48 = vadd.f32 %v15490_v39, %v19368_v5  ;;  %v21284_v39 = vld [vmem:[#allocation90_spill] sm:$0xff] }
 0x831   : > { %v14553_v33 = vpop.f32.mrb[253].mxu1 }
 0x832   : > { %v14554_v12 = vadd.f32 %v14553_v33, %v14552_v14  ;;  %v14555_v23 = vpop.f32.mrb[254].mxu1  ;;  %v19571_v10 = vadd.f32 %v15491_v48, %v19446_v54  ;;  %v21285_v48 = vld [vmem:[#allocation44_spill] sm:$0xff] }
 0x833   : > { %v14556_v56 = vpop.f32.mrb[255].mxu1 }
 0x834   : > { %v15463_v35 = vadd.f32 %v21276_v41, %v14554_v12  ;;  %v14557_v18 = vadd.f32 %v14556_v56, %v14555_v23  ;;  %v21286_v12 = vld [vmem:[#allocation45_spill] sm:$0xff] }
 0x835   : > { %15311 = vmatmul.mubr.bf16.gmra.mrb[72].mxu1 %v16976_v36 }
 0x836   : > { %v15481_v9 = vadd.f32 %v21277_v62, %v14557_v18  ;;  %15314 = vmatprep.mubr.bf16.mxu1 %v16977_v15  ;;  %v15464_v44 = vadd.f32 %v15463_v35, %v19370_v55  ;;  %v21280_v55 = vld [vmem:[#allocation43_spill] sm:$0xff]  ;;  %v21287_v15 = vld [vmem:[#allocation53_spill] sm:$0xff]  ;;  %v21289_v62 = vld [vmem:[#allocation84_spill] sm:$0xff] }
 0x837   : > { %v21288_v35 = vld [vmem:[#allocation115_spill] sm:$0xff] }
 0x838   : > { %v14558_v42 = vpop.f32.mrb[0].mxu1  ;;  %v19577_v5 = vadd.f32 %v15464_v44, %v19448_v11  ;;  %v15482_v28 = vadd.f32 %v15481_v9, %v19372_v45  ;;  %v21281_v11 = vld [vmem:[#allocation74_spill] sm:$0xff] }
 0x839   : > { %v14559_v26 = vpop.f32.mrb[1].mxu1  ;;  %v21282_v45 = vld [vmem:[#allocation78_spill] sm:$0xff] }
 0x83a   : > { %v14560_v54 = vadd.f32 %v14559_v26, %v14558_v42  ;;  %v14561_v24 = vpop.f32.mrb[2].mxu1  ;;  %v19581_v1 = vadd.f32 %v15482_v28, %v21278_v49  ;;  %v16982_v42 = vld [vmem:[#allocation2 + $0x248] ss:$12 sps:$4 sm:$0xff]   ;;  %v21291_v49 = vld [vmem:[#allocation46_spill] sm:$0xff] }
 0x83b   : > { %v14562_v53 = vpop.f32.mrb[3].mxu1 }
 0x83c   : > { %v15508_v58 = vadd.f32 %v21279_v16, %v14560_v54  ;;  %v14563_v7 = vadd.f32 %v14562_v53, %v14561_v24  ;;  %v21290_v54 = vld [vmem:[#allocation106_spill] sm:$0xff] }
 0x83d   : > { %15315 = vmatmul.mubr.bf16.gmra.mrb[76].mxu1 %v16978_v2  ;;  %v16983_v2 = vld [vmem:[#allocation2 + $0x278] ss:$12 sps:$4 sm:$0xff]  }
 0x83e   : > { %v15526_v63 = vadd.f32 %v21280_v55, %v14563_v7  ;;  %15318 = vmatprep.mubr.bf16.mxu1 %v16979_v50  ;;  %v15509_v20 = vadd.f32 %v15508_v58, %v21281_v11  ;;  %v21292_v58 = vld [vmem:[#allocation47_spill] sm:$0xff]  ;;  %v21293_v55 = vld [vmem:[#allocation54_spill] sm:$0xff] }
 0x840   : > { %v14564_v40 = vpop.f32.mrb[4].mxu1  ;;  %v19587_v32 = vadd.f32 %v15509_v20, %v21282_v45  ;;  %v15527_v25 = vadd.f32 %v15526_v63, %v21283_v47  ;;  %v21294_v20 = vld [vmem:[#allocation105_spill] sm:$0xff]  ;;  %v21295_v45 = vld [vmem:[#allocation75_spill] sm:$0xff] }
 0x841   : > { %v14565_v52 = vpop.f32.mrb[5].mxu1 }
 0x842   : > { %v14566_v21 = vadd.f32 %v14565_v52, %v14564_v40  ;;  %v14567_v19 = vpop.f32.mrb[6].mxu1  ;;  %v19591_v22 = vadd.f32 %v15527_v25, %v21284_v39  ;;  %v16984_v52 = vld [vmem:[#allocation2 + $0x290] ss:$12 sps:$4 sm:$0xff]  }
 0x843   : > { %v14568_v14 = vpop.f32.mrb[7].mxu1 }
 0x844   : > { %v15499_v33 = vadd.f32 %v21285_v48, %v14566_v21  ;;  %v14569_v36 = vadd.f32 %v14568_v14, %v14567_v19  ;;  %v16985_v19 = vld [vmem:[#allocation2 + $0x2a8] ss:$12 sps:$4 sm:$0xff]  }
 0x845   : > { %15319 = vmatmul.mubr.bf16.gmra.mrb[80].mxu1 %v16980_v57  ;;  %v21297_v48 = vld [vmem:[#allocation48_spill] sm:$0xff] }
 0x846   : > { %v15517_v23 = vadd.f32 %v21286_v12, %v14569_v36  ;;  %15322 = vmatprep.mubr.bf16.mxu1 %v16981_v27  ;;  %v15500_v56 = vadd.f32 %v15499_v33, %v21287_v15  ;;  %v21296_v27 = vld [vmem:[#allocation57_spill] sm:$0xff] }
 0x847   : > { %v21298_v12 = vld [vmem:[#allocation69_spill] sm:$0xff] }
 0x848   : > { %v14570_v41 = vpop.f32.mrb[8].mxu1  ;;  %v19597_v18 = vadd.f32 %v15500_v56, %v21288_v35  ;;  %v15518_v9 = vadd.f32 %v15517_v23, %v21289_v62  ;;  %v21299_v15 = vld [vmem:[#allocation109_spill] sm:$0xff]  ;;  %v21300_v35 = vld [vmem:[#allocation92_spill] sm:$0xff] }
 0x849   : > { %v14571_v44 = vpop.f32.mrb[9].mxu1 }
 0x84a   : > { %v14572_v28 = vadd.f32 %v14571_v44, %v14570_v41  ;;  %v14573_v26 = vpop.f32.mrb[10].mxu1  ;;  %v19601_v24 = vadd.f32 %v15518_v9, %v21290_v54  ;;  %v21301_v9 = vld [vmem:[#allocation76_spill] sm:$0xff]  ;;  %v21302_v54 = vld [vmem:[#allocation58_spill] sm:$0xff] }
 0x84b   : > { %v14574_v50 = vpop.f32.mrb[11].mxu1 }
 0x84c   : > { %v15544_v53 = vadd.f32 %v21291_v49, %v14572_v28  ;;  %v14575_v16 = vadd.f32 %v14574_v50, %v14573_v26  ;;  %v16986_v28 = vld [vmem:[#allocation2 + $0x2c0] ss:$12 sps:$4 sm:$0xff]  }
 0x84d   : > { %15323 = vmatmul.mubr.bf16.gmra.mrb[84].mxu1 %v16982_v42 }
 0x84e   : > { %v15562_v7 = vadd.f32 %v21292_v58, %v14575_v16  ;;  %15326 = vmatprep.mubr.bf16.mxu1 %v16983_v2  ;;  %v15545_v63 = vadd.f32 %v15544_v53, %v21293_v55  ;;  %v21303_v53 = vld [vmem:[#allocation70_spill] sm:$0xff] }
 0x850   : > { %v14576_v11 = vpop.f32.mrb[12].mxu1  ;;  %v19607_v40 = vadd.f32 %v15545_v63, %v21294_v20  ;;  %v15563_v47 = vadd.f32 %v15562_v7, %v21295_v45  ;;  %v21304_v7 = vld [vmem:[#allocation49_spill] sm:$0xff]  ;;  %v21305_v63 = vmov 0  }
 0x851   : > { %v14577_v25 = vpop.f32.mrb[13].mxu1 }
 0x852   : > { %v14578_v57 = vadd.f32 %v14577_v25, %v14576_v11  ;;  %v14579_v21 = vpop.f32.mrb[14].mxu1  ;;  %v19611_v39 = vadd.f32 %v15563_v47, %v21296_v27  ;;  %v21306_v11 = vld [vmem:[#allocation86_spill] sm:$0xff]  ;;  %v21307_v47 = vld [vmem:[#allocation79_spill] sm:$0xff] }
 0x853   : > { %v14580_v14 = vpop.f32.mrb[15].mxu1 }
 0x854   : > { %v15535_v33 = vadd.f32 %v21297_v48, %v14578_v57  ;;  %v14581_v36 = vadd.f32 %v14580_v14, %v14579_v21  ;;  %v21309_v14 = vld [vmem:[#allocation116_spill] sm:$0xff] }
 0x855   : > { %15327 = vmatmul.mubr.bf16.gmra.mrb[88].mxu1 %v16984_v52  ;;  %v21308_v52 = vld [vmem:[#allocation112_spill] sm:$0xff] }
 0x856   : > { %v15553_v23 = vadd.f32 %v21298_v12, %v14581_v36  ;;  %15330 = vmatprep.mubr.bf16.mxu1 %v16985_v19  ;;  %v15536_v56 = vadd.f32 %v15535_v33, %v21299_v15  ;;  %v21310_v36 = vld [vmem:[#allocation50_spill] sm:$0xff]  ;;  %v21311_v15 = vld [vmem:[#allocation71_spill] sm:$0xff] }
 0x858   : > { %v14582_v41 = vpop.f32.mrb[16].mxu1  ;;  %v19617_v62 = vadd.f32 %v15536_v56, %v21300_v35  ;;  %v15554_v44 = vadd.f32 %v15553_v23, %v21301_v9 }
 0x859   : > { %v14583_v42 = vpop.f32.mrb[17].mxu1 }
 0x85a   : > { %v14584_v26 = vadd.f32 %v14583_v42, %v14582_v41  ;;  %v14585_v2 = vpop.f32.mrb[18].mxu1  ;;  %v19621_v50 = vadd.f32 %v15554_v44, %v21302_v54  ;;  %v21312_v41 = vld [vmem:[#allocation104_spill] sm:$0xff] }
 0x85b   : > { %v14586_v49 = vpop.f32.mrb[19].mxu1  ;;  %v21313_v44 = vld [vmem:[#allocation80_spill] sm:$0xff] }
 0x85c   : > { %v15580_v16 = vadd.f32 %v21303_v53, %v14584_v26  ;;  %v14587_v58 = vadd.f32 %v14586_v49, %v14585_v2  ;;  %v21315_v53 = vld [vmem:[#allocation94_spill] sm:$0xff] }
 0x85d   : > { %15331 = vmatmul.mubr.bf16.gmra.mrb[92].mxu1 %v16986_v28  ;;  %v21314_v28 = vld [vmem:[#allocation103_spill] sm:$0xff] }
 0x85e   : > { %v15598_v55 = vadd.f32 %v21304_v7, %v14587_v58  ;;  %10966 = vmatprep.mubr.bf16.mxu1 %v21305_v63  ;;  %v15581_v20 = vadd.f32 %v15580_v16, %v21306_v11  ;;  %v21316_v7 = vld [vmem:[#allocation72_spill] sm:$0xff] }
 0x860   : > { %v14588_v45 = vpop.f32.mrb[20].mxu1  ;;  %v19628_v25 = vadd.f32 %v15581_v20, %v21307_v47  ;;  %v15599_v57 = vadd.f32 %v15598_v55, %v21308_v52  ;;  %v21317_v20 = vld [vmem:[#allocation51_spill] sm:$0xff] }
 0x861   : > { %v14589_v21 = vpop.f32.mrb[21].mxu1  ;;  %v21318_v47 = vld [vmem:[#allocation55_spill] sm:$0xff] }
 0x862   : > { %v14590_v19 = vadd.f32 %v14589_v21, %v14588_v45  ;;  %v14591_v27 = vpop.f32.mrb[22].mxu1  ;;  %v19632_v48 = vadd.f32 %v15599_v57, %v21309_v14  ;;  %v21319_v21 = vld [vmem:[#allocation119_spill] sm:$0xff] }
 0x863   : > { %v14592_v33 = vpop.f32.mrb[23].mxu1 }
 0x864   : > { %v15571_v12 = vadd.f32 %v21310_v36, %v14590_v19  ;;  %v14593_v23 = vadd.f32 %v14592_v33, %v14591_v27  ;;  %v21320_v27 = vld [vmem:[#allocation88_spill] sm:$0xff] }
 0x866   : > { %v15589_v56 = vadd.f32 %v21311_v15, %v14593_v23  ;;  %v15572_v35 = vadd.f32 %v15571_v12, %v21312_v41  ;;  %v21321_v23 = vld [vmem:[#allocation110_spill] sm:$0xff]  ;;  %v21323_v41 = vld [vmem:[#allocation52_spill] sm:$0xff] }
 0x868   : > { %v14594_v9 = vpop.f32.mrb[24].mxu1  ;;  %v19638_v42 = vadd.f32 %v15572_v35, %v21313_v44  ;;  %v15590_v26 = vadd.f32 %v15589_v56, %v21314_v28  ;;  %v21324_v44 = vld [vmem:[#allocation73_spill] sm:$0xff] }
 0x869   : > { %v14595_v2 = vpop.f32.mrb[25].mxu1 }
 0x86a   : > { %v14596_v54 = vadd.f32 %v14595_v2, %v14594_v9  ;;  %v14597_v49 = vpop.f32.mrb[26].mxu1  ;;  %v19642_v16 = vadd.f32 %v15590_v26, %v21315_v53  ;;  %v21325_v26 = vld [vmem:[#allocation56_spill] sm:$0xff] }
 0x86b   : > { %v14598_v58 = vpop.f32.mrb[27].mxu1 }
 0x86c   : > { %v15616_v55 = vadd.f32 %v21316_v7, %v14596_v54  ;;  %v14599_v11 = vadd.f32 %v14598_v58, %v14597_v49  ;;  %v19657_v54 = vld [vmem:[#allocation15 + $0x6c] ss:$16 sps:$4 sm:$0xff]  }
 0x86d   : > { %v21326_v49 = vld [vmem:[#allocation107_spill] sm:$0xff]  ;;  %v21327_v58 = vld [vmem:[#allocation77_spill] sm:$0xff]  ;;  %15337 = vmatprep.subr.bf16.mxu1 %v19657_v54 }
 0x86e   : > { %v15634_v45 = vadd.f32 %v21317_v20, %v14599_v11  ;;  %v15617_v52 = vadd.f32 %v15616_v55, %v21318_v47  ;;  %v19663_v55 = vld [vmem:[#allocation15 + $0x68] ss:$16 sps:$4 sm:$0xff]   ;;  %v19670_v20 = vld [vmem:[#allocation15 + $0x8c] ss:$16 sps:$4 sm:$0xff]  }
 0x86f   : > { %15345 = vmatpush1.bf16.msra.mxu1 %v19663_v55  ;;  %v19676_v47 = vld [vmem:[#allocation15 + $0xac] ss:$16 sps:$4 sm:$0xff]  }
 0x870   : > { %v14600_v57 = vpop.f32.mrb[28].mxu1  ;;  %v19648_v19 = vadd.f32 %v15617_v52, %v21319_v21  ;;  %v15635_v14 = vadd.f32 %v15634_v45, %v21320_v27  ;;  %v19672_v45 = vld [vmem:[#allocation15 + $0x88] ss:$16 sps:$4 sm:$0xff]   ;;  %15338 = vmatprep.subr.bf16.mxu1 %v19670_v20  ;;  %v19688_v21 = vld [vmem:[#allocation15 + $0xec] ss:$16 sps:$4 sm:$0xff]  }
 0x871   : > { %v14601_v33 = vpop.f32.mrb[29].mxu1  ;;  %v19678_v52 = vld [vmem:[#allocation15 + $0xa8] ss:$16 sps:$4 sm:$0xff]  }
 0x872   : > { %v14602_v36 = vadd.f32 %v14601_v33, %v14600_v57  ;;  %v14603_v12 = vpop.f32.mrb[30].mxu1  ;;  %v19652_v15 = vadd.f32 %v15635_v14, %v21321_v23  ;;  %v19684_v57 = vld [vmem:[#allocation15 + $0xc8] ss:$16 sps:$4 sm:$0xff]   ;;  %v19694_v33 = vld [vmem:[#allocation12] ss:$0 sm:$0xff] }
 0x873   : > { %v14604_v56 = vpop.f32.mrb[31].mxu1  ;;  %15346 = vmatpush1.bf16.msra.mxu1 %v19672_v45  ;;  %v19690_v27 = vld [vmem:[#allocation15 + $0xe8] ss:$16 sps:$4 sm:$0xff]   ;;  %v19697_v23 = vld [vmem:[#allocation14] ss:$0 sm:$0xff] }
 0x874   : > { %21322 = vst [vmem:[#allocation59_spill] sm:$0xff] %v19652_v15  ;;  %v15607_v35 = vadd.f32 %v21323_v41, %v14602_v36  ;;  %v14605_v9 = vadd.f32 %v14604_v56, %v14603_v12  ;;  %15339 = vmatprep.subr.bf16.mxu1 %v19676_v47 }
 0x876   : > { %v15625_v28 = vadd.f32 %v21324_v44, %v14605_v9  ;;  %v15608_v2 = vadd.f32 %v15607_v35, %v21325_v26 }
 0x877   : > { %15347 = vmatpush1.bf16.msra.mxu1 %v19678_v52 }
 0x878   : > { %v19660_v53 = vadd.f32 %v15608_v2, %v21326_v49  ;;  %v15626_v7 = vadd.f32 %v15625_v28, %v21327_v58 }
 0x87a   : > { %v19667_v11 = vadd.f32 %v15626_v7, %v19482_v59  ;;  %v19682_v59 = vld [vmem:[#allocation15 + $0xcc] ss:$16 sps:$4 sm:$0xff]  }
 0x87b   : > { %15340 = vmatprep.subr.bf16.mxu1 %v19682_v59 }
 0x87c   : > { %15348 = vmatpush1.bf16.msra.mxu1 %v19684_v57 }
 0x87d   : > { %15341 = vmatprep.subr.bf16.mxu1 %v19688_v21 }
 0x880   : > { %15349 = vmatpush1.bf16.msra.mxu1 %v19690_v27 }
 0x8f8   : > { %v15304_v14 = vpop.f32.mrb[64].mxu1 }
 0x8f9   : > { %v15358_v36 = vadd.f32 %v19501_v31, %v15304_v14  ;;  %v10244_v12 = vpop.f32.mrb[65].mxu1 }
 0x8fa   : > { %v15367_v56 = vadd.f32 %v19490_v29, %v10244_v12  ;;  %v15305_v41 = vpop.f32.mrb[66].mxu1 }
 0x8fb   : > { %v10412_v35 = vmul.f32 %v15358_v36, %v19694_v33  ;;  %v15376_v9 = vadd.f32 %v19505_v3, %v15305_v41  ;;  %v10247_v44 = vpop.f32.mrb[67].mxu1 }
 0x8fc   : > { %v10410_v28 = vmul.f32 %v15367_v56, %v19694_v33  ;;  %v15385_v26 = vadd.f32 %v19494_v4, %v10247_v44 }
 0x8fd   : > { %v10451_v2 = vadd.f32 %v19697_v23, %v10412_v35  ;;  %v10413_v49 = vmul.f32 %v15376_v9, %v19694_v33 }
 0x8fe   : > { %v10449_v31 = vadd.f32 %v19697_v23, %v10410_v28  ;;  %v10411_v58 = vmul.f32 %v15385_v26, %v19694_v33 }
 0x8ff   : > { %v10452_v29 = vadd.f32 %v19697_v23, %v10413_v49  ;;  %v10483_v36 = vmax.f32 %v10451_v2, 0.0 }
 0x900   : > { %v10450_v7 = vadd.f32 %v19697_v23, %v10411_v58  ;;  %v15308_v14 = vpop.f32.mrb[68].mxu1  ;;  %v10481_v41 = vmax.f32 %v10449_v31, 0.0 }
 0x901   : > { %v10484_v3 = vmax.f32 %v10452_v29, 0.0  ;;  %v15394_v12 = vadd.f32 %v19522_v8, %v15308_v14  ;;  %v10260_v56 = vpop.f32.mrb[69].mxu1 }
 0x902   : > { %v10482_v4 = vmax.f32 %v10450_v7, 0.0  ;;  %v15403_v35 = vadd.f32 %v19511_v46, %v10260_v56  ;;  %v15309_v44 = vpop.f32.mrb[70].mxu1 }
 0x903   : > { %v19712_v9 = vpack.c.bf16 %v10484_v3, %v10483_v36  ;;  %v10416_v28 = vmul.f32 %v15394_v12, %v19694_v33  ;;  %v15412_v26 = vadd.f32 %v19526_v13, %v15309_v44  ;;  %v10263_v49 = vpop.f32.mrb[71].mxu1 }
 0x904   : > { %v19716_v15 = vpack.c.bf16 %v10482_v4, %v10481_v41  ;;  %v10414_v2 = vmul.f32 %v15403_v35, %v19694_v33  ;;  %v15421_v58 = vadd.f32 %v19515_v38, %v10263_v49 }
 0x905   : > { %v10455_v8 = vadd.f32 %v19697_v23, %v10416_v28  ;;  %v10417_v31 = vmul.f32 %v15412_v26, %v19694_v33 }
 0x906   : > { %v10453_v46 = vadd.f32 %v19697_v23, %v10414_v2  ;;  %v10415_v29 = vmul.f32 %v15421_v58, %v19694_v33  ;;  %10754 = vmatmul.mubr.bf16.vlgmr.msra.gmra.mrb[160].mxu0 %v19716_v15 }
 0x907   : > { %v10456_v7 = vadd.f32 %v19697_v23, %v10417_v31  ;;  %10915 = vmatpush1.bf16.msra.mxu0 %v19535_v17  ;;  %10763 = vmatprep.mubr.bf16.mxu0 %v21305_v63  ;;  %v10487_v38 = vmax.f32 %v10455_v8, 0.0 }
 0x908   : > { %v10454_v13 = vadd.f32 %v19697_v23, %v10415_v29  ;;  %v15312_v14 = vpop.f32.mrb[72].mxu1  ;;  %10916 = vmatprep.subr.bf16.mxu0 %v19540_v60  ;;  %v10485_v56 = vmax.f32 %v10453_v46, 0.0 }
 0x909   : > { %v10488_v36 = vmax.f32 %v10456_v7, 0.0  ;;  %v15430_v3 = vadd.f32 %v19552_v6, %v15312_v14  ;;  %v10276_v12 = vpop.f32.mrb[73].mxu1 }
 0x90a   : > { %v10486_v41 = vmax.f32 %v10454_v13, 0.0  ;;  %v15439_v4 = vadd.f32 %v19532_v51, %v10276_v12  ;;  %v15313_v35 = vpop.f32.mrb[74].mxu1 }
 0x90b   : > { %v19732_v44 = vpack.c.bf16 %v10488_v36, %v10487_v38  ;;  %v10420_v17 = vmul.f32 %v15430_v3, %v19694_v33  ;;  %v15448_v28 = vadd.f32 %v19559_v34, %v15313_v35  ;;  %v10279_v26 = vpop.f32.mrb[75].mxu1  ;;  %10917 = vmatpush1.bf16.msra.mxu0 %v19545_v43 }
 0x90c   : > { %v10515_v60 = vpack.c.bf16 %v10486_v41, %v10485_v56  ;;  %v10418_v49 = vmul.f32 %v15439_v4, %v19694_v33  ;;  %v15457_v6 = vadd.f32 %v19538_v61, %v10279_v26  ;;  %10918 = vmatprep.subr.bf16.mxu0 %v19549_v37 }
 0x90d   : > { %v10459_v2 = vadd.f32 %v19697_v23, %v10420_v17  ;;  %v10421_v51 = vmul.f32 %v15448_v28, %v19694_v33 }
 0x90e   : > { %v10457_v58 = vadd.f32 %v19697_v23, %v10418_v49  ;;  %v10419_v8 = vmul.f32 %v15457_v6, %v19694_v33  ;;  %10764 = vmatmul.mubr.bf16.gmra.mrb[164].mxu0 %v19712_v9  ;;  %10967 = vmatmul.mubr.bf16.vlgmr.msra.gmra.mrb[32].mxu1 %v10515_v60 }
 0x90f   : > { %v10460_v43 = vadd.f32 %v19697_v23, %v10421_v51  ;;  %10773 = vmatprep.mubr.bf16.mxu0 %v21305_v63  ;;  %10976 = vmatprep.mubr.bf16.mxu1 %v21305_v63  ;;  %v10491_v34 = vmax.f32 %v10459_v2, 0.0 }
 0x910   : > { %v10458_v61 = vadd.f32 %v19697_v23, %v10419_v8  ;;  %v15316_v37 = vpop.f32.mrb[76].mxu1  ;;  %10919 = vmatpush1.bf16.msra.mxu0 %v19556_v0  ;;  %v10489_v7 = vmax.f32 %v10457_v58, 0.0 }
 0x911   : > { %v10492_v31 = vmax.f32 %v10460_v43, 0.0  ;;  %v15466_v46 = vadd.f32 %v19577_v5, %v15316_v37  ;;  %v10292_v29 = vpop.f32.mrb[77].mxu1  ;;  %10920 = vmatprep.subr.bf16.mxu0 %v19657_v54 }
 0x912   : > { %v10490_v13 = vmax.f32 %v10458_v61, 0.0  ;;  %v15475_v14 = vadd.f32 %v19567_v30, %v10292_v29  ;;  %v15317_v38 = vpop.f32.mrb[78].mxu1 }
 0x913   : > { %v19753_v36 = vpack.c.bf16 %v10492_v31, %v10491_v34  ;;  %v10424_v3 = vmul.f32 %v15466_v46, %v19694_v33  ;;  %v15484_v12 = vadd.f32 %v19581_v1, %v15317_v38  ;;  %v10295_v56 = vpop.f32.mrb[79].mxu1 }
 0x914   : > { %v19757_v0 = vpack.c.bf16 %v10490_v13, %v10489_v7  ;;  %v10422_v41 = vmul.f32 %v15475_v14, %v19694_v33  ;;  %v15493_v5 = vadd.f32 %v19571_v10, %v10295_v56  ;;  %10921 = vmatpush1.bf16.msra.mxu0 %v19663_v55 }
 0x915   : > { %v10463_v54 = vadd.f32 %v19697_v23, %v10424_v3  ;;  %v10425_v30 = vmul.f32 %v15484_v12, %v19694_v33  ;;  %10922 = vmatprep.subr.bf16.mxu0 %v19670_v20 }
 0x916   : > { %v10461_v4 = vadd.f32 %v19697_v23, %v10422_v41  ;;  %v10423_v35 = vmul.f32 %v15493_v5, %v19694_v33  ;;  %10774 = vmatmul.mubr.bf16.gmra.mrb[168].mxu0 %v10515_v60  ;;  %10977 = vmatmul.mubr.bf16.gmra.mrb[36].mxu1 %v19732_v44 }
 0x917   : > { %v10464_v1 = vadd.f32 %v19697_v23, %v10425_v30  ;;  %10783 = vmatprep.mubr.bf16.mxu0 %v21305_v63  ;;  %10986 = vmatprep.mubr.bf16.mxu1 %v21305_v63  ;;  %v10495_v17 = vmax.f32 %v10463_v54, 0.0 }
 0x918   : > { %v10462_v10 = vadd.f32 %v19697_v23, %v10423_v35  ;;  %v15320_v55 = vpop.f32.mrb[80].mxu1  ;;  %10923 = vmatpush1.bf16.msra.mxu0 %v19672_v45  ;;  %v10493_v60 = vmax.f32 %v10461_v4, 0.0 }
 0x919   : > { %v10496_v20 = vmax.f32 %v10464_v1, 0.0  ;;  %v15502_v28 = vadd.f32 %v19597_v18, %v15320_v55  ;;  %v10308_v26 = vpop.f32.mrb[81].mxu1  ;;  %10924 = vmatprep.subr.bf16.mxu0 %v19676_v47 }
 0x91a   : > { %v10494_v49 = vmax.f32 %v10462_v10, 0.0  ;;  %v15511_v6 = vadd.f32 %v19587_v32, %v10308_v26  ;;  %v15321_v2 = vpop.f32.mrb[82].mxu1 }
 0x91b   : > { %v19776_v51 = vpack.c.bf16 %v10496_v20, %v10495_v17  ;;  %v10428_v58 = vmul.f32 %v15502_v28, %v19694_v33  ;;  %v15520_v8 = vadd.f32 %v19601_v24, %v15321_v2  ;;  %v10311_v43 = vpop.f32.mrb[83].mxu1 }
 0x91c   : > { %v19780_v45 = vpack.c.bf16 %v10494_v49, %v10493_v60  ;;  %v10426_v61 = vmul.f32 %v15511_v6, %v19694_v33  ;;  %v15529_v18 = vadd.f32 %v19591_v22, %v10311_v43  ;;  %10925 = vmatpush1.bf16.msra.mxu0 %v19678_v52 }
 0x91d   : > { %v10467_v47 = vadd.f32 %v19697_v23, %v10428_v58  ;;  %v10429_v32 = vmul.f32 %v15520_v8, %v19694_v33  ;;  %10926 = vmatprep.subr.bf16.mxu0 %v19682_v59 }
 0x91e   : > { %v10465_v37 = vadd.f32 %v19697_v23, %v10426_v61  ;;  %v10427_v34 = vmul.f32 %v15529_v18, %v19694_v33  ;;  %10784 = vmatmul.mubr.bf16.gmra.mrb[172].mxu0 %v19732_v44  ;;  %10987 = vmatmul.mubr.bf16.gmra.mrb[40].mxu1 %v19757_v0 }
 0x91f   : > { %v10468_v24 = vadd.f32 %v19697_v23, %v10429_v32  ;;  %10793 = vmatprep.mubr.bf16.mxu0 %v21305_v63  ;;  %10996 = vmatprep.mubr.bf16.mxu1 %v21305_v63  ;;  %v10499_v59 = vmax.f32 %v10467_v47, 0.0 }
 0x920   : > { %v10466_v22 = vadd.f32 %v19697_v23, %v10427_v34  ;;  %v15324_v52 = vpop.f32.mrb[84].mxu1  ;;  %10927 = vmatpush1.bf16.msra.mxu0 %v19684_v57  ;;  %v10497_v44 = vmax.f32 %v10465_v37, 0.0 }
 0x921   : > { %v10500_v31 = vmax.f32 %v10468_v24, 0.0  ;;  %v15538_v46 = vadd.f32 %v19617_v62, %v15324_v52  ;;  %v10324_v29 = vpop.f32.mrb[85].mxu1  ;;  %10928 = vmatprep.subr.bf16.mxu0 %v19688_v21 }
 0x922   : > { %v10498_v7 = vmax.f32 %v10466_v22, 0.0  ;;  %v15547_v13 = vadd.f32 %v19607_v40, %v10324_v29  ;;  %v15325_v14 = vpop.f32.mrb[86].mxu1 }
 0x923   : > { %v19800_v38 = vpack.c.bf16 %v10500_v31, %v10499_v59  ;;  %v10432_v3 = vmul.f32 %v15538_v46, %v19694_v33  ;;  %v15556_v12 = vadd.f32 %v19621_v50, %v15325_v14  ;;  %v10327_v56 = vpop.f32.mrb[87].mxu1 }
 0x924   : > { %v19804_v57 = vpack.c.bf16 %v10498_v7, %v10497_v44  ;;  %v10430_v41 = vmul.f32 %v15547_v13, %v19694_v33  ;;  %v15565_v62 = vadd.f32 %v19611_v39, %v10327_v56  ;;  %10929 = vmatpush1.bf16.msra.mxu0 %v19690_v27  ;;  %v21328_v44 = vld [vmem:[#allocation59_spill] sm:$0xff] }
 0x925   : > { %v10471_v21 = vadd.f32 %v19697_v23, %v10432_v3  ;;  %v10433_v40 = vmul.f32 %v15556_v12, %v19694_v33 }
 0x926   : > { %v10469_v5 = vadd.f32 %v19697_v23, %v10430_v41  ;;  %v10431_v54 = vmul.f32 %v15565_v62, %v19694_v33  ;;  %10794 = vmatmul.mubr.bf16.gmra.mrb[176].mxu0 %v19757_v0  ;;  %10997 = vmatmul.mubr.bf16.gmra.mrb[44].mxu1 %v19753_v36 }
 0x927   : > { %v10472_v50 = vadd.f32 %v19697_v23, %v10433_v40  ;;  %10803 = vmatprep.mubr.bf16.mxu0 %v21305_v63  ;;  %11006 = vmatprep.mubr.bf16.mxu1 %v21305_v63  ;;  %v10503_v30 = vmax.f32 %v10471_v21, 0.0 }
 0x928   : > { %v10470_v39 = vadd.f32 %v19697_v23, %v10431_v54  ;;  %v15328_v27 = vpop.f32.mrb[88].mxu1  ;;  %v10501_v10 = vmax.f32 %v10469_v5, 0.0  ;;  %v19880_v5 = vld [vmem:[%s18022_s4 + $0x80] sm:$0xff] }
 0x929   : > { %v10504_v4 = vmax.f32 %v10472_v50, 0.0  ;;  %v15574_v35 = vadd.f32 %v19638_v42, %v15328_v27  ;;  %v10340_v1 = vpop.f32.mrb[89].mxu1  ;;  %v19883_v50 = vld [vmem:[%s18022_s4 + $0x90] sm:$0xff]  ;;  %v20156_v27 = vld [vmem:[%s18022_s4 + $0x258] sm:$0xff] }
 0x92a   : > { %v10502_v55 = vmax.f32 %v10470_v39, 0.0  ;;  %v15583_v0 = vadd.f32 %v19628_v25, %v10340_v1  ;;  %v15329_v17 = vpop.f32.mrb[90].mxu1  ;;  %v19901_v1 = vld [vmem:[%s18022_s4 + $0xb0] sm:$0xff]  ;;  %21347 = vst [vmem:[#allocation64_spill] sm:$0xff] %v20156_v27  ;;  %v21354_v27 = vunpack.c.h.bf16 %v19883_v50 }
 0x92b   : > { %v19821_v20 = vpack.c.bf16 %v10504_v4, %v10503_v30  ;;  %v10436_v28 = vmul.f32 %v15574_v35, %v19694_v33  ;;  %v15592_v26 = vadd.f32 %v19642_v16, %v15329_v17  ;;  %v10343_v60 = vpop.f32.mrb[91].mxu1  ;;  %v19898_v35 = vld [vmem:[%s18022_s4 + $0xc8] sm:$0xff] }
 0x92c   : > { %v10523_v49 = vpack.c.bf16 %v10502_v55, %v10501_v10  ;;  %v10434_v6 = vmul.f32 %v15583_v0, %v19694_v33  ;;  %v15601_v2 = vadd.f32 %v19632_v48, %v10343_v60  ;;  %v20112_v0 = vld [vmem:[%s18022_s4 + $0x218] sm:$0xff]  ;;  %v20122_v10 = vld [vmem:[%s18022_s4 + $0x228] sm:$0xff]  ;;  %v20149_v55 = vld [vmem:[%s18022_s4 + $0x230] sm:$0xff] }
 0x92d   : > { %v10475_v42 = vadd.f32 %v19697_v23, %v10436_v28  ;;  %v10437_v58 = vmul.f32 %v15592_v26, %v19694_v33  ;;  %v19912_v28 = vld [vmem:[%s18022_s4 + $0xc0] sm:$0xff]  ;;  %21339 = vst [vmem:[#allocation62_spill] sm:$0xff] %v20112_v0  ;;  %21341 = vst [vmem:[#allocation85_spill] sm:$0xff] %v20122_v10 }
 0x92e   : > { %v10473_v8 = vadd.f32 %v19697_v23, %v10434_v6  ;;  %v10435_v25 = vmul.f32 %v15601_v2, %v19694_v33  ;;  %10804 = vmatmul.mubr.bf16.gmra.mrb[180].mxu0 %v19753_v36  ;;  %11007 = vmatmul.mubr.bf16.gmra.mrb[48].mxu1 %v19780_v45  ;;  %v19922_v2 = vld [vmem:[%s18022_s4 + $0xe8] sm:$0xff]  ;;  %21346 = vst [vmem:[#allocation101_spill] sm:$0xff] %v20149_v55 }
 0x92f   : > { %v10476_v16 = vadd.f32 %v19697_v23, %v10437_v58  ;;  %10813 = vmatprep.mubr.bf16.mxu0 %v21305_v63  ;;  %11016 = vmatprep.mubr.bf16.mxu1 %v21305_v63  ;;  %v10507_v61 = vmax.f32 %v10475_v42, 0.0  ;;  %v19925_v42 = vld [vmem:[%s18022_s4 + $0xd0] sm:$0xff] }
 0x930   : > { %v10474_v48 = vadd.f32 %v19697_v23, %v10435_v25  ;;  %v15332_v43 = vpop.f32.mrb[92].mxu1  ;;  %v10505_v37 = vmax.f32 %v10473_v8, 0.0  ;;  %v20095_v25 = vld [vmem:[%s18022_s4 + $0x1e0] sm:$0xff]  ;;  %v20105_v58 = vld [vmem:[%s18022_s4 + $0x1f0] sm:$0xff] }
 0x931   : > { %v10508_v18 = vmax.f32 %v10476_v16, 0.0  ;;  %v15610_v47 = vadd.f32 %v19660_v53, %v15332_v43  ;;  %v10356_v32 = vpop.f32.mrb[93].mxu1  ;;  %v19935_v43 = vld [vmem:[%s18022_s4 + $0xe0] sm:$0xff]  ;;  %21336 = vst [vmem:[#allocation61_spill] sm:$0xff] %v20095_v25  ;;  %21338 = vst [vmem:[#allocation111_spill] sm:$0xff] %v20105_v58 }
 0x932   : > { %v10506_v34 = vmax.f32 %v10474_v48, 0.0  ;;  %v15619_v36 = vadd.f32 %v19648_v19, %v10356_v32  ;;  %v15333_v24 = vpop.f32.mrb[94].mxu1  ;;  %v19932_v48 = vld [vmem:[%s18022_s4 + $0xf8] sm:$0xff] }
 0x933   : > { %v10526_v22 = vpack.c.bf16 %v10508_v18, %v10507_v61  ;;  %v10440_v52 = vmul.f32 %v15610_v47, %v19694_v33  ;;  %v15628_v59 = vadd.f32 %v19667_v11, %v15333_v24  ;;  %v10359_v31 = vpop.f32.mrb[95].mxu1  ;;  %v20075_v47 = vld [vmem:[%s18022_s4 + $0x1c0] sm:$0xff]  ;;  %v20085_v61 = vld [vmem:[%s18022_s4 + $0x1d0] sm:$0xff]  ;;  %v20142_v18 = vld [vmem:[%s18022_s4 + $0x248] sm:$0xff] }
 0x934   : > { %v10525_v46 = vpack.c.bf16 %v10506_v34, %v10505_v37  ;;  %v10438_v29 = vmul.f32 %v15619_v36, %v19694_v33  ;;  %v15637_v7 = vadd.f32 %v21328_v44, %v10359_v31  ;;  %v19942_v37 = vld [vmem:[%s18022_s4 + $0x108] sm:$0xff]  ;;  %v19945_v34 = vld [vmem:[%s18022_s4 + $0xf0] sm:$0xff]  ;;  %v19955_v31 = vld [vmem:[%s18022_s4 + $0x100] sm:$0xff]  ;;  %21332 = vst [vmem:[#allocation120_spill] sm:$0xff] %v20075_v47 }
 0x935   : > { %v10479_v13 = vadd.f32 %v19697_v23, %v10440_v52  ;;  %v10441_v53 = vmul.f32 %v15628_v59, %v19694_v33  ;;  %v19952_v59 = vld [vmem:[%s18022_s4 + $0x118] sm:$0xff]  ;;  %v20035_v44 = vld [vmem:[%s18022_s4 + $0x180] sm:$0xff]  ;;  %v20065_v36 = vld [vmem:[%s18022_s4 + $0x1b0] sm:$0xff]  ;;  %21334 = vst [vmem:[#allocation98_spill] sm:$0xff] %v20085_v61 }
 0x936   : > { %v10477_v14 = vadd.f32 %v19697_v23, %v10438_v29  ;;  %v10439_v19 = vmul.f32 %v15637_v7, %v19694_v33  ;;  %10814 = vmatmul.mubr.bf16.gmra.mrb[184].mxu0 %v19780_v45  ;;  %11017 = vmatmul.mubr.bf16.gmra.mrb[52].mxu1 %v19776_v51  ;;  %v11109_v33 = vlaneseq  ;;  %v11107_v45 = vld [vmem:[#allocation17] sm:$0xf]  ;;  %21330 = vst [vmem:[#allocation60_spill] sm:$0xff] %v20065_v36  ;;  %v20102_v29 = vld [vmem:[%s18022_s4 + $0x208] sm:$0xff]  ;;  %v20115_v52 = vld [vmem:[%s18022_s4 + $0x200] sm:$0xff] }
 0x937   : > { %v10480_v11 = vadd.f32 %v19697_v23, %v10441_v53  ;;  %10823 = vmatprep.mubr.bf16.mxu0 %v21305_v63  ;;  %11026 = vmatprep.mubr.bf16.mxu1 %v21305_v63  ;;  %v10511_v12 = vmax.f32 %v10479_v13, 0.0  ;;  %v19962_v13 = vld [vmem:[%s18022_s4 + $0x128] sm:$0xff]  ;;  %v19965_v53 = vld [vmem:[%s18022_s4 + $0x110] sm:$0xff]  ;;  %v20092_v7 = vld [vmem:[%s18022_s4 + $0x1f8] sm:$0xff]  ;;  %21337 = vst [vmem:[#allocation99_spill] sm:$0xff] %v20102_v29 }
 0x938   : > { %v10478_v3 = vadd.f32 %v19697_v23, %v10439_v19  ;;  %v10509_v41 = vmax.f32 %v10477_v14, 0.0  ;;  %v11110_v23 = vshrl.u32 %v11109_v33, 7  ;;  %v19982_v33 = vld [vmem:[%s18022_s4 + $0x148] sm:$0xff]  ;;  %v20025_v14 = vld [vmem:[%s18022_s4 + $0x170] sm:$0xff]  ;;  %21335 = vst [vmem:[#allocation123_spill] sm:$0xff] %v20092_v7  ;;  %21340 = vst [vmem:[#allocation83_spill] sm:$0xff] %v20115_v52 }
 0x939   : > { %v10512_v56 = vmax.f32 %v10480_v11, 0.0  ;;  %v20015_v11 = vld [vmem:[%s18022_s4 + $0x160] sm:$0xff]  ;;  %v20082_v19 = vld [vmem:[%s18022_s4 + $0x1e8] sm:$0xff]  ;;  %v20125_v24 = vld [vmem:[%s18022_s4 + $0x210] sm:$0xff]  ;;  %21345 = vst [vmem:[#allocation63_spill] sm:$0xff] %v20142_v18 }
 0x93a   : > { %v10510_v62 = vmax.f32 %v10478_v3, 0.0  ;;  %v11119_v54 = vsub.s32 2, %v11110_v23  ;;  %v20072_v3 = vld [vmem:[%s18022_s4 + $0x1d8] sm:$0xff]  ;;  %21333 = vst [vmem:[#allocation82_spill] sm:$0xff] %v20082_v19  ;;  %21342 = vst [vmem:[#allocation100_spill] sm:$0xff] %v20125_v24  ;;  %v20139_v61 = vld [vmem:[%s18022_s4 + $0x220] sm:$0xff] }
 0x93b   : > { %v10528_v21 = vpack.c.bf16 %v10512_v56, %v10511_v12  ;;  %v19972_v12 = vld [vmem:[%s18022_s4 + $0x138] sm:$0xff]  ;;  %v19975_v56 = vld [vmem:[%s18022_s4 + $0x120] sm:$0xff]  ;;  %21331 = vst [vmem:[#allocation81_spill] sm:$0xff] %v20072_v3  ;;  %21344 = vst [vmem:[#allocation114_spill] sm:$0xff] %v20139_v61 }
 0x93c   : > { %v10527_v40 = vpack.c.bf16 %v10510_v62, %v10509_v41  ;;  %v19906_v17 = vrot.slane %v11107_v45, %v11119_v54  ;;  %v20005_v41 = vld [vmem:[%s18022_s4 + $0x150] sm:$0xff]  ;;  %v20062_v62 = vld [vmem:[%s18022_s4 + $0x1c8] sm:$0xff]  ;;  %v20132_v19 = vld [vmem:[%s18022_s4 + $0x238] sm:$0xff] }
 0x93d   : > { %21329 = vst [vmem:[#allocation96_spill] sm:$0xff] %v20062_v62  ;;  %21343 = vst [vmem:[#allocation117_spill] sm:$0xff] %v20132_v19  ;;  %v20163_v52 = vld [vmem:[%s18022_s4 + $0x240] sm:$0xff]  ;;  %v20170_v24 = vld [vmem:[%s18022_s4 + $0x268] sm:$0xff] }
 0x93e   : > { %10824 = vmatmul.mubr.bf16.gmra.mrb[188].mxu0 %v19776_v51  ;;  %11027 = vmatmul.mubr.bf16.gmra.mrb[56].mxu1 %v19804_v57  ;;  %v11111_v51 = vsub.s32 0, %v11110_v23  ;;  %21348 = vst [vmem:[#allocation87_spill] sm:$0xff] %v20170_v24  ;;  %v20177_v47 = vld [vmem:[%s18022_s4 + $0x250] sm:$0xff]  ;;  %v20185_v18 = vld [vmem:[%s18022_s4 + $0x278] sm:$0xff] }
 0x93f   : > { %10833 = vmatprep.mubr.bf16.mxu0 %v21305_v63  ;;  %11036 = vmatprep.mubr.bf16.mxu1 %v21305_v63  ;;  %21349 = vst [vmem:[#allocation89_spill] sm:$0xff] %v20177_v47  ;;  %21351 = vst [vmem:[#allocation102_spill] sm:$0xff] %v20185_v18 }
 0x940   : > { %v19885_v39 = vrot.slane %v11107_v45, %v11111_v51 }
 0x946   : > { %10834 = vmatmul.mubr.bf16.gmra.mrb[192].mxu0 %v19804_v57  ;;  %11037 = vmatmul.mubr.bf16.gmra.mrb[60].mxu1 %v19800_v38  ;;  %v11257_v57 = vld [vmem:[#allocation18] sm:$0xf] }
 0x947   : > { %10843 = vmatprep.mubr.bf16.mxu0 %v21305_v63  ;;  %11046 = vmatprep.mubr.bf16.mxu1 %v21305_v63  ;;  %v19915_v60 = vrot.slane %v11257_v57, %v11119_v54  ;;  %v19992_v54 = vld [vmem:[%s18022_s4 + $0x158] sm:$0xff] }
 0x94e   : > { %10844 = vmatmul.mubr.bf16.gmra.mrb[196].mxu0 %v19800_v38  ;;  %11047 = vmatmul.mubr.bf16.gmra.mrb[96].mxu1 %v10523_v49  ;;  %v11115_v38 = vsub.s32 1, %v11110_v23 }
 0x94f   : > { %10853 = vmatprep.mubr.bf16.mxu0 %v21305_v63  ;;  %11056 = vmatprep.mubr.bf16.mxu1 %v21305_v63 }
 0x950   : > { %v19893_v30 = vrot.slane %v11107_v45, %v11115_v38  ;;  %v19895_v4 = vrot.slane %v11257_v57, %v11115_v38  ;;  %v20022_v38 = vld [vmem:[%s18022_s4 + $0x188] sm:$0xff] }
 0x956   : > { %10854 = vmatmul.mubr.bf16.gmra.mrb[200].mxu0 %v10523_v49  ;;  %11057 = vmatmul.mubr.bf16.gmra.mrb[100].mxu1 %v19821_v20 }
 0x957   : > { %10863 = vmatprep.mubr.bf16.mxu0 %v21305_v63  ;;  %11066 = vmatprep.mubr.bf16.mxu1 %v21305_v63 }
 0x95e   : > { %10864 = vmatmul.mubr.bf16.gmra.mrb[204].mxu0 %v19821_v20  ;;  %11067 = vmatmul.mubr.bf16.gmra.mrb[104].mxu1 %v10525_v46  ;;  %v19909_v20 = vld [vmem:[%s18022_s4 + $0xd8] sm:$0xff] }
 0x95f   : > { %10873 = vmatprep.mubr.bf16.mxu0 %v21305_v63  ;;  %11076 = vmatprep.mubr.bf16.mxu1 %v21305_v63 }
 0x966   : > { %10874 = vmatmul.mubr.bf16.gmra.mrb[208].mxu0 %v10525_v46  ;;  %11077 = vmatmul.mubr.bf16.gmra.mrb[108].mxu1 %v10526_v22  ;;  %v20045_v46 = vld [vmem:[%s18022_s4 + $0x190] sm:$0xff] }
 0x967   : > { %10883 = vmatprep.mubr.bf16.mxu0 %v21305_v63  ;;  %11086 = vmatprep.mubr.bf16.mxu1 %v21305_v63 }
 0x96e   : > { %10884 = vmatmul.mubr.bf16.gmra.mrb[212].mxu0 %v10526_v22  ;;  %11087 = vmatmul.mubr.bf16.gmra.mrb[112].mxu1 %v10527_v40  ;;  %v20055_v22 = vld [vmem:[%s18022_s4 + $0x1a0] sm:$0xff] }
 0x96f   : > { %10893 = vmatprep.mubr.bf16.mxu0 %v21305_v63  ;;  %11096 = vmatprep.mubr.bf16.mxu1 %v21305_v63 }
 0x976   : > { %10894 = vmatmul.mubr.bf16.gmra.mrb[216].mxu0 %v10527_v40  ;;  %11097 = vmatmul.mubr.bf16.gmra.mrb[116].mxu1 %v10528_v21  ;;  %v20042_v40 = vld [vmem:[%s18022_s4 + $0x1a8] sm:$0xff] }
 0x977   : > { %10903 = vmatprep.mubr.bf16.mxu0 %v21305_v63 }
 0x97e   : > { %10904 = vmatmul.mubr.bf16.gmra.mrb[220].mxu0 %v10528_v21  ;;  %v20012_v21 = vld [vmem:[%s18022_s4 + $0x178] sm:$0xff] }
 0x97f   : > { %10946 = vmatprep.mubr.bf16.mxu0 %v21305_v63 }
 0x986   : > { %10947 = vmatmul.mubr.bf16.vlgmr.msra.gmra.mrb[224].mxu0 %v19716_v15  ;;  %v11123_v15 = vsub.s32 3, %v11110_v23  ;;  %v19985_v23 = vld [vmem:[%s18022_s4 + $0x130] sm:$0xff] }
 0x987   : > { %10956 = vmatprep.mubr.bf16.mxu0 %v21305_v63  ;;  %v19888_v63 = vld [vmem:[%s18022_s4 + $0xa0] sm:$0xff] }
 0x988   : > { %v19917_v49 = vrot.slane %v11107_v45, %v11123_v15  ;;  %v19919_v6 = vrot.slane %v11257_v57, %v11123_v15  ;;  %v19995_v15 = vld [vmem:[%s18022_s4 + $0x140] sm:$0xff]  ;;  %v20002_v45 = vld [vmem:[%s18022_s4 + $0x168] sm:$0xff] }
 0x98e   : > { %10957 = vmatmul.mubr.bf16.gmra.mrb[228].mxu0 %v19712_v9  ;;  %v19890_v9 = vrot.slane %v11257_v57, %v11111_v51  ;;  %v20032_v51 = vld [vmem:[%s18022_s4 + $0x198] sm:$0xff] }
 0x98f   : > { %v20052_v57 = vld [vmem:[%s18022_s4 + $0x1b8] sm:$0xff] }
 0x9d9   : > { %v10755_v26 = vpop.f32.mrb[160].mxu0 }
 0x9da   : > { %v11129_v16 = vmul.f32 %v19885_v39, %v10755_v26  ;;  %v10757_v0 = vpop.f32.mrb[161].mxu0 }
 0x9db   : > { %v11130_v8 = vmul.f32 %v19893_v30, %v10757_v0  ;;  %v10759_v29 = vpop.f32.mrb[162].mxu0 }
 0x9dc   : > { %v11279_v7 = vadd.f32 %v19890_v9, %v11129_v16  ;;  %v11133_v58 = vmul.f32 %v19885_v39, %v10759_v29  ;;  %v10761_v25 = vpop.f32.mrb[163].mxu0  ;;  %v21350_v16 = vunpack.c.l.bf16 %v19880_v5 }
 0x9dd   : > { %v11280_v32 = vadd.f32 %v19895_v4, %v11130_v8  ;;  %v11134_v10 = vmul.f32 %v19893_v30, %v10761_v25  ;;  %v21352_v8 = vunpack.c.h.bf16 %v19880_v5 }
 0x9de   : > { %v11603_v29 = vadd.f32 %v21350_v16, %v11279_v7  ;;  %v11283_v3 = vadd.f32 %v19890_v9, %v11133_v58  ;;  %v21353_v7 = vunpack.c.l.bf16 %v19883_v50 }
 0x9df   : > { %v11604_v25 = vadd.f32 %v21352_v8, %v11280_v32  ;;  %v11284_v26 = vadd.f32 %v19895_v4, %v11134_v10 }
 0x9e0   : > { %v11731_v36 = vmax.f32 %v11603_v29, 0.0  ;;  %v11607_v16 = vadd.f32 %v21353_v7, %v11283_v3 }
 0x9e1   : > { %v11732_v0 = vmax.f32 %v11604_v25, 0.0  ;;  %v11608_v62 = vadd.f32 %v21354_v27, %v11284_v26  ;;  %v10765_v5 = vpop.f32.mrb[164].mxu0  ;;  %v10968_v32 = vpop.f32.mrb[32].mxu1 }
 0x9e2   : > { %v11735_v61 = vmax.f32 %v11607_v16, 0.0  ;;  %v11137_v29 = vmul.f32 %v19885_v39, %v10765_v5  ;;  %v11147_v55 = vmul.f32 %v19906_v17, %v10968_v32  ;;  %v10767_v3 = vpop.f32.mrb[165].mxu0  ;;  %v10970_v7 = vpop.f32.mrb[33].mxu1 }
 0x9e3   : > { %v13613_v25 = vpack.c.bf16 %v11732_v0, %v11731_v36  ;;  %v11736_v58 = vmax.f32 %v11608_v62, 0.0  ;;  %v11138_v50 = vmul.f32 %v19893_v30, %v10767_v3  ;;  %v11148_v27 = vmul.f32 %v19917_v49, %v10970_v7  ;;  %v10769_v26 = vpop.f32.mrb[166].mxu0  ;;  %v10972_v10 = vpop.f32.mrb[34].mxu1 }
 0x9e4   : > { %v11287_v16 = vadd.f32 %v19890_v9, %v11137_v29  ;;  %v11297_v5 = vadd.f32 %v19915_v60, %v11147_v55  ;;  %v11141_v32 = vmul.f32 %v19885_v39, %v10769_v26  ;;  %v11151_v8 = vmul.f32 %v19906_v17, %v10972_v10  ;;  %v10771_v47 = vpop.f32.mrb[167].mxu0  ;;  %v10974_v24 = vpop.f32.mrb[35].mxu1 }
 0x9e5   : > { %12371 = vst [vmem:[%s18349_s3] sm:$0xff] %v13613_v25  ;;  %v13615_v36 = vpack.c.bf16 %v11736_v58, %v11735_v61  ;;  %v11288_v62 = vadd.f32 %v19895_v4, %v11138_v50  ;;  %v11298_v0 = vadd.f32 %v19919_v6, %v11148_v27  ;;  %v11142_v3 = vmul.f32 %v19893_v30, %v10771_v47 }
 0x9e6   : > { %v21355_v7 = vunpack.c.l.bf16 %v19888_v63  ;;  %v21356_v29 = vunpack.c.l.bf16 %v19898_v35  ;;  %v11291_v26 = vadd.f32 %v19890_v9, %v11141_v32  ;;  %v11301_v10 = vadd.f32 %v19915_v60, %v11151_v8 }
 0x9e7   : > { %12373 = vst [vmem:[%s18349_s3 + $0x10] sm:$0xff] %v13615_v36  ;;  %v21357_v25 = vunpack.c.h.bf16 %v19888_v63  ;;  %v21358_v58 = vunpack.c.h.bf16 %v19898_v35  ;;  %v11292_v27 = vadd.f32 %v19895_v4, %v11142_v3  ;;  %v11152_v47 = vmul.f32 %v19917_v49, %v10974_v24 }
 0x9e8   : > { %v11611_v19 = vadd.f32 %v21355_v7, %v11287_v16  ;;  %v11621_v55 = vadd.f32 %v21356_v29, %v11297_v5  ;;  %v21359_v7 = vunpack.c.l.bf16 %v19901_v1  ;;  %v21360_v32 = vunpack.c.l.bf16 %v19909_v20 }
 0x9e9   : > { %v11612_v61 = vadd.f32 %v21357_v25, %v11288_v62  ;;  %v11622_v50 = vadd.f32 %v21358_v58, %v11298_v0  ;;  %v21361_v63 = vunpack.c.h.bf16 %v19901_v1  ;;  %v11302_v35 = vadd.f32 %v19919_v6, %v11152_v47  ;;  %v10775_v0 = vpop.f32.mrb[168].mxu0  ;;  %v10978_v25 = vpop.f32.mrb[36].mxu1 }
 0x9ea   : > { %v11739_v18 = vmax.f32 %v11611_v19, 0.0  ;;  %v11749_v16 = vmax.f32 %v11621_v55, 0.0  ;;  %v11615_v5 = vadd.f32 %v21359_v7, %v11291_v26  ;;  %v11625_v29 = vadd.f32 %v21360_v32, %v11301_v10  ;;  %v10777_v55 = vpop.f32.mrb[169].mxu0  ;;  %v10980_v26 = vpop.f32.mrb[37].mxu1 }
 0x9eb   : > { %v11740_v8 = vmax.f32 %v11612_v61, 0.0  ;;  %v11750_v36 = vmax.f32 %v11622_v50, 0.0  ;;  %v11616_v62 = vadd.f32 %v21361_v63, %v11292_v27  ;;  %v11145_v24 = vmul.f32 %v19885_v39, %v10775_v0  ;;  %v10779_v7 = vpop.f32.mrb[170].mxu0  ;;  %v10982_v47 = vpop.f32.mrb[38].mxu1 }
 0x9ec   : > { %v11743_v3 = vmax.f32 %v11615_v5, 0.0  ;;  %v11753_v58 = vmax.f32 %v11625_v29, 0.0  ;;  %v11155_v19 = vmul.f32 %v19906_v17, %v10978_v25  ;;  %v21362_v1 = vunpack.c.h.bf16 %v19909_v20  ;;  %v10781_v0 = vpop.f32.mrb[171].mxu0  ;;  %v10984_v25 = vpop.f32.mrb[39].mxu1 }
 0x9ed   : > { %v13617_v10 = vpack.c.bf16 %v11740_v8, %v11739_v18  ;;  %v13622_v61 = vpack.c.bf16 %v11750_v36, %v11749_v16  ;;  %v11744_v50 = vmax.f32 %v11616_v62, 0.0  ;;  %v11295_v32 = vadd.f32 %v19890_v9, %v11145_v24 }
 0x9ee   : > { %v11626_v27 = vadd.f32 %v21362_v1, %v11302_v35  ;;  %v11305_v5 = vadd.f32 %v19915_v60, %v11155_v19  ;;  %v11146_v29 = vmul.f32 %v19893_v30, %v10777_v55  ;;  %v11156_v63 = vmul.f32 %v19917_v49, %v10980_v26 }
 0x9ef   : > { %12375 = vst [vmem:[%s18349_s3 + $0x20] sm:$0xff] %v13617_v10  ;;  %12380 = vst [vmem:[%s18349_s3 + $0x48] sm:$0xff] %v13622_v61  ;;  %v13619_v18 = vpack.c.bf16 %v11744_v50, %v11743_v3  ;;  %v11149_v20 = vmul.f32 %v19885_v39, %v10779_v7  ;;  %v11159_v8 = vmul.f32 %v19906_v17, %v10982_v47  ;;  %v21363_v36 = vunpack.c.l.bf16 %v19912_v28 }
 0x9f0   : > { %v11754_v16 = vmax.f32 %v11626_v27, 0.0  ;;  %v21364_v35 = vunpack.c.l.bf16 %v19922_v2  ;;  %v11296_v19 = vadd.f32 %v19895_v4, %v11146_v29  ;;  %v11306_v55 = vadd.f32 %v19919_v6, %v11156_v63 }
 0x9f1   : > { %v11619_v62 = vadd.f32 %v21363_v36, %v11295_v32  ;;  %12377 = vst [vmem:[%s18349_s3 + $0x30] sm:$0xff] %v13619_v18  ;;  %v11299_v3 = vadd.f32 %v19890_v9, %v11149_v20  ;;  %v11309_v10 = vadd.f32 %v19915_v60, %v11159_v8  ;;  %v11150_v61 = vmul.f32 %v19893_v30, %v10781_v0  ;;  %v10785_v0 = vpop.f32.mrb[172].mxu0  ;;  %v10988_v20 = vpop.f32.mrb[40].mxu1 }
 0x9f2   : > { %v11629_v24 = vadd.f32 %v21364_v35, %v11305_v5  ;;  %v13624_v26 = vpack.c.bf16 %v11754_v16, %v11753_v58  ;;  %v21365_v27 = vunpack.c.h.bf16 %v19912_v28  ;;  %v21366_v47 = vunpack.c.h.bf16 %v19922_v2  ;;  %v10990_v35 = vpop.f32.mrb[41].mxu1 }
 0x9f3   : > { %v11747_v50 = vmax.f32 %v11619_v62, 0.0  ;;  %v21367_v5 = vunpack.c.l.bf16 %v19925_v42  ;;  %v21368_v58 = vunpack.c.l.bf16 %v19932_v48  ;;  %v11300_v18 = vadd.f32 %v19895_v4, %v11150_v61  ;;  %v10787_v62 = vpop.f32.mrb[173].mxu0 }
 0x9f4   : > { %v11757_v1 = vmax.f32 %v11629_v24, 0.0  ;;  %v11620_v7 = vadd.f32 %v21365_v27, %v11296_v19  ;;  %v11630_v32 = vadd.f32 %v21366_v47, %v11306_v55  ;;  %12382 = vst [vmem:[%s18349_s3 + $0x58] sm:$0xff] %v13624_v26  ;;  %v11160_v16 = vmul.f32 %v19917_v49, %v10984_v25  ;;  %v10789_v25 = vpop.f32.mrb[174].mxu0 }
 0x9f5   : > { %v11623_v29 = vadd.f32 %v21367_v5, %v11299_v3  ;;  %v11633_v63 = vadd.f32 %v21368_v58, %v11309_v10  ;;  %v11153_v28 = vmul.f32 %v19885_v39, %v10785_v0  ;;  %v11163_v2 = vmul.f32 %v19906_v17, %v10988_v20  ;;  %v10992_v10 = vpop.f32.mrb[42].mxu1 }
 0x9f6   : > { %v11748_v8 = vmax.f32 %v11620_v7, 0.0  ;;  %v11758_v36 = vmax.f32 %v11630_v32, 0.0  ;;  %v21369_v55 = vunpack.c.h.bf16 %v19925_v42  ;;  %v11310_v3 = vadd.f32 %v19919_v6, %v11160_v16  ;;  %v10791_v32 = vpop.f32.mrb[175].mxu0  ;;  %v10994_v5 = vpop.f32.mrb[43].mxu1 }
 0x9f7   : > { %v11751_v24 = vmax.f32 %v11623_v29, 0.0  ;;  %v11761_v19 = vmax.f32 %v11633_v63, 0.0  ;;  %v11303_v7 = vadd.f32 %v19890_v9, %v11153_v28  ;;  %v11313_v47 = vadd.f32 %v19915_v60, %v11163_v2 }
 0x9f8   : > { %v11624_v26 = vadd.f32 %v21369_v55, %v11300_v18  ;;  %v13621_v61 = vpack.c.bf16 %v11748_v8, %v11747_v50  ;;  %v13626_v27 = vpack.c.bf16 %v11758_v36, %v11757_v1  ;;  %v21370_v29 = vunpack.c.h.bf16 %v19932_v48 }
 0x9f9   : > { %v11154_v42 = vmul.f32 %v19893_v30, %v10787_v62  ;;  %v11164_v18 = vmul.f32 %v19917_v49, %v10990_v35  ;;  %v21371_v50 = vunpack.c.l.bf16 %v19935_v43  ;;  %v21372_v16 = vunpack.c.l.bf16 %v19942_v37 }
 0x9fa   : > { %v11752_v58 = vmax.f32 %v11624_v26, 0.0  ;;  %v11634_v63 = vadd.f32 %v21370_v29, %v11310_v3  ;;  %12379 = vst [vmem:[%s18349_s3 + $0x40] sm:$0xff] %v13621_v61  ;;  %12384 = vst [vmem:[%s18349_s3 + $0x68] sm:$0xff] %v13626_v27  ;;  %v11157_v20 = vmul.f32 %v19885_v39, %v10789_v25  ;;  %v11167_v8 = vmul.f32 %v19906_v17, %v10992_v10 }
 0x9fb   : > { %v11627_v1 = vadd.f32 %v21371_v50, %v11303_v7  ;;  %v11637_v0 = vadd.f32 %v21372_v16, %v11313_v47  ;;  %v11304_v28 = vadd.f32 %v19895_v4, %v11154_v42  ;;  %v11314_v2 = vadd.f32 %v19919_v6, %v11164_v18  ;;  %v10795_v7 = vpop.f32.mrb[176].mxu0  ;;  %v10998_v47 = vpop.f32.mrb[44].mxu1 }
 0x9fc   : > { %v13623_v36 = vpack.c.bf16 %v11752_v58, %v11751_v24  ;;  %v11762_v48 = vmax.f32 %v11634_v63, 0.0  ;;  %v11307_v55 = vadd.f32 %v19890_v9, %v11157_v20  ;;  %v11317_v26 = vadd.f32 %v19915_v60, %v11167_v8  ;;  %v10797_v50 = vpop.f32.mrb[177].mxu0 }
 0x9fd   : > { %v11755_v62 = vmax.f32 %v11627_v1, 0.0  ;;  %v11765_v35 = vmax.f32 %v11637_v0, 0.0  ;;  %v21373_v61 = vunpack.c.h.bf16 %v19935_v43  ;;  %v21374_v10 = vunpack.c.h.bf16 %v19942_v37  ;;  %v11000_v43 = vpop.f32.mrb[45].mxu1  ;;  %v10799_v0 = vpop.f32.mrb[178].mxu0 }
 0x9fe   : > { %12381 = vst [vmem:[%s18349_s3 + $0x50] sm:$0xff] %v13623_v36  ;;  %v13628_v3 = vpack.c.bf16 %v11762_v48, %v11761_v19  ;;  %v11158_v27 = vmul.f32 %v19893_v30, %v10791_v32  ;;  %v21375_v58 = vunpack.c.l.bf16 %v19945_v34  ;;  %v21376_v63 = vunpack.c.l.bf16 %v19952_v59  ;;  %v11002_v20 = vpop.f32.mrb[46].mxu1 }
 0x9ff   : > { %v11628_v25 = vadd.f32 %v21373_v61, %v11304_v28  ;;  %v11638_v24 = vadd.f32 %v21374_v10, %v11314_v2  ;;  %v11168_v18 = vmul.f32 %v19917_v49, %v10994_v5  ;;  %v11161_v19 = vmul.f32 %v19885_v39, %v10795_v7  ;;  %v10801_v28 = vpop.f32.mrb[179].mxu0  ;;  %v11004_v2 = vpop.f32.mrb[47].mxu1 }
 0xa00   : > { %v11631_v29 = vadd.f32 %v21375_v58, %v11307_v55  ;;  %v11641_v42 = vadd.f32 %v21376_v63, %v11317_v26  ;;  %12386 = vst [vmem:[%s18349_s3 + $0x78] sm:$0xff] %v13628_v3  ;;  %v11308_v16 = vadd.f32 %v19895_v4, %v11158_v27  ;;  %v11171_v32 = vmul.f32 %v19906_v17, %v10998_v47 }
 0xa01   : > { %v11756_v1 = vmax.f32 %v11628_v25, 0.0  ;;  %v11766_v37 = vmax.f32 %v11638_v24, 0.0  ;;  %v11318_v48 = vadd.f32 %v19919_v6, %v11168_v18  ;;  %v11311_v5 = vadd.f32 %v19890_v9, %v11161_v19 }
 0xa02   : > { %v11759_v8 = vmax.f32 %v11631_v29, 0.0  ;;  %v11769_v36 = vmax.f32 %v11641_v42, 0.0  ;;  %v21377_v3 = vunpack.c.h.bf16 %v19945_v34  ;;  %v11321_v25 = vadd.f32 %v19915_v60, %v11171_v32  ;;  %v11008_v32 = vpop.f32.mrb[48].mxu1 }
 0xa03   : > { %v13625_v55 = vpack.c.bf16 %v11756_v1, %v11755_v62  ;;  %v13630_v26 = vpack.c.bf16 %v11766_v37, %v11765_v35  ;;  %v21378_v10 = vunpack.c.h.bf16 %v19952_v59  ;;  %v21379_v27 = vunpack.c.l.bf16 %v19955_v31 }
 0xa04   : > { %v11632_v61 = vadd.f32 %v21377_v3, %v11308_v16  ;;  %v11162_v47 = vmul.f32 %v19893_v30, %v10797_v50  ;;  %v11172_v58 = vmul.f32 %v19917_v49, %v11000_v43  ;;  %v21380_v62 = vunpack.c.l.bf16 %v19962_v13  ;;  %v10805_v16 = vpop.f32.mrb[180].mxu0 }
 0xa05   : > { %v11642_v24 = vadd.f32 %v21378_v10, %v11318_v48  ;;  %v11635_v7 = vadd.f32 %v21379_v27, %v11311_v5  ;;  %12383 = vst [vmem:[%s18349_s3 + $0x60] sm:$0xff] %v13625_v55  ;;  %12388 = vst [vmem:[%s18349_s3 + $0x88] sm:$0xff] %v13630_v26  ;;  %v11165_v34 = vmul.f32 %v19885_v39, %v10799_v0  ;;  %v21381_v0 = vunpack.c.h.bf16 %v19955_v31  ;;  %v10807_v3 = vpop.f32.mrb[181].mxu0 }
 0xa06   : > { %v11760_v29 = vmax.f32 %v11632_v61, 0.0  ;;  %v11645_v35 = vadd.f32 %v21380_v62, %v11321_v25  ;;  %v11175_v63 = vmul.f32 %v19906_v17, %v11002_v20  ;;  %v11312_v18 = vadd.f32 %v19895_v4, %v11162_v47  ;;  %v11010_v61 = vpop.f32.mrb[49].mxu1  ;;  %v10809_v31 = vpop.f32.mrb[182].mxu0 }
 0xa07   : > { %v11770_v42 = vmax.f32 %v11642_v24, 0.0  ;;  %v11763_v59 = vmax.f32 %v11635_v7, 0.0  ;;  %v11322_v19 = vadd.f32 %v19919_v6, %v11172_v58  ;;  %v11315_v43 = vadd.f32 %v19890_v9, %v11165_v34  ;;  %v11012_v7 = vpop.f32.mrb[50].mxu1 }
 0xa08   : > { %v13627_v50 = vpack.c.bf16 %v11760_v29, %v11759_v8  ;;  %v11773_v1 = vmax.f32 %v11645_v35, 0.0  ;;  %v11325_v37 = vadd.f32 %v19915_v60, %v11175_v63  ;;  %v11636_v20 = vadd.f32 %v21381_v0, %v11312_v18  ;;  %v10811_v29 = vpop.f32.mrb[183].mxu0  ;;  %v11014_v62 = vpop.f32.mrb[51].mxu1 }
 0xa09   : > { %v13632_v48 = vpack.c.bf16 %v11770_v42, %v11769_v36  ;;  %v21382_v5 = vunpack.c.h.bf16 %v19962_v13  ;;  %v11166_v26 = vmul.f32 %v19893_v30, %v10801_v28  ;;  %v21383_v8 = vunpack.c.l.bf16 %v19965_v53 }
 0xa0a   : > { %12385 = vst [vmem:[%s18349_s3 + $0x70] sm:$0xff] %v13627_v50  ;;  %v21384_v10 = vunpack.c.l.bf16 %v19972_v12  ;;  %v11176_v27 = vmul.f32 %v19917_v49, %v11004_v2  ;;  %v11169_v36 = vmul.f32 %v19885_v39, %v10805_v16  ;;  %v11764_v13 = vmax.f32 %v11636_v20, 0.0 }
 0xa0b   : > { %v11646_v55 = vadd.f32 %v21382_v5, %v11322_v19  ;;  %v11639_v25 = vadd.f32 %v21383_v8, %v11315_v43  ;;  %12390 = vst [vmem:[%s18349_s3 + $0x98] sm:$0xff] %v13632_v48  ;;  %v11316_v28 = vadd.f32 %v19895_v4, %v11166_v26  ;;  %v11179_v58 = vmul.f32 %v19906_v17, %v11008_v32 }
 0xa0c   : > { %v11649_v24 = vadd.f32 %v21384_v10, %v11325_v37  ;;  %v11326_v63 = vadd.f32 %v19919_v6, %v11176_v27  ;;  %v11319_v2 = vadd.f32 %v19890_v9, %v11169_v36  ;;  %v13629_v42 = vpack.c.bf16 %v11764_v13, %v11763_v59  ;;  %v11018_v10 = vpop.f32.mrb[52].mxu1 }
 0xa0d   : > { %v11774_v47 = vmax.f32 %v11646_v55, 0.0  ;;  %v11767_v35 = vmax.f32 %v11639_v25, 0.0  ;;  %v21385_v19 = vunpack.c.h.bf16 %v19965_v53  ;;  %v11329_v43 = vadd.f32 %v19915_v60, %v11179_v58 }
 0xa0e   : > { %v11777_v34 = vmax.f32 %v11649_v24, 0.0  ;;  %v21386_v37 = vunpack.c.h.bf16 %v19972_v12  ;;  %v21387_v32 = vunpack.c.l.bf16 %v19975_v56  ;;  %v11170_v0 = vmul.f32 %v19893_v30, %v10807_v3  ;;  %12387 = vst [vmem:[%s18349_s3 + $0x80] sm:$0xff] %v13629_v42  ;;  %v10815_v3 = vpop.f32.mrb[184].mxu0 }
 0xa0f   : > { %v13634_v18 = vpack.c.bf16 %v11774_v47, %v11773_v1  ;;  %v11640_v50 = vadd.f32 %v21385_v19, %v11316_v28  ;;  %v11180_v20 = vmul.f32 %v19917_v49, %v11010_v61  ;;  %v21388_v59 = vunpack.c.l.bf16 %v19982_v33  ;;  %v10817_v13 = vpop.f32.mrb[185].mxu0 }
 0xa10   : > { %v11650_v16 = vadd.f32 %v21386_v37, %v11326_v63  ;;  %v11643_v48 = vadd.f32 %v21387_v32, %v11319_v2  ;;  %v11173_v53 = vmul.f32 %v19885_v39, %v10809_v31  ;;  %v11183_v55 = vmul.f32 %v19906_v17, %v11012_v7  ;;  %v11020_v31 = vpop.f32.mrb[53].mxu1  ;;  %v10819_v42 = vpop.f32.mrb[186].mxu0 }
 0xa11   : > { %12392 = vst [vmem:[%s18349_s3 + $0xa8] sm:$0xff] %v13634_v18  ;;  %v11768_v5 = vmax.f32 %v11640_v50, 0.0  ;;  %v11653_v1 = vadd.f32 %v21388_v59, %v11329_v43  ;;  %v11320_v8 = vadd.f32 %v19895_v4, %v11170_v0  ;;  %v11330_v25 = vadd.f32 %v19919_v6, %v11180_v20  ;;  %v11022_v18 = vpop.f32.mrb[54].mxu1 }
 0xa12   : > { %v11778_v26 = vmax.f32 %v11650_v16, 0.0  ;;  %v11771_v12 = vmax.f32 %v11643_v48, 0.0  ;;  %v11323_v27 = vadd.f32 %v19890_v9, %v11173_v53  ;;  %v11333_v36 = vadd.f32 %v19915_v60, %v11183_v55  ;;  %v11024_v16 = vpop.f32.mrb[55].mxu1 }
 0xa13   : > { %v13631_v61 = vpack.c.bf16 %v11768_v5, %v11767_v35  ;;  %v11781_v24 = vmax.f32 %v11653_v1, 0.0  ;;  %v21389_v7 = vunpack.c.h.bf16 %v19975_v56  ;;  %v21390_v58 = vunpack.c.h.bf16 %v19982_v33  ;;  %v10821_v56 = vpop.f32.mrb[187].mxu0 }
 0xa14   : > { %v13636_v47 = vpack.c.bf16 %v11778_v26, %v11777_v34  ;;  %v11174_v2 = vmul.f32 %v19893_v30, %v10811_v29  ;;  %v21391_v35 = vunpack.c.l.bf16 %v19985_v23  ;;  %v21392_v50 = vunpack.c.l.bf16 %v19992_v54 }
 0xa15   : > { %v11644_v28 = vadd.f32 %v21389_v7, %v11320_v8  ;;  %v11654_v63 = vadd.f32 %v21390_v58, %v11330_v25  ;;  %12389 = vst [vmem:[%s18349_s3 + $0x90] sm:$0xff] %v13631_v61  ;;  %v11184_v37 = vmul.f32 %v19917_v49, %v11014_v62  ;;  %v11177_v34 = vmul.f32 %v19885_v39, %v10815_v3  ;;  %v10825_v7 = vpop.f32.mrb[188].mxu0 }
 0xa16   : > { %v11647_v19 = vadd.f32 %v21391_v35, %v11323_v27  ;;  %v11657_v43 = vadd.f32 %v21392_v50, %v11333_v36  ;;  %12394 = vst [vmem:[%s18349_s3 + $0xb8] sm:$0xff] %v13636_v47  ;;  %v11324_v29 = vadd.f32 %v19895_v4, %v11174_v2  ;;  %v11187_v48 = vmul.f32 %v19906_v17, %v11018_v10 }
 0xa17   : > { %v11772_v33 = vmax.f32 %v11644_v28, 0.0  ;;  %v11782_v32 = vmax.f32 %v11654_v63, 0.0  ;;  %v11334_v5 = vadd.f32 %v19919_v6, %v11184_v37  ;;  %v11327_v59 = vadd.f32 %v19890_v9, %v11177_v34 }
 0xa18   : > { %v11775_v0 = vmax.f32 %v11647_v19, 0.0  ;;  %v11785_v20 = vmax.f32 %v11657_v43, 0.0  ;;  %v21393_v53 = vunpack.c.h.bf16 %v19985_v23  ;;  %v11337_v26 = vadd.f32 %v19915_v60, %v11187_v48 }
 0xa19   : > { %v13633_v62 = vpack.c.bf16 %v11772_v33, %v11771_v12  ;;  %v13638_v1 = vpack.c.bf16 %v11782_v32, %v11781_v24  ;;  %v21394_v8 = vunpack.c.h.bf16 %v19992_v54  ;;  %v21395_v3 = vunpack.c.l.bf16 %v19995_v15  ;;  %v11028_v54 = vpop.f32.mrb[56].mxu1 }
 0xa1a   : > { %v11648_v55 = vadd.f32 %v21393_v53, %v11324_v29  ;;  %v11178_v10 = vmul.f32 %v19893_v30, %v10817_v13  ;;  %v11188_v27 = vmul.f32 %v19917_v49, %v11020_v31  ;;  %v21396_v12 = vunpack.c.l.bf16 %v20002_v45  ;;  %v10827_v31 = vpop.f32.mrb[189].mxu0  ;;  %v11030_v2 = vpop.f32.mrb[57].mxu1 }
 0xa1b   : > { %v11658_v25 = vadd.f32 %v21394_v8, %v11334_v5  ;;  %v11651_v61 = vadd.f32 %v21395_v3, %v11327_v59  ;;  %12391 = vst [vmem:[%s18349_s3 + $0xa0] sm:$0xff] %v13633_v62  ;;  %12396 = vst [vmem:[%s18349_s3 + $0xc8] sm:$0xff] %v13638_v1  ;;  %v11181_v23 = vmul.f32 %v19885_v39, %v10819_v42  ;;  %v10829_v43 = vpop.f32.mrb[190].mxu0  ;;  %v21397_v34 = vunpack.c.h.bf16 %v19995_v15 }
 0xa1c   : > { %v11776_v36 = vmax.f32 %v11648_v55, 0.0  ;;  %v11661_v24 = vadd.f32 %v21396_v12, %v11337_v26  ;;  %v11191_v47 = vmul.f32 %v19906_v17, %v11022_v18  ;;  %v11328_v63 = vadd.f32 %v19895_v4, %v11178_v10  ;;  %v11032_v18 = vpop.f32.mrb[58].mxu1  ;;  %v10831_v5 = vpop.f32.mrb[191].mxu0 }
 0xa1d   : > { %v11786_v28 = vmax.f32 %v11658_v25, 0.0  ;;  %v11779_v58 = vmax.f32 %v11651_v61, 0.0  ;;  %v11338_v13 = vadd.f32 %v19919_v6, %v11188_v27  ;;  %v11331_v50 = vadd.f32 %v19890_v9, %v11181_v23  ;;  %v11034_v59 = vpop.f32.mrb[59].mxu1 }
 0xa1e   : > { %v13635_v35 = vpack.c.bf16 %v11776_v36, %v11775_v0  ;;  %v11789_v19 = vmax.f32 %v11661_v24, 0.0  ;;  %v11341_v42 = vadd.f32 %v19915_v60, %v11191_v47  ;;  %v11652_v33 = vadd.f32 %v21397_v34, %v11328_v63  ;;  %v10835_v63 = vpop.f32.mrb[192].mxu0 }
 0xa1f   : > { %v13640_v37 = vpack.c.bf16 %v11786_v28, %v11785_v20  ;;  %v21398_v32 = vunpack.c.h.bf16 %v20002_v45  ;;  %v11182_v48 = vmul.f32 %v19893_v30, %v10821_v56  ;;  %v21399_v0 = vunpack.c.l.bf16 %v20005_v41 }
 0xa20   : > { %12393 = vst [vmem:[%s18349_s3 + $0xb0] sm:$0xff] %v13635_v35  ;;  %v21400_v1 = vunpack.c.l.bf16 %v20012_v21  ;;  %v11192_v55 = vmul.f32 %v19917_v49, %v11024_v16  ;;  %v11185_v20 = vmul.f32 %v19885_v39, %v10825_v7  ;;  %v11780_v15 = vmax.f32 %v11652_v33, 0.0 }
 0xa21   : > { %v11662_v29 = vadd.f32 %v21398_v32, %v11338_v13  ;;  %v11655_v62 = vadd.f32 %v21399_v0, %v11331_v50  ;;  %12398 = vst [vmem:[%s18349_s3 + $0xd8] sm:$0xff] %v13640_v37  ;;  %v11332_v45 = vadd.f32 %v19895_v4, %v11182_v48  ;;  %v11195_v56 = vmul.f32 %v19906_v17, %v11028_v54  ;;  %v11038_v13 = vpop.f32.mrb[60].mxu1  ;;  %v10837_v50 = vpop.f32.mrb[193].mxu0 }
 0xa22   : > { %v11665_v53 = vadd.f32 %v21400_v1, %v11341_v42  ;;  %v11342_v3 = vadd.f32 %v19919_v6, %v11192_v55  ;;  %v11335_v61 = vadd.f32 %v19890_v9, %v11185_v20  ;;  %v13637_v10 = vpack.c.bf16 %v11780_v15, %v11779_v58  ;;  %v11040_v42 = vpop.f32.mrb[61].mxu1  ;;  %v10839_v33 = vpop.f32.mrb[194].mxu0 }
 0xa23   : > { %v11790_v26 = vmax.f32 %v11662_v29, 0.0  ;;  %v11783_v8 = vmax.f32 %v11655_v62, 0.0  ;;  %v21401_v16 = vunpack.c.h.bf16 %v20005_v41  ;;  %v11345_v12 = vadd.f32 %v19915_v60, %v11195_v56  ;;  %v11042_v32 = vpop.f32.mrb[62].mxu1  ;;  %v10841_v62 = vpop.f32.mrb[195].mxu0 }
 0xa24   : > { %v11793_v25 = vmax.f32 %v11665_v53, 0.0  ;;  %v21402_v24 = vunpack.c.h.bf16 %v20012_v21  ;;  %v21403_v47 = vunpack.c.l.bf16 %v20015_v11  ;;  %v11186_v54 = vmul.f32 %v19893_v30, %v10827_v31  ;;  %12395 = vst [vmem:[%s18349_s3 + $0xc0] sm:$0xff] %v13637_v10 }
 0xa25   : > { %v13642_v27 = vpack.c.bf16 %v11790_v26, %v11789_v19  ;;  %v11656_v36 = vadd.f32 %v21401_v16, %v11332_v45  ;;  %v11196_v28 = vmul.f32 %v19917_v49, %v11030_v2  ;;  %v21404_v41 = vunpack.c.l.bf16 %v20022_v38 }
 0xa26   : > { %v11666_v23 = vadd.f32 %v21402_v24, %v11342_v3  ;;  %v11659_v7 = vadd.f32 %v21403_v47, %v11335_v61  ;;  %v11189_v19 = vmul.f32 %v19885_v39, %v10829_v43  ;;  %v11199_v21 = vmul.f32 %v19906_v17, %v11032_v18  ;;  %v11044_v18 = vpop.f32.mrb[63].mxu1 }
 0xa27   : > { %12400 = vst [vmem:[%s18349_s3 + $0xe8] sm:$0xff] %v13642_v27  ;;  %v11784_v58 = vmax.f32 %v11656_v36, 0.0  ;;  %v11669_v35 = vadd.f32 %v21404_v41, %v11345_v12  ;;  %v11336_v31 = vadd.f32 %v19895_v4, %v11186_v54  ;;  %v11346_v2 = vadd.f32 %v19919_v6, %v11196_v28  ;;  %v10845_v54 = vpop.f32.mrb[196].mxu0  ;;  %v11048_v28 = vpop.f32.mrb[96].mxu1 }
 0xa28   : > { %v11794_v37 = vmax.f32 %v11666_v23, 0.0  ;;  %v11787_v34 = vmax.f32 %v11659_v7, 0.0  ;;  %v11339_v0 = vadd.f32 %v19890_v9, %v11189_v19  ;;  %v11349_v43 = vadd.f32 %v19915_v60, %v11199_v21  ;;  %v10847_v21 = vpop.f32.mrb[197].mxu0 }
 0xa29   : > { %v13639_v29 = vpack.c.bf16 %v11784_v58, %v11783_v8  ;;  %v11797_v48 = vmax.f32 %v11669_v35, 0.0  ;;  %v21405_v53 = vunpack.c.h.bf16 %v20015_v11  ;;  %v21406_v20 = vunpack.c.h.bf16 %v20022_v38 }
 0xa2a   : > { %v13644_v1 = vpack.c.bf16 %v11794_v37, %v11793_v25  ;;  %v11190_v26 = vmul.f32 %v19893_v30, %v10831_v5  ;;  %v21407_v45 = vunpack.c.l.bf16 %v20025_v14  ;;  %v21408_v8 = vunpack.c.l.bf16 %v20032_v51  ;;  %v11050_v37 = vpop.f32.mrb[97].mxu1 }
 0xa2b   : > { %v11660_v55 = vadd.f32 %v21405_v53, %v11336_v31  ;;  %v11670_v15 = vadd.f32 %v21406_v20, %v11346_v2  ;;  %12397 = vst [vmem:[%s18349_s3 + $0xd0] sm:$0xff] %v13639_v29  ;;  %v11200_v61 = vmul.f32 %v19917_v49, %v11034_v59  ;;  %v11193_v10 = vmul.f32 %v19885_v39, %v10835_v63  ;;  %v10849_v29 = vpop.f32.mrb[198].mxu0 }
 0xa2c   : > { %v11663_v56 = vadd.f32 %v21407_v45, %v11339_v0  ;;  %v11673_v3 = vadd.f32 %v21408_v8, %v11349_v43  ;;  %12402 = vst [vmem:[%s18349_s3 + $0xf8] sm:$0xff] %v13644_v1  ;;  %v11340_v27 = vadd.f32 %v19895_v4, %v11190_v26  ;;  %v11203_v38 = vmul.f32 %v19906_v17, %v11038_v13  ;;  %v10851_v1 = vpop.f32.mrb[199].mxu0 }
 0xa2d   : > { %v11788_v25 = vmax.f32 %v11660_v55, 0.0  ;;  %v11798_v11 = vmax.f32 %v11670_v15, 0.0  ;;  %v11350_v36 = vadd.f32 %v19919_v6, %v11200_v61  ;;  %v11343_v12 = vadd.f32 %v19890_v9, %v11193_v10 }
 0xa2e   : > { %v11791_v16 = vmax.f32 %v11663_v56, 0.0  ;;  %v11801_v5 = vmax.f32 %v11673_v3, 0.0  ;;  %v21409_v59 = vunpack.c.h.bf16 %v20025_v14  ;;  %v11353_v7 = vadd.f32 %v19915_v60, %v11203_v38 }
 0xa2f   : > { %v13641_v24 = vpack.c.bf16 %v11788_v25, %v11787_v34  ;;  %v13646_v23 = vpack.c.bf16 %v11798_v11, %v11797_v48  ;;  %v21410_v63 = vunpack.c.h.bf16 %v20032_v51  ;;  %v21411_v58 = vunpack.c.l.bf16 %v20035_v44  ;;  %v11052_v48 = vpop.f32.mrb[98].mxu1 }
 0xa30   : > { %v11664_v47 = vadd.f32 %v21409_v59, %v11340_v27  ;;  %v11194_v35 = vmul.f32 %v19893_v30, %v10837_v50  ;;  %v11204_v19 = vmul.f32 %v19917_v49, %v11040_v42  ;;  %v21412_v34 = vunpack.c.l.bf16 %v20042_v40  ;;  %v11054_v53 = vpop.f32.mrb[99].mxu1 }
 0xa31   : > { %v11674_v13 = vadd.f32 %v21410_v63, %v11350_v36  ;;  %v11667_v41 = vadd.f32 %v21411_v58, %v11343_v12  ;;  %12399 = vst [vmem:[%s18349_s3 + $0xe0] sm:$0xff] %v13641_v24  ;;  %12404 = vst [vmem:[%s18349_s3 + $0x108] sm:$0xff] %v13646_v23  ;;  %v11197_v2 = vmul.f32 %v19885_v39, %v10839_v33  ;;  %v21414_v56 = vunpack.c.h.bf16 %v20042_v40  ;;  %v10855_v23 = vpop.f32.mrb[200].mxu0  ;;  %v11058_v59 = vpop.f32.mrb[100].mxu1 }
 0xa32   : > { %v11792_v14 = vmax.f32 %v11664_v47, 0.0  ;;  %v11677_v31 = vadd.f32 %v21412_v34, %v11353_v7  ;;  %v11207_v51 = vmul.f32 %v19906_v17, %v11042_v32  ;;  %v11344_v50 = vadd.f32 %v19895_v4, %v11194_v35  ;;  %v11060_v58 = vpop.f32.mrb[101].mxu1 }
 0xa33   : > { %v11802_v0 = vmax.f32 %v11674_v13, 0.0  ;;  %v11795_v43 = vmax.f32 %v11667_v41, 0.0  ;;  %v11354_v42 = vadd.f32 %v19919_v6, %v11204_v19  ;;  %v11347_v15 = vadd.f32 %v19890_v9, %v11197_v2  ;;  %v10857_v13 = vpop.f32.mrb[201].mxu0  ;;  %v11062_v2 = vpop.f32.mrb[102].mxu1 }
 0xa34   : > { %v13643_v55 = vpack.c.bf16 %v11792_v14, %v11791_v16  ;;  %v11805_v20 = vmax.f32 %v11677_v31, 0.0  ;;  %v11357_v33 = vadd.f32 %v19915_v60, %v11207_v51  ;;  %v21413_v32 = vunpack.c.h.bf16 %v20035_v44  ;;  %v10859_v31 = vpop.f32.mrb[202].mxu0  ;;  %v21420_v51 = vld [vmem:[#allocation96_spill] sm:$0xff] }
 0xa35   : > { %v13648_v26 = vpack.c.bf16 %v11802_v0, %v11801_v5  ;;  %v11678_v8 = vadd.f32 %v21414_v56, %v11354_v42  ;;  %v11198_v3 = vmul.f32 %v19893_v30, %v10841_v62  ;;  %v21415_v61 = vunpack.c.l.bf16 %v20045_v46  ;;  %v10861_v42 = vpop.f32.mrb[203].mxu0 }
 0xa36   : > { %v11668_v45 = vadd.f32 %v21413_v32, %v11344_v50  ;;  %12401 = vst [vmem:[%s18349_s3 + $0xf0] sm:$0xff] %v13643_v55  ;;  %v21416_v25 = vunpack.c.l.bf16 %v20052_v57  ;;  %v11208_v27 = vmul.f32 %v19917_v49, %v11044_v18  ;;  %v11201_v38 = vmul.f32 %v19885_v39, %v10845_v54  ;;  %v20501_v55 = vpop.f32.mrb[103].mxu1 }
 0xa37   : > { %v11671_v10 = vadd.f32 %v21415_v61, %v11347_v15  ;;  %12406 = vst [vmem:[%s18349_s3 + $0x118] sm:$0xff] %v13648_v26  ;;  %v11806_v44 = vmax.f32 %v11678_v8, 0.0  ;;  %v11348_v5 = vadd.f32 %v19895_v4, %v11198_v3  ;;  %v11211_v40 = vmul.f32 %v19906_v17, %v11048_v28 }
 0xa38   : > { %v11681_v11 = vadd.f32 %v21416_v25, %v11357_v33  ;;  %v11796_v16 = vmax.f32 %v11668_v45, 0.0  ;;  %v11358_v12 = vadd.f32 %v19919_v6, %v11208_v27  ;;  %v11351_v24 = vadd.f32 %v19890_v9, %v11201_v38  ;;  %v21426_v27 = vld [vmem:[#allocation81_spill] sm:$0xff] }
 0xa39   : > { %v11799_v36 = vmax.f32 %v11671_v10, 0.0  ;;  %v13650_v47 = vpack.c.bf16 %v11806_v44, %v11805_v20  ;;  %v21417_v7 = vunpack.c.h.bf16 %v20045_v46  ;;  %v11361_v63 = vadd.f32 %v19915_v60, %v11211_v40  ;;  %v21424_v10 = vld [vmem:[#allocation60_spill] sm:$0xff] }
 0xa3a   : > { %v11809_v62 = vmax.f32 %v11681_v11, 0.0  ;;  %v13645_v18 = vpack.c.bf16 %v11796_v16, %v11795_v43  ;;  %v21418_v28 = vunpack.c.h.bf16 %v20052_v57  ;;  %v21419_v35 = vunpack.c.l.bf16 %v20055_v22 }
 0xa3b   : > { %v11672_v54 = vadd.f32 %v21417_v7, %v11348_v5  ;;  %v11202_v14 = vmul.f32 %v19893_v30, %v10847_v21  ;;  %v11212_v34 = vmul.f32 %v19917_v49, %v11050_v37  ;;  %12408 = vst [vmem:[%s18349_s3 + $0x128] sm:$0xff] %v13650_v47  ;;  %v21421_v0 = vunpack.c.l.bf16 %v21420_v51 }
 0xa3c   : > { %v11682_v41 = vadd.f32 %v21418_v28, %v11358_v12  ;;  %v11675_v19 = vadd.f32 %v21419_v35, %v11351_v24  ;;  %12403 = vst [vmem:[%s18349_s3 + $0x100] sm:$0xff] %v13645_v18  ;;  %v11205_v50 = vmul.f32 %v19885_v39, %v10849_v29  ;;  %v11215_v57 = vmul.f32 %v19906_v17, %v11052_v48  ;;  %v10865_v12 = vpop.f32.mrb[204].mxu0 }
 0xa3d   : > { %v11800_v46 = vmax.f32 %v11672_v54, 0.0  ;;  %v11685_v43 = vadd.f32 %v21421_v0, %v11361_v63  ;;  %v11352_v37 = vadd.f32 %v19895_v4, %v11202_v14  ;;  %v11362_v15 = vadd.f32 %v19919_v6, %v11212_v34 }
 0xa3e   : > { %v11810_v20 = vmax.f32 %v11682_v41, 0.0  ;;  %v11803_v21 = vmax.f32 %v11675_v19, 0.0  ;;  %v11355_v32 = vadd.f32 %v19890_v9, %v11205_v50  ;;  %v11365_v45 = vadd.f32 %v19915_v60, %v11215_v57 }
 0xa3f   : > { %v13647_v33 = vpack.c.bf16 %v11800_v46, %v11799_v36  ;;  %v11813_v26 = vmax.f32 %v11685_v43, 0.0  ;;  %v21422_v56 = vunpack.c.h.bf16 %v20055_v22  ;;  %v21423_v8 = vunpack.c.h.bf16 %v21420_v51  ;;  %v21430_v46 = vld [vmem:[#allocation120_spill] sm:$0xff] }
 0xa40   : > { %v13652_v29 = vpack.c.bf16 %v11810_v20, %v11809_v62  ;;  %v11206_v61 = vmul.f32 %v19893_v30, %v10851_v1  ;;  %v21425_v25 = vunpack.c.l.bf16 %v21424_v10  ;;  %v21427_v38 = vunpack.c.l.bf16 %v21426_v27  ;;  %v11068_v1 = vpop.f32.mrb[104].mxu1 }
 0xa41   : > { %v11676_v48 = vadd.f32 %v21422_v56, %v11352_v37  ;;  %v11686_v3 = vadd.f32 %v21423_v8, %v11362_v15  ;;  %12405 = vst [vmem:[%s18349_s3 + $0x110] sm:$0xff] %v13647_v33  ;;  %v11216_v44 = vmul.f32 %v19917_v49, %v11054_v53  ;;  %v11209_v5 = vmul.f32 %v19885_v39, %v10855_v23  ;;  %v10867_v53 = vpop.f32.mrb[205].mxu0  ;;  %v11070_v54 = vpop.f32.mrb[105].mxu1  ;;  %v21432_v37 = vld [vmem:[#allocation82_spill] sm:$0xff] }
 0xa42   : > { %v11679_v11 = vadd.f32 %v21425_v25, %v11355_v32  ;;  %v11689_v16 = vadd.f32 %v21427_v38, %v11365_v45  ;;  %12410 = vst [vmem:[%s18349_s3 + $0x138] sm:$0xff] %v13652_v29  ;;  %v11356_v36 = vadd.f32 %v19895_v4, %v11206_v61  ;;  %v11219_v62 = vmul.f32 %v19906_v17, %v11058_v59  ;;  %v10869_v59 = vpop.f32.mrb[206].mxu0  ;;  %v11072_v19 = vpop.f32.mrb[106].mxu1 }
 0xa43   : > { %v11804_v40 = vmax.f32 %v11676_v48, 0.0  ;;  %v11814_v22 = vmax.f32 %v11686_v3, 0.0  ;;  %v11366_v47 = vadd.f32 %v19919_v6, %v11216_v44  ;;  %v11359_v7 = vadd.f32 %v19890_v9, %v11209_v5  ;;  %v20533_v57 = vpop.f32.mrb[207].mxu0  ;;  %v20535_v20 = vpop.f32.mrb[107].mxu1  ;;  %v21438_v44 = vld [vmem:[#allocation123_spill] sm:$0xff] }
 0xa44   : > { %v11807_v24 = vmax.f32 %v11679_v11, 0.0  ;;  %v11817_v18 = vmax.f32 %v11689_v16, 0.0  ;;  %v21428_v28 = vunpack.c.h.bf16 %v21424_v10  ;;  %v11369_v35 = vadd.f32 %v19915_v60, %v11219_v62  ;;  %v10875_v62 = vpop.f32.mrb[208].mxu0 }
 0xa45   : > { %v13649_v23 = vpack.c.bf16 %v11804_v40, %v11803_v21  ;;  %v13654_v63 = vpack.c.bf16 %v11814_v22, %v11813_v26  ;;  %v21429_v14 = vunpack.c.h.bf16 %v21426_v27  ;;  %v21431_v51 = vunpack.c.l.bf16 %v21430_v46  ;;  %v21436_v27 = vld [vmem:[#allocation98_spill] sm:$0xff] }
 0xa46   : > { %v11680_v41 = vadd.f32 %v21428_v28, %v11356_v36  ;;  %v11210_v43 = vmul.f32 %v19893_v30, %v10857_v13  ;;  %v11220_v50 = vmul.f32 %v19917_v49, %v11060_v58  ;;  %v21433_v15 = vunpack.c.l.bf16 %v21432_v37 }
 0xa47   : > { %v11690_v34 = vadd.f32 %v21429_v14, %v11366_v47  ;;  %v11683_v0 = vadd.f32 %v21431_v51, %v11359_v7  ;;  %12407 = vst [vmem:[%s18349_s3 + $0x120] sm:$0xff] %v13649_v23  ;;  %12412 = vst [vmem:[%s18349_s3 + $0x148] sm:$0xff] %v13654_v63  ;;  %v11213_v26 = vmul.f32 %v19885_v39, %v10859_v31  ;;  %v21434_v10 = vunpack.c.h.bf16 %v21430_v46  ;;  %v20563_v23 = vpop.f32.mrb[209].mxu0 }
 0xa48   : > { %v11808_v21 = vmax.f32 %v11680_v41, 0.0  ;;  %v11693_v33 = vadd.f32 %v21433_v15, %v11369_v35  ;;  %v11223_v32 = vmul.f32 %v19906_v17, %v11062_v2  ;;  %v11360_v13 = vadd.f32 %v19895_v4, %v11210_v43  ;;  %v20569_v35 = vpop.f32.mrb[210].mxu0  ;;  %v21442_v15 = vld [vmem:[#allocation61_spill] sm:$0xff] }
 0xa49   : > { %v11818_v45 = vmax.f32 %v11690_v34, 0.0  ;;  %v11811_v29 = vmax.f32 %v11683_v0, 0.0  ;;  %v11370_v58 = vadd.f32 %v19919_v6, %v11220_v50  ;;  %v11363_v8 = vadd.f32 %v19890_v9, %v11213_v26  ;;  %v20576_v43 = vpop.f32.mrb[211].mxu0 }
 0xa4a   : > { %v13651_v56 = vpack.c.bf16 %v11808_v21, %v11807_v24  ;;  %v11821_v48 = vmax.f32 %v11693_v33, 0.0  ;;  %v11373_v3 = vadd.f32 %v19915_v60, %v11223_v32  ;;  %v11684_v25 = vadd.f32 %v21434_v10, %v11360_v13  ;;  %v11078_v24 = vpop.f32.mrb[108].mxu1  ;;  %v21444_v13 = vld [vmem:[#allocation99_spill] sm:$0xff] }
 0xa4b   : > { %v13656_v61 = vpack.c.bf16 %v11818_v45, %v11817_v18  ;;  %v21435_v31 = vunpack.c.h.bf16 %v21432_v37  ;;  %v11214_v11 = vmul.f32 %v19893_v30, %v10861_v42  ;;  %v21437_v38 = vunpack.c.l.bf16 %v21436_v27  ;;  %v20565_v63 = vpop.f32.mrb[109].mxu1 }
 0xa4c   : > { %12409 = vst [vmem:[%s18349_s3 + $0x130] sm:$0xff] %v13651_v56  ;;  %v21439_v5 = vunpack.c.l.bf16 %v21438_v44  ;;  %v11224_v22 = vmul.f32 %v19917_v49, %v20501_v55  ;;  %v11217_v36 = vmul.f32 %v19885_v39, %v10865_v12  ;;  %v11812_v18 = vmax.f32 %v11684_v25, 0.0  ;;  %v20571_v14 = vpop.f32.mrb[110].mxu1 }
 0xa4d   : > { %v11694_v2 = vadd.f32 %v21435_v31, %v11370_v58  ;;  %v11687_v16 = vadd.f32 %v21437_v38, %v11363_v8  ;;  %12414 = vst [vmem:[%s18349_s3 + $0x158] sm:$0xff] %v13656_v61  ;;  %v11364_v7 = vadd.f32 %v19895_v4, %v11214_v11  ;;  %v11227_v42 = vmul.f32 %v19906_v17, %v11068_v1  ;;  %v20578_v50 = vpop.f32.mrb[111].mxu1 }
 0xa4e   : > { %v11697_v40 = vadd.f32 %v21439_v5, %v11373_v3  ;;  %v11374_v55 = vadd.f32 %v19919_v6, %v11224_v22  ;;  %v11367_v12 = vadd.f32 %v19890_v9, %v11217_v36  ;;  %v13653_v34 = vpack.c.bf16 %v11812_v18, %v11811_v29  ;;  %v11088_v5 = vpop.f32.mrb[112].mxu1  ;;  %v21450_v18 = vld [vmem:[#allocation62_spill] sm:$0xff] }
 0xa4f   : > { %v11822_v47 = vmax.f32 %v11694_v2, 0.0  ;;  %v11815_v28 = vmax.f32 %v11687_v16, 0.0  ;;  %v21440_v1 = vunpack.c.h.bf16 %v21436_v27  ;;  %v11377_v0 = vadd.f32 %v19915_v60, %v11227_v42 }
 0xa50   : > { %v11825_v41 = vmax.f32 %v11697_v40, 0.0  ;;  %v21441_v21 = vunpack.c.h.bf16 %v21438_v44  ;;  %v21443_v33 = vunpack.c.l.bf16 %v21442_v15  ;;  %v11218_v32 = vmul.f32 %v19893_v30, %v10867_v53  ;;  %12411 = vst [vmem:[%s18349_s3 + $0x140] sm:$0xff] %v13653_v34  ;;  %v10885_v44 = vpop.f32.mrb[212].mxu0  ;;  %v21448_v40 = vld [vmem:[#allocation111_spill] sm:$0xff] }
 0xa51   : > { %v13658_v46 = vpack.c.bf16 %v11822_v47, %v11821_v48  ;;  %v11688_v51 = vadd.f32 %v21440_v1, %v11364_v7  ;;  %v11228_v45 = vmul.f32 %v19917_v49, %v11070_v54  ;;  %v21445_v58 = vunpack.c.l.bf16 %v21444_v13 }
 0xa52   : > { %v11698_v37 = vadd.f32 %v21441_v21, %v11374_v55  ;;  %v11691_v26 = vadd.f32 %v21443_v33, %v11367_v12  ;;  %v11221_v48 = vmul.f32 %v19885_v39, %v10869_v59  ;;  %v11231_v8 = vmul.f32 %v19906_v17, %v11072_v19  ;;  %v20612_v55 = vpop.f32.mrb[113].mxu1 }
 0xa53   : > { %12416 = vst [vmem:[%s18349_s3 + $0x168] sm:$0xff] %v13658_v46  ;;  %v11816_v29 = vmax.f32 %v11688_v51, 0.0  ;;  %v11701_v56 = vadd.f32 %v21445_v58, %v11377_v0  ;;  %v11368_v10 = vadd.f32 %v19895_v4, %v11218_v32  ;;  %v11378_v25 = vadd.f32 %v19919_v6, %v11228_v45  ;;  %v20619_v51 = vpop.f32.mrb[114].mxu1  ;;  %v21454_v58 = vld [vmem:[#allocation83_spill] sm:$0xff] }
 0xa54   : > { %v11826_v3 = vmax.f32 %v11698_v37, 0.0  ;;  %v11819_v61 = vmax.f32 %v11691_v26, 0.0  ;;  %v11371_v54 = vadd.f32 %v19890_v9, %v11221_v48  ;;  %v11381_v2 = vadd.f32 %v19915_v60, %v11231_v8 }
 0xa55   : > { %v13655_v53 = vpack.c.bf16 %v11816_v29, %v11815_v28  ;;  %v11829_v31 = vmax.f32 %v11701_v56, 0.0  ;;  %v21446_v27 = vunpack.c.h.bf16 %v21442_v15  ;;  %v21447_v38 = vunpack.c.h.bf16 %v21444_v13  ;;  %v20625_v15 = vpop.f32.mrb[115].mxu1 }
 0xa56   : > { %v13660_v11 = vpack.c.bf16 %v11826_v3, %v11825_v41  ;;  %v11222_v16 = vmul.f32 %v19893_v30, %v20533_v57  ;;  %v21449_v22 = vunpack.c.l.bf16 %v21448_v40  ;;  %v21451_v47 = vunpack.c.l.bf16 %v21450_v18  ;;  %v20610_v41 = vpop.f32.mrb[213].mxu0 }
 0xa57   : > { %v11692_v59 = vadd.f32 %v21446_v27, %v11368_v10  ;;  %v11702_v19 = vadd.f32 %v21447_v38, %v11378_v25  ;;  %12413 = vst [vmem:[%s18349_s3 + $0x150] sm:$0xff] %v13655_v53  ;;  %v11232_v42 = vmul.f32 %v19917_v49, %v20535_v20  ;;  %v11225_v28 = vmul.f32 %v19885_v39, %v10875_v62  ;;  %v20617_v1 = vpop.f32.mrb[214].mxu0  ;;  %v21456_v10 = vld [vmem:[#allocation85_spill] sm:$0xff] }
 0xa58   : > { %v11695_v36 = vadd.f32 %v21449_v22, %v11371_v54  ;;  %v11705_v7 = vadd.f32 %v21451_v47, %v11381_v2  ;;  %12418 = vst [vmem:[%s18349_s3 + $0x178] sm:$0xff] %v13660_v11  ;;  %v11372_v34 = vadd.f32 %v19895_v4, %v11222_v16  ;;  %v11235_v46 = vmul.f32 %v19906_v17, %v11078_v24  ;;  %v20623_v37 = vpop.f32.mrb[215].mxu0 }
 0xa59   : > { %v11820_v57 = vmax.f32 %v11692_v59, 0.0  ;;  %v11830_v12 = vmax.f32 %v11702_v19, 0.0  ;;  %v11382_v62 = vadd.f32 %v19919_v6, %v11232_v42  ;;  %v11375_v21 = vadd.f32 %v19890_v9, %v11225_v28  ;;  %v10895_v16 = vpop.f32.mrb[216].mxu0  ;;  %v21460_v28 = vld [vmem:[#allocation100_spill] sm:$0xff] }
 0xa5a   : > { %v11823_v20 = vmax.f32 %v11695_v36, 0.0  ;;  %v11833_v0 = vmax.f32 %v11705_v7, 0.0  ;;  %v21452_v24 = vunpack.c.h.bf16 %v21448_v40  ;;  %v11385_v45 = vadd.f32 %v19915_v60, %v11235_v46  ;;  %v20650_v40 = vpop.f32.mrb[116].mxu1  ;;  %v20658_v7 = vpop.f32.mrb[217].mxu0 }
 0xa5b   : > { %v13657_v33 = vpack.c.bf16 %v11820_v57, %v11819_v61  ;;  %v13662_v26 = vpack.c.bf16 %v11830_v12, %v11829_v31  ;;  %v21453_v29 = vunpack.c.h.bf16 %v21450_v18  ;;  %v21455_v56 = vunpack.c.l.bf16 %v21454_v58  ;;  %v20660_v42 = vpop.f32.mrb[117].mxu1 }
 0xa5c   : > { %v11696_v32 = vadd.f32 %v21452_v24, %v11372_v34  ;;  %v11226_v8 = vmul.f32 %v19893_v30, %v20563_v23  ;;  %v11236_v3 = vmul.f32 %v19917_v49, %v20565_v63  ;;  %v21457_v25 = vunpack.c.l.bf16 %v21456_v10  ;;  %v21462_v34 = vld [vmem:[#allocation117_spill] sm:$0xff] }
 0xa5d   : > { %v11706_v13 = vadd.f32 %v21453_v29, %v11382_v62  ;;  %v11699_v48 = vadd.f32 %v21455_v56, %v11375_v21  ;;  %12415 = vst [vmem:[%s18349_s3 + $0x160] sm:$0xff] %v13657_v33  ;;  %12420 = vst [vmem:[%s18349_s3 + $0x188] sm:$0xff] %v13662_v26  ;;  %v11229_v31 = vmul.f32 %v19885_v39, %v20569_v35  ;;  %v21459_v36 = vunpack.c.h.bf16 %v21456_v10  ;;  %v20670_v21 = vpop.f32.mrb[218].mxu0  ;;  %v20672_v33 = vpop.f32.mrb[118].mxu1 }
 0xa5e   : > { %v11824_v61 = vmax.f32 %v11696_v32, 0.0  ;;  %v11709_v53 = vadd.f32 %v21457_v25, %v11385_v45  ;;  %v11239_v54 = vmul.f32 %v19906_v17, %v20571_v14  ;;  %v11376_v23 = vadd.f32 %v19895_v4, %v11226_v8  ;;  %v20677_v45 = vpop.f32.mrb[219].mxu0  ;;  %v20679_v29 = vpop.f32.mrb[119].mxu1  ;;  %v21466_v25 = vld [vmem:[#allocation114_spill] sm:$0xff] }
 0xa5f   : > { %v11834_v2 = vmax.f32 %v11706_v13, 0.0  ;;  %v11827_v11 = vmax.f32 %v11699_v48, 0.0  ;;  %v11386_v27 = vadd.f32 %v19919_v6, %v11236_v3  ;;  %v11379_v38 = vadd.f32 %v19890_v9, %v11229_v31 }
 0xa60   : > { %v13659_v63 = vpack.c.bf16 %v11824_v61, %v11823_v20  ;;  %v11837_v59 = vmax.f32 %v11709_v53, 0.0  ;;  %v11389_v19 = vadd.f32 %v19915_v60, %v11239_v54  ;;  %v21458_v14 = vunpack.c.h.bf16 %v21454_v58 }
 0xa61   : > { %v13664_v35 = vpack.c.bf16 %v11834_v2, %v11833_v0  ;;  %v11710_v18 = vadd.f32 %v21459_v36, %v11386_v27  ;;  %v11230_v47 = vmul.f32 %v19893_v30, %v20576_v43  ;;  %v21461_v57 = vunpack.c.l.bf16 %v21460_v28 }
 0xa62   : > { %v11700_v22 = vadd.f32 %v21458_v14, %v11376_v23  ;;  %12417 = vst [vmem:[%s18349_s3 + $0x170] sm:$0xff] %v13659_v63  ;;  %v21463_v46 = vunpack.c.l.bf16 %v21462_v34  ;;  %v11240_v0 = vmul.f32 %v19917_v49, %v20578_v50  ;;  %v11233_v62 = vmul.f32 %v19885_v39, %v10885_v44  ;;  %v21468_v23 = vld [vmem:[#allocation63_spill] sm:$0xff] }
 0xa63   : > { %v11703_v12 = vadd.f32 %v21461_v57, %v11379_v38  ;;  %12422 = vst [vmem:[%s18349_s3 + $0x198] sm:$0xff] %v13664_v35  ;;  %v11838_v26 = vmax.f32 %v11710_v18, 0.0  ;;  %v11380_v24 = vadd.f32 %v19895_v4, %v11230_v47  ;;  %v11243_v32 = vmul.f32 %v19906_v17, %v11088_v5 }
 0xa64   : > { %v11713_v20 = vadd.f32 %v21463_v46, %v11389_v19  ;;  %v11828_v43 = vmax.f32 %v11700_v22, 0.0  ;;  %v11390_v44 = vadd.f32 %v19919_v6, %v11240_v0  ;;  %v11383_v58 = vadd.f32 %v19890_v9, %v11233_v62  ;;  %v21472_v0 = vld [vmem:[#allocation101_spill] sm:$0xff] }
 0xa65   : > { %v11831_v50 = vmax.f32 %v11703_v12, 0.0  ;;  %v13666_v48 = vpack.c.bf16 %v11838_v26, %v11837_v59  ;;  %v21464_v8 = vunpack.c.h.bf16 %v21460_v28  ;;  %v11393_v61 = vadd.f32 %v19915_v60, %v11243_v32  ;;  %v21474_v26 = vld [vmem:[#allocation64_spill] sm:$0xff] }
 0xa66   : > { %v11841_v13 = vmax.f32 %v11713_v20, 0.0  ;;  %v13661_v56 = vpack.c.bf16 %v11828_v43, %v11827_v11  ;;  %v21465_v5 = vunpack.c.h.bf16 %v21462_v34  ;;  %v21467_v53 = vunpack.c.l.bf16 %v21466_v25 }
 0xa67   : > { %v11704_v3 = vadd.f32 %v21464_v8, %v11380_v24  ;;  %v11234_v54 = vmul.f32 %v19893_v30, %v20610_v41  ;;  %v11244_v2 = vmul.f32 %v19917_v49, %v20612_v55  ;;  %12424 = vst [vmem:[%s18349_s3 + $0x1a8] sm:$0xff] %v13666_v48  ;;  %v21469_v27 = vunpack.c.l.bf16 %v21468_v23  ;;  %v10905_v55 = vpop.f32.mrb[220].mxu0 }
 0xa68   : > { %v11714_v10 = vadd.f32 %v21465_v5, %v11390_v44  ;;  %v11707_v31 = vadd.f32 %v21467_v53, %v11383_v58  ;;  %12419 = vst [vmem:[%s18349_s3 + $0x180] sm:$0xff] %v13661_v56  ;;  %v11237_v59 = vmul.f32 %v19885_v39, %v20617_v1  ;;  %v11247_v38 = vmul.f32 %v19906_v17, %v20619_v51  ;;  %v20706_v28 = vpop.f32.mrb[221].mxu0 }
 0xa69   : > { %v11832_v11 = vmax.f32 %v11704_v3, 0.0  ;;  %v11717_v63 = vadd.f32 %v21469_v27, %v11393_v61  ;;  %v11384_v41 = vadd.f32 %v19895_v4, %v11234_v54  ;;  %v11394_v14 = vadd.f32 %v19919_v6, %v11244_v2  ;;  %v20714_v20 = vpop.f32.mrb[222].mxu0 }
 0xa6a   : > { %v11842_v19 = vmax.f32 %v11714_v10, 0.0  ;;  %v11835_v35 = vmax.f32 %v11707_v31, 0.0  ;;  %v11387_v18 = vadd.f32 %v19890_v9, %v11237_v59  ;;  %v11397_v47 = vadd.f32 %v19915_v60, %v11247_v38  ;;  %v20724_v44 = vpop.f32.mrb[223].mxu0 }
 0xa6b   : > { %v13663_v22 = vpack.c.bf16 %v11832_v11, %v11831_v50  ;;  %v11845_v36 = vmax.f32 %v11717_v63, 0.0  ;;  %v21470_v51 = vunpack.c.h.bf16 %v21466_v25  ;;  %v21471_v12 = vunpack.c.h.bf16 %v21468_v23  ;;  %v21479_v63 = vld [vmem:[#allocation87_spill] sm:$0xff] }
 0xa6c   : > { %v13668_v1 = vpack.c.bf16 %v11842_v19, %v11841_v13  ;;  %v11238_v46 = vmul.f32 %v19893_v30, %v20623_v37  ;;  %v21473_v62 = vunpack.c.l.bf16 %v21472_v0  ;;  %v21475_v24 = vunpack.c.l.bf16 %v21474_v26 }
 0xa6d   : > { %v11708_v57 = vadd.f32 %v21470_v51, %v11384_v41  ;;  %v11718_v34 = vadd.f32 %v21471_v12, %v11394_v14  ;;  %12421 = vst [vmem:[%s18349_s3 + $0x190] sm:$0xff] %v13663_v22  ;;  %v11248_v50 = vmul.f32 %v19917_v49, %v20625_v15  ;;  %v11241_v13 = vmul.f32 %v19885_v39, %v10895_v16  ;;  %v10948_v41 = vpop.f32.mrb[224].mxu0 }
 0xa6e   : > { %v11711_v43 = vadd.f32 %v21473_v62, %v11387_v18  ;;  %v11721_v32 = vadd.f32 %v21475_v24, %v11397_v47  ;;  %12426 = vst [vmem:[%s18349_s3 + $0x1b8] sm:$0xff] %v13668_v1  ;;  %v11388_v56 = vadd.f32 %v19895_v4, %v11238_v46  ;;  %v11251_v48 = vmul.f32 %v19906_v17, %v20650_v40 }
 0xa6f   : > { %v11836_v58 = vmax.f32 %v11708_v57, 0.0  ;;  %v11846_v37 = vmax.f32 %v11718_v34, 0.0  ;;  %v11398_v61 = vadd.f32 %v19919_v6, %v11248_v50  ;;  %v11391_v15 = vadd.f32 %v19890_v9, %v11241_v13  ;;  %v21485_v50 = vld [vmem:[#allocation102_spill] sm:$0xff] }
 0xa70   : > { %v11839_v8 = vmax.f32 %v11711_v43, 0.0  ;;  %v11849_v3 = vmax.f32 %v11721_v32, 0.0  ;;  %v21476_v10 = vunpack.c.h.bf16 %v21472_v0  ;;  %v11401_v53 = vadd.f32 %v19915_v60, %v11251_v48 }
 0xa71   : > { %v13665_v5 = vpack.c.bf16 %v11836_v58, %v11835_v35  ;;  %v13670_v16 = vpack.c.bf16 %v11846_v37, %v11845_v36  ;;  %v21477_v31 = vunpack.c.h.bf16 %v21474_v26  ;;  %v21478_v2 = vunpack.c.l.bf16 %v20163_v52  ;;  %v10950_v36 = vpop.f32.mrb[225].mxu0  ;;  %v21483_v26 = vld [vmem:[#allocation89_spill] sm:$0xff] }
 0xa72   : > { %v11712_v25 = vadd.f32 %v21476_v10, %v11388_v56  ;;  %v11242_v40 = vmul.f32 %v19893_v30, %v20658_v7  ;;  %v11252_v23 = vmul.f32 %v19917_v49, %v20660_v42  ;;  %v21480_v59 = vunpack.c.l.bf16 %v21479_v63  ;;  %v10952_v57 = vpop.f32.mrb[226].mxu0 }
 0xa73   : > { %v11722_v54 = vadd.f32 %v21477_v31, %v11398_v61  ;;  %v11715_v11 = vadd.f32 %v21478_v2, %v11391_v15  ;;  %12423 = vst [vmem:[%s18349_s3 + $0x1a0] sm:$0xff] %v13665_v5  ;;  %12428 = vst [vmem:[%s18349_s3 + $0x1c8] sm:$0xff] %v13670_v16  ;;  %v11245_v19 = vmul.f32 %v19885_v39, %v20670_v21  ;;  %v13535_v21 = vld [vmem:[%s18022_s4 + $0x260] sm:$0xff]  ;;  %v21482_v46 = vunpack.c.h.bf16 %v21479_v63  ;;  %v10954_v43 = vpop.f32.mrb[227].mxu0  ;;  %v13537_v16 = vld [vmem:[%s18022_s4 + $0x270] sm:$0xff] }
 0xa74   : > { %v11840_v27 = vmax.f32 %v11712_v25, 0.0  ;;  %v11725_v38 = vadd.f32 %v21480_v59, %v11401_v53  ;;  %v11255_v35 = vmul.f32 %v19906_v17, %v20672_v33  ;;  %v11392_v22 = vadd.f32 %v19895_v4, %v11242_v40 }
 0xa75   : > { %v11850_v14 = vmax.f32 %v11722_v54, 0.0  ;;  %v11843_v7 = vmax.f32 %v11715_v11, 0.0  ;;  %v11402_v42 = vadd.f32 %v19919_v6, %v11252_v23  ;;  %v11395_v1 = vadd.f32 %v19890_v9, %v11245_v19  ;;  %v10958_v23 = vpop.f32.mrb[228].mxu0 }
 0xa76   : > { %v13667_v18 = vpack.c.bf16 %v11840_v27, %v11839_v8  ;;  %v11853_v47 = vmax.f32 %v11725_v38, 0.0  ;;  %v11405_v51 = vadd.f32 %v19915_v60, %v11255_v35  ;;  %v21481_v33 = vunpack.c.h.bf16 %v20163_v52  ;;  %v10960_v19 = vpop.f32.mrb[229].mxu0 }
 0xa77   : > { %v13672_v12 = vpack.c.bf16 %v11850_v14, %v11849_v3  ;;  %v11726_v0 = vadd.f32 %v21482_v46, %v11402_v42  ;;  %v11246_v62 = vmul.f32 %v19893_v30, %v20677_v45  ;;  %v21484_v24 = vunpack.c.l.bf16 %v21483_v26 }
 0xa78   : > { %v11716_v34 = vadd.f32 %v21481_v33, %v11392_v22  ;;  %12425 = vst [vmem:[%s18349_s3 + $0x1b0] sm:$0xff] %v13667_v18  ;;  %v21486_v13 = vunpack.c.l.bf16 %v21485_v50  ;;  %v11256_v37 = vmul.f32 %v19917_v49, %v20679_v29  ;;  %v11249_v52 = vmul.f32 %v19885_v39, %v10905_v55 }
 0xa79   : > { %v11719_v32 = vadd.f32 %v21484_v24, %v11395_v1  ;;  %12430 = vst [vmem:[%s18349_s3 + $0x1d8] sm:$0xff] %v13672_v12  ;;  %v11854_v48 = vmax.f32 %v11726_v0, 0.0  ;;  %v11396_v8 = vadd.f32 %v19895_v4, %v11246_v62  ;;  %v11595_v45 = vunpack.c.l.bf16 %v13535_v21  ;;  %v13478_v1 = vld [vmem:[%s18022_s4 + $0x98] sm:$0xff] }
 0xa7a   : > { %v11729_v58 = vadd.f32 %v21486_v13, %v11405_v51  ;;  %v11844_v56 = vmax.f32 %v11716_v34, 0.0  ;;  %v11406_v15 = vadd.f32 %v19919_v6, %v11256_v37  ;;  %v11399_v5 = vadd.f32 %v19890_v9, %v11249_v52 }
 0xa7b   : > { %v11847_v3 = vmax.f32 %v11719_v32, 0.0  ;;  %v13674_v29 = vpack.c.bf16 %v11854_v48, %v11853_v47  ;;  %v21487_v55 = vunpack.c.h.bf16 %v21483_v26  ;;  %v11250_v53 = vmul.f32 %v19893_v30, %v20706_v28  ;;  %v13476_v28 = vld [vmem:[%s18022_s4 + $0x88] sm:$0xff] }
 0xa7c   : > { %v11857_v61 = vmax.f32 %v11729_v58, 0.0  ;;  %v13669_v10 = vpack.c.bf16 %v11844_v56, %v11843_v7  ;;  %v21488_v31 = vunpack.c.h.bf16 %v21485_v50  ;;  %v11723_v2 = vadd.f32 %v11595_v45, %v11399_v5  ;;  %v13480_v26 = vld [vmem:[%s18022_s4 + $0xa8] sm:$0xff]  ;;  %v13482_v56 = vld [vmem:[%s18022_s4 + $0xb8] sm:$0xff]  ;;  %s21492_s4 = sld [smem:[#allocation129_spill]] }
 0xa7d   : > { %v11720_v25 = vadd.f32 %v21487_v55, %v11396_v8  ;;  %v11596_v11 = vunpack.c.h.bf16 %v13535_v21  ;;  %v11253_v40 = vmul.f32 %v19885_v39, %v20714_v20  ;;  %12432 = vst [vmem:[%s18349_s3 + $0x1e8] sm:$0xff] %v13674_v29  ;;  %v11400_v63 = vadd.f32 %v19895_v4, %v11250_v53  ;;  %v10962_v39 = vpop.f32.mrb[230].mxu0 }
 0xa7e   : > { %v11730_v54 = vadd.f32 %v21488_v31, %v11406_v15  ;;  %12427 = vst [vmem:[%s18349_s3 + $0x1c0] sm:$0xff] %v13669_v10  ;;  %v11599_v59 = vunpack.c.l.bf16 %v13537_v16  ;;  %v11254_v38 = vmul.f32 %v19893_v30, %v20724_v44  ;;  %v11851_v14 = vmax.f32 %v11723_v2, 0.0  ;;  %v10964_v51 = vpop.f32.mrb[231].mxu0 }
 0xa7f   : > { %v11848_v27 = vmax.f32 %v11720_v25, 0.0  ;;  %v11403_v7 = vadd.f32 %v19890_v9, %v11253_v40  ;;  %v11600_v22 = vunpack.c.h.bf16 %v13537_v16  ;;  %v11724_v42 = vadd.f32 %v11596_v11, %v11400_v63 }
 0xa80   : > { %v11858_v35 = vmax.f32 %v11730_v54, 0.0  ;;  %v11404_v18 = vadd.f32 %v19895_v4, %v11254_v38  ;;  %v11131_v47 = vmul.f32 %v19906_v17, %v10948_v41  ;;  %v11477_v21 = vunpack.c.l.bf16 %v13476_v28 }
 0xa81   : > { %v13671_v20 = vpack.c.bf16 %v11848_v27, %v11847_v3  ;;  %v11727_v44 = vadd.f32 %v11599_v59, %v11403_v7  ;;  %v11132_v12 = vmul.f32 %v19917_v49, %v10950_v36  ;;  %v11852_v33 = vmax.f32 %v11724_v42, 0.0 }
 0xa82   : > { %v13676_v30 = vpack.c.bf16 %v11858_v35, %v11857_v61  ;;  %v11728_v9 = vadd.f32 %v11600_v22, %v11404_v18  ;;  %v11281_v34 = vadd.f32 %v19915_v60, %v11131_v47  ;;  %v11478_v46 = vunpack.c.h.bf16 %v13476_v28  ;;  %s20825_s1 = scalar_lea.hbm %s21492_s4, %s13607_s16 }
 0xa83   : > { %12429 = vst [vmem:[%s18349_s3 + $0x1d0] sm:$0xff] %v13671_v20  ;;  %v11855_v4 = vmax.f32 %v11727_v44, 0.0  ;;  %v11282_v41 = vadd.f32 %v19919_v6, %v11132_v12  ;;  %v11135_v0 = vmul.f32 %v19906_v17, %v10952_v57  ;;  %v11481_v62 = vunpack.c.l.bf16 %v13478_v1 }
 0xa84   : > { %12434 = vst [vmem:[%s18349_s3 + $0x1f8] sm:$0xff] %v13676_v30  ;;  %v13673_v24 = vpack.c.bf16 %v11852_v33, %v11851_v14  ;;  %v11856_v32 = vmax.f32 %v11728_v9, 0.0  ;;  %v11605_v50 = vadd.f32 %v11477_v21, %v11281_v34  ;;  %v11136_v36 = vmul.f32 %v19917_v49, %v10954_v43 }
 0xa85   : > { %v11606_v13 = vadd.f32 %v11478_v46, %v11282_v41  ;;  %v11285_v58 = vadd.f32 %v19915_v60, %v11135_v0  ;;  %v11482_v37 = vunpack.c.h.bf16 %v13478_v1  ;;  %v11139_v52 = vmul.f32 %v19906_v17, %v10958_v23 }
 0xa86   : > { %12431 = vst [vmem:[%s18349_s3 + $0x1e0] sm:$0xff] %v13673_v24  ;;  %v13675_v48 = vpack.c.bf16 %v11856_v32, %v11855_v4  ;;  %v11733_v8 = vmax.f32 %v11605_v50, 0.0  ;;  %v11286_v57 = vadd.f32 %v19919_v6, %v11136_v36  ;;  %v11485_v45 = vunpack.c.l.bf16 %v13480_v26 }
 0xa87   : > { %v11734_v3 = vmax.f32 %v11606_v13, 0.0  ;;  %v11609_v61 = vadd.f32 %v11481_v62, %v11285_v58  ;;  %v11289_v15 = vadd.f32 %v19915_v60, %v11139_v52  ;;  %v11140_v43 = vmul.f32 %v19917_v49, %v10960_v19 }
 0xa88   : > { %12433 = vst [vmem:[%s18349_s3 + $0x1f0] sm:$0xff] %v13675_v48  ;;  %v11610_v5 = vadd.f32 %v11482_v37, %v11286_v57  ;;  %v11486_v16 = vunpack.c.h.bf16 %v13480_v26  ;;  %v11143_v10 = vmul.f32 %v19906_v17, %v10962_v39  ;;  %v11489_v29 = vunpack.c.l.bf16 %v13482_v56 }
 0xa89   : > { %v13614_v55 = vpack.c.bf16 %v11734_v3, %v11733_v8  ;;  %v11737_v25 = vmax.f32 %v11609_v61, 0.0  ;;  %v11613_v53 = vadd.f32 %v11485_v45, %v11289_v15  ;;  %v11290_v31 = vadd.f32 %v19919_v6, %v11140_v43 }
 0xa8a   : > { %v11738_v54 = vmax.f32 %v11610_v5, 0.0  ;;  %v11293_v2 = vadd.f32 %v19915_v60, %v11143_v10  ;;  %v11144_v11 = vmul.f32 %v19917_v49, %v10964_v51  ;;  %v11490_v40 = vunpack.c.h.bf16 %v13482_v56 }
 0xa8b   : > { %12372 = vst [vmem:[%s18349_s3 + $0x8] sm:$0xff] %v13614_v55  ;;  %v11741_v23 = vmax.f32 %v11613_v53, 0.0  ;;  %v11614_v17 = vadd.f32 %v11486_v16, %v11290_v31 }
 0xa8c   : > { %v13616_v27 = vpack.c.bf16 %v11738_v54, %v11737_v25  ;;  %v11617_v63 = vadd.f32 %v11489_v29, %v11293_v2  ;;  %v11294_v59 = vadd.f32 %v19919_v6, %v11144_v11 }
 0xa8d   : > { %v11742_v38 = vmax.f32 %v11614_v17, 0.0 }
 0xa8e   : > { %12374 = vst [vmem:[%s18349_s3 + $0x18] sm:$0xff] %v13616_v27  ;;  %v11745_v28 = vmax.f32 %v11617_v63, 0.0  ;;  %v11618_v19 = vadd.f32 %v11490_v40, %v11294_v59 }
 0xa8f   : > { %v13618_v60 = vpack.c.bf16 %v11742_v38, %v11741_v23 }
 0xa90   : > { %v11746_v49 = vmax.f32 %v11618_v19, 0.0 }
 0xa91   : > { %12376 = vst [vmem:[%s18349_s3 + $0x28] sm:$0xff] %v13618_v60 }
 0xa92   : > { %v13620_v35 = vpack.c.bf16 %v11746_v49, %v11745_v28 }
 0xa94   : > { %12378 = vst [vmem:[%s18349_s3 + $0x38] sm:$0xff] %v13620_v35 }
 0xa95   : > { %17369 = shalt.err (!%p17366_p4)
}
 0xa96   : > { %s17370_s27 = scalar_lea.hbm %s20825_s1, 8192  ;;  %s17374_s16 = scalar_lea.hbm %s21492_s4, 32768 }
 0xa97   : > { %p17371_p6 = scmp.ne.s32.totalorder %s20825_s1, %s17370_s27  ;;  %p17375_p10 = scmp.lt.u32.totalorder %s20825_s1, %s21492_s4 }
 0xa98   : > { %p17376_p0 = scmp.lt.u32.totalorder %s17374_s16, %s17370_s27  ;;  %p17378_p5 = scmp.lt.u32.totalorder %s17370_s27, %s20825_s1 }
 0xa99   : > { %p17372_p8 = pnand %p17371_p6, %p21493_p2 }
 0xa9a   : > { %p17377_p1 = por %p17376_p0, %p17375_p10 }
 0xa9b   : > { %p17373_p12 = pneg %p17372_p8 }
 0xa9c   : > { %p17379_p9 = por %p17378_p5, %p17377_p1 }
 0xa9e   : > { %p17380_p7 = pnand %p17379_p9, %p17373_p12 }
 0xaa0   : > { %17383 = shalt.err (!%p17380_p7)
}
 0xaa1   : > { %s17518_s12 = smov 256   ;;  %s17519_s13 = smov 16  }
 0xaa2   : > { %16031 = dma.vmem_to_hbm [thread:$0]  (%p21493_p2), %s20820_s26, 8192, %s20825_s1, %s20830_s24, %s17518_s12, %s17518_s12, %s17519_s13  }
 0xaa3 PF: > { %s21494_s0 = sld [smem:[#allocation28_spill]]  ;;  %p16088_p11 = scmp.ge.s32.totalorder %s17498_s23, 2 }
 0xaa4   : > { %p21495_p3 = scmp.ne.s32.totalorder %s21024_s2, 0 }
 0xaa6   : > { %p16066_p13 = pnand %p16088_p11, %p21495_p3 }
 0xaa9   : > { %s12467_s10 = sand.u32 1, %s21494_s0  }
 0xaaa   : > { %s12468_s27 = scalar_lea.sflag [#allocation5], %s12467_s10 }
 0xaab   : > { %17453 = dma.done.wait (!%p16066_p13), %s12468_s27, 8192  }
 0xaac   : > { %17455 = vsyncadd (!%p16066_p13), %s12468_s27, 4294959104  ;;  %s31_s23 = sadd.s32 1, %s17498_s23   ;;  %s21496_s13 = sld [smem:[#allocation29_spill]] }
 0xaad   : > { %p28_p4 = scmp.ge.s32.totalorder %s31_s23, 6   ;;  %s21497_s14 = sld [smem:[#allocation30_spill]] }
 0xaae   : > { %s21498_s26 = smov %s21512_s15  ;;  %s21499_s15 = smov %s21514_s28 }
 0xaaf   : > { %s21500_s16 = smov %s17474_s17  ;;  %s21501_s17 = smov %s17478_s18 }
 0xab0   : > { %s21502_s18 = smov %s17900_s11  ;;  %s21503_s19 = smov %s17490_s21 }
 0xab1   : > { %s21504_s20 = smov %s17494_s22  ;;  %s21505_s21 = smov %s21508_s29 }
 0xab2   : > { %s21506_s22 = smov %s21498_s26  ;;  %30 = sbr.rel (!%p28_p4) target bundleno = 21 (0x15), region = 169 }
 0xab9   :  { %12473 = vsyncpa [#allocation4], 1 }
 0xaba   :  { %12475 = vsyncpa [#allocation4 + $0x1], 1 }
 0xabb   :  { %12476 = vsyncpa [#allocation7], 1 }
 0xabc   :  { %12477 = vsyncpa [#allocation10], 1 }
 0xabd   :  { %12478 = vsyncpa [#allocation13], 1 }
 0xabe   :  { %12479 = vsyncpa [#allocation16], 1 }
 0xabf   :  { %12480 = vsyncpa [#allocation19], 1 }
 0xac0   :  { %12481 = vsyncpa [#allocation5], 1 }
 0xac1   :  { %12483 = vsyncpa [#allocation5 + $0x1], 1 }

</bundles_post_ra>
